<compile_context>
chip_gen: v6e
topology: v6e:2x2x1
jax: 0.10.0
libtpu: 0.0.40
codegen_flags: <defaults>
</compile_context>

<pallas_src>
import jax
import jax.numpy as jnp
from jax import lax
from jax.experimental import pallas as pl
from jax.experimental.pallas import tpu as pltpu

LANE = 128


def _round_up(x, m):
    return (x + m - 1) // m * m


def _basic_block_kernel(x_ref, w1_ref, b1_ref, w2_ref, b2_ref,
                        out_ref, pad_ref, patch_ref):
    """One batch element per grid step (channels already padded to Cp=128k).

    x_ref     : (1, H, W, Cp)       input (f32), also the residual
    w1_ref    : (9*Cp, Cp)          conv1 weights, BN1 scale folded, bf16
    b1_ref    : (1, Cp)             folded BN1 bias (f32)
    w2_ref    : (9*Cp, Cp)          conv2 weights, BN2 scale folded, bf16
    b2_ref    : (1, Cp)             folded BN2 bias (f32)
    out_ref   : (1, H, W, Cp)       output (f32)
    pad_ref   : (H+2, W+2, Cp)      bf16 scratch, reused for both convs
    patch_ref : (H*W, 9*Cp)         bf16 im2col scratch, reused for both convs
    """
    H = out_ref.shape[1]
    W = out_ref.shape[2]
    C = out_ref.shape[3]          # = Cp (multiple of 128) inside the kernel

    # Zero only the 1-px halo each step (interior is fully overwritten below).
    # Done every step so it stays correct when the batch axis is sharded
    # across cores ("parallel" semantics).
    pad_ref[0:1, :, :] = jnp.zeros((1, W + 2, C), jnp.bfloat16)
    pad_ref[H + 1:H + 2, :, :] = jnp.zeros((1, W + 2, C), jnp.bfloat16)
    pad_ref[:, 0:1, :] = jnp.zeros((H + 2, 1, C), jnp.bfloat16)
    pad_ref[:, W + 1:W + 2, :] = jnp.zeros((H + 2, 1, C), jnp.bfloat16)

    def fused_conv3x3(w_ref, b_ref):
        # Build the (H*W, 9*C) im2col patch tap-by-tap: each tap is a direct
        # Ref slice of the padded scratch (no full-value materialization),
        # stored at a 128-aligned lane offset of the patch scratch.
        for dy in range(3):
            for dx in range(3):
                t = dy * 3 + dx
                patch_ref[:, t * C:(t + 1) * C] = (
                    pad_ref[dy:dy + H, dx:dx + W, :].reshape(H * W, C))
        # One MXU matmul per conv, contraction K = 9*C, f32 accumulation.
        acc = jnp.dot(patch_ref[...], w_ref[...],
                      preferred_element_type=jnp.float32)
        return acc + b_ref[0]                         # folded BN bias

    # ---- conv1 (3x3, stride 1, pad 1) + folded BN1 + ReLU ----
    pad_ref[1:1 + H, 1:1 + W, :] = x_ref[0].astype(jnp.bfloat16)
    out1 = jnp.maximum(fused_conv3x3(w1_ref, b1_ref), 0.0)

    # ---- conv2 (3x3, stride 1, pad 1) + folded BN2 (reuse the same scratch) ----
    # NOTE: conv2's input is quantized to bf16 here (same precision as the MXU
    # operand cast it would need anyway); checked against the f32 reference.
    pad_ref[1:1 + H, 1:1 + W, :] = out1.reshape(H, W, C).astype(jnp.bfloat16)
    out2 = fused_conv3x3(w2_ref, b2_ref)

    # ---- residual add (exact f32 identity) + final ReLU ----
    res = out2.reshape(H, W, C) + x_ref[0]
    out_ref[0] = jnp.maximum(res, 0.0).astype(out_ref.dtype)


def prepare_params(params):
    """One-time weight preparation (hoisted out of the per-call forward):
    fold the eval-mode BN scale into the conv weights in f32, pad channels to
    the 128-lane width, repack to the (9*Cp, Cp) K-fused layout, cast to bf16.
    """
    C = params["w1"].shape[-1]
    Cp = _round_up(C, LANE)
    # Fold in f32; only the final product is cast to bf16 (safer when
    # running_var is small and the folded scale is large).
    w1 = params["w1"] * params["s1"][None, None, None, :]
    w2 = params["w2"] * params["s2"][None, None, None, :]
    w1p = jnp.zeros((3, 3, Cp, Cp), jnp.float32).at[:, :, :C, :C].set(w1)
    w2p = jnp.zeros((3, 3, Cp, Cp), jnp.float32).at[:, :, :C, :C].set(w2)
    b1p = jnp.zeros((1, Cp), jnp.float32).at[0, :C].set(params["b1"])
    b2p = jnp.zeros((1, Cp), jnp.float32).at[0, :C].set(params["b2"])
    # (3,3,Cin,Cout) -> (9*Cin, Cout); row-major flatten matches the in-kernel
    # tap order k = (dy*3 + dx)*Cp + cin.
    return {
        "w1k": w1p.reshape(9 * Cp, Cp).astype(jnp.bfloat16),
        "w2k": w2p.reshape(9 * Cp, Cp).astype(jnp.bfloat16),
        "b1": b1p,
        "b2": b2p,
    }


@jax.jit
def basic_block_forward(x_nhwc, w1k, b1, w2k, b2):
    """x_nhwc: (N, H, W, C) float32; weights pre-folded/packed by prepare_params.
    Returns (N, H, W, C) float32."""
    N, H, W, C = x_nhwc.shape
    Cp = w1k.shape[-1]
    assert w1k.shape == (9 * Cp, Cp) and Cp % LANE == 0 and Cp >= C, \
        "weights must be prepared with prepare_params (stride=1, inplanes==planes)"

    # Lane-dense channel packing (padded channels carry zero weights & biases,
    # so they stay exactly zero through both convs, the residual and the ReLU).
    if Cp != C:
        x_in = jnp.pad(x_nhwc, ((0, 0), (0, 0), (0, 0), (0, Cp - C)))
    else:
        x_in = x_nhwc

    # Derived VMEM budget: double-buffered I/O blocks + weights + scratch +
    # headroom for the live f32 accumulators; capped below v7x's 64 MiB.
    est = (2 * 2 * H * W * Cp * 4            # x + out blocks, 2 buffers, f32
           + 2 * 2 * 9 * Cp * Cp * 2         # w1 + w2, 2 buffers, bf16
           + (H + 2) * (W + 2) * Cp * 2      # padded-activation scratch (bf16)
           + H * W * 9 * Cp * 2              # im2col patch scratch (bf16)
           + 4 * H * W * Cp * 4)             # headroom: f32 accumulators
    vmem_limit = int(min(max(est + (2 << 20), 16 * 1024 * 1024),
                         64 * 1024 * 1024))

    fn = pl.pallas_call(
        _basic_block_kernel,
        out_shape=jax.ShapeDtypeStruct((N, H, W, Cp), x_nhwc.dtype),
        grid=(N,),
        in_specs=[
            pl.BlockSpec((1, H, W, Cp), lambda n: (n, 0, 0, 0)),   # x / residual
            pl.BlockSpec((9 * Cp, Cp), lambda n: (0, 0)),          # w1 (folded, bf16)
            pl.BlockSpec((1, Cp), lambda n: (0, 0)),               # b1
            pl.BlockSpec((9 * Cp, Cp), lambda n: (0, 0)),          # w2 (folded, bf16)
            pl.BlockSpec((1, Cp), lambda n: (0, 0)),               # b2
        ],
        out_specs=pl.BlockSpec((1, H, W, Cp), lambda n: (n, 0, 0, 0)),
        scratch_shapes=[
            pltpu.VMEM((H + 2, W + 2, Cp), jnp.bfloat16),   # padded activations
            pltpu.VMEM((H * W, 9 * Cp), jnp.bfloat16),      # im2col patch
        ],
        compiler_params=pltpu.CompilerParams(
            dimension_semantics=("parallel",),
            vmem_limit_bytes=vmem_limit),
    )
    out = fn(x_in, w1k, b1, w2k, b2)
    return out[..., :C] if Cp != C else out


def make_params(key, inplanes, planes, eps=1e-5):
    """Deterministic synthetic parameters matching BasicBlock's shapes."""
    ks = jax.random.split(key, 12)
    # PyTorch conv weight layout is OIHW = (Cout, Cin, 3, 3); store as HWIO.
    w1_oihw = jax.random.normal(ks[0], (planes, inplanes, 3, 3), jnp.float32) * 0.1
    w2_oihw = jax.random.normal(ks[1], (planes, planes, 3, 3), jnp.float32) * 0.1
    w1 = jnp.transpose(w1_oihw, (2, 3, 1, 0))  # (3,3,Cin,Cout)
    w2 = jnp.transpose(w2_oihw, (2, 3, 1, 0))

    # BatchNorm (eval-mode folding: y = gamma*(x-mean)/sqrt(var+eps)+beta)
    def bn(kg, kb, km, kv, c):
        gamma = 1.0 + 0.1 * jax.random.normal(kg, (c,), jnp.float32)
        beta = 0.1 * jax.random.normal(kb, (c,), jnp.float32)
        mean = 0.1 * jax.random.normal(km, (c,), jnp.float32)
        var = jnp.abs(jax.random.normal(kv, (c,), jnp.float32)) + 0.5
        scale = gamma / jnp.sqrt(var + eps)
        bias = beta - mean * scale
        return scale, bias

    s1, b1 = bn(ks[2], ks[3], ks[4], ks[5], planes)
    s2, b2 = bn(ks[6], ks[7], ks[8], ks[9], planes)
    return {"w1": w1, "s1": s1, "b1": b1, "w2": w2, "s2": s2, "b2": b2}


def reference_forward(x_nhwc, params):
    """Pure-JAX f32 reference (PyTorch eval-mode semantics) for checking."""
    dn = ("NHWC", "HWIO", "NHWC")
    out = lax.conv_general_dilated(x_nhwc, params["w1"], (1, 1), "SAME",
                                   dimension_numbers=dn)
    out = out * params["s1"] + params["b1"]
    out = jnp.maximum(out, 0.0)
    out = lax.conv_general_dilated(out, params["w2"], (1, 1), "SAME",
                                   dimension_numbers=dn)
    out = out * params["s2"] + params["b2"]
    out = out + x_nhwc
    return jnp.maximum(out, 0.0)


if __name__ == "__main__":
    # NOTE: toy shapes for the correctness check. Per the perf review, real
    # benchmarking should use ResNet-sized blocks (e.g. N>=8, 56x56x64).
    N, C, H, W = 2, 4, 16, 16  # inplanes = planes = 4, stride = 1
    key = jax.random.PRNGKey(0)
    kx, kp = jax.random.split(key)
    # PyTorch input would be NCHW (2,4,16,16); kernel works in NHWC.
    x_nchw = jax.random.normal(kx, (N, C, H, W), jnp.float32)
    x = jnp.transpose(x_nchw, (0, 2, 3, 1))
    params = make_params(kp, C, C)

    # BN fold / bf16 cast / K-fused repack done once, outside the forward.
    prepped = prepare_params(params)

    out = jax.block_until_ready(
        basic_block_forward(x, prepped["w1k"], prepped["b1"],
                            prepped["w2k"], prepped["b2"]))
    ref = jax.block_until_ready(reference_forward(x, params))

    assert out.shape == (N, H, W, C)
    # bf16 MXU operands (and bf16 conv1->conv2 activation) vs f32 reference:
    # check normalized L2 error.
    rel_err = float(jnp.linalg.norm(out - ref) / (jnp.linalg.norm(ref) + 1e-12))
    assert rel_err < 2e-2, f"mismatch vs JAX reference: rel_err={rel_err}"

    print("KERNEL_OK")
</pallas_src>

<mosaic_0001>
module attributes {stable_mosaic.version = 11 : i64} {
  func.func @_basic_block_kernel(%arg0: i32, %arg1: memref<1x16x16x128xf32, #tpu.memory_space<vmem>>, %arg2: memref<1152x128xbf16, #tpu.memory_space<vmem>>, %arg3: memref<1x128xf32, #tpu.memory_space<vmem>>, %arg4: memref<1152x128xbf16, #tpu.memory_space<vmem>>, %arg5: memref<1x128xf32, #tpu.memory_space<vmem>>, %arg6: memref<1x16x16x128xf32, #tpu.memory_space<vmem>>, %arg7: memref<18x18x128xbf16, #tpu.memory_space<vmem>>, %arg8: memref<256x1152xbf16, #tpu.memory_space<vmem>>) attributes {dimension_semantics = [#tpu.dimension_semantics<parallel>], iteration_bounds = array<i64: 2>, scalar_prefetch = 0 : i64, scratch_operands = 2 : i64, tpu.core_type = #tpu.core_type<tc>, window_params = [{transform_indices = @transform_0, window_bounds = array<i64: 1, 16, 16, 128>}, {pipeline_mode = #tpu.pipeline_mode<synchronous>, transform_indices = @transform_1, window_bounds = array<i64: 1152, 128>}, {pipeline_mode = #tpu.pipeline_mode<synchronous>, transform_indices = @transform_2, window_bounds = array<i64: 1, 128>}, {pipeline_mode = #tpu.pipeline_mode<synchronous>, transform_indices = @transform_3, window_bounds = array<i64: 1152, 128>}, {pipeline_mode = #tpu.pipeline_mode<synchronous>, transform_indices = @transform_4, window_bounds = array<i64: 1, 128>}, {transform_indices = @transform_5, window_bounds = array<i64: 1, 16, 16, 128>}]} {
    %cst = arith.constant 0.000000e+00 : bf16
    %0 = vector.broadcast %cst : bf16 to vector<1x18x128xbf16>
    %c0 = arith.constant 0 : index
    %c0_0 = arith.constant 0 : index
    %c0_1 = arith.constant 0 : index
    %1 = vector.load %arg7[%c0, %c0_0, %c0_1] : memref<18x18x128xbf16, #tpu.memory_space<vmem>>, vector<1x18x128xbf16>
    tpu.vector_store %arg7[%c0, %c0_0, %c0_1], %0 {strides = array<i32>} : memref<18x18x128xbf16, #tpu.memory_space<vmem>>, vector<1x18x128xbf16>,
    %cst_2 = arith.constant 0.000000e+00 : bf16
    %2 = vector.broadcast %cst_2 : bf16 to vector<1x18x128xbf16>
    %c17 = arith.constant 17 : index
    %c0_3 = arith.constant 0 : index
    %c0_4 = arith.constant 0 : index
    %3 = vector.load %arg7[%c17, %c0_3, %c0_4] : memref<18x18x128xbf16, #tpu.memory_space<vmem>>, vector<1x18x128xbf16>
    tpu.vector_store %arg7[%c17, %c0_3, %c0_4], %2 {strides = array<i32>} : memref<18x18x128xbf16, #tpu.memory_space<vmem>>, vector<1x18x128xbf16>,
    %cst_5 = arith.constant 0.000000e+00 : bf16
    %4 = vector.broadcast %cst_5 : bf16 to vector<18x1x128xbf16>
    %c0_6 = arith.constant 0 : index
    %c0_7 = arith.constant 0 : index
    %c0_8 = arith.constant 0 : index
    %5 = vector.load %arg7[%c0_6, %c0_7, %c0_8] : memref<18x18x128xbf16, #tpu.memory_space<vmem>>, vector<18x1x128xbf16>
    tpu.vector_store %arg7[%c0_6, %c0_7, %c0_8], %4 {strides = array<i32>} : memref<18x18x128xbf16, #tpu.memory_space<vmem>>, vector<18x1x128xbf16>,
    %cst_9 = arith.constant 0.000000e+00 : bf16
    %6 = vector.broadcast %cst_9 : bf16 to vector<18x1x128xbf16>
    %c0_10 = arith.constant 0 : index
    %c17_11 = arith.constant 17 : index
    %c0_12 = arith.constant 0 : index
    %7 = vector.load %arg7[%c0_10, %c17_11, %c0_12] : memref<18x18x128xbf16, #tpu.memory_space<vmem>>, vector<18x1x128xbf16>
    tpu.vector_store %arg7[%c0_10, %c17_11, %c0_12], %6 {strides = array<i32>} : memref<18x18x128xbf16, #tpu.memory_space<vmem>>, vector<18x1x128xbf16>,
    %c0_13 = arith.constant 0 : index
    %c0_14 = arith.constant 0 : index
    %c0_15 = arith.constant 0 : index
    %c0_16 = arith.constant 0 : index
    %8 = vector.load %arg1[%c0_13, %c0_14, %c0_15, %c0_16] : memref<1x16x16x128xf32, #tpu.memory_space<vmem>>, vector<1x16x16x128xf32>
    %9 = vector.shape_cast %8 : vector<1x16x16x128xf32> to vector<16x16x128xf32>
    %10 = arith.truncf %9 : vector<16x16x128xf32> to vector<16x16x128xbf16>
    %c1 = arith.constant 1 : index
    %c1_17 = arith.constant 1 : index
    %c0_18 = arith.constant 0 : index
    %11 = vector.load %arg7[%c1, %c1_17, %c0_18] : memref<18x18x128xbf16, #tpu.memory_space<vmem>>, vector<16x16x128xbf16>
    tpu.vector_store %arg7[%c1, %c1_17, %c0_18], %10 {strides = array<i32>} : memref<18x18x128xbf16, #tpu.memory_space<vmem>>, vector<16x16x128xbf16>,
    %c0_19 = arith.constant 0 : index
    %c0_20 = arith.constant 0 : index
    %c0_21 = arith.constant 0 : index
    %12 = vector.load %arg7[%c0_19, %c0_20, %c0_21] : memref<18x18x128xbf16, #tpu.memory_space<vmem>>, vector<16x16x128xbf16>
    %13 = vector.shape_cast %12 : vector<16x16x128xbf16> to vector<256x128xbf16>
    %c0_22 = arith.constant 0 : index
    %c0_23 = arith.constant 0 : index
    %14 = vector.load %arg8[%c0_22, %c0_23] : memref<256x1152xbf16, #tpu.memory_space<vmem>>, vector<256x128xbf16>
    tpu.vector_store %arg8[%c0_22, %c0_23], %13 {strides = array<i32>} : memref<256x1152xbf16, #tpu.memory_space<vmem>>, vector<256x128xbf16>,
    %c0_24 = arith.constant 0 : index
    %c1_25 = arith.constant 1 : index
    %c0_26 = arith.constant 0 : index
    %15 = vector.load %arg7[%c0_24, %c1_25, %c0_26] : memref<18x18x128xbf16, #tpu.memory_space<vmem>>, vector<16x16x128xbf16>
    %16 = vector.shape_cast %15 : vector<16x16x128xbf16> to vector<256x128xbf16>
    %c0_27 = arith.constant 0 : index
    %c128 = arith.constant 128 : index
    %17 = vector.load %arg8[%c0_27, %c128] : memref<256x1152xbf16, #tpu.memory_space<vmem>>, vector<256x128xbf16>
    tpu.vector_store %arg8[%c0_27, %c128], %16 {strides = array<i32>} : memref<256x1152xbf16, #tpu.memory_space<vmem>>, vector<256x128xbf16>,
    %c0_28 = arith.constant 0 : index
    %c2 = arith.constant 2 : index
    %c0_29 = arith.constant 0 : index
    %18 = vector.load %arg7[%c0_28, %c2, %c0_29] : memref<18x18x128xbf16, #tpu.memory_space<vmem>>, vector<16x16x128xbf16>
    %19 = vector.shape_cast %18 : vector<16x16x128xbf16> to vector<256x128xbf16>
    %c0_30 = arith.constant 0 : index
    %c256 = arith.constant 256 : index
    %20 = vector.load %arg8[%c0_30, %c256] : memref<256x1152xbf16, #tpu.memory_space<vmem>>, vector<256x128xbf16>
    tpu.vector_store %arg8[%c0_30, %c256], %19 {strides = array<i32>} : memref<256x1152xbf16, #tpu.memory_space<vmem>>, vector<256x128xbf16>,
    %c1_31 = arith.constant 1 : index
    %c0_32 = arith.constant 0 : index
    %c0_33 = arith.constant 0 : index
    %21 = vector.load %arg7[%c1_31, %c0_32, %c0_33] : memref<18x18x128xbf16, #tpu.memory_space<vmem>>, vector<16x16x128xbf16>
    %22 = vector.shape_cast %21 : vector<16x16x128xbf16> to vector<256x128xbf16>
    %c0_34 = arith.constant 0 : index
    %c384 = arith.constant 384 : index
    %23 = vector.load %arg8[%c0_34, %c384] : memref<256x1152xbf16, #tpu.memory_space<vmem>>, vector<256x128xbf16>
    tpu.vector_store %arg8[%c0_34, %c384], %22 {strides = array<i32>} : memref<256x1152xbf16, #tpu.memory_space<vmem>>, vector<256x128xbf16>,
    %c1_35 = arith.constant 1 : index
    %c1_36 = arith.constant 1 : index
    %c0_37 = arith.constant 0 : index
    %24 = vector.load %arg7[%c1_35, %c1_36, %c0_37] : memref<18x18x128xbf16, #tpu.memory_space<vmem>>, vector<16x16x128xbf16>
    %25 = vector.shape_cast %24 : vector<16x16x128xbf16> to vector<256x128xbf16>
    %c0_38 = arith.constant 0 : index
    %c512 = arith.constant 512 : index
    %26 = vector.load %arg8[%c0_38, %c512] : memref<256x1152xbf16, #tpu.memory_space<vmem>>, vector<256x128xbf16>
    tpu.vector_store %arg8[%c0_38, %c512], %25 {strides = array<i32>} : memref<256x1152xbf16, #tpu.memory_space<vmem>>, vector<256x128xbf16>,
    %c1_39 = arith.constant 1 : index
    %c2_40 = arith.constant 2 : index
    %c0_41 = arith.constant 0 : index
    %27 = vector.load %arg7[%c1_39, %c2_40, %c0_41] : memref<18x18x128xbf16, #tpu.memory_space<vmem>>, vector<16x16x128xbf16>
    %28 = vector.shape_cast %27 : vector<16x16x128xbf16> to vector<256x128xbf16>
    %c0_42 = arith.constant 0 : index
    %c640 = arith.constant 640 : index
    %29 = vector.load %arg8[%c0_42, %c640] : memref<256x1152xbf16, #tpu.memory_space<vmem>>, vector<256x128xbf16>
    tpu.vector_store %arg8[%c0_42, %c640], %28 {strides = array<i32>} : memref<256x1152xbf16, #tpu.memory_space<vmem>>, vector<256x128xbf16>,
    %c2_43 = arith.constant 2 : index
    %c0_44 = arith.constant 0 : index
    %c0_45 = arith.constant 0 : index
    %30 = vector.load %arg7[%c2_43, %c0_44, %c0_45] : memref<18x18x128xbf16, #tpu.memory_space<vmem>>, vector<16x16x128xbf16>
    %31 = vector.shape_cast %30 : vector<16x16x128xbf16> to vector<256x128xbf16>
    %c0_46 = arith.constant 0 : index
    %c768 = arith.constant 768 : index
    %32 = vector.load %arg8[%c0_46, %c768] : memref<256x1152xbf16, #tpu.memory_space<vmem>>, vector<256x128xbf16>
    tpu.vector_store %arg8[%c0_46, %c768], %31 {strides = array<i32>} : memref<256x1152xbf16, #tpu.memory_space<vmem>>, vector<256x128xbf16>,
    %c2_47 = arith.constant 2 : index
    %c1_48 = arith.constant 1 : index
    %c0_49 = arith.constant 0 : index
    %33 = vector.load %arg7[%c2_47, %c1_48, %c0_49] : memref<18x18x128xbf16, #tpu.memory_space<vmem>>, vector<16x16x128xbf16>
    %34 = vector.shape_cast %33 : vector<16x16x128xbf16> to vector<256x128xbf16>
    %c0_50 = arith.constant 0 : index
    %c896 = arith.constant 896 : index
    %35 = vector.load %arg8[%c0_50, %c896] : memref<256x1152xbf16, #tpu.memory_space<vmem>>, vector<256x128xbf16>
    tpu.vector_store %arg8[%c0_50, %c896], %34 {strides = array<i32>} : memref<256x1152xbf16, #tpu.memory_space<vmem>>, vector<256x128xbf16>,
    %c2_51 = arith.constant 2 : index
    %c2_52 = arith.constant 2 : index
    %c0_53 = arith.constant 0 : index
    %36 = vector.load %arg7[%c2_51, %c2_52, %c0_53] : memref<18x18x128xbf16, #tpu.memory_space<vmem>>, vector<16x16x128xbf16>
    %37 = vector.shape_cast %36 : vector<16x16x128xbf16> to vector<256x128xbf16>
    %c0_54 = arith.constant 0 : index
    %c1024 = arith.constant 1024 : index
    %38 = vector.load %arg8[%c0_54, %c1024] : memref<256x1152xbf16, #tpu.memory_space<vmem>>, vector<256x128xbf16>
    tpu.vector_store %arg8[%c0_54, %c1024], %37 {strides = array<i32>} : memref<256x1152xbf16, #tpu.memory_space<vmem>>, vector<256x128xbf16>,
    %c0_55 = arith.constant 0 : index
    %c0_56 = arith.constant 0 : index
    %39 = vector.load %arg8[%c0_55, %c0_56] : memref<256x1152xbf16, #tpu.memory_space<vmem>>, vector<256x1152xbf16>
    %c0_57 = arith.constant 0 : index
    %c0_58 = arith.constant 0 : index
    %40 = vector.load %arg2[%c0_57, %c0_58] : memref<1152x128xbf16, #tpu.memory_space<vmem>>, vector<1152x128xbf16>
    %cst_59 = arith.constant dense<0.000000e+00> : vector<256x128xf32>
    %41 = tpu.matmul %39, %40, %cst_59 {dimension_numbers = #tpu.dot_dimension_numbers<[1], [0], [0], [1], [0, 0, 1, 1], [], []>} : vector<256x1152xbf16>, vector<1152x128xbf16>, vector<256x128xf32> -> vector<256x128xf32>
    %c0_60 = arith.constant 0 : index
    %c0_61 = arith.constant 0 : index
    %42 = vector.load %arg3[%c0_60, %c0_61] : memref<1x128xf32, #tpu.memory_space<vmem>>, vector<1x128xf32>
    %43 = vector.shape_cast %42 : vector<1x128xf32> to vector<128xf32>
    %44 = vector.shape_cast %43 : vector<128xf32> to vector<1x128xf32>
    %45 = vector.broadcast %44 : vector<1x128xf32> to vector<256x128xf32>
    %46 = arith.addf %41, %45 : vector<256x128xf32>
    %cst_62 = arith.constant 0.000000e+00 : f32
    %47 = vector.broadcast %cst_62 : f32 to vector<256x128xf32>
    %48 = arith.maximumf %46, %47 : vector<256x128xf32>
    %49 = vector.shape_cast %48 : vector<256x128xf32> to vector<16x16x128xf32>
    %50 = arith.truncf %49 : vector<16x16x128xf32> to vector<16x16x128xbf16>
    %c1_63 = arith.constant 1 : index
    %c1_64 = arith.constant 1 : index
    %c0_65 = arith.constant 0 : index
    %51 = vector.load %arg7[%c1_63, %c1_64, %c0_65] : memref<18x18x128xbf16, #tpu.memory_space<vmem>>, vector<16x16x128xbf16>
    tpu.vector_store %arg7[%c1_63, %c1_64, %c0_65], %50 {strides = array<i32>} : memref<18x18x128xbf16, #tpu.memory_space<vmem>>, vector<16x16x128xbf16>,
    %c0_66 = arith.constant 0 : index
    %c0_67 = arith.constant 0 : index
    %c0_68 = arith.constant 0 : index
    %52 = vector.load %arg7[%c0_66, %c0_67, %c0_68] : memref<18x18x128xbf16, #tpu.memory_space<vmem>>, vector<16x16x128xbf16>
    %53 = vector.shape_cast %52 : vector<16x16x128xbf16> to vector<256x128xbf16>
    %c0_69 = arith.constant 0 : index
    %c0_70 = arith.constant 0 : index
    %54 = vector.load %arg8[%c0_69, %c0_70] : memref<256x1152xbf16, #tpu.memory_space<vmem>>, vector<256x128xbf16>
    tpu.vector_store %arg8[%c0_69, %c0_70], %53 {strides = array<i32>} : memref<256x1152xbf16, #tpu.memory_space<vmem>>, vector<256x128xbf16>,
    %c0_71 = arith.constant 0 : index
    %c1_72 = arith.constant 1 : index
    %c0_73 = arith.constant 0 : index
    %55 = vector.load %arg7[%c0_71, %c1_72, %c0_73] : memref<18x18x128xbf16, #tpu.memory_space<vmem>>, vector<16x16x128xbf16>
    %56 = vector.shape_cast %55 : vector<16x16x128xbf16> to vector<256x128xbf16>
    %c0_74 = arith.constant 0 : index
    %c128_75 = arith.constant 128 : index
    %57 = vector.load %arg8[%c0_74, %c128_75] : memref<256x1152xbf16, #tpu.memory_space<vmem>>, vector<256x128xbf16>
    tpu.vector_store %arg8[%c0_74, %c128_75], %56 {strides = array<i32>} : memref<256x1152xbf16, #tpu.memory_space<vmem>>, vector<256x128xbf16>,
    %c0_76 = arith.constant 0 : index
    %c2_77 = arith.constant 2 : index
    %c0_78 = arith.constant 0 : index
    %58 = vector.load %arg7[%c0_76, %c2_77, %c0_78] : memref<18x18x128xbf16, #tpu.memory_space<vmem>>, vector<16x16x128xbf16>
    %59 = vector.shape_cast %58 : vector<16x16x128xbf16> to vector<256x128xbf16>
    %c0_79 = arith.constant 0 : index
    %c256_80 = arith.constant 256 : index
    %60 = vector.load %arg8[%c0_79, %c256_80] : memref<256x1152xbf16, #tpu.memory_space<vmem>>, vector<256x128xbf16>
    tpu.vector_store %arg8[%c0_79, %c256_80], %59 {strides = array<i32>} : memref<256x1152xbf16, #tpu.memory_space<vmem>>, vector<256x128xbf16>,
    %c1_81 = arith.constant 1 : index
    %c0_82 = arith.constant 0 : index
    %c0_83 = arith.constant 0 : index
    %61 = vector.load %arg7[%c1_81, %c0_82, %c0_83] : memref<18x18x128xbf16, #tpu.memory_space<vmem>>, vector<16x16x128xbf16>
    %62 = vector.shape_cast %61 : vector<16x16x128xbf16> to vector<256x128xbf16>
    %c0_84 = arith.constant 0 : index
    %c384_85 = arith.constant 384 : index
    %63 = vector.load %arg8[%c0_84, %c384_85] : memref<256x1152xbf16, #tpu.memory_space<vmem>>, vector<256x128xbf16>
    tpu.vector_store %arg8[%c0_84, %c384_85], %62 {strides = array<i32>} : memref<256x1152xbf16, #tpu.memory_space<vmem>>, vector<256x128xbf16>,
    %c1_86 = arith.constant 1 : index
    %c1_87 = arith.constant 1 : index
    %c0_88 = arith.constant 0 : index
    %64 = vector.load %arg7[%c1_86, %c1_87, %c0_88] : memref<18x18x128xbf16, #tpu.memory_space<vmem>>, vector<16x16x128xbf16>
    %65 = vector.shape_cast %64 : vector<16x16x128xbf16> to vector<256x128xbf16>
    %c0_89 = arith.constant 0 : index
    %c512_90 = arith.constant 512 : index
    %66 = vector.load %arg8[%c0_89, %c512_90] : memref<256x1152xbf16, #tpu.memory_space<vmem>>, vector<256x128xbf16>
    tpu.vector_store %arg8[%c0_89, %c512_90], %65 {strides = array<i32>} : memref<256x1152xbf16, #tpu.memory_space<vmem>>, vector<256x128xbf16>,
    %c1_91 = arith.constant 1 : index
    %c2_92 = arith.constant 2 : index
    %c0_93 = arith.constant 0 : index
    %67 = vector.load %arg7[%c1_91, %c2_92, %c0_93] : memref<18x18x128xbf16, #tpu.memory_space<vmem>>, vector<16x16x128xbf16>
    %68 = vector.shape_cast %67 : vector<16x16x128xbf16> to vector<256x128xbf16>
    %c0_94 = arith.constant 0 : index
    %c640_95 = arith.constant 640 : index
    %69 = vector.load %arg8[%c0_94, %c640_95] : memref<256x1152xbf16, #tpu.memory_space<vmem>>, vector<256x128xbf16>
    tpu.vector_store %arg8[%c0_94, %c640_95], %68 {strides = array<i32>} : memref<256x1152xbf16, #tpu.memory_space<vmem>>, vector<256x128xbf16>,
    %c2_96 = arith.constant 2 : index
    %c0_97 = arith.constant 0 : index
    %c0_98 = arith.constant 0 : index
    %70 = vector.load %arg7[%c2_96, %c0_97, %c0_98] : memref<18x18x128xbf16, #tpu.memory_space<vmem>>, vector<16x16x128xbf16>
    %71 = vector.shape_cast %70 : vector<16x16x128xbf16> to vector<256x128xbf16>
    %c0_99 = arith.constant 0 : index
    %c768_100 = arith.constant 768 : index
    %72 = vector.load %arg8[%c0_99, %c768_100] : memref<256x1152xbf16, #tpu.memory_space<vmem>>, vector<256x128xbf16>
    tpu.vector_store %arg8[%c0_99, %c768_100], %71 {strides = array<i32>} : memref<256x1152xbf16, #tpu.memory_space<vmem>>, vector<256x128xbf16>,
    %c2_101 = arith.constant 2 : index
    %c1_102 = arith.constant 1 : index
    %c0_103 = arith.constant 0 : index
    %73 = vector.load %arg7[%c2_101, %c1_102, %c0_103] : memref<18x18x128xbf16, #tpu.memory_space<vmem>>, vector<16x16x128xbf16>
    %74 = vector.shape_cast %73 : vector<16x16x128xbf16> to vector<256x128xbf16>
    %c0_104 = arith.constant 0 : index
    %c896_105 = arith.constant 896 : index
    %75 = vector.load %arg8[%c0_104, %c896_105] : memref<256x1152xbf16, #tpu.memory_space<vmem>>, vector<256x128xbf16>
    tpu.vector_store %arg8[%c0_104, %c896_105], %74 {strides = array<i32>} : memref<256x1152xbf16, #tpu.memory_space<vmem>>, vector<256x128xbf16>,
    %c2_106 = arith.constant 2 : index
    %c2_107 = arith.constant 2 : index
    %c0_108 = arith.constant 0 : index
    %76 = vector.load %arg7[%c2_106, %c2_107, %c0_108] : memref<18x18x128xbf16, #tpu.memory_space<vmem>>, vector<16x16x128xbf16>
    %77 = vector.shape_cast %76 : vector<16x16x128xbf16> to vector<256x128xbf16>
    %c0_109 = arith.constant 0 : index
    %c1024_110 = arith.constant 1024 : index
    %78 = vector.load %arg8[%c0_109, %c1024_110] : memref<256x1152xbf16, #tpu.memory_space<vmem>>, vector<256x128xbf16>
    tpu.vector_store %arg8[%c0_109, %c1024_110], %77 {strides = array<i32>} : memref<256x1152xbf16, #tpu.memory_space<vmem>>, vector<256x128xbf16>,
    %c0_111 = arith.constant 0 : index
    %c0_112 = arith.constant 0 : index
    %79 = vector.load %arg8[%c0_111, %c0_112] : memref<256x1152xbf16, #tpu.memory_space<vmem>>, vector<256x1152xbf16>
    %c0_113 = arith.constant 0 : index
    %c0_114 = arith.constant 0 : index
    %80 = vector.load %arg4[%c0_113, %c0_114] : memref<1152x128xbf16, #tpu.memory_space<vmem>>, vector<1152x128xbf16>
    %cst_115 = arith.constant dense<0.000000e+00> : vector<256x128xf32>
    %81 = tpu.matmul %79, %80, %cst_115 {dimension_numbers = #tpu.dot_dimension_numbers<[1], [0], [0], [1], [0, 0, 1, 1], [], []>} : vector<256x1152xbf16>, vector<1152x128xbf16>, vector<256x128xf32> -> vector<256x128xf32>
    %c0_116 = arith.constant 0 : index
    %c0_117 = arith.constant 0 : index
    %82 = vector.load %arg5[%c0_116, %c0_117] : memref<1x128xf32, #tpu.memory_space<vmem>>, vector<1x128xf32>
    %83 = vector.shape_cast %82 : vector<1x128xf32> to vector<128xf32>
    %84 = vector.shape_cast %83 : vector<128xf32> to vector<1x128xf32>
    %85 = vector.broadcast %84 : vector<1x128xf32> to vector<256x128xf32>
    %86 = arith.addf %81, %85 : vector<256x128xf32>
    %87 = vector.shape_cast %86 : vector<256x128xf32> to vector<16x16x128xf32>
    %c0_118 = arith.constant 0 : index
    %c0_119 = arith.constant 0 : index
    %c0_120 = arith.constant 0 : index
    %c0_121 = arith.constant 0 : index
    %88 = vector.load %arg1[%c0_118, %c0_119, %c0_120, %c0_121] : memref<1x16x16x128xf32, #tpu.memory_space<vmem>>, vector<1x16x16x128xf32>
    %89 = vector.shape_cast %88 : vector<1x16x16x128xf32> to vector<16x16x128xf32>
    %90 = arith.addf %87, %89 : vector<16x16x128xf32>
    %cst_122 = arith.constant 0.000000e+00 : f32
    %91 = vector.broadcast %cst_122 : f32 to vector<16x16x128xf32>
    %92 = arith.maximumf %90, %91 : vector<16x16x128xf32>
    %c0_123 = arith.constant 0 : index
    %c0_124 = arith.constant 0 : index
    %c0_125 = arith.constant 0 : index
    %c0_126 = arith.constant 0 : index
    %93 = vector.load %arg6[%c0_123, %c0_124, %c0_125, %c0_126] : memref<1x16x16x128xf32, #tpu.memory_space<vmem>>, vector<1x16x16x128xf32>
    %94 = vector.shape_cast %93 : vector<1x16x16x128xf32> to vector<16x16x128xf32>
    %95 = vector.shape_cast %92 : vector<16x16x128xf32> to vector<1x16x16x128xf32>
    tpu.vector_store %arg6[%c0_123, %c0_124, %c0_125, %c0_126], %95 {strides = array<i32>} : memref<1x16x16x128xf32, #tpu.memory_space<vmem>>, vector<1x16x16x128xf32>,
    return
  }
  func.func @transform_0(%arg0: i32) -> (i32, i32, i32, i32) {
    %c0_i32 = arith.constant 0 : i32
    %c0_i32_0 = arith.constant 0 : i32
    %c0_i32_1 = arith.constant 0 : i32
    %c0_i32_2 = arith.constant 0 : i32
    return %arg0, %c0_i32, %c0_i32_0, %c0_i32_1 : i32, i32, i32, i32
  }
  func.func @transform_1(%arg0: i32) -> (i32, i32) {
    %c0_i32 = arith.constant 0 : i32
    %c0_i32_0 = arith.constant 0 : i32
    %c0_i32_1 = arith.constant 0 : i32
    return %c0_i32, %c0_i32_0 : i32, i32
  }
  func.func @transform_2(%arg0: i32) -> (i32, i32) {
    %c0_i32 = arith.constant 0 : i32
    %c0_i32_0 = arith.constant 0 : i32
    %c0_i32_1 = arith.constant 0 : i32
    return %c0_i32, %c0_i32_0 : i32, i32
  }
  func.func @transform_3(%arg0: i32) -> (i32, i32) {
    %c0_i32 = arith.constant 0 : i32
    %c0_i32_0 = arith.constant 0 : i32
    %c0_i32_1 = arith.constant 0 : i32
    return %c0_i32, %c0_i32_0 : i32, i32
  }
  func.func @transform_4(%arg0: i32) -> (i32, i32) {
    %c0_i32 = arith.constant 0 : i32
    %c0_i32_0 = arith.constant 0 : i32
    %c0_i32_1 = arith.constant 0 : i32
    return %c0_i32, %c0_i32_0 : i32, i32
  }
  func.func @transform_5(%arg0: i32) -> (i32, i32, i32, i32) {
    %c0_i32 = arith.constant 0 : i32
    %c0_i32_0 = arith.constant 0 : i32
    %c0_i32_1 = arith.constant 0 : i32
    %c0_i32_2 = arith.constant 0 : i32
    return %arg0, %c0_i32, %c0_i32_0, %c0_i32_1 : i32, i32, i32, i32
  }
}

</mosaic_0001>

<bundles_post_ra>
// kernel: basic_block_forward.1
= control target key start
LH: loop header
LB: loop body
LE: loop exit
PB: predicated region body
PF: predicated region fallthrough
CT: control target
= control target key end

     0   :  { %s13540_s18 = smov 0   ;;  %s16983_s0 = inlined_call_operand.vmem [shape: f32[2,16,16,128], index: 0, kind: input, shape index: {}]   ;;  %s16984_s1 = inlined_call_operand.vmem [shape: bf16[1152,128], index: 1, kind: input, shape index: {}]   ;;  %s16985_s2 = inlined_call_operand.vmem [shape: f32[1,128], index: 2, kind: input, shape index: {}]   ;;  %s16986_s3 = inlined_call_operand.vmem [shape: bf16[1152,128], index: 3, kind: input, shape index: {}]   ;;  %s16987_s4 = inlined_call_operand.vmem [shape: f32[1,128], index: 4, kind: input, shape index: {}]   ;;  %s16988_s5 = inlined_call_operand.vmem [shape: f32[2,16,16,128], index: 5, kind: output, shape index: {}]  }
   0x1 LB: > { %s11221_s19 = sadd.s32 4294967295, %s13507_s18   ;;  %p11225_p0 = scmp.ge.s32.totalorder %s13507_s18, 1  ;;  %s13507_s18 = sphi %s13540_s18, %s15_s18  }
   0x2   : > { %p187_p1 = scmp.lt.s32.totalorder %s13507_s18, 3 }
   0x4   : > { %p188_p2 = pnand %p11225_p0, %p187_p1 }
   0x6   : > { %191 = sbr.rel (%p188_p2) target bundleno = 1417 (0x589), region = 40 }
   0xb   : > { %v12941_v0 = vld [vmem:[%s16984_s1 + $0x78] sm:$0xff]   ;;  %v13509_v2 = vmov 0   ;;  %v12944_v4 = vld [vmem:[%s16984_s1 + $0x70] sm:$0xff]   ;;  %v12948_v8 = vld [vmem:[%s16984_s1 + $0x68] sm:$0xff]   ;;  %p215_p3 = scmp.lt.s32.totalorder %s11221_s19, 1  ;;  %vm233_vm0 = vcmask 1040384  }
   0xc   : > { %v12942_v1 = vld [vmem:[%s16984_s1 + $0x38] sm:$0xff]   ;;  %226 = vst [vmem:[#allocation2] sm:$0xf] %v13509_v2  ;;  %227 = vst [vmem:[#allocation2 + $0x4] sm:$0xf] %v13509_v2  ;;  %11892 = vmatprep.subr.bf16.mxu0 %v12941_v0  ;;  %v12946_v6 = vld [vmem:[%s16984_s1 + $0x30] sm:$0xff]  }
   0xd   : > { %228 = vst [vmem:[#allocation2 + $0x8] sm:$0x1] %v13509_v2  ;;  %230 = vst [vmem:[#allocation2 + $0xcc] sm:$0xf] %v13509_v2  ;;  %v12943_v3 = vld [vmem:[%s16984_s1 + $0xf8] sm:$0xff]   ;;  %11893 = vmatpush3.bf16.msra.mxu0 %v12942_v1  ;;  %v12947_v7 = vld [vmem:[%s16984_s1 + $0xf0] sm:$0xff]  }
   0xe   : > { %231 = vst [vmem:[#allocation2 + $0xd0] sm:$0xf] %v13509_v2  ;;  %232 = vst [vmem:[#allocation2 + $0xd4] sm:$0x1] %v13509_v2  ;;  %12004 = vmatprep.subr.bf16.mxu1 %v12943_v3  ;;  %v12945_v5 = vld [vmem:[%s16984_s1 + $0xb8] sm:$0xff]   ;;  %11894 = vmatprep.subr.bf16.mxu0 %v12944_v4  ;;  %v12949_v9 = vld [vmem:[%s16984_s1 + $0xb0] sm:$0xff]  }
   0xf   : > { %12005 = vmatpush3.bf16.msra.mxu1 %v12945_v5  ;;  %v12950_v10 = vld [vmem:[%s16984_s1 + $0x28] sm:$0xff]   ;;  %v12952_v12 = vld [vmem:[%s16984_s1 + $0x60] sm:$0xff]   ;;  %v12956_v16 = vld [vmem:[%s16984_s1 + $0x58] sm:$0xff]   ;;  %s17182_s19 = smov (!%p215_p3, %s11221_s19), 1  ;;  %vm234_vm1 = vsmask.f32 256 }
  0x10   : > { %12006 = vmatprep.subr.bf16.mxu1 %v12947_v7  ;;  %v12951_v11 = vld [vmem:[%s16984_s1 + $0xe8] sm:$0xff]   ;;  %v12954_v14 = vld [vmem:[%s16984_s1 + $0x20] sm:$0xff]   ;;  %v12958_v18 = vld [vmem:[%s16984_s1 + $0x18] sm:$0xff]   ;;  %vm290_vm2 = vsmask.f32 7938  ;;  %v17003_v33 = vmov 0 }
  0x11   : > { %11895 = vmatpush3.bf16.msra.mxu0 %v12946_v6  ;;  %v12953_v13 = vld [vmem:[%s16984_s1 + $0xa8] sm:$0xff]   ;;  %v12955_v15 = vld [vmem:[%s16984_s1 + $0xe0] sm:$0xff]   ;;  %v12959_v19 = vld [vmem:[%s16984_s1 + $0xd8] sm:$0xff]   ;;  %s11826_s11 = sshll.u32 %s17182_s19, 8  ;;  %v17006_v37 = vmov 0  ;;  %vm797_vm6 = vcmask 1043456  }
  0x12   : > { %11896 = vmatprep.subr.bf16.mxu0 %v12948_v8  ;;  %v12957_v17 = vld [vmem:[%s16984_s1 + $0xa0] sm:$0xff]   ;;  %v12960_v20 = vld [vmem:[%s16984_s1 + $0x50] sm:$0xff]   ;;  %v12961_v21 = vld [vmem:[%s16984_s1 + $0x98] sm:$0xff]   ;;  %vm1023_vm5 = vsmask.f32 3328  ;;  %s13673_s20 = scalar_lea.vmem %s16983_s0, %s11826_s11  ;;  %vm1570_vm8 = vcmask 1042432   ;;  %s16813_s24 = scalar_lea.vmem %s16988_s5, %s11826_s11 }
  0x13   : > { %12007 = vmatpush3.bf16.msra.mxu1 %v12949_v9  ;;  %v12962_v22 = vld [vmem:[%s16984_s1 + $0x10] sm:$0xff]   ;;  %v12964_v24 = vld [vmem:[%s16984_s1 + $0x48] sm:$0xff]   ;;  %v12968_v28 = vld [vmem:[%s16984_s1 + $0x40] sm:$0xff]   ;;  %vm1024_vm7 = vsmask.f32 7440  ;;  %vm1571_vm10 = vcmask 1046532  }
  0x14   : > { %12008 = vmatprep.subr.bf16.mxu1 %v12951_v11  ;;  %v12963_v23 = vld [vmem:[%s16984_s1 + $0xd0] sm:$0xff]   ;;  %v12966_v26 = vld [vmem:[%s16984_s1 + $0x8] sm:$0xff]   ;;  %v12970_v30 = vld [vmem:[%s16984_s1] sm:$0xff]   ;;  %vm474_vm9 = vsmask.f32 4368  ;;  %v17009_v7 = vmov 0 }
  0x15   : > { %11897 = vmatpush3.bf16.msra.mxu0 %v12950_v10  ;;  %v12965_v25 = vld [vmem:[%s16984_s1 + $0x90] sm:$0xff]   ;;  %v12967_v27 = vld [vmem:[%s16984_s1 + $0xc8] sm:$0xff]   ;;  %v12971_v31 = vld [vmem:[%s16984_s1 + $0xc0] sm:$0xff]  }
  0x16   : > { %11898 = vmatprep.subr.bf16.mxu0 %v12952_v12  ;;  %v12969_v29 = vld [vmem:[%s16984_s1 + $0x88] sm:$0xff]   ;;  %v236_v32 = vld [vmem:[#allocation2] sm:$0x1]  ;;  %vm13648_vm3 = vmand %vm233_vm0, %vm234_vm1 }
  0x17   : > { %12009 = vmatpush3.bf16.msra.mxu1 %v12953_v13  ;;  %v17004_v33 = vsel %vm13648_vm3, 4294967295, %v17003_v33  ;;  %v292_v34 = vld [vmem:[#allocation2 + $0x8] sm:$0x1]  ;;  %v912_v35 = vld [vmem:[#allocation2 + $0x4] sm:$0xf]  ;;  %v237_v36 = vsel %vm13648_vm3, 0, %v236_v32  ;;  %vm13656_vm4 = vmand %vm233_vm0, %vm290_vm2 }
  0x18   : > { %12010 = vmatprep.subr.bf16.mxu1 %v12955_v15  ;;  %17005 = vst [vmem:[#allocation4_spill] sm:$0xff] %v17004_v33  ;;  %v17007_v37 = vsel %vm13656_vm4, 4294967295, %v17006_v37  ;;  %944 = vst [vmem:[#allocation3 + $0x24] sm:$0xf] %v912_v35  ;;  %v976_v38 = vld [vmem:[#allocation2 + $0x4] sm:$0xf] }
  0x19   : > { %11899 = vmatpush3.bf16.msra.mxu0 %v12954_v14  ;;  %17008 = vst [vmem:[#allocation5_spill] sm:$0xff] %v17007_v37  ;;  %v12974_v39 = vld [vmem:[%s16984_s1 + $0x80] sm:$0xff]   ;;  %238 = vst [vmem:[#allocation2] sm:$0x1] %v237_v36  ;;  %v293_v40 = vsel %vm13656_vm4, 0, %v292_v34  ;;  %v1036_v41 = vshll.u32 %v976_v38, 16 }
  0x1a   : > { %11900 = vmatprep.subr.bf16.mxu0 %v12956_v16  ;;  %v1040_v42 = vshrl.u32 %v976_v38, 16  ;;  %v12975_v43 = vld [vmem:[%s16984_s1 + $0x178] sm:$0xff]   ;;  %294 = vst [vmem:[#allocation2 + $0x8] sm:$0x1] %v293_v40  ;;  %v6323_v44 = vld [vmem:[#allocation2 + $0x4] sm:$0xf]  ;;  %vm13689_vm11 = vmor %vm1023_vm5, %vm1024_vm7 }
  0x1b   : > { %12011 = vmatpush3.bf16.msra.mxu1 %v12957_v17  ;;  %v13675_v45 = vrot.slane %v1036_v41, 5  ;;  %v6380_v47 = vshll.u32 %v6323_v44, 16  ;;  %v6384_v48 = vshrl.u32 %v6323_v44, 16  ;;  %v346_v52 = vld [vmem:[%s13673_s20] sm:$0xff]  ;;  %v239_v53 = vld [vmem:[#allocation2 + $0xc] sm:$0x1]  ;;  %vm13697_vm12 = vmor %vm1570_vm8, %vm1571_vm10 }
  0x1c   : > { %12012 = vmatprep.subr.bf16.mxu1 %v12959_v19  ;;  %v1042_v46 = vrot.slane %v1040_v42, 4  ;;  %v347_v54 = vld [vmem:[%s13673_s20 + $0x8] sm:$0xff]  ;;  %v240_v56 = vsel %vm13648_vm3, 0, %v239_v53  ;;  %v11828_v57 = vpack.c.bf16 %v346_v52, %v346_v52  ;;  %v17010_v7 = vsel %vm13689_vm11, 4294967295, %v17009_v7  ;;  %v1474_v12 = vld [vmem:[#allocation2] sm:$0xe]  ;;  %vm13705_vm13 = vmand %vm797_vm6, %vm290_vm2 }
  0x1d   : > { %11901 = vmatpush3.bf16.msra.mxu0 %v12958_v18  ;;  %v13678_v50 = vrot.slane %v6380_v47, 5  ;;  %v6386_v51 = vrot.slane %v6384_v48, 4  ;;  %241 = vst [vmem:[#allocation2 + $0xc] sm:$0x1] %v240_v56  ;;  %v11829_v1 = vpack.c.bf16 %v347_v54, %v347_v54  ;;  %17011 = vst [vmem:[#allocation6_spill] sm:$0xff] %v17010_v7  ;;  %v348_v38 = vld [vmem:[%s13673_s20 + $0x10] sm:$0xff] }
  0x1e   : > { %11902 = vmatprep.subr.bf16.mxu0 %v12960_v20  ;;  %v1043_v49 = vor.u32 %v1042_v46, %v13675_v45  ;;  %v477_v11 = vshrl.u32 %v11828_v57, 16  ;;  %v480_v16 = vshll.u32 %v11828_v57, 16  ;;  %v1475_v17 = vld [vmem:[#allocation2 + $0x4] sm:$0xf]  ;;  %v295_v35 = vld [vmem:[#allocation2 + $0x14] sm:$0x1]  ;;  %vm13724_vm14 = vmor %vm234_vm1, %vm474_vm9 }
  0x1f   : > { %12013 = vmatpush3.bf16.msra.mxu1 %v12961_v21  ;;  %v6387_v55 = vor.u32 %v6386_v51, %v13678_v50  ;;  %v485_v21 = vshrl.u32 %v11829_v1, 16  ;;  %v242_v36 = vld [vmem:[#allocation2 + $0x18] sm:$0x1]  ;;  %v1575_v41 = vrot.slane %v1475_v17, 5  ;;  %v298_v44 = vld [vmem:[#allocation2 + $0x20] sm:$0x1] }
  0x20   : > { %12014 = vmatprep.subr.bf16.mxu1 %v12963_v23  ;;  %v911_v58 = vld [vmem:[#allocation2] sm:$0xf]  ;;  %v1044_v60 = vrot.slane %v1043_v49, 4  ;;  %v479_v20 = vrot.slane %v477_v11, 7  ;;  %v17018_v47 = vmov 0  ;;  %v12976_v17 = vld [vmem:[%s16984_s1 + $0x138] sm:$0xff]  }
  0x21   : > { %11903 = vmatpush3.bf16.msra.mxu0 %v12962_v22  ;;  %v975_v59 = vld [vmem:[#allocation2] sm:$0xf]  ;;  %943 = vst [vmem:[#allocation3] sm:$0xf] %v911_v58  ;;  %v977_v61 = vld [vmem:[#allocation2 + $0x8] sm:$0x1] }
  0x22   : > { %11904 = vmatprep.subr.bf16.mxu0 %v12964_v24  ;;  %v1027_v62 = vshrl.u32 %v975_v59, 16  ;;  %v1030_v63 = vshll.u32 %v975_v59, 16  ;;  %v6322_v0 = vld [vmem:[#allocation2] sm:$0xf]  ;;  %v1046_v2 = vshll.u32 %v977_v61, 16  ;;  %v13685_v6 = vrot.slane %v6387_v55, 4 }
  0x23   : > { %12015 = vmatpush3.bf16.msra.mxu1 %v12965_v25  ;;  %v6324_v3 = vld [vmem:[#allocation2 + $0x8] sm:$0x1]  ;;  %v6371_v4 = vshrl.u32 %v6322_v0, 16  ;;  %v6374_v5 = vshll.u32 %v6322_v0, 16  ;;  %v17012_v22 = vmov 0  ;;  %v17015_v24 = vmov 0 }
  0x24   : > { %12016 = vmatprep.subr.bf16.mxu1 %v12967_v27  ;;  %v1029_v8 = vrot.slane %v1027_v62, 4  ;;  %v1032_v9 = vrot.slane %v1030_v63, 5  ;;  %v6390_v10 = vshll.u32 %v6324_v3, 16  ;;  %v1048_v13 = vrot.slane %v1046_v2, 5  ;;  %v13701_v23 = vld [vmem:[#allocation2] sm:$0xe] }
  0x25   : > { %11905 = vmatpush3.bf16.msra.mxu0 %v12966_v26  ;;  %v6373_v14 = vrot.slane %v6371_v4, 4  ;;  %v6376_v15 = vrot.slane %v6374_v5, 5  ;;  %v17013_v22 = vsel %vm13697_vm12, 4294967295, %v17012_v22  ;;  %v17016_v24 = vsel %vm13705_vm13, 4294967295, %v17015_v24  ;;  %v799_v34 = vld [vmem:[#allocation2 + $0xc] sm:$0xf] }
  0x26   : > { %11906 = vmatprep.subr.bf16.mxu0 %v12968_v28  ;;  %v1033_v18 = vor.u32 %v1032_v9, %v1029_v8  ;;  %v13693_v19 = vrot.slane %v6390_v10, 5  ;;  %17014 = vst [vmem:[#allocation7_spill] sm:$0xff] %v17013_v22  ;;  %17017 = vst [vmem:[#allocation8_spill] sm:$0xff] %v17016_v24  ;;  %v1049_v25 = vsel %vm13689_vm11, %v1044_v60, %v1048_v13  ;;  %v488_v27 = vshll.u32 %v11829_v1, 16  ;;  %v1476_v28 = vld [vmem:[#allocation2 + $0x8] sm:$0x1] }
  0x27   : > { %12017 = vmatpush3.bf16.msra.mxu1 %v12969_v29  ;;  %v6377_v26 = vor.u32 %v6376_v15, %v6373_v14  ;;  %v11262_v29 = vrot.slane %v1474_v12, 9  ;;  %1443 = vst [vmem:[#allocation3 + $0x28] sm:$0xf] %v1049_v25  ;;  %v482_v32 = vor.u32 %v480_v16, %v479_v20  ;;  %v13714_v40 = vrot.slane %v485_v21, 7  ;;  %v13716_v42 = vld [vmem:[#allocation2 + $0x8] sm:$0x1] }
  0x28   : > { %12018 = vmatprep.subr.bf16.mxu1 %v12971_v31  ;;  %v1034_v31 = vrot.slane %v1033_v18, 4  ;;  %v17019_v47 = vsel %vm13724_vm14, 4294967295, %v17018_v47  ;;  %v1578_v49 = vrot.slane %v1476_v28, 5  ;;  %v11559_v54 = vrot.slane %v13701_v23, 9  ;;  %v245_v59 = vld [vmem:[#allocation2 + $0x24] sm:$0x1] }
  0x29   : > { %11907 = vmatpush3.bf16.msra.mxu0 %v12970_v30  ;;  %v13711_v30 = vld [vmem:[#allocation2 + $0x4] sm:$0xf]  ;;  %17020 = vst [vmem:[#allocation9_spill] sm:$0xff] %v17019_v47  ;;  %v800_v48 = vsel %vm13705_vm13, %v482_v32, %v799_v34  ;;  %v6378_v52 = vrot.slane %v6377_v26, 4  ;;  %v490_v53 = vor.u32 %v488_v27, %v13714_v40  ;;  %v6393_v55 = vsel %vm13689_vm11, %v13685_v6, %v13693_v19  ;;  %v301_v1 = vld [vmem:[#allocation2 + $0x2c] sm:$0x1] }
  0x2a   : > { %12116 = vmatprep.subr.bf16.mxu0 %v12975_v43  ;;  %v349_v43 = vld [vmem:[%s13673_s20 + $0x18] sm:$0xff]  ;;  %v1039_v46 = vsel %vm13689_vm11, %v1034_v31, %v13675_v45  ;;  %v6916_v51 = vrot.slane %v13711_v30, 5  ;;  %801 = vst [vmem:[#allocation2 + $0xc] sm:$0xf] %v800_v48  ;;  %v1576_v45 = vsel %vm13697_vm12, %v11262_v29, %v1575_v41  ;;  %v492_v56 = vrot.slane %v13714_v40, 4  ;;  %v350_v60 = vld [vmem:[%s13673_s20 + $0x20] sm:$0xff] }
  0x2b   : > { %12019 = vmatpush3.bf16.msra.mxu1 %v12974_v39  ;;  %v483_v39 = vrot.slane %v479_v20, 4  ;;  %1442 = vst [vmem:[#allocation3 + $0x4] sm:$0xf] %v1039_v46  ;;  %v1577_v57 = vrot.slane %v1575_v41, 4  ;;  %1717 = vst [vmem:[#allocation3 + $0x8] sm:$0xf] %v1576_v45  ;;  %v11830_v0 = vpack.c.bf16 %v348_v38, %v348_v38  ;;  %v11831_v6 = vpack.c.bf16 %v349_v43, %v349_v43 }
  0x2c   : > { %v13740_v58 = vrot.slane %v6916_v51, 4  ;;  %v296_v62 = vsel %vm13656_vm4, 0, %v295_v35  ;;  %v243_v63 = vsel %vm13648_vm3, 0, %v242_v36  ;;  %v6258_v2 = vld [vmem:[#allocation2] sm:$0xf]  ;;  %v6919_v5 = vrot.slane %v13716_v42, 5 }
  0x2d   : > { %v491_v61 = vsel %vm13724_vm14, %v483_v39, %v490_v53  ;;  %v6259_v3 = vld [vmem:[#allocation2 + $0x4] sm:$0xf]  ;;  %v1579_v4 = vsel %vm13697_vm12, %v1577_v57, %v1578_v49  ;;  %297 = vst [vmem:[#allocation2 + $0x14] sm:$0x1] %v296_v62  ;;  %244 = vst [vmem:[#allocation2 + $0x18] sm:$0x1] %v243_v63  ;;  %v11832_v14 = vpack.c.bf16 %v350_v60, %v350_v60 }
  0x2e   : > { %802 = vst [vmem:[#allocation2 + $0x10] sm:$0xf] %v491_v61  ;;  %v299_v8 = vsel %vm13656_vm4, 0, %v298_v44  ;;  %v248_v9 = vld [vmem:[#allocation2 + $0x30] sm:$0x1]  ;;  %v494_v10 = vshrl.u32 %v11830_v0, 16  ;;  %v6383_v16 = vsel %vm13689_vm11, %v6378_v52, %v13678_v50  ;;  %v13774_v32 = vsel %vm13697_vm12, %v11559_v54, %v6916_v51 }
  0x2f   : > { %1718 = vst [vmem:[#allocation3 + $0x2c] sm:$0xf] %v1579_v4  ;;  %v497_v11 = vshll.u32 %v11830_v0, 16  ;;  %300 = vst [vmem:[#allocation2 + $0x20] sm:$0x1] %v299_v8  ;;  %v246_v12 = vsel %vm13648_vm3, 0, %v245_v59  ;;  %v6920_v45 = vsel %vm13697_vm12, %v13740_v58, %v6919_v5 }
  0x30   : > { %v351_v13 = vld [vmem:[%s13673_s20 + $0x28] sm:$0xff]  ;;  %v3419_v15 = vld [vmem:[#allocation3 + $0x24] sm:$0xff]  ;;  %v502_v18 = vshrl.u32 %v11831_v6, 16  ;;  %v505_v19 = vshll.u32 %v11831_v6, 16  ;;  %247 = vst [vmem:[#allocation2 + $0x24] sm:$0x1] %v246_v12 }
  0x31   : > { %v302_v20 = vsel %vm13656_vm4, 0, %v301_v1  ;;  %v352_v21 = vld [vmem:[%s13673_s20 + $0x30] sm:$0xff]  ;;  %v353_v23 = vld [vmem:[%s13673_s20 + $0x38] sm:$0xff]  ;;  %v496_v25 = vrot.slane %v494_v10, 7  ;;  %v511_v27 = vshrl.u32 %v11832_v14, 16  ;;  %v514_v28 = vshll.u32 %v11832_v14, 16 }
  0x32   : > { %v12987_v26 = vld [vmem:[%s16984_s1 + $0x170] sm:$0xff]   ;;  %303 = vst [vmem:[#allocation2 + $0x2c] sm:$0x1] %v302_v20  ;;  %v249_v50 = vsel %vm13648_vm3, 0, %v248_v9  ;;  %v3414_v29 = vld [vmem:[#allocation3] sm:$0xff]  ;;  %v504_v34 = vrot.slane %v502_v18, 7  ;;  %v13776_v35 = vpack.c.bf16 %v351_v13, %v351_v13  ;;  %v13787_v59 = vpack.c.bf16 %v352_v21, %v352_v21 }
  0x33   : > { %v12972_v30 = vld [vmem:[#allocation3 + $0x4] ss:$36 sps:$4 sm:$0xff]   ;;  %v1749_v31 = vld [vmem:[#allocation2 + $0xc] sm:$0xf]  ;;  %250 = vst [vmem:[#allocation2 + $0x30] sm:$0x1] %v249_v50  ;;  %v11311_v36 = vcombine.low %v3414_v29, %v3419_v15  ;;  %v499_v41 = vor.u32 %v497_v11, %v496_v25  ;;  %v13789_v60 = vpack.c.bf16 %v353_v23, %v353_v23 }
  0x34   : > { %6290 = vst [vmem:[#allocation3] sm:$0xf] %v6258_v2  ;;  %6291 = vst [vmem:[#allocation3 + $0x24] sm:$0xf] %v6259_v3  ;;  %v913_v38 = vld [vmem:[#allocation2 + $0xc] sm:$0xf]  ;;  %4925 = vmatprep.mubr.bf16.mxu0 %v12972_v30  ;;  %v507_v48 = vor.u32 %v505_v19, %v504_v34 }
  0x35   : > { %6786 = vst [vmem:[#allocation3 + $0x4] sm:$0xf] %v6383_v16  ;;  %6787 = vst [vmem:[#allocation3 + $0x28] sm:$0xf] %v6393_v55  ;;  %v978_v39 = vld [vmem:[#allocation2 + $0xc] sm:$0xf]  ;;  %4926 = vmatmul.mubr.bf16.vlgmr.msra.gmra.mxu0 %v11311_v36 }
  0x36   : > { %1781 = vst [vmem:[#allocation3 + $0xc] sm:$0xf] %v1749_v31  ;;  %v500_v42 = vrot.slane %v496_v25, 4  ;;  %v13778_v43 = vrot.slane %v511_v27, 7  ;;  %945 = vst [vmem:[#allocation3 + $0x48] sm:$0xf] %v913_v38  ;;  %12117 = vmatpush3.bf16.msra.mxu0 %v12976_v17 }
  0x37   : > { %v1051_v44 = vshrl.u32 %v978_v39, 16  ;;  %v1054_v46 = vshll.u32 %v978_v39, 16  ;;  %v509_v49 = vrot.slane %v504_v34, 4  ;;  %v1477_v51 = vld [vmem:[#allocation2 + $0xc] sm:$0xe]  ;;  %v12989_v52 = vld [vmem:[%s16984_s1 + $0x130] sm:$0xff]   ;;  %12118 = vmatprep.subr.bf16.mxu0 %v12987_v26 }
  0x38   : > { %v1750_v53 = vld [vmem:[#allocation2 + $0x10] sm:$0xf]  ;;  %v803_v54 = vld [vmem:[#allocation2 + $0x14] sm:$0x1]  ;;  %v516_v57 = vor.u32 %v514_v28, %v13778_v43  ;;  %v508_v58 = vsel %vm13724_vm14, %v500_v42, %v507_v48  ;;  %v806_v1 = vld [vmem:[#allocation2 + $0x18] sm:$0xf] }
  0x39   : > { %v914_v55 = vld [vmem:[#allocation2 + $0x10] sm:$0xf]  ;;  %1782 = vst [vmem:[#allocation3 + $0x30] sm:$0xf] %v1750_v53  ;;  %v804_v61 = vsel %vm13648_vm3, %v492_v56, %v803_v54  ;;  %v1053_v63 = vrot.slane %v1051_v44, 4  ;;  %v1056_v0 = vrot.slane %v1054_v46, 5  ;;  %v807_v4 = vsel %vm13705_vm13, %v499_v41, %v806_v1 }
  0x3a   : > { %946 = vst [vmem:[#allocation3 + $0x6c] sm:$0xf] %v914_v55  ;;  %v979_v62 = vld [vmem:[#allocation2 + $0x10] sm:$0xf]  ;;  %805 = vst [vmem:[#allocation2 + $0x14] sm:$0x1] %v804_v61  ;;  %12119 = vmatpush3.bf16.msra.mxu0 %v12989_v52 }
  0x3b   : > { %v1060_v2 = vshll.u32 %v979_v62, 16  ;;  %v1064_v3 = vshrl.u32 %v979_v62, 16  ;;  %809 = vst [vmem:[#allocation2 + $0x1c] sm:$0xf] %v508_v58  ;;  %v1478_v5 = vld [vmem:[#allocation2 + $0x10] sm:$0xf]  ;;  %v1057_v6 = vor.u32 %v1056_v0, %v1053_v63 }
  0x3c   : > { %v11263_v40 = vrot.slane %v1477_v51, 9  ;;  %v13001_v56 = vld [vmem:[%s16984_s1 + $0x168] sm:$0xff]   ;;  %808 = vst [vmem:[#allocation2 + $0x18] sm:$0xf] %v807_v4  ;;  %v1582_v8 = vrot.slane %v1478_v5, 5  ;;  %v517_v10 = vrot.slane %v13778_v43, 4 }
  0x3d   : > { %v810_v9 = vld [vmem:[#allocation2 + $0x20] sm:$0x1]  ;;  %v519_v11 = vshrl.u32 %v13776_v35, 16  ;;  %v1062_v12 = vrot.slane %v1060_v2, 5  ;;  %v1066_v13 = vrot.slane %v1064_v3, 4  ;;  %v522_v15 = vshll.u32 %v13776_v35, 16  ;;  %12120 = vmatprep.subr.bf16.mxu0 %v13001_v56 }
  0x3e   : > { %v811_v14 = vsel %vm13648_vm3, %v509_v49, %v810_v9  ;;  %v813_v16 = vld [vmem:[#allocation2 + $0x24] sm:$0xf]  ;;  %v1058_v18 = vrot.slane %v1057_v6, 4  ;;  %v1583_v19 = vsel %vm13697_vm12, %v11263_v40, %v1582_v8  ;;  %v1584_v20 = vrot.slane %v1582_v8, 4  ;;  %v13003_v23 = vld [vmem:[%s16984_s1 + $0x128] sm:$0xff]  }
  0x3f   : > { %v3415_v17 = vld [vmem:[#allocation3 + $0x8] sm:$0xff]  ;;  %812 = vst [vmem:[#allocation2 + $0x20] sm:$0x1] %v811_v14  ;;  %v521_v21 = vrot.slane %v519_v11, 7  ;;  %v1067_v25 = vor.u32 %v1066_v13, %v1062_v12  ;;  %1719 = vst [vmem:[#allocation3 + $0x50] sm:$0xf] %v1583_v19  ;;  %v814_v26 = vsel %vm13705_vm13, %v516_v57, %v813_v16  ;;  %12121 = vmatpush3.bf16.msra.mxu0 %v13003_v23 }
  0x40   : > { %v817_v27 = vld [vmem:[#allocation2 + $0x2c] sm:$0x1]  ;;  %v528_v28 = vshrl.u32 %v13787_v59, 16  ;;  %v531_v50 = vshll.u32 %v13787_v59, 16  ;;  %v1063_v29 = vsel %vm13689_vm11, %v1058_v18, %v1062_v12  ;;  %815 = vst [vmem:[#allocation2 + $0x24] sm:$0xf] %v814_v26 }
  0x41   : > { %v524_v30 = vor.u32 %v522_v15, %v521_v21  ;;  %v526_v31 = vrot.slane %v521_v21, 4  ;;  %v536_v34 = vshrl.u32 %v13789_v60, 16  ;;  %v3420_v35 = vld [vmem:[#allocation3 + $0x2c] sm:$0xff]  ;;  %v1068_v38 = vrot.slane %v1067_v25, 4  ;;  %1444 = vst [vmem:[#allocation3 + $0x4c] sm:$0xf] %v1063_v29 }
  0x42   : > { %v12977_v36 = vld [vmem:[#allocation3 + $0xc] ss:$36 sps:$4 sm:$0xff]   ;;  %v13819_v39 = vrot.slane %v528_v28, 7  ;;  %v539_v41 = vshll.u32 %v13789_v60, 16  ;;  %7058 = vst [vmem:[#allocation3 + $0x8] sm:$0xf] %v13774_v32  ;;  %v11313_v42 = vcombine.low %v3415_v17, %v3420_v35 }
  0x43   : > { %7059 = vst [vmem:[#allocation3 + $0x2c] sm:$0xf] %v6920_v45  ;;  %v980_v43 = vld [vmem:[#allocation2 + $0x14] sm:$0x1]  ;;  %v1752_v46 = vld [vmem:[#allocation2 + $0x1c] sm:$0xf]  ;;  %v525_v48 = vsel %vm13724_vm14, %v517_v10, %v524_v30  ;;  %v818_v49 = vsel %vm13648_vm3, %v526_v31, %v817_v27  ;;  %5086 = vmatprep.mubr.bf16.mxu1 %v12977_v36 }
  0x44   : > { %v1479_v44 = vld [vmem:[#allocation2 + $0x14] sm:$0x1]  ;;  %v820_v51 = vld [vmem:[#allocation2 + $0x30] sm:$0xf]  ;;  %v1070_v52 = vshll.u32 %v980_v43, 16  ;;  %v533_v32 = vor.u32 %v531_v50, %v13819_v39  ;;  %5087 = vmatmul.mubr.bf16.vlgmr.msra.gmra.mxu1 %v11313_v42  ;;  %v534_v5 = vrot.slane %v13819_v39, 4 }
  0x45   : > { %v1585_v53 = vrot.slane %v1479_v44, 5  ;;  %v1751_v54 = vld [vmem:[#allocation2 + $0x18] sm:$0xf]  ;;  %1784 = vst [vmem:[#allocation3 + $0x78] sm:$0xf] %v1752_v46  ;;  %v13015_v15 = vld [vmem:[%s16984_s1 + $0x160] sm:$0xff]  }
  0x46   : > { %v915_v55 = vld [vmem:[#allocation2 + $0x18] sm:$0xf]  ;;  %816 = vst [vmem:[#allocation2 + $0x28] sm:$0xf] %v525_v48  ;;  %819 = vst [vmem:[#allocation2 + $0x2c] sm:$0x1] %v818_v49  ;;  %v821_v10 = vsel %vm13705_vm13, %v533_v32, %v820_v51  ;;  %12122 = vmatprep.subr.bf16.mxu0 %v13015_v15 }
  0x47   : > { %1783 = vst [vmem:[#allocation3 + $0x54] sm:$0xf] %v1751_v54  ;;  %v916_v45 = vld [vmem:[#allocation2 + $0x1c] sm:$0xf]  ;;  %947 = vst [vmem:[#allocation3 + $0x90] sm:$0xf] %v915_v55  ;;  %v1586_v62 = vsel %vm13697_vm12, %v1584_v20, %v1585_v53 }
  0x48   : > { %v981_v57 = vld [vmem:[#allocation2 + $0x18] sm:$0xf]  ;;  %v982_v59 = vld [vmem:[#allocation2 + $0x1c] sm:$0xf]  ;;  %v1072_v61 = vrot.slane %v1070_v52, 5  ;;  %v354_v27 = vld [vmem:[%s13673_s20 + $0x40] sm:$0xff] }
  0x49   : > { %948 = vst [vmem:[#allocation3 + $0xb4] sm:$0xf] %v916_v45  ;;  %v983_v63 = vld [vmem:[#allocation2 + $0x20] sm:$0x1]  ;;  %v1075_v0 = vshrl.u32 %v981_v57, 16  ;;  %v1078_v58 = vshll.u32 %v981_v57, 16 }
  0x4a   : > { %1720 = vst [vmem:[#allocation3 + $0x74] sm:$0xf] %v1586_v62  ;;  %v1084_v1 = vshll.u32 %v982_v59, 16  ;;  %v1088_v2 = vshrl.u32 %v982_v59, 16  ;;  %v1094_v3 = vshll.u32 %v983_v63, 16  ;;  %v1073_v40 = vsel %vm13689_vm11, %v1068_v38, %v1072_v61  ;;  %v355_v28 = vld [vmem:[%s13673_s20 + $0x48] sm:$0xff] }
  0x4b   : > { %v1480_v4 = vld [vmem:[#allocation2 + $0x18] sm:$0xe]  ;;  %v1077_v56 = vrot.slane %v1075_v0, 4  ;;  %v1080_v6 = vrot.slane %v1078_v58, 5  ;;  %v1481_v8 = vld [vmem:[#allocation2 + $0x1c] sm:$0xf]  ;;  %v13851_v58 = vpack.c.bf16 %v354_v27, %v354_v27 }
  0x4c   : > { %v1482_v9 = vld [vmem:[#allocation2 + $0x20] sm:$0x1]  ;;  %1445 = vst [vmem:[#allocation3 + $0x70] sm:$0xf] %v1073_v40  ;;  %v1086_v11 = vrot.slane %v1084_v1, 5  ;;  %v1090_v12 = vrot.slane %v1088_v2, 4  ;;  %v13853_v1 = vpack.c.bf16 %v355_v28, %v355_v28 }
  0x4d   : > { %v1096_v13 = vrot.slane %v1094_v3, 5  ;;  %v11264_v14 = vrot.slane %v1480_v4, 9  ;;  %822 = vst [vmem:[#allocation2 + $0x30] sm:$0xf] %v821_v10  ;;  %v1081_v16 = vor.u32 %v1080_v6, %v1077_v56  ;;  %v1589_v17 = vrot.slane %v1481_v8, 5  ;;  %v13017_v61 = vld [vmem:[%s16984_s1 + $0x120] sm:$0xff]  }
  0x4e   : > { %v1592_v18 = vrot.slane %v1482_v9, 5  ;;  %v1753_v19 = vld [vmem:[#allocation2 + $0x24] sm:$0xf]  ;;  %v1091_v21 = vor.u32 %v1090_v12, %v1086_v11  ;;  %v1754_v23 = vld [vmem:[#allocation2 + $0x28] sm:$0xf]  ;;  %v13857_v4 = vrot.slane %v536_v34, 7  ;;  %12123 = vmatpush3.bf16.msra.mxu0 %v13017_v61 }
  0x4f   : > { %v917_v20 = vld [vmem:[#allocation2 + $0x24] sm:$0xf]  ;;  %1785 = vst [vmem:[#allocation3 + $0x9c] sm:$0xf] %v1753_v19  ;;  %v918_v25 = vld [vmem:[#allocation2 + $0x28] sm:$0xf]  ;;  %v1590_v29 = vsel %vm13697_vm12, %v11264_v14, %v1589_v17 }
  0x50   : > { %949 = vst [vmem:[#allocation3 + $0xd8] sm:$0xf] %v917_v20  ;;  %v984_v26 = vld [vmem:[#allocation2 + $0x24] sm:$0xf]  ;;  %v1082_v50 = vrot.slane %v1081_v16, 4  ;;  %v1591_v30 = vrot.slane %v1589_v17, 4  ;;  %v541_v34 = vor.u32 %v539_v41, %v13857_v4 }
  0x51   : > { %1786 = vst [vmem:[#allocation3 + $0xc0] sm:$0xf] %v1754_v23  ;;  %950 = vst [vmem:[#allocation3 + $0xfc] sm:$0xf] %v918_v25  ;;  %v985_v31 = vld [vmem:[#allocation2 + $0x28] sm:$0xf] }
  0x52   : > { %v1099_v35 = vshrl.u32 %v984_v26, 16  ;;  %v1092_v36 = vrot.slane %v1091_v21, 4  ;;  %1721 = vst [vmem:[#allocation3 + $0x98] sm:$0xf] %v1590_v29  ;;  %v986_v38 = vld [vmem:[#allocation2 + $0x2c] sm:$0x1]  ;;  %v1087_v51 = vsel %vm13689_vm11, %v1082_v50, %v1086_v11  ;;  %v1593_v52 = vsel %vm13697_vm12, %v1591_v30, %v1592_v18 }
  0x53   : > { %v1102_v42 = vshll.u32 %v984_v26, 16  ;;  %v1108_v43 = vshll.u32 %v985_v31, 16  ;;  %v1112_v44 = vshrl.u32 %v985_v31, 16  ;;  %v304_v46 = vld [vmem:[#allocation2 + $0x38] sm:$0x1]  ;;  %v1118_v0 = vshll.u32 %v986_v38, 16 }
  0x54   : > { %v12982_v48 = vld [vmem:[#allocation3 + $0x54] ss:$36 sps:$4 sm:$0xff]   ;;  %v1101_v53 = vrot.slane %v1099_v35, 4  ;;  %v1097_v54 = vsel %vm13689_vm11, %v1092_v36, %v1096_v13  ;;  %1446 = vst [vmem:[#allocation3 + $0x94] sm:$0xf] %v1087_v51  ;;  %v305_v13 = vsel %vm13656_vm4, 0, %v304_v46  ;;  %v542_v28 = vsel %vm13724_vm14, %v534_v5, %v541_v34 }
  0x55   : > { %v12984_v49 = vld [vmem:[#allocation3 + $0x50] ss:$36 sps:$4 sm:$0xff]   ;;  %1722 = vst [vmem:[#allocation3 + $0xbc] sm:$0xf] %v1593_v52  ;;  %v1104_v55 = vrot.slane %v1102_v42, 5  ;;  %v1110_v32 = vrot.slane %v1108_v43, 5  ;;  %5094 = vmatprep.mubr.bf16.mxu1 %v12982_v48 }
  0x56   : > { %v1114_v45 = vrot.slane %v1112_v44, 4  ;;  %v1483_v57 = vld [vmem:[#allocation2 + $0x24] sm:$0xe]  ;;  %v251_v59 = vld [vmem:[#allocation2 + $0x3c] sm:$0x1]  ;;  %5095 = vmatmul.mubr.bf16.gmra.mxu1 %v12984_v49  ;;  %v356_v8 = vld [vmem:[%s13673_s20 + $0x50] sm:$0xff] }
  0x57   : > { %v12979_v62 = vld [vmem:[#allocation3 + $0x4c] ss:$36 sps:$4 sm:$0xff]   ;;  %1447 = vst [vmem:[#allocation3 + $0xb8] sm:$0xf] %v1097_v54  ;;  %v1105_v2 = vor.u32 %v1104_v55, %v1101_v53  ;;  %v1485_v56 = vld [vmem:[#allocation2 + $0x2c] sm:$0x1]  ;;  %v11838_v42 = vpack.c.bf16 %v356_v8, %v356_v8 }
  0x58   : > { %v12981_v63 = vld [vmem:[#allocation3 + $0x48] ss:$36 sps:$4 sm:$0xff]   ;;  %v1115_v3 = vor.u32 %v1114_v45, %v1110_v32  ;;  %v1484_v40 = vld [vmem:[#allocation2 + $0x28] sm:$0xf]  ;;  %v11265_v6 = vrot.slane %v1483_v57, 9  ;;  %4933 = vmatprep.mubr.bf16.mxu0 %v12979_v62  ;;  %v1120_v9 = vrot.slane %v1118_v0, 5 }
  0x59   : > { %v1596_v10 = vrot.slane %v1484_v40, 5  ;;  %v1599_v11 = vrot.slane %v1485_v56, 5  ;;  %v1755_v12 = vld [vmem:[#allocation2 + $0x30] sm:$0xf]  ;;  %v357_v14 = vld [vmem:[%s13673_s20 + $0x58] sm:$0xff]  ;;  %4934 = vmatmul.mubr.bf16.gmra.mxu0 %v12981_v63  ;;  %v1106_v15 = vrot.slane %v1105_v2, 4 }
  0x5a   : > { %v1116_v16 = vrot.slane %v1115_v3, 4  ;;  %v543_v17 = vrot.slane %v13857_v4, 4  ;;  %1787 = vst [vmem:[#allocation3 + $0xe4] sm:$0xf] %v1755_v12  ;;  %306 = vst [vmem:[#allocation2 + $0x38] sm:$0x1] %v305_v13  ;;  %v11839_v44 = vpack.c.bf16 %v357_v14, %v357_v14 }
  0x5b   : > { %v919_v18 = vld [vmem:[#allocation2 + $0x30] sm:$0xf]  ;;  %v358_v19 = vld [vmem:[%s13673_s20 + $0x60] sm:$0xff]  ;;  %v1597_v20 = vsel %vm13697_vm12, %v11265_v6, %v1596_v10  ;;  %v1598_v21 = vrot.slane %v1596_v10, 4  ;;  %v252_v25 = vsel %vm13648_vm3, 0, %v251_v59  ;;  %v545_v26 = vshrl.u32 %v13851_v58, 16 }
  0x5c   : > { %951 = vst [vmem:[#allocation3 + $0x120] sm:$0xf] %v919_v18  ;;  %v987_v23 = vld [vmem:[#allocation2 + $0x30] sm:$0xf]  ;;  %v307_v27 = vld [vmem:[#allocation2 + $0x44] sm:$0x1]  ;;  %v1111_v60 = vsel %vm13689_vm11, %v1106_v15, %v1110_v32  ;;  %v1121_v41 = vsel %vm13689_vm11, %v1116_v16, %v1120_v9  ;;  %v13885_v46 = vpack.c.bf16 %v358_v19, %v358_v19 }
  0x5d   : > { %1723 = vst [vmem:[#allocation3 + $0xe0] sm:$0xf] %v1597_v20  ;;  %v1123_v50 = vshrl.u32 %v987_v23, 16  ;;  %253 = vst [vmem:[#allocation2 + $0x3c] sm:$0x1] %v252_v25  ;;  %v1600_v35 = vsel %vm13697_vm12, %v1598_v21, %v1599_v11  ;;  %v1126_v36 = vshll.u32 %v987_v23, 16 }
  0x5e   : > { %v13881_v29 = vld [vmem:[#allocation2 + $0x30] sm:$0xe]  ;;  %v254_v30 = vld [vmem:[#allocation2 + $0x48] sm:$0x1]  ;;  %v12990_v31 = vld [vmem:[#allocation3 + $0x9c] ss:$36 sps:$4 sm:$0xff]  }
  0x5f   : > { %1448 = vst [vmem:[#allocation3 + $0xdc] sm:$0xf] %v1111_v60  ;;  %1449 = vst [vmem:[#allocation3 + $0x100] sm:$0xf] %v1121_v41  ;;  %v547_v38 = vrot.slane %v545_v26, 7  ;;  %v1125_v5 = vrot.slane %v1123_v50, 4  ;;  %5102 = vmatprep.mubr.bf16.mxu1 %v12990_v31 }
  0x60   : > { %823 = vst [vmem:[#allocation2 + $0x34] sm:$0xf] %v542_v28  ;;  %v12985_v39 = vld [vmem:[#allocation3 + $0x94] ss:$36 sps:$4 sm:$0xff]   ;;  %1724 = vst [vmem:[#allocation3 + $0x104] sm:$0xf] %v1600_v35 }
  0x61   : > { %v12988_v43 = vld [vmem:[#allocation3 + $0x90] ss:$36 sps:$4 sm:$0xff]   ;;  %v12992_v48 = vld [vmem:[#allocation3 + $0x98] ss:$36 sps:$4 sm:$0xff]   ;;  %v1128_v49 = vrot.slane %v1126_v36, 5  ;;  %v548_v51 = vshll.u32 %v13851_v58, 16  ;;  %4941 = vmatprep.mubr.bf16.mxu0 %v12985_v39 }
  0x62   : > { %v551_v52 = vrot.slane %v547_v38, 4  ;;  %v553_v53 = vshrl.u32 %v13853_v1, 16  ;;  %v556_v54 = vshll.u32 %v13853_v1, 16  ;;  %v11266_v55 = vrot.slane %v13881_v29, 9  ;;  %v310_v57 = vld [vmem:[#allocation2 + $0x50] sm:$0x1]  ;;  %5103 = vmatmul.mubr.bf16.gmra.mxu1 %v12992_v48  ;;  %4942 = vmatmul.mubr.bf16.gmra.mxu0 %v12988_v43 }
  0x63   : > { %v308_v32 = vsel %vm13656_vm4, 0, %v307_v27  ;;  %v255_v45 = vsel %vm13648_vm3, 0, %v254_v30  ;;  %v824_v59 = vld [vmem:[#allocation2 + $0x38] sm:$0x1]  ;;  %v1129_v61 = vor.u32 %v1128_v49, %v1125_v5  ;;  %v550_v62 = vor.u32 %v548_v51, %v547_v38  ;;  %v12995_v13 = vld [vmem:[#allocation3 + $0xd8] ss:$36 sps:$4 sm:$0xff]  }
  0x64   : > { %v555_v63 = vrot.slane %v553_v53, 7  ;;  %309 = vst [vmem:[#allocation2 + $0x44] sm:$0x1] %v308_v32  ;;  %256 = vst [vmem:[#allocation2 + $0x48] sm:$0x1] %v255_v45  ;;  %v562_v0 = vshrl.u32 %v11838_v42, 16  ;;  %v825_v58 = vsel %vm13648_vm3, %v543_v17, %v824_v59 }
  0x65   : > { %v565_v1 = vshll.u32 %v11838_v42, 16  ;;  %v570_v2 = vshrl.u32 %v11839_v44, 16  ;;  %v573_v3 = vshll.u32 %v11839_v44, 16  ;;  %826 = vst [vmem:[#allocation2 + $0x38] sm:$0x1] %v825_v58  ;;  %v1130_v4 = vrot.slane %v1129_v61, 4 }
  0x66   : > { %v558_v40 = vor.u32 %v556_v54, %v555_v63  ;;  %v560_v56 = vrot.slane %v555_v63, 4  ;;  %v827_v6 = vld [vmem:[#allocation2 + $0x3c] sm:$0xf]  ;;  %v564_v8 = vrot.slane %v562_v0, 7  ;;  %v12993_v9 = vld [vmem:[#allocation3 + $0xdc] ss:$36 sps:$4 sm:$0xff]  }
  0x67   : > { %v828_v10 = vsel %vm13705_vm13, %v550_v62, %v827_v6  ;;  %v13899_v11 = vrot.slane %v570_v2, 7  ;;  %v311_v12 = vsel %vm13656_vm4, 0, %v310_v57  ;;  %v1756_v14 = vld [vmem:[#allocation2 + $0x34] sm:$0xf]  ;;  %4949 = vmatprep.mubr.bf16.mxu0 %v12993_v9  ;;  %v579_v27 = vshrl.u32 %v13885_v46, 16  ;;  %v13029_v9 = vld [vmem:[%s16984_s1 + $0x158] sm:$0xff]  }
  0x68   : > { %v920_v15 = vld [vmem:[#allocation2 + $0x34] sm:$0xf]  ;;  %v559_v16 = vsel %vm13724_vm14, %v551_v52, %v558_v40  ;;  %829 = vst [vmem:[#allocation2 + $0x3c] sm:$0xf] %v828_v10  ;;  %312 = vst [vmem:[#allocation2 + $0x50] sm:$0x1] %v311_v12  ;;  %v567_v18 = vor.u32 %v565_v1, %v564_v8  ;;  %12124 = vmatprep.subr.bf16.mxu0 %v13029_v9 }
  0x69   : > { %1788 = vst [vmem:[#allocation3 + $0x108] sm:$0xf] %v1756_v14  ;;  %952 = vst [vmem:[#allocation3 + $0x144] sm:$0xf] %v920_v15  ;;  %v988_v34 = vld [vmem:[#allocation2 + $0x34] sm:$0xf]  ;;  %v575_v20 = vor.u32 %v573_v3, %v13899_v11 }
  0x6a   : > { %830 = vst [vmem:[#allocation2 + $0x40] sm:$0xf] %v559_v16  ;;  %v1487_v17 = vld [vmem:[#allocation2 + $0x34] sm:$0xf]  ;;  %v568_v19 = vrot.slane %v564_v8, 4  ;;  %v577_v21 = vrot.slane %v13899_v11, 4  ;;  %4950 = vmatmul.mubr.bf16.gmra.mxu0 %v12995_v13 }
  0x6b   : > { %v1132_v23 = vshll.u32 %v988_v34, 16  ;;  %v1136_v25 = vshrl.u32 %v988_v34, 16  ;;  %v1603_v26 = vrot.slane %v1487_v17, 5  ;;  %v831_v60 = vld [vmem:[#allocation2 + $0x44] sm:$0x1]  ;;  %v13918_v5 = vrot.slane %v579_v27, 7 }
  0x6c   : > { %v576_v41 = vsel %vm13724_vm14, %v568_v19, %v575_v20  ;;  %v834_v28 = vld [vmem:[#allocation2 + $0x48] sm:$0xf]  ;;  %v257_v35 = vld [vmem:[#allocation2 + $0x54] sm:$0x1]  ;;  %v989_v36 = vld [vmem:[#allocation2 + $0x38] sm:$0x1]  ;;  %v832_v42 = vsel %vm13648_vm3, %v560_v56, %v831_v60 }
  0x6d   : > { %v1134_v50 = vrot.slane %v1132_v23, 5  ;;  %v1138_v29 = vrot.slane %v1136_v25, 4  ;;  %v1604_v30 = vsel %vm13697_vm12, %v11266_v55, %v1603_v26  ;;  %v1605_v31 = vrot.slane %v1603_v26, 4  ;;  %837 = vst [vmem:[#allocation2 + $0x4c] sm:$0xf] %v576_v41  ;;  %v359_v8 = vld [vmem:[%s13673_s20 + $0x68] sm:$0xff] }
  0x6e   : > { %v1488_v38 = vld [vmem:[#allocation2 + $0x38] sm:$0x1]  ;;  %1725 = vst [vmem:[#allocation3 + $0x128] sm:$0xf] %v1604_v30  ;;  %v835_v39 = vsel %vm13705_vm13, %v567_v18, %v834_v28  ;;  %v258_v43 = vsel %vm13648_vm3, 0, %v257_v35  ;;  %v1142_v49 = vshll.u32 %v989_v36, 16  ;;  %v11841_v36 = vpack.c.bf16 %v359_v8, %v359_v8 }
  0x6f   : > { %v1135_v44 = vsel %vm13689_vm11, %v1130_v4, %v1134_v50  ;;  %v1139_v48 = vor.u32 %v1138_v29, %v1134_v50  ;;  %v1606_v51 = vrot.slane %v1488_v38, 5  ;;  %833 = vst [vmem:[#allocation2 + $0x44] sm:$0x1] %v832_v42  ;;  %836 = vst [vmem:[#allocation2 + $0x48] sm:$0xf] %v835_v39  ;;  %v582_v2 = vshll.u32 %v13885_v46, 16 }
  0x70   : > { %259 = vst [vmem:[#allocation2 + $0x54] sm:$0x1] %v258_v43  ;;  %1450 = vst [vmem:[#allocation3 + $0x124] sm:$0xf] %v1135_v44  ;;  %v1757_v52 = vld [vmem:[#allocation2 + $0x3c] sm:$0xf] }
  0x71   : > { %v921_v53 = vld [vmem:[#allocation2 + $0x3c] sm:$0xf]  ;;  %v1140_v45 = vrot.slane %v1139_v48, 4  ;;  %v1607_v57 = vsel %vm13697_vm12, %v1605_v31, %v1606_v51  ;;  %1789 = vst [vmem:[#allocation3 + $0x12c] sm:$0xf] %v1757_v52  ;;  %v1144_v59 = vrot.slane %v1142_v49, 5  ;;  %v584_v44 = vor.u32 %v582_v2, %v13918_v5 }
  0x72   : > { %v990_v54 = vld [vmem:[#allocation2 + $0x3c] sm:$0xf]  ;;  %953 = vst [vmem:[#allocation3 + $0x168] sm:$0xf] %v921_v53  ;;  %1726 = vst [vmem:[#allocation3 + $0x14c] sm:$0xf] %v1607_v57 }
  0x73   : > { %v12996_v55 = vld [vmem:[#allocation3 + $0xe4] ss:$36 sps:$4 sm:$0xff]   ;;  %v1147_v63 = vshrl.u32 %v990_v54, 16  ;;  %v1150_v58 = vshll.u32 %v990_v54, 16  ;;  %v1145_v3 = vsel %vm13689_vm11, %v1140_v45, %v1144_v59  ;;  %v360_v26 = vld [vmem:[%s13673_s20 + $0x70] sm:$0xff]  ;;  %v585_v51 = vrot.slane %v13918_v5, 4 }
  0x74   : > { %v12998_v32 = vld [vmem:[#allocation3 + $0xe0] ss:$36 sps:$4 sm:$0xff]   ;;  %v1758_v61 = vld [vmem:[#allocation2 + $0x40] sm:$0xf]  ;;  %5110 = vmatprep.mubr.bf16.mxu1 %v12996_v55  ;;  %1451 = vst [vmem:[#allocation3 + $0x148] sm:$0xf] %v1145_v3  ;;  %v13950_v59 = vpack.c.bf16 %v360_v26, %v360_v26 }
  0x75   : > { %v922_v62 = vld [vmem:[#allocation2 + $0x40] sm:$0xf]  ;;  %1790 = vst [vmem:[#allocation3 + $0x150] sm:$0xf] %v1758_v61  ;;  %v1489_v1 = vld [vmem:[#allocation2 + $0x3c] sm:$0xe]  ;;  %5111 = vmatmul.mubr.bf16.gmra.mxu1 %v12998_v32 }
  0x76   : > { %954 = vst [vmem:[#allocation3 + $0x18c] sm:$0xf] %v922_v62  ;;  %v991_v0 = vld [vmem:[#allocation2 + $0x40] sm:$0xf]  ;;  %v1149_v4 = vrot.slane %v1147_v63, 4  ;;  %v1152_v10 = vrot.slane %v1150_v58, 5 }
  0x77   : > { %v1156_v40 = vshll.u32 %v991_v0, 16  ;;  %v1160_v56 = vshrl.u32 %v991_v0, 16  ;;  %v1490_v6 = vld [vmem:[#allocation2 + $0x40] sm:$0xf]  ;;  %v11267_v12 = vrot.slane %v1489_v1, 9  ;;  %v13031_v46 = vld [vmem:[%s16984_s1 + $0x118] sm:$0xff]  }
  0x78   : > { %v1610_v13 = vrot.slane %v1490_v6, 5  ;;  %v1760_v14 = vld [vmem:[#allocation2 + $0x4c] sm:$0xf]  ;;  %v992_v15 = vld [vmem:[#allocation2 + $0x44] sm:$0x1]  ;;  %v1153_v18 = vor.u32 %v1152_v10, %v1149_v4  ;;  %12125 = vmatpush3.bf16.msra.mxu0 %v13031_v46  ;;  %v361_v54 = vld [vmem:[%s13673_s20 + $0x78] sm:$0xff] }
  0x79   : > { %v1158_v16 = vrot.slane %v1156_v40, 5  ;;  %v1162_v34 = vrot.slane %v1160_v56, 4  ;;  %v1491_v17 = vld [vmem:[#allocation2 + $0x44] sm:$0x1]  ;;  %1792 = vst [vmem:[#allocation3 + $0x198] sm:$0xf] %v1760_v14  ;;  %v13954_v40 = vpack.c.bf16 %v361_v54, %v361_v54 }
  0x7a   : > { %v1166_v19 = vshll.u32 %v992_v15, 16  ;;  %v1611_v20 = vsel %vm13697_vm12, %v11267_v12, %v1610_v13  ;;  %v1612_v23 = vrot.slane %v1610_v13, 4  ;;  %v1759_v25 = vld [vmem:[#allocation2 + $0x48] sm:$0xf]  ;;  %v1613_v60 = vrot.slane %v1491_v17, 5 }
  0x7b   : > { %v1163_v27 = vor.u32 %v1162_v34, %v1158_v16  ;;  %1727 = vst [vmem:[#allocation3 + $0x170] sm:$0xf] %v1611_v20  ;;  %1791 = vst [vmem:[#allocation3 + $0x174] sm:$0xf] %v1759_v25  ;;  %v838_v41 = vld [vmem:[#allocation2 + $0x50] sm:$0x1] }
  0x7c   : > { %v923_v28 = vld [vmem:[#allocation2 + $0x48] sm:$0xf]  ;;  %v1154_v50 = vrot.slane %v1153_v18, 4  ;;  %v1168_v29 = vrot.slane %v1166_v19, 5  ;;  %v839_v30 = vsel %vm13648_vm3, %v577_v21, %v838_v41  ;;  %v924_v31 = vld [vmem:[#allocation2 + $0x4c] sm:$0xf]  ;;  %v1614_v43 = vsel %vm13697_vm12, %v1612_v23, %v1613_v60 }
  0x7d   : > { %955 = vst [vmem:[#allocation3 + $0x1b0] sm:$0xf] %v923_v28  ;;  %v993_v35 = vld [vmem:[#allocation2 + $0x48] sm:$0xf]  ;;  %v13006_v42 = vld [vmem:[#allocation3 + $0x128] ss:$36 sps:$4 sm:$0xff]  }
  0x7e   : > { %v13004_v38 = vld [vmem:[#allocation3 + $0x12c] ss:$36 sps:$4 sm:$0xff]   ;;  %v1164_v39 = vrot.slane %v1163_v27, 4  ;;  %840 = vst [vmem:[#allocation2 + $0x50] sm:$0x1] %v839_v30  ;;  %v1159_v11 = vsel %vm13689_vm11, %v1154_v50, %v1158_v16  ;;  %v1171_v48 = vshrl.u32 %v993_v35, 16 }
  0x7f   : > { %956 = vst [vmem:[#allocation3 + $0x1d4] sm:$0xf] %v924_v31  ;;  %1728 = vst [vmem:[#allocation3 + $0x194] sm:$0xf] %v1614_v43  ;;  %v994_v21 = vld [vmem:[#allocation2 + $0x4c] sm:$0xf]  ;;  %5118 = vmatprep.mubr.bf16.mxu1 %v13004_v38 }
  0x80   : > { %v1174_v49 = vshll.u32 %v993_v35, 16  ;;  %v313_v52 = vld [vmem:[#allocation2 + $0x5c] sm:$0x1]  ;;  %v260_v53 = vld [vmem:[#allocation2 + $0x60] sm:$0x1]  ;;  %v1169_v45 = vsel %vm13689_vm11, %v1164_v39, %v1168_v29  ;;  %v1180_v57 = vshll.u32 %v994_v21, 16  ;;  %5119 = vmatmul.mubr.bf16.gmra.mxu1 %v13006_v42 }
  0x81   : > { %v12999_v55 = vld [vmem:[#allocation3 + $0x124] ss:$36 sps:$4 sm:$0xff]   ;;  %1452 = vst [vmem:[#allocation3 + $0x16c] sm:$0xf] %v1159_v11  ;;  %1453 = vst [vmem:[#allocation3 + $0x190] sm:$0xf] %v1169_v45 }
  0x82   : > { %v13002_v32 = vld [vmem:[#allocation3 + $0x120] ss:$36 sps:$4 sm:$0xff]   ;;  %v1173_v61 = vrot.slane %v1171_v48, 4  ;;  %v1176_v62 = vrot.slane %v1174_v49, 5  ;;  %v1184_v63 = vshrl.u32 %v994_v21, 16  ;;  %v587_v0 = vshrl.u32 %v11841_v36, 16  ;;  %4957 = vmatprep.mubr.bf16.mxu0 %v12999_v55 }
  0x83   : > { %v841_v5 = vld [vmem:[#allocation2 + $0x54] sm:$0xf]  ;;  %v1182_v58 = vrot.slane %v1180_v57, 5  ;;  %v590_v1 = vshll.u32 %v11841_v36, 16  ;;  %v1492_v3 = vld [vmem:[#allocation2 + $0x48] sm:$0xe]  ;;  %4958 = vmatmul.mubr.bf16.gmra.mxu0 %v13002_v32 }
  0x84   : > { %v842_v2 = vsel %vm13705_vm13, %v584_v44, %v841_v5  ;;  %v1493_v4 = vld [vmem:[#allocation2 + $0x4c] sm:$0xf]  ;;  %v1177_v56 = vor.u32 %v1176_v62, %v1173_v61  ;;  %v1186_v6 = vrot.slane %v1184_v63, 4  ;;  %v589_v8 = vrot.slane %v587_v0, 7  ;;  %v362_v28 = vld [vmem:[%s13673_s20 + $0x80] sm:$0xff] }
  0x85   : > { %843 = vst [vmem:[#allocation2 + $0x54] sm:$0xf] %v842_v2  ;;  %v11268_v9 = vrot.slane %v1492_v3, 9  ;;  %v1617_v10 = vrot.slane %v1493_v4, 5  ;;  %v314_v12 = vsel %vm13656_vm4, 0, %v313_v52  ;;  %v261_v13 = vsel %vm13648_vm3, 0, %v260_v53 }
  0x86   : > { %v596_v14 = vshrl.u32 %v13950_v59, 16  ;;  %v995_v46 = vld [vmem:[#allocation2 + $0x50] sm:$0x1]  ;;  %v1178_v15 = vrot.slane %v1177_v56, 4  ;;  %v1187_v16 = vor.u32 %v1186_v6, %v1182_v58  ;;  %v592_v34 = vor.u32 %v590_v1, %v589_v8  ;;  %315 = vst [vmem:[#allocation2 + $0x5c] sm:$0x1] %v314_v12 }
  0x87   : > { %v594_v17 = vrot.slane %v589_v8, 4  ;;  %v1494_v18 = vld [vmem:[#allocation2 + $0x50] sm:$0x1]  ;;  %262 = vst [vmem:[#allocation2 + $0x60] sm:$0x1] %v261_v13  ;;  %v1190_v23 = vshll.u32 %v995_v46, 16  ;;  %v1618_v25 = vsel %vm13697_vm12, %v11268_v9, %v1617_v10  ;;  %v13972_v21 = vpack.c.bf16 %v362_v28, %v362_v28 }
  0x88   : > { %v13010_v19 = vld [vmem:[#allocation3 + $0x174] ss:$36 sps:$4 sm:$0xff]   ;;  %v1183_v26 = vsel %vm13689_vm11, %v1178_v15, %v1182_v58  ;;  %v1188_v27 = vrot.slane %v1187_v16, 4  ;;  %v593_v60 = vsel %vm13724_vm14, %v585_v51, %v592_v34  ;;  %v1619_v41 = vrot.slane %v1617_v10, 4  ;;  %1729 = vst [vmem:[#allocation3 + $0x1b8] sm:$0xf] %v1618_v25 }
  0x89   : > { %v13012_v20 = vld [vmem:[#allocation3 + $0x170] ss:$36 sps:$4 sm:$0xff]   ;;  %v13009_v29 = vld [vmem:[#allocation3 + $0x168] ss:$36 sps:$4 sm:$0xff]   ;;  %5126 = vmatprep.mubr.bf16.mxu1 %v13010_v19  ;;  %v1192_v30 = vrot.slane %v1190_v23, 5  ;;  %v1620_v35 = vrot.slane %v1494_v18, 5 }
  0x8a   : > { %v13007_v50 = vld [vmem:[#allocation3 + $0x16c] ss:$36 sps:$4 sm:$0xff]   ;;  %1454 = vst [vmem:[#allocation3 + $0x1b4] sm:$0xf] %v1183_v26  ;;  %844 = vst [vmem:[#allocation2 + $0x58] sm:$0xf] %v593_v60  ;;  %5127 = vmatmul.mubr.bf16.gmra.mxu1 %v13012_v20 }
  0x8b   : > { %v316_v31 = vld [vmem:[#allocation2 + $0x68] sm:$0x1]  ;;  %v598_v36 = vrot.slane %v596_v14, 7  ;;  %v599_v38 = vshll.u32 %v13950_v59, 16  ;;  %v604_v42 = vshrl.u32 %v13954_v40, 16  ;;  %4965 = vmatprep.mubr.bf16.mxu0 %v13007_v50  ;;  %v1193_v39 = vsel %vm13689_vm11, %v1188_v27, %v1192_v30 }
  0x8c   : > { %v1761_v43 = vld [vmem:[#allocation2 + $0x54] sm:$0xf]  ;;  %4966 = vmatmul.mubr.bf16.gmra.mxu0 %v13009_v29  ;;  %1455 = vst [vmem:[#allocation3 + $0x1d8] sm:$0xf] %v1193_v39  ;;  %v1621_v48 = vsel %vm13697_vm12, %v1619_v41, %v1620_v35  ;;  %v607_v45 = vshll.u32 %v13954_v40, 16  ;;  %v317_v0 = vsel %vm13656_vm4, 0, %v316_v31 }
  0x8d   : > { %v925_v44 = vld [vmem:[#allocation2 + $0x54] sm:$0xf]  ;;  %1793 = vst [vmem:[#allocation3 + $0x1bc] sm:$0xf] %v1761_v43  ;;  %v601_v52 = vor.u32 %v599_v38, %v598_v36  ;;  %1730 = vst [vmem:[#allocation3 + $0x1dc] sm:$0xf] %v1621_v48 }
  0x8e   : > { %v996_v11 = vld [vmem:[#allocation2 + $0x54] sm:$0xf]  ;;  %957 = vst [vmem:[#allocation3 + $0x1f8] sm:$0xf] %v925_v44  ;;  %v845_v54 = vld [vmem:[#allocation2 + $0x5c] sm:$0x1] }
  0x8f   : > { %v1195_v49 = vshrl.u32 %v996_v11, 16  ;;  %v1198_v51 = vshll.u32 %v996_v11, 16  ;;  %v1495_v53 = vld [vmem:[#allocation2 + $0x54] sm:$0xe]  ;;  %v602_v55 = vrot.slane %v598_v36, 4  ;;  %v13976_v32 = vrot.slane %v604_v42, 7 }
  0x90   : > { %v11269_v57 = vrot.slane %v1495_v53, 9  ;;  %v846_v59 = vsel %vm13648_vm3, %v594_v17, %v845_v54  ;;  %v848_v63 = vld [vmem:[#allocation2 + $0x60] sm:$0xf]  ;;  %v363_v5 = vld [vmem:[%s13673_s20 + $0x88] sm:$0xff]  ;;  %318 = vst [vmem:[#allocation2 + $0x68] sm:$0x1] %v317_v0 }
  0x91   : > { %v1197_v61 = vrot.slane %v1195_v49, 4  ;;  %v1200_v62 = vrot.slane %v1198_v51, 5  ;;  %847 = vst [vmem:[#allocation2 + $0x5c] sm:$0x1] %v846_v59  ;;  %v609_v58 = vor.u32 %v607_v45, %v13976_v32  ;;  %v611_v1 = vrot.slane %v13976_v32, 4  ;;  %v364_v31 = vld [vmem:[%s13673_s20 + $0x90] sm:$0xff] }
  0x92   : > { %v849_v2 = vsel %vm13705_vm13, %v601_v52, %v848_v63  ;;  %v263_v3 = vld [vmem:[#allocation2 + $0x6c] sm:$0x1]  ;;  %v613_v4 = vshrl.u32 %v13972_v21, 16  ;;  %v1762_v40 = vld [vmem:[#allocation2 + $0x58] sm:$0xf]  ;;  %v13993_v14 = vpack.c.bf16 %v363_v5, %v363_v5  ;;  %v616_v15 = vshll.u32 %v13972_v21, 16 }
  0x93   : > { %v926_v56 = vld [vmem:[#allocation2 + $0x58] sm:$0xf]  ;;  %v1201_v6 = vor.u32 %v1200_v62, %v1197_v61  ;;  %850 = vst [vmem:[#allocation2 + $0x60] sm:$0xf] %v849_v2  ;;  %v264_v8 = vsel %vm13648_vm3, 0, %v263_v3  ;;  %v610_v12 = vsel %vm13724_vm14, %v602_v55, %v609_v58  ;;  %v14015_v63 = vpack.c.bf16 %v364_v31, %v364_v31  ;;  %v13043_v3 = vld [vmem:[%s16984_s1 + $0x150] sm:$0xff]  }
  0x94   : > { %v319_v9 = vld [vmem:[#allocation2 + $0x74] sm:$0x1]  ;;  %1794 = vst [vmem:[#allocation3 + $0x1e0] sm:$0xf] %v1762_v40  ;;  %958 = vst [vmem:[#allocation3 + $0x21c] sm:$0xf] %v926_v56  ;;  %12126 = vmatprep.subr.bf16.mxu0 %v13043_v3 }
  0x95   : > { %v997_v10 = vld [vmem:[#allocation2 + $0x58] sm:$0xf]  ;;  %265 = vst [vmem:[#allocation2 + $0x6c] sm:$0x1] %v264_v8  ;;  %v13995_v46 = vrot.slane %v613_v4, 7  ;;  %v1202_v16 = vrot.slane %v1201_v6, 4 }
  0x96   : > { %v1496_v13 = vld [vmem:[#allocation2 + $0x58] sm:$0xf]  ;;  %v1204_v34 = vshll.u32 %v997_v10, 16  ;;  %v1208_v17 = vshrl.u32 %v997_v10, 16  ;;  %851 = vst [vmem:[#allocation2 + $0x64] sm:$0xf] %v610_v12 }
  0x97   : > { %v1624_v18 = vrot.slane %v1496_v13, 5  ;;  %v266_v19 = vld [vmem:[#allocation2 + $0x78] sm:$0x1]  ;;  %v13013_v20 = vld [vmem:[#allocation3 + $0x1b4] ss:$36 sps:$4 sm:$0xff]   ;;  %v619_v25 = vrot.slane %v13995_v46, 4  ;;  %v618_v53 = vor.u32 %v616_v15, %v13995_v46 }
  0x98   : > { %v13016_v23 = vld [vmem:[#allocation3 + $0x1b0] ss:$36 sps:$4 sm:$0xff]   ;;  %v1206_v26 = vrot.slane %v1204_v34, 5  ;;  %v1210_v27 = vrot.slane %v1208_v17, 4  ;;  %4973 = vmatprep.mubr.bf16.mxu0 %v13013_v20  ;;  %v621_v28 = vshrl.u32 %v13993_v14, 16  ;;  %v624_v50 = vshll.u32 %v13993_v14, 16 }
  0x99   : > { %v1625_v60 = vsel %vm13697_vm12, %v11269_v57, %v1624_v18  ;;  %v1626_v41 = vrot.slane %v1624_v18, 4  ;;  %v320_v29 = vsel %vm13656_vm4, 0, %v319_v9  ;;  %v267_v30 = vsel %vm13648_vm3, 0, %v266_v19  ;;  %4974 = vmatmul.mubr.bf16.gmra.mxu0 %v13016_v23  ;;  %v998_v35 = vld [vmem:[#allocation2 + $0x5c] sm:$0x1]  ;;  %v13045_v18 = vld [vmem:[%s16984_s1 + $0x110] sm:$0xff]  }
  0x9a   : > { %1731 = vst [vmem:[#allocation3 + $0x200] sm:$0xf] %v1625_v60  ;;  %v1207_v36 = vsel %vm13689_vm11, %v1202_v16, %v1206_v26  ;;  %v1211_v38 = vor.u32 %v1210_v27, %v1206_v26  ;;  %v1497_v42 = vld [vmem:[#allocation2 + $0x5c] sm:$0x1]  ;;  %v852_v39 = vld [vmem:[#allocation2 + $0x68] sm:$0x1]  ;;  %12127 = vmatpush3.bf16.msra.mxu0 %v13045_v18 }
  0x9b   : > { %321 = vst [vmem:[#allocation2 + $0x74] sm:$0x1] %v320_v29  ;;  %268 = vst [vmem:[#allocation2 + $0x78] sm:$0x1] %v267_v30  ;;  %v1214_v43 = vshll.u32 %v998_v35, 16  ;;  %v1627_v44 = vrot.slane %v1497_v42, 5  ;;  %v853_v21 = vsel %vm13648_vm3, %v611_v1, %v852_v39 }
  0x9c   : > { %1456 = vst [vmem:[#allocation3 + $0x1fc] sm:$0xf] %v1207_v36  ;;  %v1763_v11 = vld [vmem:[#allocation2 + $0x60] sm:$0xf]  ;;  %v13018_v49 = vld [vmem:[#allocation3 + $0x1bc] ss:$36 sps:$4 sm:$0xff]  }
  0x9d   : > { %v927_v48 = vld [vmem:[#allocation2 + $0x60] sm:$0xf]  ;;  %v13020_v51 = vld [vmem:[#allocation3 + $0x1b8] ss:$36 sps:$4 sm:$0xff]   ;;  %v1212_v52 = vrot.slane %v1211_v38, 4  ;;  %v1216_v54 = vrot.slane %v1214_v43, 5  ;;  %v1628_v55 = vsel %vm13697_vm12, %v1626_v41, %v1627_v44  ;;  %5134 = vmatprep.mubr.bf16.mxu1 %v13018_v49 }
  0x9e   : > { %1795 = vst [vmem:[#allocation3 + $0x204] sm:$0xf] %v1763_v11  ;;  %854 = vst [vmem:[#allocation2 + $0x68] sm:$0x1] %v853_v21  ;;  %v1764_v32 = vld [vmem:[#allocation2 + $0x64] sm:$0xf]  ;;  %5135 = vmatmul.mubr.bf16.gmra.mxu1 %v13020_v51 }
  0x9f   : > { %959 = vst [vmem:[#allocation3 + $0x240] sm:$0xf] %v927_v48  ;;  %v928_v45 = vld [vmem:[#allocation2 + $0x64] sm:$0xf]  ;;  %v623_v57 = vrot.slane %v621_v28, 7  ;;  %v1217_v0 = vsel %vm13689_vm11, %v1212_v52, %v1216_v54  ;;  %v365_v26 = vld [vmem:[%s13673_s20 + $0x98] sm:$0xff] }
  0xa0   : > { %1732 = vst [vmem:[#allocation3 + $0x224] sm:$0xf] %v1628_v55  ;;  %1796 = vst [vmem:[#allocation3 + $0x228] sm:$0xf] %v1764_v32  ;;  %v999_v59 = vld [vmem:[#allocation2 + $0x60] sm:$0xf]  ;;  %v11847_v52 = vpack.c.bf16 %v365_v26, %v365_v26 }
  0xa1   : > { %960 = vst [vmem:[#allocation3 + $0x264] sm:$0xf] %v928_v45  ;;  %v1000_v61 = vld [vmem:[#allocation2 + $0x64] sm:$0xf]  ;;  %v855_v62 = vld [vmem:[#allocation2 + $0x6c] sm:$0xf]  ;;  %v626_v40 = vor.u32 %v624_v50, %v623_v57 }
  0xa2   : > { %v1219_v5 = vshrl.u32 %v999_v59, 16  ;;  %v1222_v58 = vshll.u32 %v999_v59, 16  ;;  %v1228_v1 = vshll.u32 %v1000_v61, 16  ;;  %v1498_v2 = vld [vmem:[#allocation2 + $0x60] sm:$0xe]  ;;  %v1232_v4 = vshrl.u32 %v1000_v61, 16 }
  0xa3   : > { %1457 = vst [vmem:[#allocation3 + $0x220] sm:$0xf] %v1217_v0  ;;  %v628_v56 = vrot.slane %v623_v57, 4  ;;  %v856_v6 = vsel %vm13705_vm13, %v618_v53, %v855_v62  ;;  %v1499_v8 = vld [vmem:[#allocation2 + $0x64] sm:$0xf]  ;;  %v11270_v13 = vrot.slane %v1498_v2, 9  ;;  %v627_v16 = vsel %vm13724_vm14, %v619_v25, %v626_v40 }
  0xa4   : > { %v1221_v9 = vrot.slane %v1219_v5, 4  ;;  %v1224_v10 = vrot.slane %v1222_v58, 5  ;;  %v1230_v12 = vrot.slane %v1228_v1, 5  ;;  %857 = vst [vmem:[#allocation2 + $0x6c] sm:$0xf] %v856_v6  ;;  %v1234_v15 = vrot.slane %v1232_v4, 4 }
  0xa5   : > { %v859_v14 = vld [vmem:[#allocation2 + $0x74] sm:$0x1]  ;;  %v1631_v34 = vrot.slane %v1499_v8, 5  ;;  %v1001_v19 = vld [vmem:[#allocation2 + $0x68] sm:$0x1]  ;;  %v630_v27 = vshrl.u32 %v14015_v63, 16 }
  0xa6   : > { %v860_v17 = vsel %vm13648_vm3, %v628_v56, %v859_v14  ;;  %v1225_v20 = vor.u32 %v1224_v10, %v1221_v9  ;;  %858 = vst [vmem:[#allocation2 + $0x70] sm:$0xf] %v627_v16  ;;  %v1500_v23 = vld [vmem:[#allocation2 + $0x68] sm:$0x1]  ;;  %v1235_v46 = vor.u32 %v1234_v15, %v1230_v12  ;;  %v1238_v60 = vshll.u32 %v1001_v19, 16  ;;  %v366_v57 = vld [vmem:[%s13673_s20 + $0xa0] sm:$0xff] }
  0xa7   : > { %861 = vst [vmem:[#allocation2 + $0x74] sm:$0x1] %v860_v17  ;;  %v1632_v25 = vsel %vm13697_vm12, %v11270_v13, %v1631_v34  ;;  %v1633_v41 = vrot.slane %v1631_v34, 4  ;;  %v13024_v28 = vld [vmem:[#allocation3 + $0x204] ss:$36 sps:$4 sm:$0xff]   ;;  %v1634_v35 = vrot.slane %v1500_v23, 5  ;;  %v14049_v5 = vpack.c.bf16 %v366_v57, %v366_v57 }
  0xa8   : > { %v13026_v50 = vld [vmem:[#allocation3 + $0x200] ss:$36 sps:$4 sm:$0xff]   ;;  %v1226_v29 = vrot.slane %v1225_v20, 4  ;;  %1733 = vst [vmem:[#allocation3 + $0x248] sm:$0xf] %v1632_v25  ;;  %v1236_v30 = vrot.slane %v1235_v46, 4  ;;  %5142 = vmatprep.mubr.bf16.mxu1 %v13024_v28 }
  0xa9   : > { %v1240_v31 = vrot.slane %v1238_v60, 5  ;;  %v14037_v36 = vrot.slane %v630_v27, 7  ;;  %v13023_v42 = vld [vmem:[#allocation3 + $0x1f8] ss:$36 sps:$4 sm:$0xff]   ;;  %v633_v43 = vshll.u32 %v14015_v63, 16  ;;  %5143 = vmatmul.mubr.bf16.gmra.mxu1 %v13026_v50  ;;  %v1635_v21 = vsel %vm13697_vm12, %v1633_v41, %v1634_v35  ;;  %v367_v16 = vld [vmem:[%s13673_s20 + $0xa8] sm:$0xff] }
  0xaa   : > { %v13021_v38 = vld [vmem:[#allocation3 + $0x1fc] ss:$36 sps:$4 sm:$0xff]   ;;  %v1231_v39 = vsel %vm13689_vm11, %v1226_v29, %v1230_v12  ;;  %1734 = vst [vmem:[#allocation3 + $0x26c] sm:$0xf] %v1635_v21  ;;  %v322_v63 = vld [vmem:[#allocation2 + $0x80] sm:$0x1]  ;;  %v11849_v50 = vpack.c.bf16 %v367_v16, %v367_v16 }
  0xab   : > { %v862_v44 = vld [vmem:[#allocation2 + $0x78] sm:$0xf]  ;;  %v1241_v11 = vsel %vm13689_vm11, %v1236_v30, %v1240_v31  ;;  %1458 = vst [vmem:[#allocation3 + $0x244] sm:$0xf] %v1231_v39  ;;  %v1765_v48 = vld [vmem:[#allocation2 + $0x6c] sm:$0xf]  ;;  %4981 = vmatprep.mubr.bf16.mxu0 %v13021_v38  ;;  %v635_v55 = vor.u32 %v633_v43, %v14037_v36 }
  0xac   : > { %v929_v49 = vld [vmem:[#allocation2 + $0x6c] sm:$0xf]  ;;  %1459 = vst [vmem:[#allocation3 + $0x268] sm:$0xf] %v1241_v11  ;;  %1797 = vst [vmem:[#allocation3 + $0x24c] sm:$0xf] %v1765_v48  ;;  %4982 = vmatmul.mubr.bf16.gmra.mxu0 %v13023_v42 }
  0xad   : > { %v1002_v51 = vld [vmem:[#allocation2 + $0x6c] sm:$0xf]  ;;  %961 = vst [vmem:[#allocation3 + $0x288] sm:$0xf] %v929_v49  ;;  %v636_v32 = vrot.slane %v14037_v36, 4  ;;  %v638_v56 = vshrl.u32 %v11847_v52, 16  ;;  %v863_v8 = vsel %vm13705_vm13, %v635_v55, %v862_v44 }
  0xae   : > { %v1243_v53 = vshrl.u32 %v1002_v51, 16  ;;  %v1246_v54 = vshll.u32 %v1002_v51, 16  ;;  %v1501_v45 = vld [vmem:[#allocation2 + $0x6c] sm:$0xe]  ;;  %v1766_v59 = vld [vmem:[#allocation2 + $0x70] sm:$0xf] }
  0xaf   : > { %v930_v61 = vld [vmem:[#allocation2 + $0x70] sm:$0xf]  ;;  %v269_v0 = vld [vmem:[#allocation2 + $0x84] sm:$0x1]  ;;  %1798 = vst [vmem:[#allocation3 + $0x270] sm:$0xf] %v1766_v59 }
  0xb0   : > { %v1003_v62 = vld [vmem:[#allocation2 + $0x70] sm:$0xf]  ;;  %962 = vst [vmem:[#allocation3 + $0x2ac] sm:$0xf] %v930_v61  ;;  %v1004_v58 = vld [vmem:[#allocation2 + $0x74] sm:$0x1] }
  0xb1   : > { %v1245_v1 = vrot.slane %v1243_v53, 4  ;;  %v1248_v2 = vrot.slane %v1246_v54, 5  ;;  %v1252_v3 = vshll.u32 %v1003_v62, 16  ;;  %v1256_v4 = vshrl.u32 %v1003_v62, 16  ;;  %v1502_v9 = vld [vmem:[#allocation2 + $0x70] sm:$0xf] }
  0xb2   : > { %v1262_v40 = vshll.u32 %v1004_v58, 16  ;;  %v641_v6 = vshll.u32 %v11847_v52, 16  ;;  %864 = vst [vmem:[#allocation2 + $0x78] sm:$0xf] %v863_v8  ;;  %v1503_v14 = vld [vmem:[#allocation2 + $0x74] sm:$0x1] }
  0xb3   : > { %v1249_v10 = vor.u32 %v1248_v2, %v1245_v1  ;;  %v1254_v12 = vrot.slane %v1252_v3, 5  ;;  %v1258_v13 = vrot.slane %v1256_v4, 4  ;;  %v11271_v15 = vrot.slane %v1501_v45, 9  ;;  %v13027_v46 = vld [vmem:[#allocation3 + $0x244] ss:$36 sps:$4 sm:$0xff]   ;;  %v368_v38 = vld [vmem:[%s13673_s20 + $0xb0] sm:$0xff] }
  0xb4   : > { %v1264_v34 = vrot.slane %v1262_v40, 5  ;;  %v14054_v17 = vrot.slane %v638_v56, 7  ;;  %v1638_v18 = vrot.slane %v1502_v9, 5  ;;  %v1641_v19 = vrot.slane %v1503_v14, 5  ;;  %v13030_v60 = vld [vmem:[#allocation3 + $0x240] ss:$36 sps:$4 sm:$0xff]   ;;  %4989 = vmatprep.mubr.bf16.mxu0 %v13027_v46 }
  0xb5   : > { %v1250_v20 = vrot.slane %v1249_v10, 4  ;;  %v1259_v23 = vor.u32 %v1258_v13, %v1254_v12  ;;  %v323_v26 = vsel %vm13656_vm4, 0, %v322_v63  ;;  %v270_v27 = vsel %vm13648_vm3, 0, %v269_v0  ;;  %v325_v36 = vld [vmem:[#allocation2 + $0x8c] sm:$0x1]  ;;  %4990 = vmatmul.mubr.bf16.gmra.mxu0 %v13030_v60  ;;  %v369_v52 = vld [vmem:[%s13673_s20 + $0xb8] sm:$0xff] }
  0xb6   : > { %v643_v25 = vor.u32 %v641_v6, %v14054_v17  ;;  %v645_v41 = vrot.slane %v14054_v17, 4  ;;  %v1639_v28 = vsel %vm13697_vm12, %v11271_v15, %v1638_v18  ;;  %324 = vst [vmem:[#allocation2 + $0x80] sm:$0x1] %v323_v26  ;;  %271 = vst [vmem:[#allocation2 + $0x84] sm:$0x1] %v270_v27  ;;  %v1640_v31 = vrot.slane %v1638_v18, 4 }
  0xb7   : > { %v1255_v29 = vsel %vm13689_vm11, %v1250_v20, %v1254_v12  ;;  %v1260_v30 = vrot.slane %v1259_v23, 4  ;;  %1735 = vst [vmem:[#allocation3 + $0x290] sm:$0xf] %v1639_v28  ;;  %v647_v35 = vshrl.u32 %v14049_v5, 16  ;;  %v13057_v42 = vld [vmem:[%s16984_s1 + $0x148] sm:$0xff]   ;;  %v650_v11 = vshll.u32 %v14049_v5, 16 }
  0xb8   : > { %v13032_v39 = vld [vmem:[#allocation3 + $0x24c] ss:$36 sps:$4 sm:$0xff]   ;;  %1460 = vst [vmem:[#allocation3 + $0x28c] sm:$0xf] %v1255_v29  ;;  %v644_v44 = vsel %vm13724_vm14, %v636_v32, %v643_v25  ;;  %v1642_v48 = vsel %vm13697_vm12, %v1640_v31, %v1641_v19  ;;  %v655_v51 = vshrl.u32 %v11849_v50, 16  ;;  %12128 = vmatprep.subr.bf16.mxu0 %v13057_v42  ;;  %v14079_v45 = vpack.c.bf16 %v368_v38, %v368_v38  ;;  %v13063_v31 = vld [vmem:[%s16984_s1 + $0x1f8] sm:$0xff]  }
  0xb9   : > { %v13034_v43 = vld [vmem:[#allocation3 + $0x248] ss:$36 sps:$4 sm:$0xff]   ;;  %v1265_v21 = vsel %vm13689_vm11, %v1260_v30, %v1264_v34  ;;  %865 = vst [vmem:[#allocation2 + $0x7c] sm:$0xf] %v644_v44  ;;  %v649_v49 = vrot.slane %v647_v35, 7  ;;  %5150 = vmatprep.mubr.bf16.mxu1 %v13032_v39  ;;  %v13059_v0 = vld [vmem:[%s16984_s1 + $0x108] sm:$0xff]   ;;  %v11851_v6 = vpack.c.bf16 %v369_v52, %v369_v52  ;;  %12228 = vmatprep.subr.bf16.mxu1 %v13063_v31 }
  0xba   : > { %1461 = vst [vmem:[#allocation3 + $0x2b0] sm:$0xf] %v1265_v21  ;;  %1736 = vst [vmem:[#allocation3 + $0x2b4] sm:$0xf] %v1642_v48  ;;  %v1767_v53 = vld [vmem:[#allocation2 + $0x78] sm:$0xf]  ;;  %5151 = vmatmul.mubr.bf16.gmra.mxu1 %v13034_v43  ;;  %12129 = vmatpush3.bf16.msra.mxu0 %v13059_v0 }
  0xbb   : > { %v931_v54 = vld [vmem:[#allocation2 + $0x78] sm:$0xf]  ;;  %v272_v32 = vld [vmem:[#allocation2 + $0x90] sm:$0x1]  ;;  %1799 = vst [vmem:[#allocation3 + $0x294] sm:$0xf] %v1767_v53  ;;  %v652_v61 = vor.u32 %v650_v11, %v649_v49 }
  0xbc   : > { %v1005_v55 = vld [vmem:[#allocation2 + $0x78] sm:$0xf]  ;;  %963 = vst [vmem:[#allocation3 + $0x2d0] sm:$0xf] %v931_v54  ;;  %v653_v62 = vrot.slane %v649_v49, 4  ;;  %v657_v5 = vrot.slane %v655_v51, 7 }
  0xbd   : > { %v1267_v57 = vshrl.u32 %v1005_v55, 16  ;;  %v1270_v59 = vshll.u32 %v1005_v55, 16  ;;  %v1504_v63 = vld [vmem:[#allocation2 + $0x78] sm:$0xe]  ;;  %v658_v58 = vshll.u32 %v11849_v50, 16  ;;  %v326_v2 = vsel %vm13656_vm4, 0, %v325_v36 }
  0xbe   : > { %v11272_v1 = vrot.slane %v1504_v63, 9  ;;  %v866_v3 = vld [vmem:[#allocation2 + $0x80] sm:$0x1]  ;;  %v869_v56 = vld [vmem:[#allocation2 + $0x84] sm:$0xf]  ;;  %v662_v10 = vrot.slane %v657_v5, 4 }
  0xbf   : > { %v1269_v4 = vrot.slane %v1267_v57, 4  ;;  %v1272_v40 = vrot.slane %v1270_v59, 5  ;;  %327 = vst [vmem:[#allocation2 + $0x8c] sm:$0x1] %v326_v2  ;;  %v867_v8 = vsel %vm13648_vm3, %v645_v41, %v866_v3  ;;  %v660_v9 = vor.u32 %v658_v58, %v657_v5  ;;  %v328_v34 = vld [vmem:[#allocation2 + $0x98] sm:$0x1] }
  0xc0   : > { %v870_v12 = vsel %vm13705_vm13, %v652_v61, %v869_v56  ;;  %868 = vst [vmem:[#allocation2 + $0x80] sm:$0x1] %v867_v8  ;;  %v273_v14 = vsel %vm13648_vm3, 0, %v272_v32  ;;  %v664_v15 = vshrl.u32 %v14079_v45, 16  ;;  %v667_v16 = vshll.u32 %v14079_v45, 16  ;;  %v13064_v39 = vld [vmem:[%s16984_s1 + $0x1b8] sm:$0xff]  }
  0xc1   : > { %v1273_v13 = vor.u32 %v1272_v40, %v1269_v4  ;;  %871 = vst [vmem:[#allocation2 + $0x84] sm:$0xf] %v870_v12  ;;  %v1768_v17 = vld [vmem:[#allocation2 + $0x7c] sm:$0xf]  ;;  %v661_v20 = vsel %vm13724_vm14, %v653_v62, %v660_v9  ;;  %274 = vst [vmem:[#allocation2 + $0x90] sm:$0x1] %v273_v14  ;;  %12229 = vmatpush3.bf16.msra.mxu1 %v13064_v39 }
  0xc2   : > { %v932_v18 = vld [vmem:[#allocation2 + $0x7c] sm:$0xf]  ;;  %v13035_v23 = vld [vmem:[#allocation3 + $0x28c] ss:$36 sps:$4 sm:$0xff]   ;;  %1800 = vst [vmem:[#allocation3 + $0x2b8] sm:$0xf] %v1768_v17 }
  0xc3   : > { %v1006_v19 = vld [vmem:[#allocation2 + $0x7c] sm:$0xf]  ;;  %v13037_v26 = vld [vmem:[#allocation3 + $0x288] ss:$36 sps:$4 sm:$0xff]   ;;  %964 = vst [vmem:[#allocation3 + $0x2f4] sm:$0xf] %v932_v18  ;;  %4997 = vmatprep.mubr.bf16.mxu0 %v13035_v23 }
  0xc4   : > { %v1274_v27 = vrot.slane %v1273_v13, 4  ;;  %872 = vst [vmem:[#allocation2 + $0x88] sm:$0xf] %v661_v20  ;;  %v1276_v46 = vshll.u32 %v1006_v19, 16  ;;  %v1280_v60 = vshrl.u32 %v1006_v19, 16  ;;  %v666_v41 = vrot.slane %v664_v15, 7  ;;  %4998 = vmatmul.mubr.bf16.gmra.mxu0 %v13037_v26 }
  0xc5   : > { %v1505_v25 = vld [vmem:[#allocation2 + $0x7c] sm:$0xf]  ;;  %v672_v50 = vshrl.u32 %v11851_v6, 16  ;;  %v675_v29 = vshll.u32 %v11851_v6, 16  ;;  %v329_v30 = vsel %vm13656_vm4, 0, %v328_v34  ;;  %v370_v48 = vld [vmem:[%s13673_s20 + $0xc0] sm:$0xff] }
  0xc6   : > { %v1645_v28 = vrot.slane %v1505_v25, 5  ;;  %v1278_v35 = vrot.slane %v1276_v46, 5  ;;  %v1282_v36 = vrot.slane %v1280_v60, 4  ;;  %v873_v38 = vld [vmem:[#allocation2 + $0x8c] sm:$0x1]  ;;  %v670_v42 = vrot.slane %v666_v41, 4 }
  0xc7   : > { %330 = vst [vmem:[#allocation2 + $0x98] sm:$0x1] %v329_v30  ;;  %v874_v11 = vsel %vm13648_vm3, %v662_v10, %v873_v38  ;;  %v674_v21 = vrot.slane %v672_v50, 7  ;;  %v1007_v49 = vld [vmem:[#allocation2 + $0x80] sm:$0x1]  ;;  %v669_v0 = vor.u32 %v667_v16, %v666_v41  ;;  %v14115_v10 = vpack.c.bf16 %v370_v48, %v370_v48  ;;  %v13065_v34 = vld [vmem:[%s16984_s1 + $0x1f0] sm:$0xff]  }
  0xc8   : > { %v1646_v43 = vsel %vm13697_vm12, %v11272_v1, %v1645_v28  ;;  %v1647_v44 = vrot.slane %v1645_v28, 4  ;;  %v1279_v51 = vsel %vm13689_vm11, %v1274_v27, %v1278_v35  ;;  %v1283_v52 = vor.u32 %v1282_v36, %v1278_v35  ;;  %v1506_v53 = vld [vmem:[#allocation2 + $0x80] sm:$0x1]  ;;  %v1769_v54 = vld [vmem:[#allocation2 + $0x84] sm:$0xf]  ;;  %12230 = vmatprep.subr.bf16.mxu1 %v13065_v34  ;;  %v13068_v30 = vld [vmem:[%s16984_s1 + $0x1b0] sm:$0xff]  }
  0xc9   : > { %1737 = vst [vmem:[#allocation3 + $0x2d8] sm:$0xf] %v1646_v43  ;;  %875 = vst [vmem:[#allocation2 + $0x8c] sm:$0x1] %v874_v11  ;;  %v1286_v55 = vshll.u32 %v1007_v49, 16  ;;  %v1648_v32 = vrot.slane %v1506_v53, 5  ;;  %v677_v59 = vor.u32 %v675_v29, %v674_v21  ;;  %12231 = vmatpush3.bf16.msra.mxu1 %v13068_v30 }
  0xca   : > { %1462 = vst [vmem:[#allocation3 + $0x2d4] sm:$0xf] %v1279_v51  ;;  %1801 = vst [vmem:[#allocation3 + $0x2dc] sm:$0xf] %v1769_v54  ;;  %v933_v45 = vld [vmem:[#allocation2 + $0x84] sm:$0xf] }
  0xcb   : > { %v1008_v57 = vld [vmem:[#allocation2 + $0x84] sm:$0xf]  ;;  %v13038_v61 = vld [vmem:[#allocation3 + $0x294] ss:$36 sps:$4 sm:$0xff]   ;;  %v1284_v63 = vrot.slane %v1283_v52, 4  ;;  %v1288_v5 = vrot.slane %v1286_v55, 5  ;;  %v1649_v58 = vsel %vm13697_vm12, %v1647_v44, %v1648_v32  ;;  %v678_v4 = vsel %vm13724_vm14, %v670_v42, %v677_v59 }
  0xcc   : > { %v13040_v62 = vld [vmem:[#allocation3 + $0x290] ss:$36 sps:$4 sm:$0xff]   ;;  %965 = vst [vmem:[#allocation3 + $0x318] sm:$0xf] %v933_v45  ;;  %v1291_v3 = vshrl.u32 %v1008_v57, 16  ;;  %5158 = vmatprep.mubr.bf16.mxu1 %v13038_v61  ;;  %v1294_v56 = vshll.u32 %v1008_v57, 16 }
  0xcd   : > { %v1770_v1 = vld [vmem:[#allocation2 + $0x88] sm:$0xf]  ;;  %1738 = vst [vmem:[#allocation3 + $0x2fc] sm:$0xf] %v1649_v58  ;;  %v679_v6 = vrot.slane %v674_v21, 4  ;;  %5159 = vmatmul.mubr.bf16.gmra.mxu1 %v13040_v62  ;;  %v1289_v12 = vsel %vm13689_vm11, %v1284_v63, %v1288_v5  ;;  %v681_v38 = vshrl.u32 %v14115_v10, 16 }
  0xce   : > { %v934_v2 = vld [vmem:[#allocation2 + $0x88] sm:$0xf]  ;;  %1802 = vst [vmem:[#allocation3 + $0x300] sm:$0xf] %v1770_v1  ;;  %v876_v8 = vld [vmem:[#allocation2 + $0x90] sm:$0xf] }
  0xcf   : > { %966 = vst [vmem:[#allocation3 + $0x33c] sm:$0xf] %v934_v2  ;;  %v1009_v40 = vld [vmem:[#allocation2 + $0x88] sm:$0xf]  ;;  %879 = vst [vmem:[#allocation2 + $0x94] sm:$0xf] %v678_v4  ;;  %v877_v18 = vsel %vm13705_vm13, %v669_v0, %v876_v8 }
  0xd0   : > { %v275_v9 = vld [vmem:[#allocation2 + $0x9c] sm:$0x1]  ;;  %v1293_v13 = vrot.slane %v1291_v3, 4  ;;  %v1300_v14 = vshll.u32 %v1009_v40, 16  ;;  %v1304_v15 = vshrl.u32 %v1009_v40, 16  ;;  %v1296_v17 = vrot.slane %v1294_v56, 5 }
  0xd1   : > { %v1507_v16 = vld [vmem:[#allocation2 + $0x84] sm:$0xe]  ;;  %1463 = vst [vmem:[#allocation3 + $0x2f8] sm:$0xf] %v1289_v12  ;;  %v1508_v19 = vld [vmem:[#allocation2 + $0x88] sm:$0xf] }
  0xd2   : > { %v11273_v20 = vrot.slane %v1507_v16, 9  ;;  %v880_v23 = vld [vmem:[#allocation2 + $0x98] sm:$0x1]  ;;  %v1010_v26 = vld [vmem:[#allocation2 + $0x8c] sm:$0x1]  ;;  %v1302_v27 = vrot.slane %v1300_v14, 5  ;;  %v1297_v41 = vor.u32 %v1296_v17, %v1293_v13 }
  0xd3   : > { %v1306_v46 = vrot.slane %v1304_v15, 4  ;;  %878 = vst [vmem:[#allocation2 + $0x90] sm:$0xf] %v877_v18  ;;  %v1509_v60 = vld [vmem:[#allocation2 + $0x8c] sm:$0x1]  ;;  %v881_v25 = vsel %vm13648_vm3, %v679_v6, %v880_v23  ;;  %v1310_v28 = vshll.u32 %v1010_v26, 16 }
  0xd4   : > { %v1652_v50 = vrot.slane %v1508_v19, 5  ;;  %v1655_v29 = vrot.slane %v1509_v60, 5  ;;  %882 = vst [vmem:[#allocation2 + $0x98] sm:$0x1] %v881_v25  ;;  %v276_v35 = vsel %vm13648_vm3, 0, %v275_v9  ;;  %v371_v36 = vld [vmem:[%s13673_s20 + $0xc8] sm:$0xff] }
  0xd5   : > { %v1307_v31 = vor.u32 %v1306_v46, %v1302_v27  ;;  %v684_v42 = vshll.u32 %v14115_v10, 16  ;;  %v1298_v39 = vrot.slane %v1297_v41, 4  ;;  %v1312_v43 = vrot.slane %v1310_v28, 5  ;;  %277 = vst [vmem:[#allocation2 + $0x9c] sm:$0x1] %v276_v35  ;;  %v372_v21 = vld [vmem:[%s13673_s20 + $0xd0] sm:$0xff] }
  0xd6   : > { %v1653_v44 = vsel %vm13697_vm12, %v11273_v20, %v1652_v50  ;;  %v1654_v11 = vrot.slane %v1652_v50, 4  ;;  %v13046_v48 = vld [vmem:[#allocation3 + $0x2dc] ss:$36 sps:$4 sm:$0xff]   ;;  %v11853_v45 = vpack.c.bf16 %v371_v36, %v371_v36  ;;  %v13044_v59 = vld [vmem:[#allocation3 + $0x2d0] ss:$36 sps:$4 sm:$0xff]   ;;  %v14143_v58 = vpack.c.bf16 %v372_v21, %v372_v21 }
  0xd7   : > { %v13048_v49 = vld [vmem:[#allocation3 + $0x2d8] ss:$36 sps:$4 sm:$0xff]   ;;  %v1308_v51 = vrot.slane %v1307_v31, 4  ;;  %1739 = vst [vmem:[#allocation3 + $0x320] sm:$0xf] %v1653_v44  ;;  %v1303_v52 = vsel %vm13689_vm11, %v1298_v39, %v1302_v27  ;;  %5166 = vmatprep.mubr.bf16.mxu1 %v13046_v48  ;;  %v683_v6 = vrot.slane %v681_v38, 7 }
  0xd8   : > { %v1656_v53 = vsel %vm13697_vm12, %v1654_v11, %v1655_v29  ;;  %v1772_v54 = vld [vmem:[#allocation2 + $0x94] sm:$0xf]  ;;  %v13041_v57 = vld [vmem:[#allocation3 + $0x2d4] ss:$36 sps:$4 sm:$0xff]   ;;  %1464 = vst [vmem:[#allocation3 + $0x31c] sm:$0xf] %v1303_v52  ;;  %5167 = vmatmul.mubr.bf16.gmra.mxu1 %v13048_v49 }
  0xd9   : > { %v936_v55 = vld [vmem:[#allocation2 + $0x94] sm:$0xf]  ;;  %v1313_v61 = vsel %vm13689_vm11, %v1308_v51, %v1312_v43  ;;  %1740 = vst [vmem:[#allocation3 + $0x344] sm:$0xf] %v1656_v53  ;;  %1804 = vst [vmem:[#allocation3 + $0x348] sm:$0xf] %v1772_v54  ;;  %5005 = vmatprep.mubr.bf16.mxu0 %v13041_v57  ;;  %v686_v34 = vor.u32 %v684_v42, %v683_v6 }
  0xda   : > { %v1012_v32 = vld [vmem:[#allocation2 + $0x94] sm:$0xf]  ;;  %968 = vst [vmem:[#allocation3 + $0x384] sm:$0xf] %v936_v55  ;;  %1465 = vst [vmem:[#allocation3 + $0x340] sm:$0xf] %v1313_v61  ;;  %5006 = vmatmul.mubr.bf16.gmra.mxu0 %v13044_v59 }
  0xdb   : > { %v1324_v62 = vshll.u32 %v1012_v32, 16  ;;  %v1771_v63 = vld [vmem:[#allocation2 + $0x90] sm:$0xf]  ;;  %v1013_v1 = vld [vmem:[#allocation2 + $0x98] sm:$0x1]  ;;  %v1328_v40 = vshrl.u32 %v1012_v32, 16 }
  0xdc   : > { %v935_v0 = vld [vmem:[#allocation2 + $0x90] sm:$0xf]  ;;  %1803 = vst [vmem:[#allocation3 + $0x324] sm:$0xf] %v1771_v63  ;;  %v1334_v56 = vshll.u32 %v1013_v1, 16  ;;  %v689_v8 = vshrl.u32 %v11853_v45, 16 }
  0xdd   : > { %v1011_v5 = vld [vmem:[#allocation2 + $0x90] sm:$0xf]  ;;  %967 = vst [vmem:[#allocation3 + $0x360] sm:$0xf] %v935_v0  ;;  %v1326_v4 = vrot.slane %v1324_v62, 5  ;;  %v692_v9 = vshll.u32 %v11853_v45, 16 }
  0xde   : > { %v1315_v2 = vshrl.u32 %v1011_v5, 16  ;;  %v1318_v3 = vshll.u32 %v1011_v5, 16  ;;  %v1510_v10 = vld [vmem:[#allocation2 + $0x90] sm:$0xe]  ;;  %v1330_v14 = vrot.slane %v1328_v40, 4  ;;  %v687_v17 = vrot.slane %v683_v6, 4 }
  0xdf   : > { %v883_v15 = vld [vmem:[#allocation2 + $0x9c] sm:$0xf]  ;;  %v11274_v16 = vrot.slane %v1510_v10, 9  ;;  %v14145_v18 = vrot.slane %v689_v8, 7  ;;  %v1511_v19 = vld [vmem:[#allocation2 + $0x94] sm:$0xf] }
  0xe0   : > { %v1317_v12 = vrot.slane %v1315_v2, 4  ;;  %v1320_v13 = vrot.slane %v1318_v3, 5  ;;  %v373_v20 = vld [vmem:[%s13673_s20 + $0xd8] sm:$0xff]  ;;  %v13073_v23 = vld [vmem:[%s16984_s1 + $0x1e8] sm:$0xff]   ;;  %v1331_v27 = vor.u32 %v1330_v14, %v1326_v4  ;;  %v1659_v60 = vrot.slane %v1511_v19, 5  ;;  %v13075_v62 = vld [vmem:[%s16984_s1 + $0x1e0] sm:$0xff]  }
  0xe1   : > { %v1512_v46 = vld [vmem:[#allocation2 + $0x98] sm:$0x1]  ;;  %v698_v25 = vshrl.u32 %v14143_v58, 16  ;;  %v1336_v41 = vrot.slane %v1334_v56, 5  ;;  %v694_v28 = vor.u32 %v692_v9, %v14145_v18  ;;  %v884_v50 = vsel %vm13705_vm13, %v686_v34, %v883_v15  ;;  %12232 = vmatprep.subr.bf16.mxu1 %v13073_v23  ;;  %v13051_v31 = vld [vmem:[#allocation3 + $0x318] ss:$36 sps:$4 sm:$0xff]  }
  0xe2   : > { %v1321_v26 = vor.u32 %v1320_v13, %v1317_v12  ;;  %v1662_v29 = vrot.slane %v1512_v46, 5  ;;  %v13049_v30 = vld [vmem:[#allocation3 + $0x31c] ss:$36 sps:$4 sm:$0xff]   ;;  %885 = vst [vmem:[#allocation2 + $0x9c] sm:$0xf] %v884_v50  ;;  %v1660_v36 = vsel %vm13697_vm12, %v11274_v16, %v1659_v60  ;;  %v11855_v38 = vpack.c.bf16 %v373_v20, %v373_v20  ;;  %v13074_v59 = vld [vmem:[%s16984_s1 + $0x1a8] sm:$0xff]  }
  0xe3   : > { %v13052_v42 = vld [vmem:[#allocation3 + $0x324] ss:$36 sps:$4 sm:$0xff]   ;;  %v1332_v43 = vrot.slane %v1331_v27, 4  ;;  %v695_v44 = vsel %vm13724_vm14, %v687_v17, %v694_v28  ;;  %1741 = vst [vmem:[#allocation3 + $0x368] sm:$0xf] %v1660_v36  ;;  %5013 = vmatprep.mubr.bf16.mxu0 %v13049_v30  ;;  %v1661_v21 = vrot.slane %v1659_v60, 4  ;;  %12233 = vmatpush3.bf16.msra.mxu1 %v13074_v59 }
  0xe4   : > { %v1322_v35 = vrot.slane %v1321_v26, 4  ;;  %v13054_v39 = vld [vmem:[#allocation3 + $0x320] ss:$36 sps:$4 sm:$0xff]   ;;  %886 = vst [vmem:[#allocation2 + $0xa0] sm:$0xf] %v695_v44  ;;  %v700_v49 = vrot.slane %v698_v25, 7  ;;  %5014 = vmatmul.mubr.bf16.gmra.mxu0 %v13051_v31  ;;  %5174 = vmatprep.mubr.bf16.mxu1 %v13052_v42 }
  0xe5   : > { %v331_v48 = vld [vmem:[#allocation2 + $0xa4] sm:$0x1]  ;;  %v1337_v51 = vsel %vm13689_vm11, %v1332_v43, %v1336_v41  ;;  %v278_v53 = vld [vmem:[#allocation2 + $0xa8] sm:$0x1]  ;;  %v701_v54 = vshll.u32 %v14143_v58, 16  ;;  %5175 = vmatmul.mubr.bf16.gmra.mxu1 %v13054_v39  ;;  %v1663_v55 = vsel %vm13697_vm12, %v1661_v21, %v1662_v29  ;;  %v706_v57 = vshrl.u32 %v11855_v38, 16  ;;  %12234 = vmatprep.subr.bf16.mxu1 %v13075_v62 }
  0xe6   : > { %v1327_v11 = vsel %vm13689_vm11, %v1322_v35, %v1326_v4  ;;  %v332_v52 = vsel %vm13656_vm4, 0, %v331_v48  ;;  %1467 = vst [vmem:[#allocation3 + $0x388] sm:$0xf] %v1337_v51  ;;  %v279_v32 = vsel %vm13648_vm3, 0, %v278_v53  ;;  %v704_v45 = vrot.slane %v700_v49, 4  ;;  %v13078_v0 = vld [vmem:[%s16984_s1 + $0x140] sm:$0xff]  }
  0xe7   : > { %1466 = vst [vmem:[#allocation3 + $0x364] sm:$0xf] %v1327_v11  ;;  %333 = vst [vmem:[#allocation2 + $0xa4] sm:$0x1] %v332_v52  ;;  %v709_v61 = vshll.u32 %v11855_v38, 16  ;;  %v14176_v63 = vrot.slane %v706_v57, 7  ;;  %12130 = vmatprep.subr.bf16.mxu0 %v13078_v0  ;;  %v703_v12 = vor.u32 %v701_v54, %v700_v49 }
  0xe8   : > { %1742 = vst [vmem:[#allocation3 + $0x38c] sm:$0xf] %v1663_v55  ;;  %280 = vst [vmem:[#allocation2 + $0xa8] sm:$0x1] %v279_v32  ;;  %v696_v2 = vrot.slane %v14145_v18, 4  ;;  %v13079_v6 = vld [vmem:[%s16984_s1 + $0x1a0] sm:$0xff]  }
  0xe9   : > { %v1773_v5 = vld [vmem:[#allocation2 + $0x9c] sm:$0xf]  ;;  %v711_v40 = vor.u32 %v709_v61, %v14176_v63  ;;  %12235 = vmatpush3.bf16.msra.mxu1 %v13079_v6  ;;  %v13081_v34 = vld [vmem:[%s16984_s1 + $0x100] sm:$0xff]   ;;  %v334_v50 = vld [vmem:[#allocation2 + $0xb0] sm:$0x1]  ;;  %v713_v38 = vrot.slane %v14176_v63, 4 }
  0xea   : > { %v937_v58 = vld [vmem:[#allocation2 + $0x9c] sm:$0xf]  ;;  %1805 = vst [vmem:[#allocation3 + $0x36c] sm:$0xf] %v1773_v5  ;;  %12131 = vmatpush3.bf16.msra.mxu0 %v13081_v34  ;;  %v335_v35 = vsel %vm13656_vm4, 0, %v334_v50  ;;  %v374_v36 = vld [vmem:[%s13673_s20 + $0xe0] sm:$0xff] }
  0xeb   : > { %v1014_v1 = vld [vmem:[#allocation2 + $0x9c] sm:$0xf]  ;;  %969 = vst [vmem:[#allocation3 + $0x3a8] sm:$0xf] %v937_v58  ;;  %v1774_v8 = vld [vmem:[#allocation2 + $0xa0] sm:$0xf]  ;;  %v712_v19 = vsel %vm13724_vm14, %v704_v45, %v711_v40  ;;  %v11856_v42 = vpack.c.bf16 %v374_v36, %v374_v36 }
  0xec   : > { %v1339_v3 = vshrl.u32 %v1014_v1, 16  ;;  %v1342_v4 = vshll.u32 %v1014_v1, 16  ;;  %v1513_v56 = vld [vmem:[#allocation2 + $0x9c] sm:$0xe]  ;;  %v938_v9 = vld [vmem:[#allocation2 + $0xa0] sm:$0xf] }
  0xed   : > { %v1015_v10 = vld [vmem:[#allocation2 + $0xa0] sm:$0xf]  ;;  %1806 = vst [vmem:[#allocation3 + $0x390] sm:$0xf] %v1774_v8  ;;  %970 = vst [vmem:[#allocation3 + $0x3cc] sm:$0xf] %v938_v9 }
  0xee   : > { %v1341_v13 = vrot.slane %v1339_v3, 4  ;;  %v1344_v14 = vrot.slane %v1342_v4, 5  ;;  %v1348_v15 = vshll.u32 %v1015_v10, 16  ;;  %v1352_v16 = vshrl.u32 %v1015_v10, 16  ;;  %v13055_v17 = vld [vmem:[#allocation3 + $0x364] ss:$36 sps:$4 sm:$0xff]  }
  0xef   : > { %v13058_v18 = vld [vmem:[#allocation3 + $0x360] ss:$36 sps:$4 sm:$0xff]   ;;  %v11275_v20 = vrot.slane %v1513_v56, 9  ;;  %v887_v23 = vld [vmem:[#allocation2 + $0xa4] sm:$0x1]  ;;  %5021 = vmatprep.mubr.bf16.mxu0 %v13055_v17  ;;  %v715_v49 = vshrl.u32 %v11856_v42, 16 }
  0xf0   : > { %v1345_v26 = vor.u32 %v1344_v14, %v1341_v13  ;;  %v1350_v27 = vrot.slane %v1348_v15, 5  ;;  %v1354_v46 = vrot.slane %v1352_v16, 4  ;;  %v890_v60 = vld [vmem:[#allocation2 + $0xa8] sm:$0xf]  ;;  %893 = vst [vmem:[#allocation2 + $0xac] sm:$0xf] %v712_v19  ;;  %v888_v25 = vsel %vm13648_vm3, %v696_v2, %v887_v23  ;;  %5022 = vmatmul.mubr.bf16.gmra.mxu0 %v13058_v18 }
  0xf1   : > { %v891_v41 = vsel %vm13705_vm13, %v703_v12, %v890_v60  ;;  %v1514_v28 = vld [vmem:[#allocation2 + $0xa0] sm:$0xf]  ;;  %889 = vst [vmem:[#allocation2 + $0xa4] sm:$0x1] %v888_v25  ;;  %336 = vst [vmem:[#allocation2 + $0xb0] sm:$0x1] %v335_v35 }
  0xf2   : > { %v1346_v29 = vrot.slane %v1345_v26, 4  ;;  %v1355_v30 = vor.u32 %v1354_v46, %v1350_v27  ;;  %892 = vst [vmem:[#allocation2 + $0xa8] sm:$0xf] %v891_v41  ;;  %v1666_v31 = vrot.slane %v1514_v28, 5  ;;  %v13062_v48 = vld [vmem:[#allocation3 + $0x368] ss:$36 sps:$4 sm:$0xff]  }
  0xf3   : > { %v281_v51 = vld [vmem:[#allocation2 + $0xb4] sm:$0x1]  ;;  %v375_v52 = vld [vmem:[%s13673_s20 + $0xe8] sm:$0xff]  ;;  %v718_v53 = vshll.u32 %v11856_v42, 16  ;;  %v717_v61 = vrot.slane %v715_v49, 7  ;;  %v13085_v10 = vld [vmem:[%s16984_s1 + $0x1d8] sm:$0xff]  }
  0xf4   : > { %v1351_v39 = vsel %vm13689_vm11, %v1346_v29, %v1350_v27  ;;  %v1356_v43 = vrot.slane %v1355_v30, 4  ;;  %v1667_v44 = vsel %vm13697_vm12, %v11275_v20, %v1666_v31  ;;  %v1668_v11 = vrot.slane %v1666_v31, 4  ;;  %v13060_v21 = vld [vmem:[#allocation3 + $0x36c] ss:$36 sps:$4 sm:$0xff]   ;;  %12236 = vmatprep.subr.bf16.mxu1 %v13085_v10  ;;  %v13086_v20 = vld [vmem:[%s16984_s1 + $0x198] sm:$0xff]   ;;  %v13087_v60 = vld [vmem:[%s16984_s1 + $0x1d0] sm:$0xff]  }
  0xf5   : > { %1468 = vst [vmem:[#allocation3 + $0x3ac] sm:$0xf] %v1351_v39  ;;  %1743 = vst [vmem:[#allocation3 + $0x3b0] sm:$0xf] %v1667_v44  ;;  %5182 = vmatprep.mubr.bf16.mxu1 %v13060_v21  ;;  %v282_v59 = vsel %vm13648_vm3, 0, %v281_v51  ;;  %v11857_v5 = vpack.c.bf16 %v375_v52, %v375_v52  ;;  %v720_v9 = vor.u32 %v718_v53, %v717_v61  ;;  %v721_v25 = vrot.slane %v717_v61, 4 }
  0xf6   : > { %5183 = vmatmul.mubr.bf16.gmra.mxu1 %v13062_v48  ;;  %283 = vst [vmem:[#allocation2 + $0xb4] sm:$0x1] %v282_v59  ;;  %v13090_v31 = vld [vmem:[%s16984_s1 + $0x190] sm:$0xff]   ;;  %v337_v42 = vld [vmem:[#allocation2 + $0xbc] sm:$0x1] }
  0xf7   : > { %v1776_v54 = vld [vmem:[#allocation2 + $0xac] sm:$0xf]  ;;  %v723_v17 = vshrl.u32 %v11857_v5, 16  ;;  %v726_v18 = vshll.u32 %v11857_v5, 16  ;;  %12237 = vmatpush3.bf16.msra.mxu1 %v13086_v20  ;;  %v284_v48 = vld [vmem:[#allocation2 + $0xc0] sm:$0x1] }
  0xf8   : > { %v940_v55 = vld [vmem:[#allocation2 + $0xac] sm:$0xf]  ;;  %1808 = vst [vmem:[#allocation3 + $0x3d8] sm:$0xf] %v1776_v54  ;;  %v1016_v62 = vld [vmem:[#allocation2 + $0xa4] sm:$0x1]  ;;  %12238 = vmatprep.subr.bf16.mxu1 %v13087_v60 }
  0xf9   : > { %v1018_v32 = vld [vmem:[#allocation2 + $0xac] sm:$0xf]  ;;  %972 = vst [vmem:[#allocation3 + $0x414] sm:$0xf] %v940_v55  ;;  %v1515_v63 = vld [vmem:[#allocation2 + $0xa4] sm:$0x1] }
  0xfa   : > { %v1372_v45 = vshll.u32 %v1018_v32, 16  ;;  %v1376_v57 = vshrl.u32 %v1018_v32, 16  ;;  %v1775_v0 = vld [vmem:[#allocation2 + $0xa8] sm:$0xf]  ;;  %v1517_v58 = vld [vmem:[#allocation2 + $0xac] sm:$0xf] }
  0xfb   : > { %v1358_v1 = vshll.u32 %v1016_v62, 16  ;;  %v1669_v2 = vrot.slane %v1515_v63, 5  ;;  %1807 = vst [vmem:[#allocation3 + $0x3b4] sm:$0xf] %v1775_v0  ;;  %v894_v3 = vld [vmem:[#allocation2 + $0xb0] sm:$0x1]  ;;  %12239 = vmatpush3.bf16.msra.mxu1 %v13090_v31 }
  0xfc   : > { %v939_v4 = vld [vmem:[#allocation2 + $0xa8] sm:$0xf]  ;;  %v895_v40 = vsel %vm13648_vm3, %v713_v38, %v894_v3  ;;  %v1374_v6 = vrot.slane %v1372_v45, 5  ;;  %v1378_v8 = vrot.slane %v1376_v57, 4  ;;  %v1673_v46 = vrot.slane %v1517_v58, 5  ;;  %v376_v32 = vld [vmem:[%s13673_s20 + $0xf0] sm:$0xff] }
  0xfd   : > { %971 = vst [vmem:[#allocation3 + $0x3f0] sm:$0xf] %v939_v4  ;;  %v1017_v56 = vld [vmem:[#allocation2 + $0xa8] sm:$0xf]  ;;  %v1360_v12 = vrot.slane %v1358_v1, 5  ;;  %v1670_v13 = vsel %vm13697_vm12, %v1668_v11, %v1669_v2  ;;  %v14221_v41 = vrot.slane %v723_v17, 7  ;;  %v11858_v62 = vpack.c.bf16 %v376_v32, %v376_v32 }
  0xfe   : > { %896 = vst [vmem:[#allocation2 + $0xb0] sm:$0x1] %v895_v40  ;;  %v1363_v14 = vshrl.u32 %v1017_v56, 16  ;;  %v1366_v15 = vshll.u32 %v1017_v56, 16  ;;  %v1516_v16 = vld [vmem:[#allocation2 + $0xa8] sm:$0xe]  ;;  %v1379_v34 = vor.u32 %v1378_v8, %v1374_v6 }
  0xff   : > { %1744 = vst [vmem:[#allocation3 + $0x3d4] sm:$0xf] %v1670_v13  ;;  %v11276_v19 = vrot.slane %v1516_v16, 9  ;;  %v1361_v23 = vsel %vm13689_vm11, %v1356_v43, %v1360_v12  ;;  %v897_v29 = vld [vmem:[#allocation2 + $0xb4] sm:$0xf]  ;;  %v728_v35 = vor.u32 %v726_v18, %v14221_v41  ;;  %v1675_v38 = vrot.slane %v1673_v46, 4 }
 0x100   : > { %v1365_v26 = vrot.slane %v1363_v14, 4  ;;  %v1368_v27 = vrot.slane %v1366_v15, 5  ;;  %1469 = vst [vmem:[#allocation3 + $0x3d0] sm:$0xf] %v1361_v23  ;;  %v1380_v50 = vrot.slane %v1379_v34, 4  ;;  %v898_v36 = vsel %vm13705_vm13, %v720_v9, %v897_v29  ;;  %v377_v45 = vld [vmem:[%s13673_s20 + $0xf8] sm:$0xff] }
 0x101   : > { %v1674_v30 = vsel %vm13697_vm12, %v11276_v19, %v1673_v46  ;;  %899 = vst [vmem:[#allocation2 + $0xb4] sm:$0xf] %v898_v36  ;;  %v338_v43 = vsel %vm13656_vm4, 0, %v337_v42  ;;  %v729_v11 = vsel %vm13724_vm14, %v721_v25, %v728_v35  ;;  %v285_v55 = vsel %vm13648_vm3, 0, %v284_v48  ;;  %v13069_v59 = vld [vmem:[#allocation3 + $0x3a8] ss:$36 sps:$4 sm:$0xff]  }
 0x102   : > { %v1369_v28 = vor.u32 %v1368_v27, %v1365_v26  ;;  %1745 = vst [vmem:[#allocation3 + $0x3f8] sm:$0xf] %v1674_v30  ;;  %339 = vst [vmem:[#allocation2 + $0xbc] sm:$0x1] %v338_v43  ;;  %v13070_v49 = vld [vmem:[#allocation3 + $0x3b4] ss:$36 sps:$4 sm:$0xff]   ;;  %v11859_v63 = vpack.c.bf16 %v377_v45, %v377_v45 }
 0x103   : > { %900 = vst [vmem:[#allocation2 + $0xb8] sm:$0xf] %v729_v11  ;;  %5190 = vmatprep.mubr.bf16.mxu1 %v13070_v49  ;;  %286 = vst [vmem:[#allocation2 + $0xc0] sm:$0x1] %v285_v55  ;;  %v730_v0 = vrot.slane %v14221_v41, 4  ;;  %v13095_v58 = vld [vmem:[%s16984_s1 + $0x1c8] sm:$0xff]  }
 0x104   : > { %v1370_v39 = vrot.slane %v1369_v28, 4  ;;  %v732_v2 = vshrl.u32 %v11858_v62, 16  ;;  %v735_v3 = vshll.u32 %v11858_v62, 16  ;;  %v740_v4 = vshrl.u32 %v11859_v63, 16  ;;  %v13096_v40 = vld [vmem:[%s16984_s1 + $0x188] sm:$0xff]   ;;  %12240 = vmatprep.subr.bf16.mxu1 %v13095_v58  ;;  %v13097_v26 = vld [vmem:[%s16984_s1 + $0x1c0] sm:$0xff]  }
 0x105   : > { %v1019_v44 = vld [vmem:[#allocation2 + $0xb0] sm:$0x1]  ;;  %12241 = vmatpush3.bf16.msra.mxu1 %v13096_v40  ;;  %v743_v60 = vshll.u32 %v11859_v63, 16  ;;  %v13100_v41 = vld [vmem:[%s16984_s1 + $0x180] sm:$0xff]   ;;  %v13080_v43 = vld [vmem:[#allocation3 + $0x3f0] ss:$36 sps:$4 sm:$0xff]  }
 0x106   : > { %v1518_v21 = vld [vmem:[#allocation2 + $0xb0] sm:$0x1]  ;;  %v13072_v51 = vld [vmem:[#allocation3 + $0x3b0] ss:$36 sps:$4 sm:$0xff]   ;;  %v1375_v52 = vsel %vm13689_vm11, %v1370_v39, %v1374_v6  ;;  %v1382_v53 = vshll.u32 %v1019_v44, 16  ;;  %v734_v13 = vrot.slane %v732_v2, 7  ;;  %12242 = vmatprep.subr.bf16.mxu1 %v13097_v26 }
 0x107   : > { %1470 = vst [vmem:[#allocation3 + $0x3f4] sm:$0xf] %v1375_v52  ;;  %v1676_v54 = vrot.slane %v1518_v21, 5  ;;  %v13066_v57 = vld [vmem:[#allocation3 + $0x3ac] ss:$36 sps:$4 sm:$0xff]   ;;  %5191 = vmatmul.mubr.bf16.gmra.mxu1 %v13072_v51  ;;  %v14252_v14 = vrot.slane %v740_v4, 7 }
 0x108   : > { %v1384_v61 = vrot.slane %v1382_v53, 5  ;;  %5029 = vmatprep.mubr.bf16.mxu0 %v13066_v57  ;;  %v1777_v56 = vld [vmem:[#allocation2 + $0xb4] sm:$0xf]  ;;  %v737_v27 = vor.u32 %v735_v3, %v734_v13  ;;  %v738_v46 = vrot.slane %v734_v13, 4  ;;  %v1813_v51 = vld [vmem:[#allocation2 + $0xc] sm:$0xf] }
 0x109   : > { %v1677_v5 = vsel %vm13697_vm12, %v1675_v38, %v1676_v54  ;;  %5030 = vmatmul.mubr.bf16.gmra.mxu0 %v13069_v59  ;;  %v941_v6 = vld [vmem:[#allocation2 + $0xb4] sm:$0xf]  ;;  %1809 = vst [vmem:[#allocation3 + $0x3fc] sm:$0xf] %v1777_v56  ;;  %v901_v9 = vld [vmem:[#allocation2 + $0xbc] sm:$0x1]  ;;  %v745_v35 = vor.u32 %v743_v60, %v14252_v14  ;;  %12243 = vmatpush3.bf16.msra.mxu1 %v13100_v41 }
 0x10a   : > { %v1385_v1 = vsel %vm13689_vm11, %v1380_v50, %v1384_v61  ;;  %1746 = vst [vmem:[#allocation3 + $0x41c] sm:$0xf] %v1677_v5  ;;  %v1020_v8 = vld [vmem:[#allocation2 + $0xb4] sm:$0xf]  ;;  %973 = vst [vmem:[#allocation3 + $0x438] sm:$0xf] %v941_v6  ;;  %v902_v16 = vsel %vm13648_vm3, %v730_v0, %v901_v9 }
 0x10b   : > { %1471 = vst [vmem:[#allocation3 + $0x418] sm:$0xf] %v1385_v1  ;;  %v1387_v10 = vshrl.u32 %v1020_v8, 16  ;;  %v1390_v12 = vshll.u32 %v1020_v8, 16  ;;  %17021 = vst [vmem:[#allocation10_spill] sm:$0xff] %v14252_v14  ;;  %v746_v21 = vsel %vm13724_vm14, %v738_v46, %v745_v35  ;;  %v1862_v32 = vshrl.u32 %v1813_v51, 16 }
 0x10c   : > { %v1778_v15 = vld [vmem:[#allocation2 + $0xb8] sm:$0xf]  ;;  %903 = vst [vmem:[#allocation2 + $0xbc] sm:$0x1] %v902_v16  ;;  %v904_v25 = vld [vmem:[#allocation2 + $0xc0] sm:$0xf] }
 0x10d   : > { %v942_v34 = vld [vmem:[#allocation2 + $0xb8] sm:$0xf]  ;;  %1810 = vst [vmem:[#allocation3 + $0x420] sm:$0xf] %v1778_v15  ;;  %v1389_v18 = vrot.slane %v1387_v10, 4  ;;  %v1392_v19 = vrot.slane %v1390_v12, 5  ;;  %v905_v36 = vsel %vm13705_vm13, %v737_v27, %v904_v25 }
 0x10e   : > { %v1021_v17 = vld [vmem:[#allocation2 + $0xb8] sm:$0xf]  ;;  %974 = vst [vmem:[#allocation3 + $0x45c] sm:$0xf] %v942_v34  ;;  %v1519_v30 = vld [vmem:[#allocation2 + $0xb4] sm:$0xe] }
 0x10f   : > { %v1396_v20 = vshll.u32 %v1021_v17, 16  ;;  %v1400_v23 = vshrl.u32 %v1021_v17, 16  ;;  %v1393_v28 = vor.u32 %v1392_v19, %v1389_v18  ;;  %v1520_v31 = vld [vmem:[#allocation2 + $0xb8] sm:$0xf]  ;;  %v11277_v38 = vrot.slane %v1519_v30, 9 }
 0x110   : > { %v1680_v42 = vrot.slane %v1520_v31, 5  ;;  %906 = vst [vmem:[#allocation2 + $0xc0] sm:$0xf] %v905_v36  ;;  %v1814_v52 = vld [vmem:[#allocation2 + $0x10] sm:$0xf]  ;;  %v1865_v45 = vshll.u32 %v1813_v51, 16 }
 0x111   : > { %v1398_v50 = vrot.slane %v1396_v20, 5  ;;  %v1402_v29 = vrot.slane %v1400_v23, 4  ;;  %v1394_v44 = vrot.slane %v1393_v28, 4  ;;  %907 = vst [vmem:[#allocation2 + $0xc4] sm:$0xf] %v746_v21  ;;  %v14274_v57 = vld [vmem:[%s16984_s1 + $0x238] sm:$0xff]  }
 0x112   : > { %v13076_v39 = vld [vmem:[#allocation3 + $0x3f4] ss:$36 sps:$4 sm:$0xff]   ;;  %v1681_v48 = vsel %vm13697_vm12, %v11277_v38, %v1680_v42  ;;  %v1682_v49 = vrot.slane %v1680_v42, 4  ;;  %v1815_v55 = vld [vmem:[#allocation2 + $0x14] sm:$0x1]  ;;  %v1871_v62 = vshll.u32 %v1814_v52, 16  ;;  %12836 = vmatprep.subr.bf16.mxu0 %v14274_v57 }
 0x113   : > { %v1403_v11 = vor.u32 %v1402_v29, %v1398_v50  ;;  %5037 = vmatprep.mubr.bf16.mxu0 %v13076_v39  ;;  %v1399_v53 = vsel %vm13689_vm11, %v1394_v44, %v1398_v50  ;;  %1747 = vst [vmem:[#allocation3 + $0x440] sm:$0xf] %v1681_v48  ;;  %v13084_v61 = vld [vmem:[#allocation3 + $0x3f8] ss:$36 sps:$4 sm:$0xff]   ;;  %v1022_v63 = vld [vmem:[#allocation2 + $0xbc] sm:$0x1] }
 0x114   : > { %5038 = vmatmul.mubr.bf16.gmra.mxu0 %v13080_v43  ;;  %v13082_v59 = vld [vmem:[#allocation3 + $0x3fc] ss:$36 sps:$4 sm:$0xff]   ;;  %1472 = vst [vmem:[#allocation3 + $0x43c] sm:$0xf] %v1399_v53  ;;  %v1521_v0 = vld [vmem:[#allocation2 + $0xbc] sm:$0x1]  ;;  %v11908_v43 = vpop.f32.mrf.mxu0 }
 0x115   : > { %v1404_v54 = vrot.slane %v1403_v11, 4  ;;  %v1864_v5 = vrot.slane %v1862_v32, 4  ;;  %v1867_v58 = vrot.slane %v1865_v45, 5  ;;  %5198 = vmatprep.mubr.bf16.mxu1 %v13082_v59  ;;  %v1406_v1 = vshll.u32 %v1022_v63, 16  ;;  %v2309_v40 = vld [vmem:[#allocation2 + $0xc] sm:$0xe] }
 0x116   : > { %v1683_v2 = vrot.slane %v1521_v0, 5  ;;  %v1873_v3 = vrot.slane %v1871_v62, 5  ;;  %v1875_v4 = vshrl.u32 %v1814_v52, 16  ;;  %5199 = vmatmul.mubr.bf16.gmra.mxu1 %v13084_v61  ;;  %v1881_v6 = vshll.u32 %v1815_v55, 16  ;;  %v2310_v8 = vld [vmem:[#allocation2 + $0x10] sm:$0xf] }
 0x117   : > { %v1868_v56 = vor.u32 %v1867_v58, %v1864_v5  ;;  %v2311_v9 = vld [vmem:[#allocation2 + $0x14] sm:$0x1]  ;;  %v11278_v10 = vrot.slane %v2309_v40, 9  ;;  %v1408_v12 = vrot.slane %v1406_v1, 5  ;;  %v1779_v15 = vld [vmem:[#allocation2 + $0xc0] sm:$0xf] }
 0x118   : > { %v1684_v13 = vsel %vm13697_vm12, %v1682_v49, %v1683_v2  ;;  %v1877_v16 = vrot.slane %v1875_v4, 4  ;;  %v2407_v34 = vrot.slane %v2310_v8, 5  ;;  %1811 = vst [vmem:[#allocation3 + $0x444] sm:$0xf] %v1779_v15  ;;  %v1883_v18 = vrot.slane %v1881_v6, 5 }
 0x119   : > { %1748 = vst [vmem:[#allocation3 + $0x464] sm:$0xf] %v1684_v13  ;;  %v1869_v17 = vrot.slane %v1868_v56, 4  ;;  %v2410_v19 = vrot.slane %v2311_v9, 5  ;;  %v1409_v20 = vsel %vm13689_vm11, %v1404_v54, %v1408_v12  ;;  %v1780_v23 = vld [vmem:[#allocation2 + $0xc4] sm:$0xf]  ;;  %v11909_v54 = vpop.f32.mrf.mxu0 }
 0x11a   : > { %v1878_v26 = vor.u32 %v1877_v16, %v1873_v3  ;;  %v2408_v27 = vsel %vm13697_vm12, %v11278_v10, %v2407_v34  ;;  %v2409_v46 = vrot.slane %v2407_v34, 4  ;;  %1473 = vst [vmem:[#allocation3 + $0x460] sm:$0xf] %v1409_v20  ;;  %1812 = vst [vmem:[#allocation3 + $0x468] sm:$0xf] %v1780_v23  ;;  %v14289_v58 = vadd.f32 %v11909_v54, %v11908_v43 }
 0x11b   : > { %v1874_v60 = vsel %vm13689_vm11, %v1869_v17, %v1873_v3  ;;  %2549 = vst [vmem:[#allocation3 + $0x14] sm:$0xf] %v2408_v27  ;;  %v2582_v28 = vld [vmem:[#allocation2 + $0x18] sm:$0xf]  ;;  %v2583_v50 = vld [vmem:[#allocation2 + $0x1c] sm:$0xf] }
 0x11c   : > { %v1879_v25 = vrot.slane %v1878_v26, 4  ;;  %2277 = vst [vmem:[#allocation3 + $0x10] sm:$0xf] %v1874_v60  ;;  %v2411_v41 = vsel %vm13697_vm12, %v2409_v46, %v2410_v19  ;;  %2614 = vst [vmem:[#allocation3 + $0x18] sm:$0xf] %v2582_v28 }
 0x11d   : > { %2550 = vst [vmem:[#allocation3 + $0x38] sm:$0xf] %v2411_v41  ;;  %2615 = vst [vmem:[#allocation3 + $0x3c] sm:$0xf] %v2583_v50  ;;  %v2646_v29 = vld [vmem:[#allocation2 + $0x18] sm:$0xf] }
 0x11e   : > { %v2647_v30 = vld [vmem:[#allocation2 + $0x1c] sm:$0xf]  ;;  %v2648_v31 = vld [vmem:[#allocation2 + $0x20] sm:$0x1]  ;;  %v1884_v35 = vsel %vm13689_vm11, %v1879_v25, %v1883_v18  ;;  %v2695_v36 = vshrl.u32 %v2646_v29, 16  ;;  %v2698_v38 = vshll.u32 %v2646_v29, 16 }
 0x11f   : > { %v2704_v42 = vshll.u32 %v2647_v30, 16  ;;  %v1816_v39 = vld [vmem:[#allocation2 + $0x18] sm:$0xf]  ;;  %2278 = vst [vmem:[#allocation3 + $0x34] sm:$0xf] %v1884_v35  ;;  %v2708_v44 = vshrl.u32 %v2647_v30, 16 }
 0x120   : > { %v2714_v11 = vshll.u32 %v2648_v31, 16  ;;  %v1817_v21 = vld [vmem:[#allocation2 + $0x1c] sm:$0xf]  ;;  %v1818_v48 = vld [vmem:[#allocation2 + $0x20] sm:$0x1]  ;;  %v2697_v49 = vrot.slane %v2695_v36, 4 }
 0x121   : > { %v2700_v51 = vrot.slane %v2698_v38, 5  ;;  %v2706_v52 = vrot.slane %v2704_v42, 5  ;;  %v1886_v53 = vshrl.u32 %v1816_v39, 16  ;;  %v2710_v55 = vrot.slane %v2708_v44, 4  ;;  %v2312_v61 = vld [vmem:[#allocation2 + $0x18] sm:$0xe]  ;;  %v12020_v38 = vpop.f32.mrf.mxu1 }
 0x122   : > { %v2716_v32 = vrot.slane %v2714_v11, 5  ;;  %v1889_v45 = vshll.u32 %v1816_v39, 16  ;;  %v1895_v59 = vshll.u32 %v1817_v21, 16  ;;  %v13088_v62 = vld [vmem:[#allocation3 + $0x43c] ss:$36 sps:$4 sm:$0xff]   ;;  %v1899_v6 = vshrl.u32 %v1817_v21, 16 }
 0x123   : > { %v13091_v63 = vld [vmem:[#allocation3 + $0x438] ss:$36 sps:$4 sm:$0xff]   ;;  %v2701_v0 = vor.u32 %v2700_v51, %v2697_v49  ;;  %v1888_v5 = vrot.slane %v1886_v53, 4  ;;  %v13092_v1 = vld [vmem:[#allocation3 + $0x444] ss:$36 sps:$4 sm:$0xff]   ;;  %v2711_v3 = vor.u32 %v2710_v55, %v2706_v52  ;;  %5045 = vmatprep.mubr.bf16.mxu0 %v13088_v62  ;;  %v1905_v8 = vshll.u32 %v1818_v48, 16  ;;  %v12021_v53 = vpop.f32.mrf.mxu1 }
 0x124   : > { %v13094_v2 = vld [vmem:[#allocation3 + $0x440] ss:$36 sps:$4 sm:$0xff]   ;;  %v1891_v4 = vrot.slane %v1889_v45, 5  ;;  %v1897_v56 = vrot.slane %v1895_v59, 5  ;;  %5046 = vmatmul.mubr.bf16.gmra.mxu0 %v13091_v63  ;;  %5206 = vmatprep.mubr.bf16.mxu1 %v13092_v1  ;;  %v2314_v13 = vld [vmem:[#allocation2 + $0x20] sm:$0x1] }
 0x125   : > { %v2702_v40 = vrot.slane %v2701_v0, 4  ;;  %v2712_v9 = vrot.slane %v2711_v3, 4  ;;  %v2313_v12 = vld [vmem:[#allocation2 + $0x1c] sm:$0xf]  ;;  %v11279_v15 = vrot.slane %v2312_v61, 9  ;;  %5207 = vmatmul.mubr.bf16.gmra.mxu1 %v13094_v2  ;;  %v1901_v17 = vrot.slane %v1899_v6, 4  ;;  %v14306_v1 = vpop.f32.mrf.mxu1 }
 0x126   : > { %v1892_v10 = vor.u32 %v1891_v4, %v1888_v5  ;;  %v13098_v16 = vld [vmem:[#allocation3 + $0x14] ss:$36 sps:$4 sm:$0xff]   ;;  %v2414_v23 = vrot.slane %v2313_v12, 5  ;;  %v2584_v26 = vld [vmem:[#allocation2 + $0x24] sm:$0xf]  ;;  %v1907_v46 = vrot.slane %v1905_v8, 5  ;;  %v14312_v12 = vpop.f32.mrf.mxu0 }
 0x127   : > { %v2707_v34 = vsel %vm13689_vm11, %v2702_v40, %v2706_v52  ;;  %v13102_v18 = vld [vmem:[#allocation3 + $0x10] ss:$36 sps:$4 sm:$0xff]   ;;  %v2717_v19 = vsel %vm13689_vm11, %v2712_v9, %v2716_v32  ;;  %5247 = vmatprep.mubr.bf16.mxu0 %v13098_v16  ;;  %v1902_v27 = vor.u32 %v1901_v17, %v1897_v56  ;;  %v2417_v60 = vrot.slane %v2314_v13, 5  ;;  %2616 = vst [vmem:[#allocation3 + $0x60] sm:$0xf] %v2584_v26  ;;  %v13114_v36 = vld [vmem:[%s16984_s1 + $0x230] sm:$0xff]  }
 0x128   : > { %3110 = vst [vmem:[#allocation3 + $0x1c] sm:$0xf] %v2707_v34  ;;  %v1893_v20 = vrot.slane %v1892_v10, 4  ;;  %3111 = vst [vmem:[#allocation3 + $0x40] sm:$0xf] %v2717_v19  ;;  %v2415_v50 = vsel %vm13697_vm12, %v11279_v15, %v2414_v23  ;;  %v2416_v29 = vrot.slane %v2414_v23, 4  ;;  %v14314_v13 = vadd.f32 %v12021_v53, %v12020_v38 }
 0x129   : > { %v2585_v25 = vld [vmem:[#allocation2 + $0x28] sm:$0xf]  ;;  %v2649_v41 = vld [vmem:[#allocation2 + $0x24] sm:$0xf]  ;;  %v2651_v31 = vld [vmem:[#allocation2 + $0x2c] sm:$0x1] }
 0x12a   : > { %v1898_v28 = vsel %vm13689_vm11, %v1893_v20, %v1897_v56  ;;  %2617 = vst [vmem:[#allocation3 + $0x84] sm:$0xf] %v2585_v25  ;;  %v2650_v30 = vld [vmem:[#allocation2 + $0x28] sm:$0xf]  ;;  %v2719_v35 = vshrl.u32 %v2649_v41, 16  ;;  %v1903_v42 = vrot.slane %v1902_v27, 4  ;;  %v2418_v21 = vsel %vm13697_vm12, %v2416_v29, %v2417_v60  ;;  %v14316_v20 = vpop.f32.mrf.mxu1 }
 0x12b   : > { %2279 = vst [vmem:[#allocation3 + $0x58] sm:$0xf] %v1898_v28  ;;  %2551 = vst [vmem:[#allocation3 + $0x5c] sm:$0xf] %v2415_v50  ;;  %v2722_v39 = vshll.u32 %v2649_v41, 16  ;;  %v2728_v43 = vshll.u32 %v2650_v30, 16 }
 0x12c   : > { %v2732_v44 = vshrl.u32 %v2650_v30, 16  ;;  %v1819_v11 = vld [vmem:[#allocation2 + $0x24] sm:$0xf]  ;;  %v2721_v48 = vrot.slane %v2719_v35, 4  ;;  %v2738_v49 = vshll.u32 %v2651_v31, 16  ;;  %v1908_v54 = vsel %vm13689_vm11, %v1903_v42, %v1907_v46  ;;  %5248 = vmatmul.mubr.bf16.vlgmr.msra.gmra.mxu0 %v13102_v18  ;;  %v13127_v6 = vld [vmem:[%s16984_s1 + $0x228] sm:$0xff]   ;;  %v14327_v35 = vpop.f32.mrf.mxu0 }
 0x12d   : > { %v1820_v51 = vld [vmem:[#allocation2 + $0x28] sm:$0xf]  ;;  %v1821_v52 = vld [vmem:[#allocation2 + $0x2c] sm:$0x1]  ;;  %2552 = vst [vmem:[#allocation3 + $0x80] sm:$0xf] %v2418_v21  ;;  %12837 = vmatpush3.bf16.msra.mxu0 %v14274_v57 }
 0x12e   : > { %v2724_v55 = vrot.slane %v2722_v39, 5  ;;  %v2730_v32 = vrot.slane %v2728_v43, 5  ;;  %v2734_v45 = vrot.slane %v2732_v44, 4  ;;  %v2315_v59 = vld [vmem:[#allocation2 + $0x24] sm:$0xe]  ;;  %v2740_v61 = vrot.slane %v2738_v49, 5  ;;  %12838 = vmatprep.subr.bf16.mxu0 %v13114_v36 }
 0x12f   : > { %2280 = vst [vmem:[#allocation3 + $0x7c] sm:$0xf] %v1908_v54  ;;  %v1910_v62 = vshrl.u32 %v1819_v11, 16  ;;  %v1913_v63 = vshll.u32 %v1819_v11, 16  ;;  %v1919_v0 = vshll.u32 %v1820_v51, 16  ;;  %v1923_v4 = vshrl.u32 %v1820_v51, 16 }
 0x130   : > { %v2316_v5 = vld [vmem:[#allocation2 + $0x28] sm:$0xf]  ;;  %v2725_v2 = vor.u32 %v2724_v55, %v2721_v48  ;;  %v2735_v3 = vor.u32 %v2734_v45, %v2730_v32  ;;  %v1929_v40 = vshll.u32 %v1821_v52, 16  ;;  %v2317_v56 = vld [vmem:[#allocation2 + $0x2c] sm:$0x1]  ;;  %v11280_v18 = vrot.slane %v2315_v59, 9  ;;  %v14331_v48 = vpop.f32.mrf.mxu1 }
 0x131   : > { %v13103_v8 = vld [vmem:[#allocation3 + $0x1c] ss:$36 sps:$4 sm:$0xff]   ;;  %v1912_v10 = vrot.slane %v1910_v62, 4  ;;  %v1915_v57 = vrot.slane %v1913_v63, 5  ;;  %v1921_v34 = vrot.slane %v1919_v0, 5  ;;  %v1925_v17 = vrot.slane %v1923_v4, 4  ;;  %12839 = vmatpush3.bf16.msra.mxu0 %v13114_v36  ;;  %v11914_v63 = vpop.f32.mrf.mxu0 }
 0x132   : > { %v13105_v9 = vld [vmem:[#allocation3 + $0x18] ss:$36 sps:$4 sm:$0xff]   ;;  %v2726_v15 = vrot.slane %v2725_v2, 4  ;;  %v2736_v16 = vrot.slane %v2735_v3, 4  ;;  %5408 = vmatprep.mubr.bf16.mxu1 %v13103_v8  ;;  %v2421_v19 = vrot.slane %v2316_v5, 5  ;;  %v2424_v46 = vrot.slane %v2317_v56, 5  ;;  %12840 = vmatprep.subr.bf16.mxu0 %v13127_v6  ;;  %v12027_v0 = vpop.f32.mrf.mxu1 }
 0x133   : > { %5409 = vmatmul.mubr.bf16.vlgmr.msra.gmra.mxu1 %v13105_v9  ;;  %v1916_v27 = vor.u32 %v1915_v57, %v1912_v10  ;;  %v2586_v60 = vld [vmem:[#allocation2 + $0x30] sm:$0xf]  ;;  %v13140_v25 = vld [vmem:[%s16984_s1 + $0x220] sm:$0xff]   ;;  %v1926_v41 = vor.u32 %v1925_v17, %v1921_v34  ;;  %v1931_v28 = vrot.slane %v1929_v40, 5  ;;  %v2587_v30 = vld [vmem:[#allocation2 + $0x34] sm:$0xf] }
 0x134   : > { %v2731_v23 = vsel %vm13689_vm11, %v2726_v15, %v2730_v32  ;;  %v2741_v26 = vsel %vm13689_vm11, %v2736_v16, %v2740_v61  ;;  %v2422_v50 = vsel %vm13697_vm12, %v11280_v18, %v2421_v19  ;;  %v2423_v29 = vrot.slane %v2421_v19, 4  ;;  %2618 = vst [vmem:[#allocation3 + $0xa8] sm:$0xf] %v2586_v60  ;;  %v2652_v31 = vld [vmem:[#allocation2 + $0x30] sm:$0xf]  ;;  %v13153_v55 = vld [vmem:[%s16984_s1 + $0x218] sm:$0xff]   ;;  %v11915_v15 = vpop.f32.mrf.mxu0  ;;  %v14340_v16 = vpop.f32.mrf.mxu1 }
 0x135   : > { %3112 = vst [vmem:[#allocation3 + $0x64] sm:$0xf] %v2731_v23  ;;  %3113 = vst [vmem:[#allocation3 + $0x88] sm:$0xf] %v2741_v26  ;;  %v13106_v36 = vld [vmem:[#allocation3 + $0x5c] ss:$36 sps:$4 sm:$0xff]   ;;  %12841 = vmatpush3.bf16.msra.mxu0 %v13127_v6 }
 0x136   : > { %v13108_v38 = vld [vmem:[#allocation3 + $0x58] ss:$36 sps:$4 sm:$0xff]   ;;  %v1917_v42 = vrot.slane %v1916_v27, 4  ;;  %2553 = vst [vmem:[#allocation3 + $0xa4] sm:$0xf] %v2422_v50  ;;  %v1927_v39 = vrot.slane %v1926_v41, 4  ;;  %v2425_v43 = vsel %vm13697_vm12, %v2423_v29, %v2424_v46  ;;  %5255 = vmatprep.mubr.bf16.mxu0 %v13106_v36  ;;  %12842 = vmatprep.subr.bf16.mxu0 %v13140_v25  ;;  %v14349_v50 = vpop.f32.mrf.mxu1 }
 0x137   : > { %2619 = vst [vmem:[#allocation3 + $0xcc] sm:$0xf] %v2587_v30  ;;  %v2653_v44 = vld [vmem:[#allocation2 + $0x34] sm:$0xf]  ;;  %v2654_v11 = vld [vmem:[#allocation2 + $0x38] sm:$0x1]  ;;  %5256 = vmatmul.mubr.bf16.gmra.mxu0 %v13108_v38 }
 0x138   : > { %v2743_v21 = vshrl.u32 %v2652_v31, 16  ;;  %v1922_v49 = vsel %vm13689_vm11, %v1917_v42, %v1921_v34  ;;  %2554 = vst [vmem:[#allocation3 + $0xc8] sm:$0xf] %v2425_v43  ;;  %v2746_v51 = vshll.u32 %v2652_v31, 16  ;;  %v2752_v52 = vshll.u32 %v2653_v44, 16  ;;  %v14345_v57 = vld [vmem:[%s16984_s1 + $0x210] sm:$0xff]  }
 0x139   : > { %v2756_v53 = vshrl.u32 %v2653_v44, 16  ;;  %v1822_v54 = vld [vmem:[#allocation2 + $0x30] sm:$0xf]  ;;  %v1932_v32 = vsel %vm13689_vm11, %v1927_v39, %v1931_v28  ;;  %2281 = vst [vmem:[#allocation3 + $0xa0] sm:$0xf] %v1922_v49  ;;  %v2762_v59 = vshll.u32 %v2654_v11, 16  ;;  %12843 = vmatpush3.bf16.msra.mxu0 %v13140_v25  ;;  %v14347_v28 = vpop.f32.mrf.mxu0  ;;  %v14351_v11 = vadd.f32 %v11915_v15, %v11914_v63 }
 0x13a   : > { %v2745_v45 = vrot.slane %v2743_v21, 4  ;;  %v1823_v61 = vld [vmem:[#allocation2 + $0x34] sm:$0xf]  ;;  %v1824_v62 = vld [vmem:[#allocation2 + $0x38] sm:$0x1]  ;;  %v2748_v5 = vrot.slane %v2746_v51, 5  ;;  %12844 = vmatprep.subr.bf16.mxu0 %v13153_v55  ;;  %v14362_v63 = vadd.f32 %v12027_v0, %v14331_v48 }
 0x13b   : > { %2282 = vst [vmem:[#allocation3 + $0xc4] sm:$0xf] %v1932_v32  ;;  %v2754_v2 = vrot.slane %v2752_v52, 5  ;;  %v2758_v3 = vrot.slane %v2756_v53, 4  ;;  %v1934_v4 = vshrl.u32 %v1822_v54, 16  ;;  %v2764_v56 = vrot.slane %v2762_v59, 5  ;;  %v14353_v21 = vpop.f32.mrf.mxu0 }
 0x13c   : > { %v2318_v40 = vld [vmem:[#allocation2 + $0x30] sm:$0xe]  ;;  %v1937_v6 = vshll.u32 %v1822_v54, 16  ;;  %v1943_v8 = vshll.u32 %v1823_v61, 16  ;;  %v1947_v9 = vshrl.u32 %v1823_v61, 16  ;;  %v2749_v17 = vor.u32 %v2748_v5, %v2745_v45  ;;  %v12032_v45 = vpop.f32.mrf.mxu1 }
 0x13d   : > { %v2319_v10 = vld [vmem:[#allocation2 + $0x34] sm:$0xf]  ;;  %v13109_v34 = vld [vmem:[#allocation3 + $0x64] ss:$36 sps:$4 sm:$0xff]   ;;  %v2759_v18 = vor.u32 %v2758_v3, %v2754_v2  ;;  %v1936_v19 = vrot.slane %v1934_v4, 4  ;;  %v1953_v23 = vshll.u32 %v1824_v62, 16  ;;  %12845 = vmatpush3.bf16.msra.mxu0 %v13153_v55  ;;  %v11920_v5 = vpop.f32.mrf.mxu0 }
 0x13e   : > { %v13111_v26 = vld [vmem:[#allocation3 + $0x60] ss:$36 sps:$4 sm:$0xff]   ;;  %v1939_v27 = vrot.slane %v1937_v6, 5  ;;  %v1945_v46 = vrot.slane %v1943_v8, 5  ;;  %v1949_v60 = vrot.slane %v1947_v9, 4  ;;  %v11281_v41 = vrot.slane %v2318_v40, 9  ;;  %5416 = vmatprep.mubr.bf16.mxu1 %v13109_v34  ;;  %12846 = vmatprep.subr.bf16.mxu0 %v14345_v57  ;;  %v12033_v15 = vpop.f32.mrf.mxu1 }
 0x13f   : > { %v2750_v29 = vrot.slane %v2749_v17, 4  ;;  %v2760_v30 = vrot.slane %v2759_v18, 4  ;;  %v1955_v31 = vrot.slane %v1953_v23, 5  ;;  %v2320_v36 = vld [vmem:[#allocation2 + $0x38] sm:$0x1]  ;;  %v2428_v38 = vrot.slane %v2319_v10, 5  ;;  %5417 = vmatmul.mubr.bf16.gmra.mxu1 %v13111_v26  ;;  %v11921_v10 = vpop.f32.mrf.mxu0 }
 0x140   : > { %v1940_v42 = vor.u32 %v1939_v27, %v1936_v19  ;;  %v1950_v39 = vor.u32 %v1949_v60, %v1945_v46  ;;  %v2431_v25 = vrot.slane %v2320_v36, 5  ;;  %v2588_v43 = vld [vmem:[#allocation2 + $0x3c] sm:$0xf]  ;;  %v2589_v44 = vld [vmem:[#allocation2 + $0x40] sm:$0xf]  ;;  %v14374_v26 = vadd.f32 %v11921_v10, %v11920_v5 }
 0x141   : > { %v2755_v49 = vsel %vm13689_vm11, %v2750_v29, %v2754_v2  ;;  %v2765_v51 = vsel %vm13689_vm11, %v2760_v30, %v2764_v56  ;;  %v2429_v52 = vsel %vm13697_vm12, %v11281_v41, %v2428_v38  ;;  %v2430_v53 = vrot.slane %v2428_v38, 4  ;;  %2620 = vst [vmem:[#allocation3 + $0xf0] sm:$0xf] %v2588_v43  ;;  %2621 = vst [vmem:[#allocation3 + $0x114] sm:$0xf] %v2589_v44  ;;  %v13179_v56 = vld [vmem:[%s16984_s1 + $0x208] sm:$0xff]   ;;  %v14377_v30 = vpop.f32.mrf.mxu0 }
 0x142   : > { %v2655_v54 = vld [vmem:[#allocation2 + $0x3c] sm:$0xf]  ;;  %v2656_v32 = vld [vmem:[#allocation2 + $0x40] sm:$0xf]  ;;  %3114 = vst [vmem:[#allocation3 + $0xac] sm:$0xf] %v2755_v49  ;;  %12847 = vmatpush3.bf16.msra.mxu0 %v14345_v57 }
 0x143   : > { %v13112_v59 = vld [vmem:[#allocation3 + $0xa4] ss:$36 sps:$4 sm:$0xff]   ;;  %3115 = vst [vmem:[#allocation3 + $0xd0] sm:$0xf] %v2765_v51  ;;  %v1941_v62 = vrot.slane %v1940_v42, 4  ;;  %v1951_v2 = vrot.slane %v1950_v39, 4  ;;  %v2432_v3 = vsel %vm13697_vm12, %v2430_v53, %v2431_v25  ;;  %12848 = vmatprep.subr.bf16.mxu0 %v13179_v56  ;;  %v14381_v53 = vpop.f32.mrf.mxu1 }
 0x144   : > { %v13115_v61 = vld [vmem:[#allocation3 + $0xa0] ss:$36 sps:$4 sm:$0xff]   ;;  %2555 = vst [vmem:[#allocation3 + $0xec] sm:$0xf] %v2429_v52  ;;  %v2657_v4 = vld [vmem:[#allocation2 + $0x44] sm:$0x1]  ;;  %5263 = vmatprep.mubr.bf16.mxu0 %v13112_v59  ;;  %v14379_v52 = vpop.f32.mrf.mxu0  ;;  %v14383_v59 = vadd.f32 %v12033_v15, %v12032_v45 }
 0x145   : > { %v2767_v40 = vshrl.u32 %v2655_v54, 16  ;;  %v2770_v55 = vshll.u32 %v2655_v54, 16  ;;  %v1946_v6 = vsel %vm13689_vm11, %v1941_v62, %v1945_v46  ;;  %2556 = vst [vmem:[#allocation3 + $0x110] sm:$0xf] %v2432_v3  ;;  %v2776_v48 = vshll.u32 %v2656_v32, 16  ;;  %5264 = vmatmul.mubr.bf16.gmra.mxu0 %v13115_v61  ;;  %v14389_v10 = vpop.f32.mrf.mxu1 }
 0x146   : > { %v2780_v0 = vshrl.u32 %v2656_v32, 16  ;;  %v2786_v8 = vshll.u32 %v2657_v4, 16  ;;  %v1825_v9 = vld [vmem:[#allocation2 + $0x3c] sm:$0xf]  ;;  %v1956_v34 = vsel %vm13689_vm11, %v1951_v2, %v1955_v31  ;;  %2283 = vst [vmem:[#allocation3 + $0xe8] sm:$0xf] %v1946_v6  ;;  %v11926_v3 = vpop.f32.mrf.mxu0  ;;  %12849 = vmatpush3.bf16.msra.mxu0 %v13179_v56 }
 0x147   : > { %v2769_v17 = vrot.slane %v2767_v40, 4  ;;  %v2772_v18 = vrot.slane %v2770_v55, 5  ;;  %v1826_v19 = vld [vmem:[#allocation2 + $0x40] sm:$0xf]  ;;  %v1827_v23 = vld [vmem:[#allocation2 + $0x44] sm:$0x1] }
 0x148   : > { %2284 = vst [vmem:[#allocation3 + $0x10c] sm:$0xf] %v1956_v34  ;;  %v2778_v27 = vrot.slane %v2776_v48, 5  ;;  %v2782_v46 = vrot.slane %v2780_v0, 4  ;;  %v2788_v60 = vrot.slane %v2786_v8, 5  ;;  %v1958_v41 = vshrl.u32 %v1825_v9, 16  ;;  %v11927_v15 = vpop.f32.mrf.mxu0 }
 0x149   : > { %v2321_v29 = vld [vmem:[#allocation2 + $0x3c] sm:$0xe]  ;;  %v2773_v36 = vor.u32 %v2772_v18, %v2769_v17  ;;  %v1961_v38 = vshll.u32 %v1825_v9, 16  ;;  %v1967_v31 = vshll.u32 %v1826_v19, 16  ;;  %v1971_v42 = vshrl.u32 %v1826_v19, 16 }
 0x14a   : > { %v2322_v39 = vld [vmem:[#allocation2 + $0x40] sm:$0xf]  ;;  %v2783_v25 = vor.u32 %v2782_v46, %v2778_v27  ;;  %v1960_v43 = vrot.slane %v1958_v41, 4  ;;  %v1977_v44 = vshll.u32 %v1827_v23, 16  ;;  %v2323_v49 = vld [vmem:[#allocation2 + $0x44] sm:$0x1]  ;;  %v14393_v19 = vadd.f32 %v11927_v15, %v11926_v3  ;;  %v14404_v15 = vpop.f32.mrf.mxu0 }
 0x14b   : > { %v11282_v51 = vrot.slane %v2321_v29, 9  ;;  %v13116_v54 = vld [vmem:[#allocation3 + $0xac] ss:$36 sps:$4 sm:$0xff]   ;;  %v2774_v32 = vrot.slane %v2773_v36, 4  ;;  %v1963_v57 = vrot.slane %v1961_v38, 5  ;;  %v1969_v5 = vrot.slane %v1967_v31, 5 }
 0x14c   : > { %v13118_v61 = vld [vmem:[#allocation3 + $0xa8] ss:$36 sps:$4 sm:$0xff]   ;;  %v2784_v62 = vrot.slane %v2783_v25, 4  ;;  %v1973_v2 = vrot.slane %v1971_v42, 4  ;;  %5424 = vmatprep.mubr.bf16.mxu1 %v13116_v54  ;;  %v1979_v55 = vrot.slane %v1977_v44, 5  ;;  %v2435_v6 = vrot.slane %v2322_v39, 5  ;;  %v12038_v54 = vpop.f32.mrf.mxu1 }
 0x14d   : > { %v2779_v4 = vsel %vm13689_vm11, %v2774_v32, %v2778_v27  ;;  %v1964_v40 = vor.u32 %v1963_v57, %v1960_v43  ;;  %5425 = vmatmul.mubr.bf16.gmra.mxu1 %v13118_v61  ;;  %v2438_v0 = vrot.slane %v2323_v49, 5  ;;  %v2590_v8 = vld [vmem:[#allocation2 + $0x48] sm:$0xf]  ;;  %v2591_v9 = vld [vmem:[#allocation2 + $0x4c] sm:$0xf]  ;;  %v13192_v42 = vld [vmem:[%s16984_s1 + $0x200] sm:$0xff]  }
 0x14e   : > { %v2789_v48 = vsel %vm13689_vm11, %v2784_v62, %v2788_v60  ;;  %3116 = vst [vmem:[#allocation3 + $0xf4] sm:$0xf] %v2779_v4  ;;  %v1974_v45 = vor.u32 %v1973_v2, %v1969_v5  ;;  %v13119_v56 = vld [vmem:[#allocation3 + $0xec] ss:$36 sps:$4 sm:$0xff]   ;;  %v2436_v18 = vsel %vm13697_vm12, %v11282_v51, %v2435_v6  ;;  %2622 = vst [vmem:[#allocation3 + $0x138] sm:$0xf] %v2590_v8  ;;  %12850 = vmatprep.subr.bf16.mxu0 %v13192_v42 }
 0x14f   : > { %v13121_v34 = vld [vmem:[#allocation3 + $0xe8] ss:$36 sps:$4 sm:$0xff]   ;;  %3117 = vst [vmem:[#allocation3 + $0x118] sm:$0xf] %v2789_v48  ;;  %v1965_v17 = vrot.slane %v1964_v40, 4  ;;  %v2437_v27 = vrot.slane %v2435_v6, 4  ;;  %5271 = vmatprep.mubr.bf16.mxu0 %v13119_v56  ;;  %v12039_v6 = vpop.f32.mrf.mxu1  ;;  %12851 = vmatpush3.bf16.msra.mxu0 %v13192_v42 }
 0x150   : > { %2623 = vst [vmem:[#allocation3 + $0x15c] sm:$0xf] %v2591_v9  ;;  %v1975_v23 = vrot.slane %v1974_v45, 4  ;;  %2557 = vst [vmem:[#allocation3 + $0x134] sm:$0xf] %v2436_v18  ;;  %5272 = vmatmul.mubr.bf16.gmra.mxu0 %v13121_v34 }
 0x151   : > { %v2658_v46 = vld [vmem:[#allocation2 + $0x48] sm:$0xf]  ;;  %v2659_v60 = vld [vmem:[#allocation2 + $0x4c] sm:$0xf]  ;;  %v1970_v41 = vsel %vm13689_vm11, %v1965_v17, %v1969_v5  ;;  %v2660_v29 = vld [vmem:[#allocation2 + $0x50] sm:$0x1]  ;;  %v2439_v25 = vsel %vm13697_vm12, %v2437_v27, %v2438_v0  ;;  %v14408_v27 = vpop.f32.mrf.mxu1 }
 0x152   : > { %v2791_v36 = vshrl.u32 %v2658_v46, 16  ;;  %v2794_v38 = vshll.u32 %v2658_v46, 16  ;;  %v2800_v31 = vshll.u32 %v2659_v60, 16  ;;  %v1980_v39 = vsel %vm13689_vm11, %v1975_v23, %v1979_v55  ;;  %2285 = vst [vmem:[#allocation3 + $0x130] sm:$0xf] %v1970_v41 }
 0x153   : > { %v2804_v43 = vshrl.u32 %v2659_v60, 16  ;;  %v2810_v44 = vshll.u32 %v2660_v29, 16  ;;  %v1828_v49 = vld [vmem:[#allocation2 + $0x48] sm:$0xf]  ;;  %v1829_v51 = vld [vmem:[#allocation2 + $0x4c] sm:$0xf]  ;;  %v14406_v23 = vadd.f32 %v12039_v6, %v12038_v54 }
 0x154   : > { %2286 = vst [vmem:[#allocation3 + $0x154] sm:$0xf] %v1980_v39  ;;  %2558 = vst [vmem:[#allocation3 + $0x158] sm:$0xf] %v2439_v25  ;;  %v2793_v32 = vrot.slane %v2791_v36, 4  ;;  %v2796_v57 = vrot.slane %v2794_v38, 5 }
 0x155   : > { %v2802_v61 = vrot.slane %v2800_v31, 5  ;;  %v1830_v62 = vld [vmem:[#allocation2 + $0x50] sm:$0x1]  ;;  %v1982_v5 = vshrl.u32 %v1828_v49, 16  ;;  %v2806_v2 = vrot.slane %v2804_v43, 4  ;;  %v2812_v3 = vrot.slane %v2810_v44, 5  ;;  %v14410_v43 = vpop.f32.mrf.mxu1 }
 0x156   : > { %v1985_v4 = vshll.u32 %v1828_v49, 16  ;;  %v1991_v40 = vshll.u32 %v1829_v51, 16  ;;  %v2324_v55 = vld [vmem:[#allocation2 + $0x48] sm:$0xe]  ;;  %v2797_v48 = vor.u32 %v2796_v57, %v2793_v32  ;;  %v1995_v0 = vshrl.u32 %v1829_v51, 16  ;;  %v14414_v57 = vpop.f32.mrf.mxu0 }
 0x157   : > { %v1984_v45 = vrot.slane %v1982_v5, 4  ;;  %v2001_v8 = vshll.u32 %v1830_v62, 16  ;;  %v2325_v9 = vld [vmem:[#allocation2 + $0x4c] sm:$0xf]  ;;  %v2807_v17 = vor.u32 %v2806_v2, %v2802_v61  ;;  %v2326_v36 = vld [vmem:[#allocation2 + $0x50] sm:$0x1] }
 0x158   : > { %v13122_v56 = vld [vmem:[#allocation3 + $0xf4] ss:$36 sps:$4 sm:$0xff]   ;;  %v1987_v18 = vrot.slane %v1985_v4, 5  ;;  %v2798_v46 = vrot.slane %v2797_v48, 4  ;;  %v1993_v60 = vrot.slane %v1991_v40, 5  ;;  %v1997_v41 = vrot.slane %v1995_v0, 4 }
 0x159   : > { %v13124_v34 = vld [vmem:[#allocation3 + $0xf0] ss:$36 sps:$4 sm:$0xff]   ;;  %v2003_v29 = vrot.slane %v2001_v8, 5  ;;  %5432 = vmatprep.mubr.bf16.mxu1 %v13122_v56  ;;  %v2808_v38 = vrot.slane %v2807_v17, 4  ;;  %v11283_v42 = vrot.slane %v2324_v55, 9  ;;  %v2442_v39 = vrot.slane %v2325_v9, 5 }
 0x15a   : > { %v1988_v31 = vor.u32 %v1987_v18, %v1984_v45  ;;  %v2592_v25 = vld [vmem:[#allocation2 + $0x54] sm:$0xf]  ;;  %5433 = vmatmul.mubr.bf16.gmra.mxu1 %v13124_v34  ;;  %v2803_v44 = vsel %vm13689_vm11, %v2798_v46, %v2802_v61  ;;  %v1998_v49 = vor.u32 %v1997_v41, %v1993_v60  ;;  %v2445_v51 = vrot.slane %v2326_v36, 5  ;;  %v2593_v54 = vld [vmem:[#allocation2 + $0x58] sm:$0xf]  ;;  %v12044_v45 = vpop.f32.mrf.mxu1 }
 0x15b   : > { %2624 = vst [vmem:[#allocation3 + $0x180] sm:$0xf] %v2592_v25  ;;  %v2661_v32 = vld [vmem:[#allocation2 + $0x54] sm:$0xf]  ;;  %v13125_v62 = vld [vmem:[#allocation3 + $0x134] ss:$36 sps:$4 sm:$0xff]   ;;  %v2813_v2 = vsel %vm13689_vm11, %v2808_v38, %v2812_v3  ;;  %v2443_v40 = vsel %vm13697_vm12, %v11283_v42, %v2442_v39  ;;  %v11932_v38 = vpop.f32.mrf.mxu0 }
 0x15c   : > { %v13128_v5 = vld [vmem:[#allocation3 + $0x130] ss:$36 sps:$4 sm:$0xff]   ;;  %3118 = vst [vmem:[#allocation3 + $0x13c] sm:$0xf] %v2803_v44  ;;  %v1989_v4 = vrot.slane %v1988_v31, 4  ;;  %v1999_v61 = vrot.slane %v1998_v49, 4  ;;  %5279 = vmatprep.mubr.bf16.mxu0 %v13125_v62  ;;  %v12045_v31 = vpop.f32.mrf.mxu1 }
 0x15d   : > { %2625 = vst [vmem:[#allocation3 + $0x1a4] sm:$0xf] %v2593_v54  ;;  %3119 = vst [vmem:[#allocation3 + $0x160] sm:$0xf] %v2813_v2  ;;  %v2444_v55 = vrot.slane %v2442_v39, 4  ;;  %v2815_v8 = vshrl.u32 %v2661_v32, 16  ;;  %5280 = vmatmul.mubr.bf16.gmra.mxu0 %v13128_v5  ;;  %v11933_v5 = vpop.f32.mrf.mxu0 }
 0x15e   : > { %2559 = vst [vmem:[#allocation3 + $0x17c] sm:$0xf] %v2443_v40  ;;  %v2662_v6 = vld [vmem:[#allocation2 + $0x58] sm:$0xf]  ;;  %v2663_v48 = vld [vmem:[#allocation2 + $0x5c] sm:$0x1]  ;;  %v1994_v0 = vsel %vm13689_vm11, %v1989_v4, %v1993_v60  ;;  %v2004_v34 = vsel %vm13689_vm11, %v1999_v61, %v2003_v29 }
 0x15f   : > { %v2818_v9 = vshll.u32 %v2661_v32, 16  ;;  %v2824_v3 = vshll.u32 %v2662_v6, 16  ;;  %v1831_v56 = vld [vmem:[#allocation2 + $0x54] sm:$0xf]  ;;  %2287 = vst [vmem:[#allocation3 + $0x178] sm:$0xf] %v1994_v0  ;;  %v2446_v17 = vsel %vm13697_vm12, %v2444_v55, %v2445_v51  ;;  %v14426_v51 = vpop.f32.mrf.mxu1 }
 0x160   : > { %v2828_v18 = vshrl.u32 %v2662_v6, 16  ;;  %v2834_v46 = vshll.u32 %v2663_v48, 16  ;;  %v1832_v41 = vld [vmem:[#allocation2 + $0x58] sm:$0xf]  ;;  %v1833_v36 = vld [vmem:[#allocation2 + $0x5c] sm:$0x1] }
 0x161   : > { %2288 = vst [vmem:[#allocation3 + $0x19c] sm:$0xf] %v2004_v34  ;;  %2560 = vst [vmem:[#allocation3 + $0x1a0] sm:$0xf] %v2446_v17  ;;  %v2817_v60 = vrot.slane %v2815_v8, 4  ;;  %v2820_v42 = vrot.slane %v2818_v9, 5  ;;  %v14428_v9 = vpop.f32.mrf.mxu0 }
 0x162   : > { %v2826_v39 = vrot.slane %v2824_v3, 5  ;;  %v2006_v25 = vshrl.u32 %v1831_v56, 16  ;;  %v2327_v44 = vld [vmem:[#allocation2 + $0x54] sm:$0xe]  ;;  %v2830_v49 = vrot.slane %v2828_v18, 4  ;;  %v2836_v54 = vrot.slane %v2834_v46, 5  ;;  %v14430_v3 = vpop.f32.mrf.mxu1 }
 0x163   : > { %v2009_v29 = vshll.u32 %v1831_v56, 16  ;;  %v2015_v32 = vshll.u32 %v1832_v41, 16  ;;  %v2328_v62 = vld [vmem:[#allocation2 + $0x58] sm:$0xf]  ;;  %v2821_v2 = vor.u32 %v2820_v42, %v2817_v60  ;;  %v2019_v40 = vshrl.u32 %v1832_v41, 16 }
 0x164   : > { %v2008_v4 = vrot.slane %v2006_v25, 4  ;;  %v2025_v61 = vshll.u32 %v1833_v36, 16  ;;  %v2329_v55 = vld [vmem:[#allocation2 + $0x5c] sm:$0x1]  ;;  %v2831_v6 = vor.u32 %v2830_v49, %v2826_v39  ;;  %v11284_v8 = vrot.slane %v2327_v44, 9  ;;  %v14437_v25 = vpop.f32.mrf.mxu0  ;;  %v12050_v49 = vpop.f32.mrf.mxu1 }
 0x165   : > { %v2011_v48 = vrot.slane %v2009_v29, 5  ;;  %v2017_v0 = vrot.slane %v2015_v32, 5  ;;  %v13129_v34 = vld [vmem:[#allocation3 + $0x13c] ss:$36 sps:$4 sm:$0xff]   ;;  %v2822_v17 = vrot.slane %v2821_v2, 4  ;;  %v14432_v18 = vadd.f32 %v11933_v5, %v11932_v38 }
 0x166   : > { %v13131_v56 = vld [vmem:[#allocation3 + $0x138] ss:$36 sps:$4 sm:$0xff]   ;;  %v14434_v46 = vadd.f32 %v12045_v31, %v12044_v45  ;;  %v2832_v41 = vrot.slane %v2831_v6, 4  ;;  %v2021_v42 = vrot.slane %v2019_v40, 4  ;;  %5440 = vmatprep.mubr.bf16.mxu1 %v13129_v34  ;;  %v2027_v29 = vrot.slane %v2025_v61, 5  ;;  %v11938_v6 = vpop.f32.mrf.mxu0 }
 0x167   : > { %v2012_v36 = vor.u32 %v2011_v48, %v2008_v4  ;;  %v2827_v44 = vsel %vm13689_vm11, %v2822_v17, %v2826_v39  ;;  %v2449_v32 = vrot.slane %v2328_v62, 5  ;;  %v2452_v47 = vrot.slane %v2329_v55, 5  ;;  %v2594_v2 = vld [vmem:[#allocation2 + $0x60] sm:$0xf]  ;;  %5441 = vmatmul.mubr.bf16.gmra.mxu1 %v13131_v56  ;;  %v12051_v39 = vpop.f32.mrf.mxu1  ;;  %v2595_v55 = vld [vmem:[#allocation2 + $0x64] sm:$0xf] }
 0x168   : > { %v13132_v38 = vld [vmem:[#allocation3 + $0x17c] ss:$36 sps:$4 sm:$0xff]   ;;  %v2837_v31 = vsel %vm13689_vm11, %v2832_v41, %v2836_v54  ;;  %3120 = vst [vmem:[#allocation3 + $0x184] sm:$0xf] %v2827_v44  ;;  %v2022_v4 = vor.u32 %v2021_v42, %v2017_v0  ;;  %2626 = vst [vmem:[#allocation3 + $0x1c8] sm:$0xf] %v2594_v2  ;;  %v14445_v40 = vadd.f32 %v14327_v35, %v14312_v12 }
 0x169   : > { %v13134_v45 = vld [vmem:[#allocation3 + $0x178] ss:$36 sps:$4 sm:$0xff]   ;;  %v2013_v5 = vrot.slane %v2012_v36, 4  ;;  %3121 = vst [vmem:[#allocation3 + $0x1a8] sm:$0xf] %v2837_v31  ;;  %v2450_v62 = vsel %vm13697_vm12, %v11284_v8, %v2449_v32  ;;  %v2451_v61 = vrot.slane %v2449_v32, 4  ;;  %v14451_v54 = vadd.f32 %v14316_v20, %v14306_v1  ;;  %5287 = vmatprep.mubr.bf16.mxu0 %v13132_v38  ;;  %v11939_v36 = vpop.f32.mrf.mxu0 }
 0x16a   : > { %v2664_v48 = vld [vmem:[#allocation2 + $0x60] sm:$0xf]  ;;  %v14453_v34 = vadd.f32 %v12051_v39, %v12050_v49  ;;  %v2023_v35 = vrot.slane %v2022_v4, 4  ;;  %2561 = vst [vmem:[#allocation3 + $0x1c4] sm:$0xf] %v2450_v62  ;;  %v14459_v8 = vadd.f32 %v14353_v21, %v14347_v28  ;;  %5288 = vmatmul.mubr.bf16.gmra.mxu0 %v13134_v45  ;;  %v14465_v28 = vadd.f32 %v11939_v36, %v11938_v6  ;;  %v14471_v36 = vpop.f32.mrf.mxu1 }
 0x16b   : > { %v2018_v12 = vsel %vm13689_vm11, %v2013_v5, %v2017_v0  ;;  %2627 = vst [vmem:[#allocation3 + $0x1ec] sm:$0xf] %v2595_v55  ;;  %v2665_v56 = vld [vmem:[#allocation2 + $0x64] sm:$0xf]  ;;  %v2666_v17 = vld [vmem:[#allocation2 + $0x68] sm:$0x1]  ;;  %v2453_v1 = vsel %vm13697_vm12, %v2451_v61, %v2452_v47  ;;  %v14467_v21 = vpop.f32.mrf.mxu0  ;;  %v14513_v14 = vadd.f32 %v14430_v3, %v14426_v51 }
 0x16c   : > { %v2839_v41 = vshrl.u32 %v2664_v48, 16  ;;  %2289 = vst [vmem:[#allocation3 + $0x1c0] sm:$0xf] %v2018_v12  ;;  %v2842_v20 = vshll.u32 %v2664_v48, 16  ;;  %v2848_v42 = vshll.u32 %v2665_v56, 16  ;;  %v2852_v49 = vshrl.u32 %v2665_v56, 16 }
 0x16d   : > { %v1834_v0 = vld [vmem:[#allocation2 + $0x60] sm:$0xf]  ;;  %v2028_v44 = vsel %vm13689_vm11, %v2023_v35, %v2027_v29  ;;  %2562 = vst [vmem:[#allocation3 + $0x1e8] sm:$0xf] %v2453_v1  ;;  %v2858_v2 = vshll.u32 %v2666_v17, 16  ;;  %v14469_v12 = vpop.f32.mrf.mxu0 }
 0x16e   : > { %v2841_v32 = vrot.slane %v2839_v41, 4  ;;  %v1835_v38 = vld [vmem:[#allocation2 + $0x64] sm:$0xf]  ;;  %v1836_v31 = vld [vmem:[#allocation2 + $0x68] sm:$0x1]  ;;  %v2844_v45 = vrot.slane %v2842_v20, 5 }
 0x16f   : > { %2290 = vst [vmem:[#allocation3 + $0x1e4] sm:$0xf] %v2028_v44  ;;  %v2850_v5 = vrot.slane %v2848_v42, 5  ;;  %v2854_v47 = vrot.slane %v2852_v49, 4  ;;  %v2030_v4 = vshrl.u32 %v1834_v0, 16  ;;  %v2860_v62 = vrot.slane %v2858_v2, 5 }
 0x170   : > { %v2330_v39 = vld [vmem:[#allocation2 + $0x60] sm:$0xe]  ;;  %v2033_v61 = vshll.u32 %v1834_v0, 16  ;;  %v2039_v55 = vshll.u32 %v1835_v38, 16  ;;  %v2043_v48 = vshrl.u32 %v1835_v38, 16  ;;  %v2845_v35 = vor.u32 %v2844_v45, %v2841_v32 }
 0x171   : > { %v2331_v29 = vld [vmem:[#allocation2 + $0x64] sm:$0xf]  ;;  %v2855_v56 = vor.u32 %v2854_v47, %v2850_v5  ;;  %v2032_v17 = vrot.slane %v2030_v4, 4  ;;  %v2049_v6 = vshll.u32 %v1836_v31, 16  ;;  %v2332_v41 = vld [vmem:[#allocation2 + $0x68] sm:$0x1]  ;;  %v14475_v49 = vadd.f32 %v14349_v50, %v14340_v16  ;;  %v11944_v50 = vpop.f32.mrf.mxu0 }
 0x172   : > { %v13135_v1 = vld [vmem:[#allocation3 + $0x184] ss:$36 sps:$4 sm:$0xff]   ;;  %v2035_v42 = vrot.slane %v2033_v61, 5  ;;  %v14479_v0 = vadd.f32 %v14379_v52, %v14377_v30  ;;  %v14483_v44 = vadd.f32 %v14389_v10, %v14381_v53  ;;  %v2846_v32 = vrot.slane %v2845_v35, 4  ;;  %v2596_v45 = vld [vmem:[#allocation2 + $0x6c] sm:$0xf]  ;;  %v14489_v35 = vpop.f32.mrf.mxu1 }
 0x173   : > { %v13137_v20 = vld [vmem:[#allocation3 + $0x180] ss:$36 sps:$4 sm:$0xff]   ;;  %v2856_v2 = vrot.slane %v2855_v56, 4  ;;  %v2041_v38 = vrot.slane %v2039_v55, 5  ;;  %v2045_v31 = vrot.slane %v2043_v48, 4  ;;  %5448 = vmatprep.mubr.bf16.mxu1 %v13135_v1  ;;  %v2051_v4 = vrot.slane %v2049_v6, 5 }
 0x174   : > { %v2036_v47 = vor.u32 %v2035_v42, %v2032_v17  ;;  %v11285_v61 = vrot.slane %v2330_v39, 9  ;;  %v2456_v60 = vrot.slane %v2331_v29, 5  ;;  %v2597_v16 = vld [vmem:[#allocation2 + $0x70] sm:$0xf]  ;;  %2628 = vst [vmem:[#allocation3 + $0x210] sm:$0xf] %v2596_v45  ;;  %5449 = vmatmul.mubr.bf16.gmra.mxu1 %v13137_v20  ;;  %v2851_v30 = vsel %vm13689_vm11, %v2846_v32, %v2850_v5  ;;  %v11945_v32 = vpop.f32.mrf.mxu0 }
 0x175   : > { %v2861_v52 = vsel %vm13689_vm11, %v2856_v2, %v2860_v62  ;;  %v2046_v53 = vor.u32 %v2045_v31, %v2041_v38  ;;  %v2459_v10 = vrot.slane %v2332_v41, 5  ;;  %2629 = vst [vmem:[#allocation3 + $0x234] sm:$0xf] %v2597_v16  ;;  %v2667_v55 = vld [vmem:[#allocation2 + $0x6c] sm:$0xf]  ;;  %v14495_v5 = vadd.f32 %v14414_v57, %v14404_v15 }
 0x176   : > { %v2668_v48 = vld [vmem:[#allocation2 + $0x70] sm:$0xf]  ;;  %v13138_v56 = vld [vmem:[#allocation3 + $0x1c4] ss:$36 sps:$4 sm:$0xff]   ;;  %3122 = vst [vmem:[#allocation3 + $0x1cc] sm:$0xf] %v2851_v30  ;;  %v2457_v17 = vsel %vm13697_vm12, %v11285_v61, %v2456_v60  ;;  %v14499_v62 = vadd.f32 %v14410_v43, %v14408_v27  ;;  %v12056_v30 = vpop.f32.mrf.mxu1 }
 0x177   : > { %v13141_v39 = vld [vmem:[#allocation3 + $0x1c0] ss:$36 sps:$4 sm:$0xff]   ;;  %3123 = vst [vmem:[#allocation3 + $0x1f0] sm:$0xf] %v2861_v52  ;;  %v2037_v29 = vrot.slane %v2036_v47, 4  ;;  %v2047_v6 = vrot.slane %v2046_v53, 4  ;;  %5295 = vmatprep.mubr.bf16.mxu0 %v13138_v56 }
 0x178   : > { %v2458_v41 = vrot.slane %v2456_v60, 4  ;;  %2563 = vst [vmem:[#allocation3 + $0x20c] sm:$0xf] %v2457_v17  ;;  %v2669_v1 = vld [vmem:[#allocation2 + $0x74] sm:$0x1]  ;;  %v2863_v20 = vshrl.u32 %v2667_v55, 16  ;;  %5296 = vmatmul.mubr.bf16.gmra.mxu0 %v13141_v39 }
 0x179   : > { %v2866_v42 = vshll.u32 %v2667_v55, 16  ;;  %v2042_v2 = vsel %vm13689_vm11, %v2037_v29, %v2041_v38  ;;  %v2872_v31 = vshll.u32 %v2668_v48, 16  ;;  %v2876_v45 = vshrl.u32 %v2668_v48, 16  ;;  %v1837_v15 = vld [vmem:[#allocation2 + $0x6c] sm:$0xf] }
 0x17a   : > { %v2882_v47 = vshll.u32 %v2669_v1, 16  ;;  %v2052_v27 = vsel %vm13689_vm11, %v2047_v6, %v2051_v4  ;;  %2291 = vst [vmem:[#allocation3 + $0x208] sm:$0xf] %v2042_v2  ;;  %v2460_v43 = vsel %vm13697_vm12, %v2458_v41, %v2459_v10  ;;  %v2865_v57 = vrot.slane %v2863_v20, 4  ;;  %v1838_v61 = vld [vmem:[#allocation2 + $0x70] sm:$0xf]  ;;  %v11947_v6 = vpop.f32.mrf.mxu0  ;;  %v12057_v1 = vpop.f32.mrf.mxu1 }
 0x17b   : > { %v2868_v60 = vrot.slane %v2866_v42, 5  ;;  %v1839_v16 = vld [vmem:[#allocation2 + $0x74] sm:$0x1]  ;;  %2292 = vst [vmem:[#allocation3 + $0x22c] sm:$0xf] %v2052_v27  ;;  %v2874_v38 = vrot.slane %v2872_v31, 5  ;;  %v14507_v31 = vadd.f32 %v11945_v32, %v11944_v50 }
 0x17c   : > { %2564 = vst [vmem:[#allocation3 + $0x230] sm:$0xf] %v2460_v43  ;;  %v2878_v52 = vrot.slane %v2876_v45, 4  ;;  %v2884_v53 = vrot.slane %v2882_v47, 5  ;;  %v2054_v55 = vshrl.u32 %v1837_v15, 16  ;;  %v2057_v39 = vshll.u32 %v1837_v15, 16  ;;  %v12059_v47 = vpop.f32.mrf.mxu1  ;;  %v11948_v50 = vpop.f32.mrf.mxu0 }
 0x17d   : > { %v2333_v48 = vld [vmem:[#allocation2 + $0x6c] sm:$0xe]  ;;  %v2869_v56 = vor.u32 %v2868_v60, %v2865_v57  ;;  %v2063_v29 = vshll.u32 %v1838_v61, 16  ;;  %v2067_v4 = vshrl.u32 %v1838_v61, 16  ;;  %v2334_v17 = vld [vmem:[#allocation2 + $0x70] sm:$0xf]  ;;  %v14509_v45 = vadd.f32 %v12057_v1, %v12056_v30 }
 0x17e   : > { %v2879_v10 = vor.u32 %v2878_v52, %v2874_v38  ;;  %v2056_v41 = vrot.slane %v2054_v55, 4  ;;  %v2073_v20 = vshll.u32 %v1839_v16, 16  ;;  %v2335_v42 = vld [vmem:[#allocation2 + $0x74] sm:$0x1]  ;;  %v11286_v2 = vrot.slane %v2333_v48, 9  ;;  %v12060_v32 = vpop.f32.mrf.mxu1 }
 0x17f   : > { %v13142_v24 = vld [vmem:[#allocation3 + $0x1cc] ss:$36 sps:$4 sm:$0xff]   ;;  %v2870_v27 = vrot.slane %v2869_v56, 4  ;;  %v2059_v43 = vrot.slane %v2057_v39, 5  ;;  %v2065_v60 = vrot.slane %v2063_v29, 5  ;;  %v2069_v61 = vrot.slane %v2067_v4, 4 }
 0x180   : > { %v13144_v57 = vld [vmem:[#allocation3 + $0x1c8] ss:$36 sps:$4 sm:$0xff]   ;;  %v2880_v15 = vrot.slane %v2879_v10, 4  ;;  %5456 = vmatprep.mubr.bf16.mxu1 %v13142_v24  ;;  %v2075_v55 = vrot.slane %v2073_v20, 5  ;;  %v2463_v48 = vrot.slane %v2334_v17, 5  ;;  %v2466_v39 = vrot.slane %v2335_v42, 5 }
 0x181   : > { %v2875_v16 = vsel %vm13689_vm11, %v2870_v27, %v2874_v38  ;;  %v2060_v52 = vor.u32 %v2059_v43, %v2056_v41  ;;  %5457 = vmatmul.mubr.bf16.gmra.mxu1 %v13144_v57  ;;  %v2070_v56 = vor.u32 %v2069_v61, %v2065_v60  ;;  %v2598_v29 = vld [vmem:[#allocation2 + $0x78] sm:$0xf]  ;;  %v2599_v4 = vld [vmem:[#allocation2 + $0x7c] sm:$0xf]  ;;  %v14521_v24 = vadd.f32 %v14437_v25, %v14428_v9  ;;  %v14550_v61 = vpop.f32.mrf.mxu0 }
 0x182   : > { %v2885_v30 = vsel %vm13689_vm11, %v2880_v15, %v2884_v53  ;;  %3124 = vst [vmem:[#allocation3 + $0x214] sm:$0xf] %v2875_v16  ;;  %v13147_v3 = vld [vmem:[#allocation3 + $0x208] ss:$36 sps:$4 sm:$0xff]   ;;  %v2464_v17 = vsel %vm13697_vm12, %v11286_v2, %v2463_v48  ;;  %2630 = vst [vmem:[#allocation3 + $0x258] sm:$0xf] %v2598_v29  ;;  %v14527_v53 = vadd.f32 %v14469_v12, %v14467_v21  ;;  %v14537_v2 = vpop.f32.mrf.mxu1 }
 0x183   : > { %v13145_v51 = vld [vmem:[#allocation3 + $0x20c] ss:$36 sps:$4 sm:$0xff]   ;;  %3125 = vst [vmem:[#allocation3 + $0x238] sm:$0xf] %v2885_v30  ;;  %v2061_v38 = vrot.slane %v2060_v52, 4  ;;  %v14531_v1 = vadd.f32 %v14489_v35, %v14471_v36  ;;  %v2071_v10 = vrot.slane %v2070_v56, 4  ;;  %v14533_v20 = vadd.f32 %v11948_v50, %v11947_v6 }
 0x184   : > { %2631 = vst [vmem:[#allocation3 + $0x27c] sm:$0xf] %v2599_v4  ;;  %v2465_v9 = vrot.slane %v2463_v48, 4  ;;  %2565 = vst [vmem:[#allocation3 + $0x254] sm:$0xf] %v2464_v17  ;;  %v14535_v42 = vadd.f32 %v12060_v32, %v12059_v47  ;;  %5303 = vmatprep.mubr.bf16.mxu0 %v13145_v51  ;;  %v14552_v16 = vpop.f32.mrf.mxu1  ;;  %v14558_v51 = vpop.f32.mrf.mxu0 }
 0x185   : > { %v2670_v25 = vld [vmem:[#allocation2 + $0x78] sm:$0xf]  ;;  %v2671_v41 = vld [vmem:[#allocation2 + $0x7c] sm:$0xf]  ;;  %v2066_v21 = vsel %vm13689_vm11, %v2061_v38, %v2065_v60  ;;  %v2672_v12 = vld [vmem:[#allocation2 + $0x80] sm:$0x1]  ;;  %5304 = vmatmul.mubr.bf16.gmra.mxu0 %v13147_v3  ;;  %v2076_v35 = vsel %vm13689_vm11, %v2071_v10, %v2075_v55 }
 0x186   : > { %v2887_v27 = vshrl.u32 %v2670_v25, 16  ;;  %v2890_v43 = vshll.u32 %v2670_v25, 16  ;;  %v2896_v36 = vshll.u32 %v2671_v41, 16  ;;  %2293 = vst [vmem:[#allocation3 + $0x250] sm:$0xf] %v2066_v21  ;;  %v2467_v6 = vsel %vm13697_vm12, %v2465_v9, %v2466_v39  ;;  %v14563_v25 = vpop.f32.mrf.mxu1 }
 0x187   : > { %v2900_v47 = vshrl.u32 %v2671_v41, 16  ;;  %v2906_v57 = vshll.u32 %v2672_v12, 16  ;;  %v14548_v15 = vld [vmem:[%s16985_s2] ss:$0 sm:$0xff]  ;;  %v1840_v60 = vld [vmem:[#allocation2 + $0x78] sm:$0xf] }
 0x188   : > { %2294 = vst [vmem:[#allocation3 + $0x274] sm:$0xf] %v2076_v35  ;;  %2566 = vst [vmem:[#allocation3 + $0x278] sm:$0xf] %v2467_v6  ;;  %v2889_v52 = vrot.slane %v2887_v27, 4  ;;  %v2892_v55 = vrot.slane %v2890_v43, 5  ;;  %v4928_v50 = vadd.f32 %v14289_v58, %v14548_v15  ;;  %v4931_v39 = vadd.f32 %v14445_v40, %v14548_v15  ;;  %v14570_v43 = vpop.f32.mrf.mxu0 }
 0x189   : > { %v2898_v48 = vrot.slane %v2896_v36, 5  ;;  %v1841_v32 = vld [vmem:[#allocation2 + $0x7c] sm:$0xf]  ;;  %v2902_v30 = vrot.slane %v2900_v47, 4  ;;  %v2908_v56 = vrot.slane %v2906_v57, 5  ;;  %v2078_v4 = vshrl.u32 %v1840_v60, 16 }
 0x18a   : > { %v1842_v29 = vld [vmem:[#allocation2 + $0x80] sm:$0x1]  ;;  %v2893_v3 = vor.u32 %v2892_v55, %v2889_v52  ;;  %v14561_v38 = vadd.f32 %v14314_v13, %v4928_v50  ;;  %v2081_v17 = vshll.u32 %v1840_v60, 16  ;;  %v2087_v10 = vshll.u32 %v1841_v32, 16  ;;  %v2336_v9 = vld [vmem:[#allocation2 + $0x78] sm:$0xe] }
 0x18b   : > { %v13148_v58 = vld [vmem:[#allocation3 + $0x214] ss:$36 sps:$4 sm:$0xff]   ;;  %v2903_v21 = vor.u32 %v2902_v30, %v2898_v48  ;;  %v2080_v12 = vrot.slane %v2078_v4, 4  ;;  %v14566_v27 = vadd.f32 %v14451_v54, %v4931_v39  ;;  %v4936_v40 = vadd.f32 %v14351_v11, %v14548_v15  ;;  %v2337_v47 = vld [vmem:[#allocation2 + $0x7c] sm:$0xf]  ;;  %v14572_v30 = vpop.f32.mrf.mxu0 }
 0x18c   : > { %17022 = vst [vmem:[#allocation11_spill] sm:$0xff] %v14561_v38  ;;  %v13150_v41 = vld [vmem:[#allocation3 + $0x210] ss:$36 sps:$4 sm:$0xff]   ;;  %v2894_v36 = vrot.slane %v2893_v3, 4  ;;  %v2083_v13 = vrot.slane %v2081_v17, 5  ;;  %v2089_v35 = vrot.slane %v2087_v10, 5  ;;  %5464 = vmatprep.mubr.bf16.mxu1 %v13148_v58  ;;  %v14576_v17 = vpop.f32.mrf.mxu1 }
 0x18d   : > { %17023 = vst [vmem:[#allocation12_spill] sm:$0xff] %v14566_v27  ;;  %v2091_v6 = vshrl.u32 %v1841_v32, 16  ;;  %v2904_v57 = vrot.slane %v2903_v21, 4  ;;  %v2097_v60 = vshll.u32 %v1842_v29, 16  ;;  %v2338_v52 = vld [vmem:[#allocation2 + $0x80] sm:$0x1]  ;;  %5465 = vmatmul.mubr.bf16.gmra.mxu1 %v13150_v41  ;;  %v14583_v41 = vadd.f32 %v14362_v63, %v4936_v40 }
 0x18e   : > { %v11287_v55 = vrot.slane %v2336_v9, 9  ;;  %v2470_v50 = vrot.slane %v2337_v47, 5  ;;  %v2899_v54 = vsel %vm13689_vm11, %v2894_v36, %v2898_v48  ;;  %v2084_v11 = vor.u32 %v2083_v13, %v2080_v12  ;;  %v2600_v3 = vld [vmem:[#allocation2 + $0x84] sm:$0xf]  ;;  %v2601_v36 = vld [vmem:[#allocation2 + $0x88] sm:$0xf] }
 0x18f   : > { %v2093_v39 = vrot.slane %v2091_v6, 4  ;;  %v2473_v4 = vrot.slane %v2338_v52, 5  ;;  %v13151_v32 = vld [vmem:[#allocation3 + $0x254] ss:$36 sps:$4 sm:$0xff]   ;;  %v2909_v29 = vsel %vm13689_vm11, %v2904_v57, %v2908_v56  ;;  %3126 = vst [vmem:[#allocation3 + $0x25c] sm:$0xf] %v2899_v54  ;;  %v4939_v6 = vadd.f32 %v14459_v8, %v14548_v15  ;;  %v14587_v56 = vpop.f32.mrf.mxu0 }
 0x190   : > { %v13154_v10 = vld [vmem:[#allocation3 + $0x250] ss:$36 sps:$4 sm:$0xff]   ;;  %v2099_v9 = vrot.slane %v2097_v60, 5  ;;  %v2471_v58 = vsel %vm13697_vm12, %v11287_v55, %v2470_v50  ;;  %2632 = vst [vmem:[#allocation3 + $0x2a0] sm:$0xf] %v2600_v3  ;;  %17024 = vst [vmem:[#allocation13_spill] sm:$0xff] %v14583_v41  ;;  %5311 = vmatprep.mubr.bf16.mxu0 %v13151_v32  ;;  %v4944_v63 = vadd.f32 %v14374_v26, %v14548_v15  ;;  %v14599_v32 = vpop.f32.mrf.mxu1 }
 0x191   : > { %3127 = vst [vmem:[#allocation3 + $0x280] sm:$0xf] %v2909_v29  ;;  %v2085_v48 = vrot.slane %v2084_v11, 4  ;;  %v2094_v21 = vor.u32 %v2093_v39, %v2089_v35  ;;  %v2472_v12 = vrot.slane %v2470_v50, 4  ;;  %2567 = vst [vmem:[#allocation3 + $0x29c] sm:$0xf] %v2471_v58  ;;  %v4947_v40 = vadd.f32 %v14479_v0, %v14548_v15  ;;  %5312 = vmatmul.mubr.bf16.gmra.mxu0 %v13154_v10  ;;  %v14597_v3 = vpop.f32.mrf.mxu0 }
 0x192   : > { %v2673_v13 = vld [vmem:[#allocation2 + $0x84] sm:$0xf]  ;;  %2633 = vst [vmem:[#allocation3 + $0x2c4] sm:$0xf] %v2601_v36  ;;  %v2674_v47 = vld [vmem:[#allocation2 + $0x88] sm:$0xf] }
 0x193   : > { %v2675_v57 = vld [vmem:[#allocation2 + $0x8c] sm:$0x1]  ;;  %v2911_v60 = vshrl.u32 %v2673_v13, 16  ;;  %v2914_v52 = vshll.u32 %v2673_v13, 16  ;;  %v2090_v55 = vsel %vm13689_vm11, %v2085_v48, %v2089_v35  ;;  %v2095_v50 = vrot.slane %v2094_v21, 4 }
 0x194   : > { %v2474_v8 = vsel %vm13697_vm12, %v2472_v12, %v2473_v4  ;;  %v2920_v54 = vshll.u32 %v2674_v47, 16  ;;  %v1843_v11 = vld [vmem:[#allocation2 + $0x84] sm:$0xf]  ;;  %v1844_v39 = vld [vmem:[#allocation2 + $0x88] sm:$0xf]  ;;  %v2924_v0 = vshrl.u32 %v2674_v47, 16 }
 0x195   : > { %2295 = vst [vmem:[#allocation3 + $0x298] sm:$0xf] %v2090_v55  ;;  %2568 = vst [vmem:[#allocation3 + $0x2c0] sm:$0xf] %v2474_v8  ;;  %v2913_v26 = vrot.slane %v2911_v60, 4  ;;  %v2916_v29 = vrot.slane %v2914_v52, 5  ;;  %v2100_v35 = vsel %vm13689_vm11, %v2095_v50, %v2099_v9  ;;  %v14603_v55 = vpop.f32.mrf.mxu0  ;;  %v14605_v8 = vpop.f32.mrf.mxu1 }
 0x196   : > { %v2930_v10 = vshll.u32 %v2675_v57, 16  ;;  %v1845_v58 = vld [vmem:[#allocation2 + $0x8c] sm:$0x1]  ;;  %v2922_v48 = vrot.slane %v2920_v54, 5  ;;  %v2102_v21 = vshrl.u32 %v1843_v11, 16  ;;  %v2105_v4 = vshll.u32 %v1843_v11, 16 }
 0x197   : > { %v2339_v12 = vld [vmem:[#allocation2 + $0x84] sm:$0xe]  ;;  %2296 = vst [vmem:[#allocation3 + $0x2bc] sm:$0xf] %v2100_v35  ;;  %v2917_v36 = vor.u32 %v2916_v29, %v2913_v26  ;;  %v2926_v13 = vrot.slane %v2924_v0, 4  ;;  %v2111_v27 = vshll.u32 %v1844_v39, 16  ;;  %v14608_v11 = vadd.f32 %v14475_v49, %v4939_v6 }
 0x198   : > { %v2932_v41 = vrot.slane %v2930_v10, 5  ;;  %v2340_v38 = vld [vmem:[#allocation2 + $0x88] sm:$0xf]  ;;  %v2104_v60 = vrot.slane %v2102_v21, 4  ;;  %v2107_v52 = vrot.slane %v2105_v4, 5  ;;  %v2115_v47 = vshrl.u32 %v1844_v39, 16 }
 0x199   : > { %v2121_v57 = vshll.u32 %v1845_v58, 16  ;;  %v13155_v33 = vld [vmem:[#allocation3 + $0x25c] ss:$36 sps:$4 sm:$0xff]   ;;  %v2918_v50 = vrot.slane %v2917_v36, 4  ;;  %v2927_v54 = vor.u32 %v2926_v13, %v2922_v48  ;;  %v14611_v26 = vadd.f32 %v14383_v59, %v4944_v63  ;;  %v2341_v21 = vld [vmem:[#allocation2 + $0x8c] sm:$0x1]  ;;  %v14615_v36 = vpop.f32.mrf.mxu0 }
 0x19a   : > { %v13157_v9 = vld [vmem:[#allocation3 + $0x258] ss:$36 sps:$4 sm:$0xff]   ;;  %v2108_v29 = vor.u32 %v2107_v52, %v2104_v60  ;;  %v2113_v0 = vrot.slane %v2111_v27, 5  ;;  %v2117_v10 = vrot.slane %v2115_v47, 4  ;;  %5472 = vmatprep.mubr.bf16.mxu1 %v13155_v33  ;;  %v11288_v4 = vrot.slane %v2339_v12, 9  ;;  %v14620_v27 = vpop.f32.mrf.mxu1 }
 0x19b   : > { %v2123_v35 = vrot.slane %v2121_v57, 5  ;;  %v2923_v39 = vsel %vm13689_vm11, %v2918_v50, %v2922_v48  ;;  %v2928_v58 = vrot.slane %v2927_v54, 4  ;;  %v2477_v37 = vrot.slane %v2340_v38, 5  ;;  %5473 = vmatmul.mubr.bf16.gmra.mxu1 %v13157_v9  ;;  %v2602_v38 = vld [vmem:[#allocation2 + $0x90] sm:$0xf] }
 0x19c   : > { %3128 = vst [vmem:[#allocation3 + $0x2a4] sm:$0xf] %v2923_v39  ;;  %v2109_v49 = vrot.slane %v2108_v29, 4  ;;  %v2118_v6 = vor.u32 %v2117_v10, %v2113_v0  ;;  %v2480_v59 = vrot.slane %v2341_v21, 5  ;;  %v14618_v63 = vadd.f32 %v14483_v44, %v4947_v40  ;;  %v2603_v13 = vld [vmem:[#allocation2 + $0x94] sm:$0xf] }
 0x19d   : > { %v2933_v33 = vsel %vm13689_vm11, %v2928_v58, %v2932_v41  ;;  %v2478_v48 = vsel %vm13697_vm12, %v11288_v4, %v2477_v37  ;;  %v2479_v12 = vrot.slane %v2477_v37, 4  ;;  %v4952_v60 = vadd.f32 %v14393_v19, %v14548_v15  ;;  %v13158_v52 = vld [vmem:[#allocation3 + $0x29c] ss:$36 sps:$4 sm:$0xff]   ;;  %2634 = vst [vmem:[#allocation3 + $0x2e8] sm:$0xf] %v2602_v38  ;;  %v14647_v4 = vpop.f32.mrf.mxu1 }
 0x19e   : > { %v13160_v47 = vld [vmem:[#allocation3 + $0x298] ss:$36 sps:$4 sm:$0xff]   ;;  %3129 = vst [vmem:[#allocation3 + $0x2c8] sm:$0xf] %v2933_v33  ;;  %v2114_v44 = vsel %vm13689_vm11, %v2109_v49, %v2113_v0  ;;  %v2119_v40 = vrot.slane %v2118_v6, 4  ;;  %v4955_v41 = vadd.f32 %v14495_v5, %v14548_v15  ;;  %v4960_v37 = vadd.f32 %v14432_v18, %v14548_v15  ;;  %v14643_v5 = vpop.f32.mrf.mxu0  ;;  %5319 = vmatprep.mubr.bf16.mxu0 %v13158_v52 }
 0x19f   : > { %2569 = vst [vmem:[#allocation3 + $0x2e4] sm:$0xf] %v2478_v48  ;;  %2635 = vst [vmem:[#allocation3 + $0x30c] sm:$0xf] %v2603_v13  ;;  %v2481_v19 = vsel %vm13697_vm12, %v2479_v12, %v2480_v59  ;;  %v2676_v57 = vld [vmem:[#allocation2 + $0x90] sm:$0xf]  ;;  %v14637_v54 = vadd.f32 %v14406_v23, %v4952_v60  ;;  %v4963_v29 = vadd.f32 %v14521_v24, %v14548_v15  ;;  %5320 = vmatmul.mubr.bf16.gmra.mxu0 %v13160_v47 }
 0x1a0   : > { %2297 = vst [vmem:[#allocation3 + $0x2e0] sm:$0xf] %v2114_v44  ;;  %v2677_v9 = vld [vmem:[#allocation2 + $0x94] sm:$0xf]  ;;  %v2678_v50 = vld [vmem:[#allocation2 + $0x98] sm:$0x1]  ;;  %v4968_v0 = vadd.f32 %v14465_v28, %v14548_v15  ;;  %v2124_v18 = vsel %vm13689_vm11, %v2119_v40, %v2123_v35  ;;  %v14650_v28 = vadd.f32 %v14499_v62, %v4955_v41  ;;  %v14653_v59 = vadd.f32 %v14434_v46, %v4960_v37  ;;  %v14655_v44 = vpop.f32.mrf.mxu0  ;;  %v14657_v41 = vpop.f32.mrf.mxu1 }
 0x1a1   : > { %2570 = vst [vmem:[#allocation3 + $0x308] sm:$0xf] %v2481_v19  ;;  %v2935_v10 = vshrl.u32 %v2676_v57, 16  ;;  %v2938_v21 = vshll.u32 %v2676_v57, 16  ;;  %v2944_v39 = vshll.u32 %v2677_v9, 16  ;;  %v2948_v23 = vshrl.u32 %v2677_v9, 16 }
 0x1a2   : > { %v1846_v58 = vld [vmem:[#allocation2 + $0x90] sm:$0xf]  ;;  %2298 = vst [vmem:[#allocation3 + $0x304] sm:$0xf] %v2124_v18  ;;  %v2954_v24 = vshll.u32 %v2678_v50, 16  ;;  %17025 = vst [vmem:[#allocation14_spill] sm:$0xff] %v14650_v28 }
 0x1a3   : > { %v1847_v49 = vld [vmem:[#allocation2 + $0x94] sm:$0xf]  ;;  %v1848_v6 = vld [vmem:[#allocation2 + $0x98] sm:$0x1]  ;;  %17026 = vst [vmem:[#allocation15_spill] sm:$0xff] %v14653_v59  ;;  %v2937_v35 = vrot.slane %v2935_v10, 4  ;;  %v14660_v10 = vadd.f32 %v14513_v14, %v4963_v29 }
 0x1a4   : > { %v2940_v33 = vrot.slane %v2938_v21, 5  ;;  %v2946_v48 = vrot.slane %v2944_v39, 5  ;;  %v2126_v12 = vshrl.u32 %v1846_v58, 16  ;;  %v2342_v38 = vld [vmem:[#allocation2 + $0x90] sm:$0xe]  ;;  %v2950_v13 = vrot.slane %v2948_v23, 4 }
 0x1a5   : > { %v2956_v60 = vrot.slane %v2954_v24, 5  ;;  %v2129_v52 = vshll.u32 %v1846_v58, 16  ;;  %v2135_v47 = vshll.u32 %v1847_v49, 16  ;;  %v2139_v57 = vshrl.u32 %v1847_v49, 16  ;;  %v2343_v62 = vld [vmem:[#allocation2 + $0x94] sm:$0xf] }
 0x1a6   : > { %v2941_v40 = vor.u32 %v2940_v33, %v2937_v35  ;;  %v2128_v19 = vrot.slane %v2126_v12, 4  ;;  %v2145_v9 = vshll.u32 %v1848_v6, 16  ;;  %v13161_v46 = vld [vmem:[#allocation3 + $0x2a4] ss:$36 sps:$4 sm:$0xff]   ;;  %v2951_v50 = vor.u32 %v2950_v13, %v2946_v48  ;;  %17027 = vst [vmem:[#allocation16_spill] sm:$0xff] %v14660_v10  ;;  %v14665_v35 = vpop.f32.mrf.mxu1  ;;  %v14667_v13 = vpop.f32.mrf.mxu0 }
 0x1a7   : > { %v13163_v37 = vld [vmem:[#allocation3 + $0x2a0] ss:$36 sps:$4 sm:$0xff]   ;;  %v2131_v18 = vrot.slane %v2129_v52, 5  ;;  %v14663_v21 = vadd.f32 %v14453_v34, %v4968_v0  ;;  %v2137_v58 = vrot.slane %v2135_v47, 5  ;;  %v2141_v23 = vrot.slane %v2139_v57, 4  ;;  %5480 = vmatprep.mubr.bf16.mxu1 %v13161_v46 }
 0x1a8   : > { %v2942_v39 = vrot.slane %v2941_v40, 4  ;;  %v2147_v24 = vrot.slane %v2145_v9, 5  ;;  %v2952_v49 = vrot.slane %v2951_v50, 4  ;;  %v2344_v33 = vld [vmem:[#allocation2 + $0x98] sm:$0x1]  ;;  %v11289_v12 = vrot.slane %v2342_v38, 9  ;;  %5481 = vmatmul.mubr.bf16.gmra.mxu1 %v13163_v37  ;;  %v14673_v40 = vpop.f32.mrf.mxu1 }
 0x1a9   : > { %17028 = vst [vmem:[#allocation17_spill] sm:$0xff] %v14663_v21  ;;  %v2132_v6 = vor.u32 %v2131_v18, %v2128_v19  ;;  %v2484_v59 = vrot.slane %v2343_v62, 5  ;;  %v13164_v14 = vld [vmem:[#allocation3 + $0x2e4] ss:$36 sps:$4 sm:$0xff]   ;;  %v2142_v0 = vor.u32 %v2141_v23, %v2137_v58  ;;  %v2487_v52 = vrot.slane %v2344_v33, 5 }
 0x1aa   : > { %v13167_v29 = vld [vmem:[#allocation3 + $0x2e0] ss:$36 sps:$4 sm:$0xff]   ;;  %v2947_v34 = vsel %vm13689_vm11, %v2942_v39, %v2946_v48  ;;  %v4971_v47 = vadd.f32 %v14527_v53, %v14548_v15  ;;  %v2957_v19 = vsel %vm13689_vm11, %v2952_v49, %v2956_v60  ;;  %v2605_v46 = vld [vmem:[#allocation2 + $0xa0] sm:$0xf]  ;;  %5327 = vmatprep.mubr.bf16.mxu0 %v13164_v14  ;;  %v4976_v60 = vadd.f32 %v14507_v31, %v14548_v15  ;;  %v2681_v49 = vld [vmem:[#allocation2 + $0xa4] sm:$0x1] }
 0x1ab   : > { %3130 = vst [vmem:[#allocation3 + $0x2ec] sm:$0xf] %v2947_v34  ;;  %v2133_v38 = vrot.slane %v2132_v6, 4  ;;  %v2485_v57 = vsel %vm13697_vm12, %v11289_v12, %v2484_v59  ;;  %v2486_v9 = vrot.slane %v2484_v59, 4  ;;  %v2604_v62 = vld [vmem:[#allocation2 + $0x9c] sm:$0xf]  ;;  %v4979_v18 = vadd.f32 %v14533_v20, %v14548_v15  ;;  %v14686_v59 = vpop.f32.mrf.mxu1  ;;  %5328 = vmatmul.mubr.bf16.gmra.mxu0 %v13167_v29  ;;  %v14692_v12 = vpop.f32.mrf.mxu0 }
 0x1ac   : > { %3131 = vst [vmem:[#allocation3 + $0x310] sm:$0xf] %v2957_v19  ;;  %v2143_v48 = vrot.slane %v2142_v0, 4  ;;  %2571 = vst [vmem:[#allocation3 + $0x32c] sm:$0xf] %v2485_v57  ;;  %v14680_v50 = vadd.f32 %v14531_v1, %v4971_v47  ;;  %v2978_v29 = vshll.u32 %v2681_v49, 16  ;;  %v14703_v28 = vadd.f32 %v14509_v45, %v4976_v60 }
 0x1ad   : > { %2636 = vst [vmem:[#allocation3 + $0x330] sm:$0xf] %v2604_v62  ;;  %2637 = vst [vmem:[#allocation3 + $0x354] sm:$0xf] %v2605_v46  ;;  %v2679_v53 = vld [vmem:[#allocation2 + $0x9c] sm:$0xf]  ;;  %v2138_v39 = vsel %vm13689_vm11, %v2133_v38, %v2137_v58  ;;  %v2488_v23 = vsel %vm13697_vm12, %v2486_v9, %v2487_v52  ;;  %v14696_v38 = vpop.f32.mrf.mxu1  ;;  %v14698_v49 = vpop.f32.mrf.mxu0  ;;  %v11952_v45 = vadd.f32 %v14558_v51, %v14550_v61 }
 0x1ae   : > { %v2680_v37 = vld [vmem:[#allocation2 + $0xa0] sm:$0xf]  ;;  %17029 = vst [vmem:[#allocation18_spill] sm:$0xff] %v14680_v50  ;;  %v2959_v6 = vshrl.u32 %v2679_v53, 16  ;;  %v2962_v33 = vshll.u32 %v2679_v53, 16  ;;  %v2148_v31 = vsel %vm13689_vm11, %v2143_v48, %v2147_v24  ;;  %v2980_v62 = vrot.slane %v2978_v29, 5 }
 0x1af   : > { %v1849_v1 = vld [vmem:[#allocation2 + $0x9c] sm:$0xf]  ;;  %2299 = vst [vmem:[#allocation3 + $0x328] sm:$0xf] %v2138_v39  ;;  %2572 = vst [vmem:[#allocation3 + $0x350] sm:$0xf] %v2488_v23 }
 0x1b0   : > { %v2968_v20 = vshll.u32 %v2680_v37, 16  ;;  %v2972_v14 = vshrl.u32 %v2680_v37, 16  ;;  %v1850_v34 = vld [vmem:[#allocation2 + $0xa0] sm:$0xf]  ;;  %2300 = vst [vmem:[#allocation3 + $0x34c] sm:$0xf] %v2148_v31  ;;  %v14700_v31 = vpop.f32.mrf.mxu1 }
 0x1b1   : > { %v2961_v58 = vrot.slane %v2959_v6, 4  ;;  %v2964_v0 = vrot.slane %v2962_v33, 5  ;;  %v1851_v47 = vld [vmem:[#allocation2 + $0xa4] sm:$0x1]  ;;  %v2150_v52 = vshrl.u32 %v1849_v1, 16  ;;  %v2153_v19 = vshll.u32 %v1849_v1, 16 }
 0x1b2   : > { %v2970_v57 = vrot.slane %v2968_v20, 5  ;;  %v2974_v9 = vrot.slane %v2972_v14, 4  ;;  %v2159_v46 = vshll.u32 %v1850_v34, 16  ;;  %v2345_v53 = vld [vmem:[#allocation2 + $0x9c] sm:$0xe]  ;;  %v2163_v23 = vshrl.u32 %v1850_v34, 16  ;;  %v14708_v34 = vpop.f32.mrf.mxu0 }
 0x1b3   : > { %v2965_v24 = vor.u32 %v2964_v0, %v2961_v58  ;;  %v2152_v48 = vrot.slane %v2150_v52, 4  ;;  %v2155_v39 = vrot.slane %v2153_v19, 5  ;;  %v2346_v37 = vld [vmem:[#allocation2 + $0xa0] sm:$0xf]  ;;  %v2169_v50 = vshll.u32 %v1851_v47, 16  ;;  %v14710_v0 = vpop.f32.mrf.mxu1 }
 0x1b4   : > { %v2975_v6 = vor.u32 %v2974_v9, %v2970_v57  ;;  %v2161_v33 = vrot.slane %v2159_v46, 5  ;;  %v2347_v1 = vld [vmem:[#allocation2 + $0xa4] sm:$0x1]  ;;  %v11290_v21 = vrot.slane %v2345_v53, 9  ;;  %v14706_v58 = vadd.f32 %v14535_v42, %v4979_v18  ;;  %v14716_v60 = vpop.f32.mrf.mxu0  ;;  %v13218_v42 = vld [vmem:[%s16986_s3 + $0x78] sm:$0xff]  }
 0x1b5   : > { %v13168_v10 = vld [vmem:[#allocation3 + $0x2ec] ss:$36 sps:$4 sm:$0xff]   ;;  %v2966_v14 = vrot.slane %v2965_v24, 4  ;;  %v2156_v29 = vor.u32 %v2155_v39, %v2152_v48  ;;  %v2165_v19 = vrot.slane %v2163_v23, 4  ;;  %v2171_v9 = vrot.slane %v2169_v50, 5  ;;  %v14725_v23 = vpop.f32.mrf.mxu1  ;;  %12364 = vmatprep.subr.bf16.mxu1 %v13218_v42 }
 0x1b6   : > { %v13170_v20 = vld [vmem:[#allocation3 + $0x2e8] ss:$36 sps:$4 sm:$0xff]   ;;  %17030 = vst [vmem:[#allocation19_spill] sm:$0xff] %v14706_v58  ;;  %v2976_v52 = vrot.slane %v2975_v6, 4  ;;  %v2491_v47 = vrot.slane %v2346_v37, 5  ;;  %5488 = vmatprep.mubr.bf16.mxu1 %v13168_v10  ;;  %v2494_v24 = vrot.slane %v2347_v1, 5  ;;  %v4984_v1 = vadd.f32 %v11952_v45, %v14548_v15 }
 0x1b7   : > { %v2971_v46 = vsel %vm13689_vm11, %v2966_v14, %v2970_v57  ;;  %v2157_v53 = vrot.slane %v2156_v29, 4  ;;  %5489 = vmatmul.mubr.bf16.gmra.mxu1 %v13170_v20  ;;  %v13171_v18 = vld [vmem:[#allocation3 + $0x32c] ss:$36 sps:$4 sm:$0xff]   ;;  %v2166_v50 = vor.u32 %v2165_v19, %v2161_v33  ;;  %v2607_v37 = vld [vmem:[#allocation2 + $0xac] sm:$0xf]  ;;  %v11955_v20 = vadd.f32 %v14572_v30, %v14570_v43 }
 0x1b8   : > { %v13173_v48 = vld [vmem:[#allocation3 + $0x328] ss:$36 sps:$4 sm:$0xff]   ;;  %v2981_v10 = vsel %vm13689_vm11, %v2976_v52, %v2980_v62  ;;  %3132 = vst [vmem:[#allocation3 + $0x334] sm:$0xf] %v2971_v46  ;;  %v2492_v57 = vsel %vm13697_vm12, %v11290_v21, %v2491_v47  ;;  %v2493_v39 = vrot.slane %v2491_v47, 4  ;;  %v12064_v62 = vadd.f32 %v14552_v16, %v14537_v2  ;;  %v14734_v21 = vpop.f32.mrf.mxu0  ;;  %5335 = vmatprep.mubr.bf16.mxu0 %v13171_v18 }
 0x1b9   : > { %3133 = vst [vmem:[#allocation3 + $0x358] sm:$0xf] %v2981_v10  ;;  %v2162_v61 = vsel %vm13689_vm11, %v2157_v53, %v2161_v33  ;;  %2573 = vst [vmem:[#allocation3 + $0x374] sm:$0xf] %v2492_v57  ;;  %v2606_v51 = vld [vmem:[#allocation2 + $0xa8] sm:$0xf]  ;;  %v12067_v2 = vadd.f32 %v14576_v17, %v14563_v25  ;;  %5336 = vmatmul.mubr.bf16.gmra.mxu0 %v13173_v48 }
 0x1ba   : > { %v2682_v6 = vld [vmem:[#allocation2 + $0xa8] sm:$0xf]  ;;  %v2167_v14 = vrot.slane %v2166_v50, 4  ;;  %2301 = vst [vmem:[#allocation3 + $0x370] sm:$0xf] %v2162_v61  ;;  %v2495_v33 = vsel %vm13697_vm12, %v2493_v39, %v2494_v24  ;;  %v14742_v10 = vadd.f32 %v12064_v62, %v4984_v1  ;;  %v14744_v50 = vpop.f32.mrf.mxu1  ;;  %v14746_v61 = vpop.f32.mrf.mxu0 }
 0x1bb   : > { %2638 = vst [vmem:[#allocation3 + $0x378] sm:$0xf] %v2606_v51  ;;  %2639 = vst [vmem:[#allocation3 + $0x39c] sm:$0xf] %v2607_v37  ;;  %v2683_v29 = vld [vmem:[#allocation2 + $0xac] sm:$0xf] }
 0x1bc   : > { %v2684_v52 = vld [vmem:[#allocation2 + $0xb0] sm:$0x1]  ;;  %v2983_v19 = vshrl.u32 %v2682_v6, 16  ;;  %2574 = vst [vmem:[#allocation3 + $0x398] sm:$0xf] %v2495_v33  ;;  %v2986_v16 = vshll.u32 %v2682_v6, 16  ;;  %v2172_v53 = vsel %vm13689_vm11, %v2167_v14, %v2171_v9 }
 0x1bd   : > { %v2992_v43 = vshll.u32 %v2683_v29, 16  ;;  %v2996_v30 = vshrl.u32 %v2683_v29, 16  ;;  %v3002_v47 = vshll.u32 %v2684_v52, 16  ;;  %v1852_v46 = vld [vmem:[#allocation2 + $0xa8] sm:$0xf]  ;;  %17031 = vst [vmem:[#allocation20_spill] sm:$0xff] %v14742_v10 }
 0x1be   : > { %v2985_v45 = vrot.slane %v2983_v19, 4  ;;  %v1853_v24 = vld [vmem:[#allocation2 + $0xac] sm:$0xf]  ;;  %v1854_v42 = vld [vmem:[#allocation2 + $0xb0] sm:$0x1]  ;;  %v2174_v18 = vshrl.u32 %v1852_v46, 16 }
 0x1bf   : > { %2302 = vst [vmem:[#allocation3 + $0x394] sm:$0xf] %v2172_v53  ;;  %v2988_v25 = vrot.slane %v2986_v16, 5  ;;  %v2994_v17 = vrot.slane %v2992_v43, 5  ;;  %v2998_v48 = vrot.slane %v2996_v30, 4  ;;  %v3004_v57 = vrot.slane %v3002_v47, 5 }
 0x1c0   : > { %v2348_v39 = vld [vmem:[#allocation2 + $0xa8] sm:$0xe]  ;;  %v2176_v51 = vrot.slane %v2174_v18, 4  ;;  %v2177_v37 = vshll.u32 %v1852_v46, 16  ;;  %v2183_v6 = vshll.u32 %v1853_v24, 16  ;;  %v2187_v9 = vshrl.u32 %v1853_v24, 16 }
 0x1c1   : > { %v2349_v14 = vld [vmem:[#allocation2 + $0xac] sm:$0xf]  ;;  %v2989_v33 = vor.u32 %v2988_v25, %v2985_v45  ;;  %v2999_v29 = vor.u32 %v2998_v48, %v2994_v17  ;;  %v2193_v52 = vshll.u32 %v1854_v42, 16  ;;  %v2350_v1 = vld [vmem:[#allocation2 + $0xb0] sm:$0x1]  ;;  %v11291_v62 = vrot.slane %v2348_v39, 9  ;;  %v14758_v45 = vpop.f32.mrf.mxu1  ;;  %v14760_v48 = vpop.f32.mrf.mxu0 }
 0x1c2   : > { %v13219_v19 = vld [vmem:[%s16986_s3 + $0x38] sm:$0xff]   ;;  %v13174_v16 = vld [vmem:[#allocation3 + $0x334] ss:$36 sps:$4 sm:$0xff]   ;;  %v2179_v30 = vrot.slane %v2177_v37, 5  ;;  %v4987_v47 = vadd.f32 %v11955_v20, %v14548_v15  ;;  %v11958_v46 = vadd.f32 %v14597_v3, %v14587_v56  ;;  %v14756_v53 = vadd.f32 %v14605_v8, %v14599_v32  ;;  %v2608_v58 = vld [vmem:[#allocation2 + $0xb4] sm:$0xf] }
 0x1c3   : > { %v13176_v43 = vld [vmem:[#allocation3 + $0x330] ss:$36 sps:$4 sm:$0xff]   ;;  %v2990_v24 = vrot.slane %v2989_v33, 4  ;;  %v3000_v42 = vrot.slane %v2999_v29, 4  ;;  %v2185_v18 = vrot.slane %v2183_v6, 5  ;;  %v2189_v25 = vrot.slane %v2187_v9, 4  ;;  %12365 = vmatpush3.bf16.msra.mxu1 %v13219_v19  ;;  %5496 = vmatprep.mubr.bf16.mxu1 %v13174_v16 }
 0x1c4   : > { %v2180_v39 = vor.u32 %v2179_v30, %v2176_v51  ;;  %v2195_v37 = vrot.slane %v2193_v52, 5  ;;  %v2498_v20 = vrot.slane %v2349_v14, 5  ;;  %v2501_v10 = vrot.slane %v2350_v1, 5  ;;  %5497 = vmatmul.mubr.bf16.gmra.mxu1 %v13176_v43  ;;  %v2609_v8 = vld [vmem:[#allocation2 + $0xb8] sm:$0xf]  ;;  %v14773_v1 = vpop.f32.mrf.mxu1  ;;  %v14775_v30 = vpop.f32.mrf.mxu0 }
 0x1c5   : > { %v2995_v56 = vsel %vm13689_vm11, %v2990_v24, %v2994_v17  ;;  %v3005_v3 = vsel %vm13689_vm11, %v3000_v42, %v3004_v57  ;;  %v2190_v32 = vor.u32 %v2189_v25, %v2185_v18  ;;  %2640 = vst [vmem:[#allocation3 + $0x3c0] sm:$0xf] %v2608_v58  ;;  %v2685_v6 = vld [vmem:[#allocation2 + $0xb4] sm:$0xf]  ;;  %v2686_v9 = vld [vmem:[#allocation2 + $0xb8] sm:$0xf]  ;;  %v14766_v33 = vadd.f32 %v12067_v2, %v4987_v47 }
 0x1c6   : > { %v13177_v29 = vld [vmem:[#allocation3 + $0x374] ss:$36 sps:$4 sm:$0xff]   ;;  %3134 = vst [vmem:[#allocation3 + $0x37c] sm:$0xf] %v2995_v56  ;;  %3135 = vst [vmem:[#allocation3 + $0x3a0] sm:$0xf] %v3005_v3  ;;  %v2499_v52 = vsel %vm13697_vm12, %v11291_v62, %v2498_v20  ;;  %v4992_v17 = vadd.f32 %v11958_v46, %v14548_v15  ;;  %v11961_v57 = vadd.f32 %v14615_v36, %v14603_v55 }
 0x1c7   : > { %17032 = vst [vmem:[#allocation21_spill] sm:$0xff] %v14766_v33  ;;  %v13180_v51 = vld [vmem:[#allocation3 + $0x370] ss:$36 sps:$4 sm:$0xff]   ;;  %v2181_v14 = vrot.slane %v2180_v39, 4  ;;  %2641 = vst [vmem:[#allocation3 + $0x3e4] sm:$0xf] %v2609_v8  ;;  %5343 = vmatprep.mubr.bf16.mxu0 %v13177_v29 }
 0x1c8   : > { %v2191_v58 = vrot.slane %v2190_v32, 4  ;;  %v2500_v19 = vrot.slane %v2498_v20, 4  ;;  %2575 = vst [vmem:[#allocation3 + $0x3bc] sm:$0xf] %v2499_v52  ;;  %v2687_v2 = vld [vmem:[#allocation2 + $0xbc] sm:$0x1]  ;;  %5344 = vmatmul.mubr.bf16.gmra.mxu0 %v13180_v51 }
 0x1c9   : > { %v3007_v16 = vshrl.u32 %v2685_v6, 16  ;;  %v3010_v43 = vshll.u32 %v2685_v6, 16  ;;  %v2186_v62 = vsel %vm13689_vm11, %v2181_v14, %v2185_v18  ;;  %v3016_v47 = vshll.u32 %v2686_v9, 16  ;;  %v1855_v42 = vld [vmem:[#allocation2 + $0xb4] sm:$0xf] }
 0x1ca   : > { %v3020_v24 = vshrl.u32 %v2686_v9, 16  ;;  %v3026_v46 = vshll.u32 %v2687_v2, 16  ;;  %v2196_v55 = vsel %vm13689_vm11, %v2191_v58, %v2195_v37  ;;  %2303 = vst [vmem:[#allocation3 + $0x3b8] sm:$0xf] %v2186_v62  ;;  %v2502_v36 = vsel %vm13697_vm12, %v2500_v19, %v2501_v10  ;;  %v1856_v20 = vld [vmem:[#allocation2 + $0xb8] sm:$0xf]  ;;  %v14783_v9 = vpop.f32.mrf.mxu1  ;;  %v14785_v58 = vpop.f32.mrf.mxu0 }
 0x1cb   : > { %v3009_v25 = vrot.slane %v3007_v16, 4  ;;  %v3012_v39 = vrot.slane %v3010_v43, 5  ;;  %v1857_v56 = vld [vmem:[#allocation2 + $0xbc] sm:$0x1]  ;;  %2304 = vst [vmem:[#allocation3 + $0x3dc] sm:$0xf] %v2196_v55  ;;  %v4995_v55 = vadd.f32 %v11961_v57, %v14548_v15 }
 0x1cc   : > { %2576 = vst [vmem:[#allocation3 + $0x3e0] sm:$0xf] %v2502_v36  ;;  %v3018_v3 = vrot.slane %v3016_v47, 5  ;;  %v3022_v18 = vrot.slane %v3020_v24, 4  ;;  %v3028_v32 = vrot.slane %v3026_v46, 5  ;;  %v2198_v8 = vshrl.u32 %v1855_v42, 16  ;;  %v14791_v33 = vpop.f32.mrf.mxu1 }
 0x1cd   : > { %v2351_v6 = vld [vmem:[#allocation2 + $0xb4] sm:$0xe]  ;;  %v3013_v29 = vor.u32 %v3012_v39, %v3009_v25  ;;  %v2201_v51 = vshll.u32 %v1855_v42, 16  ;;  %v2207_v37 = vshll.u32 %v1856_v20, 16  ;;  %v2211_v14 = vshrl.u32 %v1856_v20, 16 }
 0x1ce   : > { %v2352_v52 = vld [vmem:[#allocation2 + $0xb8] sm:$0xf]  ;;  %v3023_v10 = vor.u32 %v3022_v18, %v3018_v3  ;;  %v2200_v19 = vrot.slane %v2198_v8, 4  ;;  %v2217_v2 = vshll.u32 %v1857_v56, 16  ;;  %v2353_v16 = vld [vmem:[#allocation2 + $0xbc] sm:$0x1]  ;;  %v14788_v46 = vadd.f32 %v14756_v53, %v4992_v17 }
 0x1cf   : > { %v11292_v43 = vrot.slane %v2351_v6, 9  ;;  %v13181_v62 = vld [vmem:[#allocation3 + $0x37c] ss:$36 sps:$4 sm:$0xff]   ;;  %v3014_v47 = vrot.slane %v3013_v29, 4  ;;  %v2203_v24 = vrot.slane %v2201_v51, 5  ;;  %v2209_v25 = vrot.slane %v2207_v37, 5  ;;  %v14795_v29 = vpop.f32.mrf.mxu0 }
 0x1d0   : > { %v13183_v36 = vld [vmem:[#allocation3 + $0x378] ss:$36 sps:$4 sm:$0xff]   ;;  %v3024_v42 = vrot.slane %v3023_v10, 4  ;;  %v2213_v39 = vrot.slane %v2211_v14, 4  ;;  %v2219_v20 = vrot.slane %v2217_v2, 5  ;;  %5504 = vmatprep.mubr.bf16.mxu1 %v13181_v62  ;;  %v2505_v8 = vrot.slane %v2352_v52, 5 }
 0x1d1   : > { %v3019_v56 = vsel %vm13689_vm11, %v3014_v47, %v3018_v3  ;;  %v2204_v18 = vor.u32 %v2203_v24, %v2200_v19  ;;  %v2508_v6 = vrot.slane %v2353_v16, 5  ;;  %5505 = vmatmul.mubr.bf16.gmra.mxu1 %v13183_v36  ;;  %v340_v57 = vld [vmem:[#allocation2 + $0xc8] sm:$0x1]  ;;  %v2610_v51 = vld [vmem:[#allocation2 + $0xc0] sm:$0xf]  ;;  %v12073_v37 = vadd.f32 %v14647_v4, %v14620_v27  ;;  %v14809_v16 = vpop.f32.mrf.mxu1 }
 0x1d2   : > { %v3029_v53 = vsel %vm13689_vm11, %v3024_v42, %v3028_v32  ;;  %3136 = vst [vmem:[#allocation3 + $0x3c4] sm:$0xf] %v3019_v56  ;;  %v2214_v17 = vor.u32 %v2213_v39, %v2209_v25  ;;  %v11964_v14 = vadd.f32 %v14655_v44, %v14643_v5  ;;  %v13186_v10 = vld [vmem:[#allocation3 + $0x3b8] ss:$36 sps:$4 sm:$0xff]   ;;  %v2506_v19 = vsel %vm13697_vm12, %v11292_v43, %v2505_v8  ;;  %v2611_v62 = vld [vmem:[#allocation2 + $0xc4] sm:$0xf]  ;;  %v14824_v42 = vpop.f32.mrf.mxu0 }
 0x1d3   : > { %v13184_v3 = vld [vmem:[#allocation3 + $0x3bc] ss:$36 sps:$4 sm:$0xff]   ;;  %3137 = vst [vmem:[#allocation3 + $0x3e8] sm:$0xf] %v3029_v53  ;;  %v2205_v52 = vrot.slane %v2204_v18, 4  ;;  %v12076_v32 = vadd.f32 %v14665_v35, %v14657_v41  ;;  %v11967_v2 = vadd.f32 %v14692_v12, %v14667_v13  ;;  %v2507_v4 = vrot.slane %v2505_v8, 4 }
 0x1d4   : > { %2642 = vst [vmem:[#allocation3 + $0x408] sm:$0xf] %v2610_v51  ;;  %v2215_v27 = vrot.slane %v2214_v17, 4  ;;  %2577 = vst [vmem:[#allocation3 + $0x404] sm:$0xf] %v2506_v19  ;;  %v341_v44 = vsel %vm13656_vm4, 0, %v340_v57  ;;  %v14813_v47 = vadd.f32 %v12073_v37, %v4995_v55  ;;  %5351 = vmatprep.mubr.bf16.mxu0 %v13184_v3  ;;  %v5000_v24 = vadd.f32 %v11964_v14, %v14548_v15  ;;  %v14830_v51 = vpop.f32.mrf.mxu1 }
 0x1d5   : > { %v13220_v43 = vld [vmem:[%s16986_s3 + $0x70] sm:$0xff]   ;;  %v2210_v41 = vsel %vm13689_vm11, %v2205_v52, %v2209_v25  ;;  %342 = vst [vmem:[#allocation2 + $0xc8] sm:$0x1] %v341_v44  ;;  %2643 = vst [vmem:[#allocation3 + $0x42c] sm:$0xf] %v2611_v62  ;;  %v5003_v36 = vadd.f32 %v11967_v2, %v14548_v15  ;;  %v12079_v55 = vadd.f32 %v14686_v59, %v14673_v40  ;;  %5352 = vmatmul.mubr.bf16.gmra.mxu0 %v13186_v10 }
 0x1d6   : > { %17034 = vst [vmem:[#allocation5_spill] sm:$0xff] %v14813_v47  ;;  %v2688_v35 = vld [vmem:[#allocation2 + $0xc0] sm:$0xf]  ;;  %v2689_v13 = vld [vmem:[#allocation2 + $0xc4] sm:$0xf]  ;;  %v2220_v39 = vsel %vm13689_vm11, %v2215_v27, %v2219_v20  ;;  %v2509_v25 = vsel %vm13697_vm12, %v2507_v4, %v2508_v6  ;;  %12366 = vmatprep.subr.bf16.mxu1 %v13220_v43  ;;  %v14832_v27 = vpop.f32.mrf.mxu0  ;;  %v13221_v4 = vld [vmem:[%s16986_s3 + $0x30] sm:$0xff]  }
 0x1d7   : > { %v1858_v12 = vld [vmem:[#allocation2 + $0xc0] sm:$0xf]  ;;  %2305 = vst [vmem:[#allocation3 + $0x400] sm:$0xf] %v2210_v41  ;;  %v3031_v56 = vshrl.u32 %v2688_v35, 16  ;;  %v3034_v18 = vshll.u32 %v2688_v35, 16  ;;  %v14837_v35 = vadd.f32 %v12076_v32, %v5000_v24  ;;  %12367 = vmatpush3.bf16.msra.mxu1 %v13221_v4  ;;  %v11970_v4 = vadd.f32 %v14708_v34, %v14698_v49 }
 0x1d8   : > { %v1859_v8 = vld [vmem:[#allocation2 + $0xc4] sm:$0xf]  ;;  %v2354_v53 = vld [vmem:[#allocation2 + $0xc0] sm:$0xe]  ;;  %2306 = vst [vmem:[#allocation3 + $0x424] sm:$0xf] %v2220_v39 }
 0x1d9   : > { %2578 = vst [vmem:[#allocation3 + $0x428] sm:$0xf] %v2509_v25  ;;  %v3040_v15 = vshll.u32 %v2689_v13, 16  ;;  %v3044_v17 = vshrl.u32 %v2689_v13, 16  ;;  %v2222_v40 = vshrl.u32 %v1858_v12, 16  ;;  %v2225_v59 = vshll.u32 %v1858_v12, 16 }
 0x1da   : > { %v2355_v57 = vld [vmem:[#allocation2 + $0xc4] sm:$0xf]  ;;  %v3033_v37 = vrot.slane %v3031_v56, 4  ;;  %v3036_v20 = vrot.slane %v3034_v18, 5  ;;  %v2231_v14 = vshll.u32 %v1859_v8, 16  ;;  %v2235_v3 = vshrl.u32 %v1859_v8, 16 }
 0x1db   : > { %v287_v10 = vld [vmem:[#allocation2 + $0xcc] sm:$0x1]  ;;  %v3042_v6 = vrot.slane %v3040_v15, 5  ;;  %v3046_v52 = vrot.slane %v3044_v17, 4  ;;  %v2224_v19 = vrot.slane %v2222_v40, 4  ;;  %v2227_v2 = vrot.slane %v2225_v59, 5  ;;  %v14841_v15 = vpop.f32.mrf.mxu1 }
 0x1dc   : > { %v13187_v44 = vld [vmem:[#allocation3 + $0x3c4] ss:$36 sps:$4 sm:$0xff]   ;;  %v3037_v43 = vor.u32 %v3036_v20, %v3033_v37  ;;  %v2233_v41 = vrot.slane %v2231_v14, 5  ;;  %v14839_v13 = vadd.f32 %v12079_v55, %v5003_v36  ;;  %v2237_v25 = vrot.slane %v2235_v3, 4  ;;  %v343_v18 = vld [vmem:[#allocation2 + $0xd4] sm:$0x1]  ;;  %v14853_v3 = vpop.f32.mrf.mxu0 }
 0x1dd   : > { %v13189_v62 = vld [vmem:[#allocation3 + $0x3c0] ss:$36 sps:$4 sm:$0xff]   ;;  %v3047_v12 = vor.u32 %v3046_v52, %v3042_v6  ;;  %v2228_v39 = vor.u32 %v2227_v2, %v2224_v19  ;;  %v11293_v56 = vrot.slane %v2354_v53, 9  ;;  %v2613_v8 = vld [vmem:[#allocation2 + $0xd0] sm:$0xf]  ;;  %5512 = vmatprep.mubr.bf16.mxu1 %v13187_v44  ;;  %v2512_v59 = vrot.slane %v2355_v57, 5 }
 0x1de   : > { %v908_v17 = vld [vmem:[#allocation2 + $0xc8] sm:$0x1]  ;;  %v3038_v40 = vrot.slane %v3037_v43, 4  ;;  %v288_v37 = vsel %vm13648_vm3, 0, %v287_v10  ;;  %v344_v32 = vsel %vm13656_vm4, 0, %v343_v18  ;;  %5513 = vmatmul.mubr.bf16.gmra.mxu1 %v13189_v62  ;;  %v2238_v14 = vor.u32 %v2237_v25, %v2233_v41 }
 0x1df   : > { %2645 = vst [vmem:[#allocation3 + $0x474] sm:$0xf] %v2613_v8  ;;  %v17036_v24 = vld [vmem:[#allocation10_spill] sm:$0xff]  ;;  %v14851_v53 = vrot.slane %v3047_v12, 4  ;;  %v2229_v20 = vrot.slane %v2228_v39, 4  ;;  %v2513_v19 = vsel %vm13697_vm12, %v11293_v56, %v2512_v59  ;;  %v14859_v2 = vrot.slane %v2512_v59, 4  ;;  %v14867_v39 = vpop.f32.mrf.mxu1 }
 0x1e0   : > { %v17037_v36 = vrot.slane %v17036_v24, 4  ;;  %289 = vst [vmem:[#allocation2 + $0xcc] sm:$0x1] %v288_v37  ;;  %345 = vst [vmem:[#allocation2 + $0xd4] sm:$0x1] %v344_v32  ;;  %v3043_v5 = vsel %vm13689_vm11, %v3038_v40, %v3042_v6  ;;  %v14865_v62 = vrot.slane %v2238_v14, 4  ;;  %v11973_v18 = vadd.f32 %v14734_v21, %v14716_v60  ;;  %v14887_v24 = vpop.f32.mrf.mxu0 }
 0x1e1   : > { %v2692_v57 = vld [vmem:[#allocation2 + $0xd0] sm:$0xf]  ;;  %v13190_v10 = vld [vmem:[#allocation3 + $0x404] ss:$36 sps:$4 sm:$0xff]   ;;  %3138 = vst [vmem:[#allocation3 + $0x40c] sm:$0xf] %v3043_v5  ;;  %v2234_v44 = vsel %vm13689_vm11, %v2229_v20, %v2233_v41  ;;  %v12082_v41 = vadd.f32 %v14700_v31, %v14696_v38  ;;  %v12085_v8 = vadd.f32 %v14725_v23, %v14710_v0  ;;  %v14893_v60 = vpop.f32.mrf.mxu1 }
 0x1e2   : > { %v909_v55 = vsel %vm13648_vm3, %v17037_v36, %v908_v17  ;;  %v13193_v52 = vld [vmem:[#allocation3 + $0x400] ss:$36 sps:$4 sm:$0xff]   ;;  %2579 = vst [vmem:[#allocation3 + $0x44c] sm:$0xf] %v2513_v19  ;;  %v3064_v43 = vshll.u32 %v2692_v57, 16  ;;  %v3068_v12 = vshrl.u32 %v2692_v57, 16  ;;  %5359 = vmatprep.mubr.bf16.mxu0 %v13190_v10  ;;  %v14899_v14 = vpop.f32.mrf.mxu0  ;;  %v11976_v19 = vadd.f32 %v14760_v48, %v14746_v61 }
 0x1e3   : > { %910 = vst [vmem:[#allocation2 + $0xc8] sm:$0x1] %v909_v55  ;;  %2307 = vst [vmem:[#allocation3 + $0x448] sm:$0xf] %v2234_v44  ;;  %v8032_v6 = vld [vmem:[#allocation2 + $0xd0] sm:$0xf]  ;;  %5360 = vmatmul.mubr.bf16.gmra.mxu0 %v13193_v52  ;;  %v14913_v44 = vadd.f32 %v14785_v58, %v14775_v30  ;;  %v14920_v61 = vadd.f32 %v14783_v9, %v14773_v1 }
 0x1e4   : > { %v3142_v25 = vld [vmem:[#allocation2 + $0x18] sm:$0xe]  ;;  %v14869_v56 = vld [vmem:[#allocation2 + $0x1c] sm:$0xf]  ;;  %v14874_v49 = vld [vmem:[%s16985_s2] ss:$0 sm:$0xff] }
 0x1e5   : > { %v5008_v34 = vadd.f32 %v14874_v49, %v11970_v4  ;;  %v14883_v17 = vrot.slane %v3064_v43, 5  ;;  %v3070_v40 = vrot.slane %v3068_v12, 4  ;;  %v8404_v59 = vshll.u32 %v8032_v6, 16  ;;  %v14885_v32 = vld [vmem:[#allocation2 + $0x20] sm:$0x1] }
 0x1e6   : > { %v8408_v37 = vshrl.u32 %v8032_v6, 16  ;;  %v11294_v36 = vrot.slane %v3142_v25, 9  ;;  %v3240_v55 = vrot.slane %v14869_v56, 5  ;;  %v5011_v20 = vadd.f32 %v14874_v49, %v11973_v18  ;;  %v14928_v18 = vpop.f32.mrf.mxu1 }
 0x1e7   : > { %v14891_v31 = vadd.f32 %v12082_v41, %v5008_v34  ;;  %v3071_v0 = vor.u32 %v3070_v40, %v14883_v17  ;;  %v14896_v23 = vrot.slane %v8404_v59, 5  ;;  %v2612_v57 = vld [vmem:[#allocation2 + $0xcc] sm:$0xf]  ;;  %v2693_v52 = vld [vmem:[#allocation2 + $0xd4] sm:$0x1]  ;;  %v14909_v4 = vadd.f32 %v14758_v45, %v14744_v50  ;;  %v14926_v45 = vpop.f32.mrf.mxu0 }
 0x1e8   : > { %v8410_v21 = vrot.slane %v8408_v37, 4  ;;  %v2691_v10 = vld [vmem:[#allocation2 + $0xcc] sm:$0xf]  ;;  %v3241_v5 = vsel %vm13697_vm12, %v11294_v36, %v3240_v55  ;;  %2644 = vst [vmem:[#allocation3 + $0x450] sm:$0xf] %v2612_v57  ;;  %v14916_v34 = vadd.f32 %v12085_v8, %v5011_v20  ;;  %v14924_v50 = vadd.f32 %v14824_v42, %v14795_v29  ;;  %v14949_v38 = vpop.f32.mrf.mxu1 }
 0x1e9   : > { %3382 = vst [vmem:[#allocation3 + $0x20] sm:$0xf] %v3241_v5  ;;  %v3055_v41 = vshrl.u32 %v2691_v10, 16  ;;  %v3058_v40 = vshll.u32 %v2691_v10, 16  ;;  %v3072_v59 = vrot.slane %v3071_v0, 4  ;;  %v3074_v8 = vshll.u32 %v2693_v52, 16  ;;  %v14936_v5 = vpop.f32.mrf.mxu0 }
 0x1ea   : > { %v2690_v43 = vld [vmem:[#allocation2 + $0xc8] sm:$0x1]  ;;  %v8411_v25 = vor.u32 %v8410_v21, %v14896_v23  ;;  %v3145_v37 = vld [vmem:[#allocation2 + $0x24] sm:$0xe]  ;;  %v14931_v1 = vadd.f32 %v14874_v49, %v11976_v19  ;;  %v8031_v20 = vld [vmem:[#allocation2 + $0xcc] sm:$0xf] }
 0x1eb   : > { %v1860_v12 = vld [vmem:[#allocation2 + $0xc8] sm:$0x1]  ;;  %v3050_v48 = vshll.u32 %v2690_v43, 16  ;;  %v3057_v42 = vrot.slane %v3055_v41, 4  ;;  %v3147_v57 = vld [vmem:[#allocation2 + $0x2c] sm:$0x1]  ;;  %v14957_v47 = vpop.f32.mrf.mxu0 }
 0x1ec   : > { %v2356_v6 = vld [vmem:[#allocation2 + $0xc8] sm:$0x1]  ;;  %v2241_v30 = vshll.u32 %v1860_v12, 16  ;;  %v3060_v10 = vrot.slane %v3058_v40, 5  ;;  %v3076_v52 = vrot.slane %v3074_v8, 5  ;;  %v8395_v43 = vshrl.u32 %v8031_v20, 16 }
 0x1ed   : > { %v2515_v58 = vrot.slane %v2356_v6, 5  ;;  %v3146_v36 = vld [vmem:[#allocation2 + $0x28] sm:$0xf]  ;;  %v3052_v9 = vrot.slane %v3050_v48, 5  ;;  %v8033_v19 = vld [vmem:[#allocation2 + $0xd4] sm:$0x1] }
 0x1ee   : > { %v2243_v21 = vrot.slane %v2241_v30, 5  ;;  %v13222_v0 = vld [vmem:[%s16986_s3 + $0x68] sm:$0xff]   ;;  %v8398_v12 = vshll.u32 %v8031_v20, 16  ;;  %v14947_v48 = vrot.slane %v8411_v25, 4  ;;  %v8414_v30 = vshll.u32 %v8033_v19, 16 }
 0x1ef   : > { %v2516_v29 = vsel %vm13697_vm12, %v14859_v2, %v2515_v58  ;;  %v3053_v6 = vsel %vm13689_vm11, %v14851_v53, %v3052_v9  ;;  %v3148_v58 = vld [vmem:[#allocation2 + $0x30] sm:$0xe]  ;;  %v3149_v41 = vld [vmem:[#allocation2 + $0x34] sm:$0xf]  ;;  %12368 = vmatprep.subr.bf16.mxu1 %v13222_v0  ;;  %v3061_v40 = vor.u32 %v3060_v10, %v3057_v42  ;;  %v3077_v8 = vsel %vm13689_vm11, %v3072_v59, %v3076_v52  ;;  %v3150_v9 = vld [vmem:[#allocation2 + $0x38] sm:$0x1] }
 0x1f0   : > { %2580 = vst [vmem:[#allocation3 + $0x470] sm:$0xf] %v2516_v29  ;;  %v2244_v2 = vsel %vm13689_vm11, %v14865_v62, %v2243_v21  ;;  %3139 = vst [vmem:[#allocation3 + $0x430] sm:$0xf] %v3053_v6  ;;  %v8397_v29 = vrot.slane %v8395_v43, 4  ;;  %v8400_v53 = vrot.slane %v8398_v12, 5  ;;  %v14972_v12 = vpop.f32.mrf.mxu1 }
 0x1f1   : > { %2308 = vst [vmem:[#allocation3 + $0x46c] sm:$0xf] %v2244_v2  ;;  %v3151_v20 = vld [vmem:[#allocation2 + $0x3c] sm:$0xe]  ;;  %3141 = vst [vmem:[#allocation3 + $0x478] sm:$0xf] %v3077_v8 }
 0x1f2   : > { %v14953_v62 = vrot.slane %v8414_v30, 5  ;;  %v3242_v25 = vrot.slane %v3240_v55, 4  ;;  %v11295_v21 = vrot.slane %v3145_v37, 9  ;;  %v3247_v19 = vrot.slane %v3146_v36, 5  ;;  %v3152_v2 = vld [vmem:[#allocation2 + $0x40] sm:$0xf] }
 0x1f3   : > { %v3062_v0 = vrot.slane %v3061_v40, 4  ;;  %v8401_v6 = vor.u32 %v8400_v53, %v8397_v29  ;;  %v3250_v42 = vrot.slane %v3147_v57, 5  ;;  %v11296_v10 = vrot.slane %v3148_v58, 9  ;;  %v13223_v59 = vld [vmem:[%s16986_s3 + $0x28] sm:$0xff]   ;;  %v3153_v57 = vld [vmem:[#allocation2 + $0x44] sm:$0x1] }
 0x1f4   : > { %v17038_v56 = vrot.slane %v14885_v32, 5  ;;  %v3248_v37 = vsel %vm13697_vm12, %v11295_v21, %v3247_v19  ;;  %v3249_v36 = vrot.slane %v3247_v19, 4  ;;  %v3154_v43 = vld [vmem:[#allocation2 + $0x48] sm:$0xe]  ;;  %v3254_v32 = vrot.slane %v3149_v41, 5  ;;  %12369 = vmatpush3.bf16.msra.mxu1 %v13223_v59 }
 0x1f5   : > { %v3067_v30 = vsel %vm13689_vm11, %v3062_v0, %v14883_v17  ;;  %v14977_v58 = vrot.slane %v8401_v6, 4  ;;  %3384 = vst [vmem:[#allocation3 + $0x68] sm:$0xf] %v3248_v37  ;;  %v3257_v40 = vrot.slane %v3150_v9, 5  ;;  %v3155_v8 = vld [vmem:[#allocation2 + $0x4c] sm:$0xf] }
 0x1f6   : > { %v3244_v55 = vsel %vm13697_vm12, %v3242_v25, %v17038_v56  ;;  %3140 = vst [vmem:[#allocation3 + $0x454] sm:$0xf] %v3067_v30  ;;  %v3251_v29 = vsel %vm13697_vm12, %v3249_v36, %v3250_v42  ;;  %v11297_v53 = vrot.slane %v3151_v20, 9  ;;  %v3261_v25 = vrot.slane %v3152_v2, 5  ;;  %v3156_v19 = vld [vmem:[#allocation2 + $0x50] sm:$0x1]  ;;  %v14981_v56 = vpop.f32.mrf.mxu0  ;;  %v14989_v42 = vpop.f32.mrf.mxu1 }
 0x1f7   : > { %3383 = vst [vmem:[#allocation3 + $0x44] sm:$0xf] %v3244_v55  ;;  %v3264_v21 = vrot.slane %v3153_v57, 5  ;;  %v8407_v17 = vsel %vm13689_vm11, %v14977_v58, %v14896_v23  ;;  %3385 = vst [vmem:[#allocation3 + $0x8c] sm:$0xf] %v3251_v29  ;;  %v3255_v41 = vsel %vm13697_vm12, %v11296_v10, %v3254_v32  ;;  %v3256_v9 = vrot.slane %v3254_v32, 4 }
 0x1f8   : > { %v11298_v0 = vrot.slane %v3154_v43, 9  ;;  %v3157_v6 = vld [vmem:[#allocation2 + $0x54] sm:$0xe]  ;;  %v3158_v59 = vld [vmem:[#allocation2 + $0x58] sm:$0xf]  ;;  %v3262_v55 = vsel %vm13697_vm12, %v11297_v53, %v3261_v25  ;;  %v3263_v37 = vrot.slane %v3261_v25, 4  ;;  %v14995_v23 = vadd.f32 %v14909_v4, %v14931_v1 }
 0x1f9   : > { %v13194_v20 = vld [vmem:[#allocation3 + $0x40c] ss:$36 sps:$4 sm:$0xff]   ;;  %3386 = vst [vmem:[#allocation3 + $0xb0] sm:$0xf] %v3255_v41  ;;  %v5019_v10 = vadd.f32 %v14874_v49, %v14913_v44  ;;  %v7952_v43 = vld [vmem:[#allocation2 + $0xcc] sm:$0xf]  ;;  %v3258_v58 = vsel %vm13697_vm12, %v3256_v9, %v3257_v40  ;;  %v5024_v29 = vadd.f32 %v14874_v49, %v14924_v50  ;;  %v12094_v53 = vadd.f32 %v14809_v16, %v14791_v33  ;;  %v15009_v40 = vpop.f32.mrf.mxu0 }
 0x1fa   : > { %v13196_v2 = vld [vmem:[#allocation3 + $0x408] ss:$36 sps:$4 sm:$0xff]   ;;  %v7953_v30 = vld [vmem:[#allocation2 + $0xd0] sm:$0xf]  ;;  %3388 = vst [vmem:[#allocation3 + $0xf8] sm:$0xf] %v3262_v55  ;;  %5520 = vmatprep.mubr.bf16.mxu1 %v13194_v20  ;;  %v3265_v44 = vsel %vm13697_vm12, %v3263_v37, %v3264_v21  ;;  %v12107_v21 = vpop.f32.mrf.mxu1 }
 0x1fb   : > { %v13197_v36 = vld [vmem:[#allocation3 + $0x44c] ss:$36 sps:$4 sm:$0xff]   ;;  %v3268_v32 = vrot.slane %v3155_v8, 5  ;;  %v15005_v4 = vld [vmem:[#allocation3 + $0x474] sm:$0xff]  ;;  %3387 = vst [vmem:[#allocation3 + $0xd4] sm:$0xf] %v3258_v58  ;;  %5521 = vmatmul.mubr.bf16.gmra.mxu1 %v13196_v2  ;;  %v15014_v20 = vadd.f32 %v14920_v61, %v5019_v10  ;;  %v11985_v2 = vadd.f32 %v14853_v3, %v14832_v27  ;;  %v12100_v58 = vadd.f32 %v14893_v60, %v14867_v39 }
 0x1fc   : > { %v13199_v57 = vld [vmem:[#allocation3 + $0x448] ss:$36 sps:$4 sm:$0xff]   ;;  %v3271_v1 = vrot.slane %v3156_v19, 5  ;;  %v3159_v25 = vld [vmem:[#allocation2 + $0x5c] sm:$0x1]  ;;  %v11299_v41 = vrot.slane %v3157_v6, 9  ;;  %5367 = vmatprep.mubr.bf16.mxu0 %v13197_v36 }
 0x1fd   : > { %v3275_v52 = vrot.slane %v3158_v59, 5  ;;  %3389 = vst [vmem:[#allocation3 + $0x11c] sm:$0xf] %v3265_v44  ;;  %v3269_v50 = vsel %vm13697_vm12, %v11298_v0, %v3268_v32  ;;  %v3270_v33 = vrot.slane %v3268_v32, 4  ;;  %v3278_v16 = vrot.slane %v3159_v25, 5  ;;  %5368 = vmatmul.mubr.bf16.gmra.mxu0 %v13199_v57  ;;  %v3567_v55 = vld [vmem:[#allocation3 + $0x450] sm:$0xff] }
 0x1fe   : > { %v3160_v8 = vld [vmem:[#allocation2 + $0x60] sm:$0xe]  ;;  %v3161_v9 = vld [vmem:[#allocation2 + $0x64] sm:$0xf]  ;;  %v13202_v19 = vld [vmem:[#allocation3 + $0x20] ss:$36 sps:$4 sm:$0xff]   ;;  %v15018_v59 = vadd.f32 %v12094_v53, %v5024_v29  ;;  %v12097_v0 = vadd.f32 %v14841_v15, %v14830_v51  ;;  %v11988_v57 = vadd.f32 %v14899_v14, %v14887_v24  ;;  %v17039_v51 = vsel %vm13689_vm11, %v14947_v48, %v14953_v62  ;;  %v11996_v14 = vpop.f32.mrf.mxu0  ;;  %v12108_v62 = vpop.f32.mrf.mxu1 }
 0x1ff   : > { %3390 = vst [vmem:[#allocation3 + $0x140] sm:$0xf] %v3269_v50  ;;  %v3276_v6 = vsel %vm13697_vm12, %v11299_v41, %v3275_v52  ;;  %v13200_v37 = vld [vmem:[#allocation3 + $0x454] ss:$36 sps:$4 sm:$0xff]   ;;  %v3272_v61 = vsel %vm13697_vm12, %v3270_v33, %v3271_v1  ;;  %v3277_v10 = vrot.slane %v3275_v52, 4  ;;  %v11452_v27 = vcombine.low %v3567_v55, %v15005_v4  ;;  %12852 = vmatprep.mubr.bf16.mxu0 %v13202_v19 }
 0x200   : > { %3392 = vst [vmem:[#allocation3 + $0x188] sm:$0xf] %v3276_v6  ;;  %v3162_v36 = vld [vmem:[#allocation2 + $0x68] sm:$0x1]  ;;  %7984 = vst [vmem:[#allocation3 + $0x450] sm:$0xf] %v7952_v43  ;;  %v5027_v24 = vadd.f32 %v14874_v49, %v11985_v2  ;;  %5528 = vmatprep.mubr.bf16.mxu1 %v13200_v37  ;;  %v5032_v43 = vadd.f32 %v14874_v49, %v11988_v57  ;;  %v11991_v48 = vadd.f32 %v14936_v5, %v14926_v45 }
 0x201   : > { %7985 = vst [vmem:[#allocation3 + $0x474] sm:$0xf] %v7953_v30  ;;  %8480 = vst [vmem:[#allocation3 + $0x454] sm:$0xf] %v8407_v17  ;;  %v13203_v15 = vld [vmem:[#allocation3 + $0x68] ss:$36 sps:$4 sm:$0xff]   ;;  %v3279_v39 = vsel %vm13697_vm12, %v3277_v10, %v3278_v16  ;;  %v12103_v45 = vadd.f32 %v14949_v38, %v14928_v18  ;;  %v11994_v5 = vadd.f32 %v14981_v56, %v14957_v47  ;;  %v12110_v56 = vpop.f32.mrf.mxu1 }
 0x202   : > { %8481 = vst [vmem:[#allocation3 + $0x478] sm:$0xf] %v17039_v51  ;;  %3391 = vst [vmem:[#allocation3 + $0x164] sm:$0xf] %v3272_v61  ;;  %v11300_v3 = vrot.slane %v3160_v8, 9  ;;  %v3282_v52 = vrot.slane %v3161_v9, 5  ;;  %v15044_v4 = vadd.f32 %v12097_v0, %v5027_v24  ;;  %v15046_v25 = vadd.f32 %v12100_v58, %v5032_v43  ;;  %v11998_v9 = vpop.f32.mrf.mxu0 }
 0x203   : > { %v3285_v60 = vrot.slane %v3162_v36, 5  ;;  %v3163_v17 = vld [vmem:[#allocation2 + $0x6c] sm:$0xe]  ;;  %3393 = vst [vmem:[#allocation3 + $0x1ac] sm:$0xf] %v3279_v39  ;;  %v5035_v41 = vadd.f32 %v14874_v49, %v11991_v48  ;;  %v12106_v8 = vadd.f32 %v14989_v42, %v14972_v12  ;;  %5529 = vmatmul.mubr.bf16.gmra.mxu1 %v11452_v27  ;;  %v5040_v38 = vadd.f32 %v14874_v49, %v11994_v5  ;;  %v12111_v58 = vpop.f32.mrf.mxu1 }
 0x204   : > { %v3283_v30 = vsel %vm13697_vm12, %v11300_v3, %v3282_v52  ;;  %v3284_v32 = vrot.slane %v3282_v52, 4  ;;  %v3164_v29 = vld [vmem:[#allocation2 + $0x70] sm:$0xf]  ;;  %v11301_v53 = vrot.slane %v3163_v17, 9  ;;  %v13204_v44 = vld [vmem:[#allocation3 + $0xb0] ss:$36 sps:$4 sm:$0xff]   ;;  %v11997_v18 = vadd.f32 %v11996_v14, %v15009_v40  ;;  %v11999_v42 = vpop.f32.mrf.mxu0 }
 0x205   : > { %3394 = vst [vmem:[#allocation3 + $0x1d0] sm:$0xf] %v3283_v30  ;;  %v3165_v1 = vld [vmem:[#allocation2 + $0x74] sm:$0x1]  ;;  %v3289_v33 = vrot.slane %v3164_v29, 5  ;;  %v15057_v2 = vadd.f32 %v12103_v45, %v5035_v41  ;;  %v12109_v47 = vadd.f32 %v12108_v62, %v12107_v21  ;;  %12853 = vmatmul.mubr.bf16.vlgmr.msra.gmra.mxu0 %v13203_v15  ;;  %v15063_v36 = vadd.f32 %v12106_v8, %v5040_v38  ;;  %v12113_v48 = vpop.f32.mrf.mxu1 }
 0x206   : > { %v3286_v50 = vsel %vm13697_vm12, %v3284_v32, %v3285_v60  ;;  %v3292_v16 = vrot.slane %v3165_v1, 5  ;;  %v3166_v19 = vld [vmem:[#allocation2 + $0x78] sm:$0xe]  ;;  %v3167_v6 = vld [vmem:[#allocation2 + $0x7c] sm:$0xf]  ;;  %12856 = vmatprep.mubr.bf16.mxu0 %v13204_v44  ;;  %v5043_v57 = vadd.f32 %v14874_v49, %v11997_v18  ;;  %v12000_v3 = vadd.f32 %v11999_v42, %v11998_v9  ;;  %v12001_v52 = vpop.f32.mrf.mxu0 }
 0x207   : > { %3395 = vst [vmem:[#allocation3 + $0x1f4] sm:$0xf] %v3286_v50  ;;  %v3290_v0 = vsel %vm13697_vm12, %v11301_v53, %v3289_v33  ;;  %v3291_v55 = vrot.slane %v3289_v33, 4  ;;  %v3168_v37 = vld [vmem:[#allocation2 + $0x80] sm:$0x1]  ;;  %v11302_v12 = vrot.slane %v3166_v19, 9  ;;  %v12112_v24 = vadd.f32 %v12111_v58, %v12110_v56  ;;  %v12114_v50 = vpop.f32.mrf.mxu1 }
 0x208   : > { %3396 = vst [vmem:[#allocation3 + $0x218] sm:$0xf] %v3290_v0  ;;  %v3296_v61 = vrot.slane %v3167_v6, 5  ;;  %v3299_v10 = vrot.slane %v3168_v37, 5  ;;  %v13205_v40 = vld [vmem:[#allocation3 + $0xf8] ss:$36 sps:$4 sm:$0xff]   ;;  %v15070_v43 = vadd.f32 %v12109_v47, %v5043_v57  ;;  %v5048_v29 = vadd.f32 %v14874_v49, %v12000_v3  ;;  %v12002_v53 = vpop.f32.mrf.mxu0 }
 0x209   : > { %v3293_v21 = vsel %vm13697_vm12, %v3291_v55, %v3292_v16  ;;  %v3169_v51 = vld [vmem:[#allocation2 + $0x84] sm:$0xe]  ;;  %v3170_v27 = vld [vmem:[#allocation2 + $0x88] sm:$0xf]  ;;  %v3171_v15 = vld [vmem:[#allocation2 + $0x8c] sm:$0x1]  ;;  %v12003_v5 = vadd.f32 %v12002_v53, %v12001_v52  ;;  %v12115_v0 = vadd.f32 %v12114_v50, %v12113_v48  ;;  %v15096_v48 = vpop.f32.mrf.mxu1 }
 0x20a   : > { %v13206_v14 = vld [vmem:[#allocation3 + $0x140] ss:$36 sps:$4 sm:$0xff]   ;;  %3397 = vst [vmem:[#allocation3 + $0x23c] sm:$0xf] %v3293_v21  ;;  %v3297_v39 = vsel %vm13697_vm12, %v11302_v12, %v3296_v61  ;;  %v3298_v60 = vrot.slane %v3296_v61, 4  ;;  %v11303_v17 = vrot.slane %v3169_v51, 9  ;;  %v15080_v19 = vadd.f32 %v12112_v24, %v5048_v29  ;;  %v12132_v6 = vpop.f32.mrf.mxu0 }
 0x20b   : > { %3398 = vst [vmem:[#allocation3 + $0x260] sm:$0xf] %v3297_v39  ;;  %v3303_v62 = vrot.slane %v3170_v27, 5  ;;  %v3306_v30 = vrot.slane %v3171_v15, 5  ;;  %v3172_v32 = vld [vmem:[#allocation2 + $0x90] sm:$0xe]  ;;  %v5051_v56 = vadd.f32 %v14874_v49, %v12003_v5 }
 0x20c   : > { %v3300_v44 = vsel %vm13697_vm12, %v3298_v60, %v3299_v10  ;;  %v3173_v1 = vld [vmem:[#allocation2 + $0x94] sm:$0xf]  ;;  %v3174_v41 = vld [vmem:[#allocation2 + $0x98] sm:$0x1]  ;;  %v11304_v45 = vrot.slane %v3172_v32, 9  ;;  %v13224_v33 = vld [vmem:[%s16986_s3 + $0x60] sm:$0xff]   ;;  %v12133_v57 = vpop.f32.mrf.mxu0 }
 0x20d   : > { %3399 = vst [vmem:[#allocation3 + $0x284] sm:$0xf] %v3300_v44  ;;  %v3304_v16 = vsel %vm13697_vm12, %v11303_v17, %v3303_v62  ;;  %v3305_v8 = vrot.slane %v3303_v62, 4  ;;  %v3310_v9 = vrot.slane %v3173_v1, 5  ;;  %17040 = vst [vmem:[#allocation10_spill] sm:$0xff] %v15080_v19  ;;  %v3313_v38 = vrot.slane %v3174_v41, 5  ;;  %12370 = vmatprep.subr.bf16.mxu1 %v13224_v33  ;;  %12857 = vmatmul.mubr.bf16.gmra.mxu0 %v13205_v40  ;;  %v15105_v33 = vpop.f32.mrf.mxu1 }
 0x20e   : > { %3400 = vst [vmem:[#allocation3 + $0x2a8] sm:$0xf] %v3304_v16  ;;  %v3175_v18 = vld [vmem:[#allocation2 + $0x9c] sm:$0xe]  ;;  %v3176_v47 = vld [vmem:[#allocation2 + $0xa0] sm:$0xf]  ;;  %12860 = vmatprep.mubr.bf16.mxu0 %v13206_v14  ;;  %v15090_v27 = vadd.f32 %v12115_v0, %v5051_v56  ;;  %v12134_v40 = vadd.f32 %v12133_v57, %v12132_v6  ;;  %v12135_v24 = vpop.f32.mrf.mxu0 }
 0x20f   : > { %v13225_v55 = vld [vmem:[%s16986_s3 + $0x20] sm:$0xff]   ;;  %v3307_v37 = vsel %vm13697_vm12, %v3305_v8, %v3306_v30  ;;  %v3311_v12 = vsel %vm13697_vm12, %v11304_v45, %v3310_v9  ;;  %v3312_v42 = vrot.slane %v3310_v9, 4  ;;  %v11305_v10 = vrot.slane %v3175_v18, 9  ;;  %v3178_v21 = vld [vmem:[#allocation2 + $0xa8] sm:$0xe]  ;;  %v17042_v29 = vld [vmem:[#allocation11_spill] sm:$0xff]  ;;  %v15109_v56 = vpop.f32.mrf.mxu1 }
 0x210   : > { %v3177_v61 = vld [vmem:[#allocation2 + $0xa4] sm:$0x1]  ;;  %3401 = vst [vmem:[#allocation3 + $0x2cc] sm:$0xf] %v3307_v37  ;;  %3402 = vst [vmem:[#allocation3 + $0x2f0] sm:$0xf] %v3311_v12  ;;  %12371 = vmatpush3.bf16.msra.mxu1 %v13225_v55  ;;  %v15099_v53 = vadd.f32 %v12134_v40, %v17042_v29  ;;  %v12136_v44 = vpop.f32.mrf.mxu0 }
 0x211   : > { %v3317_v49 = vrot.slane %v3176_v47, 5  ;;  %v3320_v58 = vrot.slane %v3177_v61, 5  ;;  %v3179_v51 = vld [vmem:[#allocation2 + $0xac] sm:$0xf]  ;;  %17041 = vst [vmem:[#allocation22_spill] sm:$0xff] %v15090_v27  ;;  %v3314_v3 = vsel %vm13697_vm12, %v3312_v42, %v3313_v38  ;;  %v11306_v60 = vrot.slane %v3178_v21, 9  ;;  %v15116_v21 = vpop.f32.mrf.mxu1 }
 0x212   : > { %v13207_v15 = vld [vmem:[#allocation3 + $0x188] ss:$36 sps:$4 sm:$0xff]   ;;  %v3180_v52 = vld [vmem:[#allocation2 + $0xb0] sm:$0x1]  ;;  %3403 = vst [vmem:[#allocation3 + $0x314] sm:$0xf] %v3314_v3  ;;  %v12137_v9 = vadd.f32 %v12136_v44, %v12135_v24  ;;  %v12138_v12 = vpop.f32.mrf.mxu0 }
 0x213   : > { %v3318_v14 = vsel %vm13697_vm12, %v11305_v10, %v3317_v49  ;;  %v3319_v39 = vrot.slane %v3317_v49, 4  ;;  %v3324_v17 = vrot.slane %v3179_v51, 5  ;;  %v3327_v62 = vrot.slane %v3180_v52, 5  ;;  %v3181_v30 = vld [vmem:[#allocation2 + $0xb4] sm:$0xe]  ;;  %v17043_v55 = vld [vmem:[#allocation12_spill] sm:$0xff] }
 0x214   : > { %3404 = vst [vmem:[#allocation3 + $0x338] sm:$0xf] %v3318_v14  ;;  %v3182_v32 = vld [vmem:[#allocation2 + $0xb8] sm:$0xf]  ;;  %v13208_v1 = vld [vmem:[#allocation3 + $0x1d0] ss:$36 sps:$4 sm:$0xff]   ;;  %v15114_v37 = vadd.f32 %v12137_v9, %v17043_v55  ;;  %v12139_v51 = vpop.f32.mrf.mxu0 }
 0x215   : > { %v3321_v41 = vsel %vm13697_vm12, %v3319_v39, %v3320_v58  ;;  %v3325_v45 = vsel %vm13697_vm12, %v11306_v60, %v3324_v17  ;;  %v3326_v5 = vrot.slane %v3324_v17, 4  ;;  %v11307_v50 = vrot.slane %v3181_v30, 9  ;;  %v3183_v16 = vld [vmem:[#allocation2 + $0xbc] sm:$0x1]  ;;  %v3184_v18 = vld [vmem:[#allocation2 + $0xc0] sm:$0xe]  ;;  %12861 = vmatmul.mubr.bf16.gmra.mxu0 %v13207_v15 }
 0x216   : > { %3405 = vst [vmem:[#allocation3 + $0x35c] sm:$0xf] %v3321_v41  ;;  %3406 = vst [vmem:[#allocation3 + $0x380] sm:$0xf] %v3325_v45  ;;  %v3331_v8 = vrot.slane %v3182_v32, 5  ;;  %v3334_v38 = vrot.slane %v3183_v16, 5  ;;  %12864 = vmatprep.mubr.bf16.mxu0 %v13208_v1  ;;  %v12140_v24 = vadd.f32 %v12139_v51, %v12138_v12  ;;  %v12141_v17 = vpop.f32.mrf.mxu0  ;;  %v15127_v45 = vpop.f32.mrf.mxu1 }
 0x217   : > { %v3328_v6 = vsel %vm13697_vm12, %v3326_v5, %v3327_v62  ;;  %v3185_v47 = vld [vmem:[#allocation2 + $0xc4] sm:$0xf]  ;;  %v3186_v61 = vld [vmem:[#allocation2 + $0xc8] sm:$0x1]  ;;  %v11308_v10 = vrot.slane %v3184_v18, 9 }
 0x218   : > { %3407 = vst [vmem:[#allocation3 + $0x3a4] sm:$0xf] %v3328_v6  ;;  %v3332_v0 = vsel %vm13697_vm12, %v11307_v50, %v3331_v8  ;;  %v3333_v42 = vrot.slane %v3331_v8, 4  ;;  %v3338_v57 = vrot.slane %v3185_v47, 5  ;;  %v13209_v49 = vld [vmem:[#allocation3 + $0x218] ss:$36 sps:$4 sm:$0xff]   ;;  %v12142_v5 = vpop.f32.mrf.mxu0  ;;  %v15131_v18 = vpop.f32.mrf.mxu1 }
 0x219   : > { %3408 = vst [vmem:[#allocation3 + $0x3c8] sm:$0xf] %v3332_v0  ;;  %v3341_v58 = vrot.slane %v3186_v61, 5  ;;  %v3187_v52 = vld [vmem:[#allocation2 + $0xcc] sm:$0xe]  ;;  %v17044_v32 = vld [vmem:[#allocation13_spill] sm:$0xff]  ;;  %v12143_v8 = vadd.f32 %v12142_v5, %v12141_v17 }
 0x21a   : > { %v3335_v40 = vsel %vm13697_vm12, %v3333_v42, %v3334_v38  ;;  %v3339_v15 = vsel %vm13697_vm12, %v11308_v10, %v3338_v57  ;;  %v3340_v3 = vrot.slane %v3338_v57, 4  ;;  %v3188_v14 = vld [vmem:[#allocation2 + $0xd0] sm:$0xf]  ;;  %v3189_v39 = vld [vmem:[#allocation2 + $0xd4] sm:$0x1]  ;;  %v11309_v60 = vrot.slane %v3187_v52, 9  ;;  %v15141_v61 = vpop.f32.mrf.mxu1 }
 0x21b   : > { %3409 = vst [vmem:[#allocation3 + $0x3ec] sm:$0xf] %v3335_v40  ;;  %3410 = vst [vmem:[#allocation3 + $0x410] sm:$0xf] %v3339_v15  ;;  %v13210_v62 = vld [vmem:[#allocation3 + $0x260] ss:$36 sps:$4 sm:$0xff]   ;;  %v15125_v29 = vadd.f32 %v12140_v24, %v17044_v32  ;;  %v15137_v0 = vadd.f32 %v12143_v8, %v14608_v11 }
 0x21c   : > { %v3342_v30 = vsel %vm13697_vm12, %v3340_v3, %v3341_v58  ;;  %v3345_v44 = vrot.slane %v3188_v14, 5  ;;  %v3348_v1 = vrot.slane %v3189_v39, 5  ;;  %v8528_v41 = vld [vmem:[#allocation2 + $0xd0] sm:$0xf]  ;;  %v8527_v50 = vld [vmem:[#allocation2 + $0xcc] sm:$0xe]  ;;  %v15143_v40 = vpop.f32.mrf.mxu1 }
 0x21d   : > { %3411 = vst [vmem:[#allocation3 + $0x434] sm:$0xf] %v3342_v30  ;;  %v8529_v16 = vld [vmem:[#allocation2 + $0xd4] sm:$0x1]  ;;  %12865 = vmatmul.mubr.bf16.gmra.mxu0 %v13209_v49  ;;  %v8685_v38 = vrot.slane %v8528_v41, 5  ;;  %v13226_v47 = vld [vmem:[%s16986_s3 + $0x58] sm:$0xff]   ;;  %v12144_v49 = vpop.f32.mrf.mxu0 }
 0x21e   : > { %v3346_v9 = vsel %vm13697_vm12, %v11309_v60, %v3345_v44  ;;  %v3347_v6 = vrot.slane %v3345_v44, 4  ;;  %12868 = vmatprep.mubr.bf16.mxu0 %v13210_v62  ;;  %v13211_v55 = vld [vmem:[#allocation3 + $0x2a8] ss:$36 sps:$4 sm:$0xff]   ;;  %v11606_v42 = vrot.slane %v8527_v50, 9  ;;  %12372 = vmatprep.subr.bf16.mxu1 %v13226_v47  ;;  %v8688_v57 = vrot.slane %v8529_v16, 5  ;;  %v15152_v17 = vpop.f32.mrf.mxu1  ;;  %v13227_v32 = vld [vmem:[%s16986_s3 + $0x18] sm:$0xff]  }
 0x21f   : > { %3412 = vst [vmem:[#allocation3 + $0x458] sm:$0xf] %v3346_v9  ;;  %v8687_v10 = vrot.slane %v8685_v38, 4  ;;  %v13212_v58 = vld [vmem:[#allocation3 + $0x2f0] ss:$36 sps:$4 sm:$0xff]   ;;  %v12145_v51 = vpop.f32.mrf.mxu0  ;;  %12373 = vmatpush3.bf16.msra.mxu1 %v13227_v32 }
 0x220   : > { %v3349_v12 = vsel %vm13697_vm12, %v3347_v6, %v3348_v1  ;;  %v12146_v15 = vadd.f32 %v12145_v51, %v12144_v49  ;;  %v8686_v11 = vsel %vm13697_vm12, %v11606_v42, %v8685_v38  ;;  %v13213_v39 = vld [vmem:[#allocation3 + $0x338] ss:$36 sps:$4 sm:$0xff]   ;;  %v13214_v30 = vld [vmem:[#allocation3 + $0x380] ss:$36 sps:$4 sm:$0xff]   ;;  %v15157_v44 = vpop.f32.mrf.mxu1  ;;  %v17046_v42 = vld [vmem:[#allocation14_spill] sm:$0xff] }
 0x221   : > { %3413 = vst [vmem:[#allocation3 + $0x47c] sm:$0xf] %v3349_v12  ;;  %v12147_v3 = vpop.f32.mrf.mxu0  ;;  %v8689_v52 = vsel %vm13697_vm12, %v8687_v10, %v8688_v57  ;;  %v13248_v19 = vld [vmem:[#allocation3] ss:$36 sps:$4 sm:$0xff]  }
 0x222   : > { %v15150_v24 = vadd.f32 %v12146_v15, %v14611_v26  ;;  %v15162_v26 = vpop.f32.mrf.mxu1  ;;  %v13215_v8 = vld [vmem:[#allocation3 + $0x3c8] ss:$36 sps:$4 sm:$0xff]  }
 0x223   : > { %v12148_v14 = vpop.f32.mrf.mxu0 }
 0x224   : > { %v12149_v62 = vadd.f32 %v12148_v14, %v12147_v3  ;;  %v15164_v50 = vpop.f32.mrf.mxu1  ;;  %v13216_v6 = vld [vmem:[#allocation3 + $0x410] ss:$36 sps:$4 sm:$0xff]   ;;  %v17048_v3 = vld [vmem:[#allocation15_spill] sm:$0xff] }
 0x225   : > { %12869 = vmatmul.mubr.bf16.gmra.mxu0 %v13211_v55  ;;  %v12150_v41 = vpop.f32.mrf.mxu0 }
 0x226   : > { %12872 = vmatprep.mubr.bf16.mxu0 %v13212_v58  ;;  %v15160_v1 = vadd.f32 %v12149_v62, %v14618_v63  ;;  %v15169_v55 = vpop.f32.mrf.mxu1  ;;  %v17050_v62 = vld [vmem:[#allocation16_spill] sm:$0xff] }
 0x227   : > { %v12151_v5 = vpop.f32.mrf.mxu0 }
 0x228   : > { %v13217_v60 = vld [vmem:[#allocation3 + $0x458] ss:$36 sps:$4 sm:$0xff]   ;;  %v12152_v16 = vadd.f32 %v12151_v5, %v12150_v41  ;;  %v15171_v12 = vpop.f32.mrf.mxu1 }
 0x229   : > { %8752 = vst [vmem:[#allocation3 + $0x458] sm:$0xf] %v8686_v11  ;;  %8753 = vst [vmem:[#allocation3 + $0x47c] sm:$0xf] %v8689_v52  ;;  %v12153_v9 = vpop.f32.mrf.mxu0  ;;  %v13228_v41 = vld [vmem:[%s16986_s3 + $0x50] sm:$0xff]  }
 0x22a   : > { %v15167_v38 = vadd.f32 %v12152_v16, %v14637_v54  ;;  %v15176_v57 = vpop.f32.mrf.mxu1  ;;  %12374 = vmatprep.subr.bf16.mxu1 %v13228_v41  ;;  %v13231_v41 = vld [vmem:[%s16986_s3 + $0xf8] sm:$0xff]  }
 0x22b   : > { %v12154_v47 = vpop.f32.mrf.mxu0  ;;  %12476 = vmatprep.subr.bf16.mxu0 %v13231_v41  ;;  %v17057_v41 = vld [vmem:[#allocation19_spill] sm:$0xff] }
 0x22c   : > { %17045 = vst [vmem:[#allocation11_spill] sm:$0xff] %v15167_v38  ;;  %v12155_v63 = vadd.f32 %v12154_v47, %v12153_v9  ;;  %v15178_v15 = vpop.f32.mrf.mxu1 }
 0x22d   : > { %12873 = vmatmul.mubr.bf16.gmra.mxu0 %v13213_v39  ;;  %v12156_v49 = vpop.f32.mrf.mxu0 }
 0x22e   : > { %12876 = vmatprep.mubr.bf16.mxu0 %v13214_v30  ;;  %v15174_v10 = vadd.f32 %v12155_v63, %v17046_v42  ;;  %v15183_v39 = vpop.f32.mrf.mxu1  ;;  %v17052_v63 = vld [vmem:[#allocation17_spill] sm:$0xff] }
 0x22f   : > { %v12157_v58 = vpop.f32.mrf.mxu0 }
 0x230   : > { %17047 = vst [vmem:[#allocation12_spill] sm:$0xff] %v15174_v10  ;;  %v12158_v51 = vadd.f32 %v12157_v58, %v12156_v49  ;;  %v15188_v32 = vpop.f32.mrf.mxu1 }
 0x231   : > { %v12159_v54 = vpop.f32.mrf.mxu0 }
 0x232   : > { %v15181_v11 = vadd.f32 %v12158_v51, %v17048_v3  ;;  %v15193_v16 = vpop.f32.mrf.mxu1 }
 0x233   : > { %v12160_v52 = vpop.f32.mrf.mxu0 }
 0x234   : > { %17049 = vst [vmem:[#allocation13_spill] sm:$0xff] %v15181_v11  ;;  %v12161_v14 = vadd.f32 %v12160_v52, %v12159_v54  ;;  %v17054_v54 = vld [vmem:[#allocation18_spill] sm:$0xff]  ;;  %v17061_v11 = vld [vmem:[#allocation21_spill] sm:$0xff] }
 0x235   : > { %12877 = vmatmul.mubr.bf16.gmra.mxu0 %v13215_v8  ;;  %v12162_v5 = vpop.f32.mrf.mxu0 }
 0x236   : > { %12880 = vmatprep.mubr.bf16.mxu0 %v13216_v6  ;;  %v15186_v30 = vadd.f32 %v12161_v14, %v17050_v62  ;;  %v15198_v6 = vpop.f32.mrf.mxu1 }
 0x237   : > { %v12163_v8 = vpop.f32.mrf.mxu0 }
 0x238   : > { %17051 = vst [vmem:[#allocation14_spill] sm:$0xff] %v15186_v30  ;;  %v12164_v9 = vadd.f32 %v12163_v8, %v12162_v5  ;;  %v15203_v51 = vpop.f32.mrf.mxu1  ;;  %v13233_v8 = vld [vmem:[%s16986_s3 + $0xb8] sm:$0xff]  }
 0x239   : > { %v12165_v47 = vpop.f32.mrf.mxu0  ;;  %12477 = vmatpush3.bf16.msra.mxu0 %v13233_v8  ;;  %v13237_v8 = vld [vmem:[%s16986_s3 + $0xa8] sm:$0xff]  }
 0x23a   : > { %v15201_v42 = vadd.f32 %v12164_v9, %v17052_v63  ;;  %v15208_v52 = vpop.f32.mrf.mxu1 }
 0x23b   : > { %v12166_v49 = vpop.f32.mrf.mxu0 }
 0x23c   : > { %17053 = vst [vmem:[#allocation15_spill] sm:$0xff] %v15201_v42  ;;  %v12167_v58 = vadd.f32 %v12166_v49, %v12165_v47  ;;  %v15210_v14 = vpop.f32.mrf.mxu1  ;;  %v13234_v49 = vld [vmem:[%s16986_s3 + $0xf0] sm:$0xff]   ;;  %v13241_v42 = vld [vmem:[%s16986_s3 + $0xd8] sm:$0xff]  }
 0x23d   : > { %12881 = vmatmul.mubr.bf16.gmra.mxu0 %v13217_v60  ;;  %v13229_v60 = vld [vmem:[%s16986_s3 + $0x10] sm:$0xff]   ;;  %v12168_v62 = vpop.f32.mrf.mxu0  ;;  %12478 = vmatprep.subr.bf16.mxu0 %v13234_v49  ;;  %v13230_v49 = vld [vmem:[%s16986_s3 + $0x48] sm:$0xff]  }
 0x23e   : > { %12375 = vmatpush3.bf16.msra.mxu1 %v13229_v60  ;;  %v15206_v3 = vadd.f32 %v12167_v58, %v17054_v54  ;;  %v15218_v60 = vpop.f32.mrf.mxu1  ;;  %v13235_v54 = vld [vmem:[%s16986_s3 + $0xb0] sm:$0xff]  }
 0x23f   : > { %v12169_v5 = vpop.f32.mrf.mxu0  ;;  %12479 = vmatpush3.bf16.msra.mxu0 %v13235_v54  ;;  %v13238_v54 = vld [vmem:[%s16986_s3 + $0xe0] sm:$0xff]   ;;  %12376 = vmatprep.subr.bf16.mxu1 %v13230_v49  ;;  %v13243_v49 = vld [vmem:[%s16986_s3 + $0x98] sm:$0xff]  }
 0x240   : > { %17055 = vst [vmem:[#allocation16_spill] sm:$0xff] %v15206_v3  ;;  %v12170_v9 = vadd.f32 %v12169_v5, %v12168_v62 }
 0x241   : > { %v12171_v47 = vpop.f32.mrf.mxu0  ;;  %v15229_v7 = vpop.f32.mrf.mxu1 }
 0x242   : > { %v15221_v63 = vadd.f32 %v12170_v9, %v14703_v28  ;;  %v13236_v28 = vld [vmem:[%s16986_s3 + $0xe8] sm:$0xff]  }
 0x243   : > { %v12172_v58 = vpop.f32.mrf.mxu0  ;;  %v15231_v62 = vpop.f32.mrf.mxu1  ;;  %12480 = vmatprep.subr.bf16.mxu0 %v13236_v28  ;;  %v13232_v28 = vld [vmem:[%s16986_s3 + $0x8] sm:$0xff]  }
 0x244   : > { %17056 = vst [vmem:[#allocation17_spill] sm:$0xff] %v15221_v63  ;;  %v12173_v22 = vadd.f32 %v12172_v58, %v12171_v47  ;;  %12481 = vmatpush3.bf16.msra.mxu0 %v13237_v8  ;;  %v17059_v8 = vld [vmem:[#allocation20_spill] sm:$0xff]  ;;  %12377 = vmatpush3.bf16.msra.mxu1 %v13232_v28 }
 0x245   : > { %v15242_v9 = vpop.f32.mrf.mxu1  ;;  %v12174_v27 = vpop.f32.mrf.mxu0  ;;  %12482 = vmatprep.subr.bf16.mxu0 %v13238_v54 }
 0x246   : > { %v15234_v5 = vadd.f32 %v12173_v22, %v17057_v41  ;;  %v13239_v41 = vld [vmem:[%s16986_s3 + $0xa0] sm:$0xff]  }
 0x247   : > { %v12175_v47 = vpop.f32.mrf.mxu0  ;;  %v15247_v22 = vpop.f32.mrf.mxu1 }
 0x248   : > { %17058 = vst [vmem:[#allocation18_spill] sm:$0xff] %v15234_v5  ;;  %v12176_v58 = vadd.f32 %v12175_v47, %v12174_v27  ;;  %12483 = vmatpush3.bf16.msra.mxu0 %v13239_v41 }
 0x249   : > { %v12177_v5 = vpop.f32.mrf.mxu0  ;;  %12484 = vmatprep.subr.bf16.mxu0 %v13241_v42 }
 0x24a   : > { %v15259_v63 = vadd.f32 %v12176_v58, %v17059_v8 }
 0x24b   : > { %v12178_v3 = vpop.f32.mrf.mxu0 }
 0x24c   : > { %17060 = vst [vmem:[#allocation19_spill] sm:$0xff] %v15259_v63  ;;  %v12179_v47 = vadd.f32 %v12178_v3, %v12177_v5  ;;  %12485 = vmatpush3.bf16.msra.mxu0 %v13243_v49  ;;  %v13244_v3 = vld [vmem:[%s16986_s3 + $0xd0] sm:$0xff]   ;;  %v13242_v49 = vld [vmem:[%s16986_s3] sm:$0xff]  }
 0x24d   : > { %v15261_v27 = vpop.f32.mrf.mxu1  ;;  %v13245_v5 = vld [vmem:[%s16986_s3 + $0x90] sm:$0xff]   ;;  %12486 = vmatprep.subr.bf16.mxu0 %v13244_v3 }
 0x24e   : > { %v15272_v58 = vadd.f32 %v12179_v47, %v17061_v11  ;;  %v13240_v11 = vld [vmem:[%s16986_s3 + $0x40] sm:$0xff]  }
 0x24f   : > { %v15269_v30 = vpop.f32.mrf.mxu1  ;;  %12378 = vmatprep.subr.bf16.mxu1 %v13240_v11 }
 0x250   : > { %17062 = vst [vmem:[#allocation20_spill] sm:$0xff] %v15272_v58  ;;  %12487 = vmatpush3.bf16.msra.mxu0 %v13245_v5  ;;  %v13246_v58 = vld [vmem:[%s16986_s3 + $0xc8] sm:$0xff]   ;;  %12379 = vmatpush3.bf16.msra.mxu1 %v13242_v49  ;;  %v13250_v5 = vld [vmem:[#allocation3 + $0x4] ss:$36 sps:$4 sm:$0xff]  }
 0x251   : > { %v15274_v54 = vpop.f32.mrf.mxu1  ;;  %v12180_v41 = vpop.f32.mrf.mxu0  ;;  %12488 = vmatprep.subr.bf16.mxu0 %v13246_v58  ;;  %10265 = vmatprep.mubr.bf16.mxu1 %v13250_v5  ;;  %v13252_v58 = vld [vmem:[%s16986_s3 + $0x80] sm:$0xff]  }
 0x253   : > { %v12181_v28 = vpop.f32.mrf.mxu0  ;;  %v15285_v42 = vpop.f32.mrf.mxu1  ;;  %10266 = vmatmul.mubr.bf16.vlgmr.msra.gmra.mxu1 %v13248_v19 }
 0x254   : > { %v12182_v8 = vadd.f32 %v12181_v28, %v12180_v41  ;;  %17063 = vst [vmem:[#allocation21_spill] sm:$0xff] %v15285_v42  ;;  %v13247_v41 = vld [vmem:[%s16986_s3 + $0x88] sm:$0xff]  }
 0x255   : > { %v12183_v47 = vpop.f32.mrf.mxu0  ;;  %12489 = vmatpush3.bf16.msra.mxu0 %v13247_v41 }
 0x256   : > { %v15294_v63 = vadd.f32 %v12182_v8, %v14788_v46  ;;  %v13251_v46 = vld [vmem:[%s16986_s3 + $0xc0] sm:$0xff]  }
 0x257   : > { %v12184_v3 = vpop.f32.mrf.mxu0  ;;  %v17066_v8 = vld [vmem:[#allocation5_spill] sm:$0xff]  ;;  %12490 = vmatprep.subr.bf16.mxu0 %v13251_v46 }
 0x258   : > { %17064 = vst [vmem:[#allocation23_spill] sm:$0xff] %v15294_v63  ;;  %v12185_v28 = vadd.f32 %v12184_v3, %v12183_v47 }
 0x259   : > { %12491 = vmatpush3.bf16.msra.mxu0 %v13252_v58 }
 0x25a   : > { %v15305_v11 = vadd.f32 %v12185_v28, %v17066_v8 }
 0x25b   : > { %v15299_v10 = vpop.f32.mrf.mxu1 }
 0x25c   : > { %17065 = vst [vmem:[#allocation24_spill] sm:$0xff] %v15299_v10  ;;  %17067 = vst [vmem:[#allocation5_spill] sm:$0xff] %v15305_v11 }
 0x25d   : > { %v15307_v63 = vpop.f32.mrf.mxu1 }
 0x25e   : > { %17068 = vst [vmem:[#allocation25_spill] sm:$0xff] %v15307_v63 }
 0x25f   : > { %v15309_v49 = vpop.f32.mrf.mxu1  ;;  %v12186_v47 = vpop.f32.mrf.mxu0 }
 0x260   : > { %17069 = vst [vmem:[#allocation26_spill] sm:$0xff] %v15309_v49 }
 0x261   : > { %v12187_v41 = vpop.f32.mrf.mxu0  ;;  %v15314_v3 = vpop.f32.mrf.mxu1 }
 0x262   : > { %17070 = vst [vmem:[#allocation27_spill] sm:$0xff] %v15314_v3  ;;  %v12188_v5 = vadd.f32 %v12187_v41, %v12186_v47 }
 0x263   : > { %v12189_v38 = vpop.f32.mrf.mxu0 }
 0x264   : > { %v15317_v28 = vadd.f32 %v12188_v5, %v14837_v35 }
 0x265   : > { %v12190_v19 = vpop.f32.mrf.mxu0 }
 0x266   : > { %17071 = vst [vmem:[#allocation28_spill] sm:$0xff] %v15317_v28  ;;  %v12191_v46 = vadd.f32 %v12190_v19, %v12189_v38  ;;  %v13256_v38 = vld [vmem:[%s16986_s3 + $0x178] sm:$0xff]  }
 0x267   : > { %12588 = vmatprep.subr.bf16.mxu1 %v13256_v38 }
 0x268   : > { %v15319_v8 = vpop.f32.mrf.mxu1  ;;  %v15324_v49 = vadd.f32 %v12191_v46, %v14839_v13  ;;  %v13257_v13 = vld [vmem:[%s16986_s3 + $0x138] sm:$0xff]  }
 0x269   : > { %12589 = vmatpush3.bf16.msra.mxu1 %v13257_v13 }
 0x26a   : > { %v15321_v11 = vpop.f32.mrf.mxu1  ;;  %17072 = vst [vmem:[#allocation29_spill] sm:$0xff] %v15324_v49 }
 0x26b   : > { %v12192_v63 = vpop.f32.mrf.mxu0 }
 0x26c   : > { %v15326_v10 = vpop.f32.mrf.mxu1 }
 0x26d   : > { %v12193_v58 = vpop.f32.mrf.mxu0 }
 0x26e   : > { %v12194_v42 = vadd.f32 %v12193_v58, %v12192_v63  ;;  %v15328_v47 = vpop.f32.mrf.mxu1 }
 0x26f   : > { %v12195_v3 = vpop.f32.mrf.mxu0 }
 0x270   : > { %v15331_v35 = vadd.f32 %v12194_v42, %v14891_v31 }
 0x271   : > { %v12196_v41 = vpop.f32.mrf.mxu0 }
 0x272   : > { %17073 = vst [vmem:[#allocation30_spill] sm:$0xff] %v15331_v35  ;;  %v12197_v5 = vadd.f32 %v12196_v41, %v12195_v3 }
 0x274   : > { %v15342_v63 = vadd.f32 %v12197_v5, %v14916_v34 }
 0x276   : > { %17075 = vst [vmem:[#allocation32_spill] sm:$0xff] %v15342_v63 }
 0x277   : > { %v15339_v19 = vpop.f32.mrf.mxu1 }
 0x278   : > { %17074 = vst [vmem:[#allocation31_spill] sm:$0xff] %v15339_v19 }
 0x279   : > { %v15344_v46 = vpop.f32.mrf.mxu1  ;;  %v12198_v31 = vpop.f32.mrf.mxu0 }
 0x27b   : > { %v15346_v42 = vpop.f32.mrf.mxu1  ;;  %v12199_v58 = vpop.f32.mrf.mxu0 }
 0x27c   : > { %17076 = vst [vmem:[#allocation33_spill] sm:$0xff] %v15346_v42  ;;  %v12200_v35 = vadd.f32 %v12199_v58, %v12198_v31 }
 0x27d   : > { %v15348_v49 = vpop.f32.mrf.mxu1  ;;  %v12201_v3 = vpop.f32.mrf.mxu0 }
 0x27e   : > { %17077 = vst [vmem:[#allocation34_spill] sm:$0xff] %v15348_v49  ;;  %v15351_v41 = vadd.f32 %v12200_v35, %v14995_v23 }
 0x27f   : > { %v12202_v38 = vpop.f32.mrf.mxu0 }
 0x280   : > { %17078 = vst [vmem:[#allocation35_spill] sm:$0xff] %v15351_v41  ;;  %v12203_v28 = vadd.f32 %v12202_v38, %v12201_v3 }
 0x282   : > { %v15356_v34 = vadd.f32 %v12203_v28, %v15014_v20 }
 0x284   : > { %v15353_v19 = vpop.f32.mrf.mxu1  ;;  %17079 = vst [vmem:[#allocation36_spill] sm:$0xff] %v15356_v34 }
 0x286   : > { %v15358_v5 = vpop.f32.mrf.mxu1 }
 0x287   : > { %17080 = vst [vmem:[#allocation37_spill] sm:$0xff] %v15358_v5 }
 0x288   : > { %v12204_v13 = vpop.f32.mrf.mxu0  ;;  %v15360_v63 = vpop.f32.mrf.mxu1 }
 0x289   : > { %17081 = vst [vmem:[#allocation38_spill] sm:$0xff] %v15360_v63 }
 0x28a   : > { %v12205_v42 = vpop.f32.mrf.mxu0  ;;  %v15365_v23 = vpop.f32.mrf.mxu1 }
 0x28b   : > { %v12206_v31 = vadd.f32 %v12205_v42, %v12204_v13 }
 0x28c   : > { %v12207_v58 = vpop.f32.mrf.mxu0 }
 0x28d   : > { %v15363_v49 = vadd.f32 %v12206_v31, %v15018_v59  ;;  %v13270_v59 = vld [vmem:[%s16986_s3 + $0x170] sm:$0xff]  }
 0x28e   : > { %v12208_v35 = vpop.f32.mrf.mxu0  ;;  %12590 = vmatprep.subr.bf16.mxu1 %v13270_v59 }
 0x28f   : > { %v12209_v3 = vadd.f32 %v12208_v35, %v12207_v58 }
 0x291   : > { %v15368_v38 = vadd.f32 %v12209_v3, %v15044_v4  ;;  %v15370_v20 = vpop.f32.mrf.mxu1 }
 0x293   : > { %17082 = vst [vmem:[#allocation39_spill] sm:$0xff] %v15368_v38  ;;  %v15372_v41 = vpop.f32.mrf.mxu1 }
 0x295   : > { %v12210_v28 = vpop.f32.mrf.mxu0  ;;  %v15380_v31 = vpop.f32.mrf.mxu1 }
 0x297   : > { %v12211_v34 = vpop.f32.mrf.mxu0  ;;  %v15385_v35 = vpop.f32.mrf.mxu1 }
 0x298   : > { %v12212_v63 = vadd.f32 %v12211_v34, %v12210_v28 }
 0x299   : > { %v12213_v5 = vpop.f32.mrf.mxu0 }
 0x29a   : > { %v15375_v42 = vadd.f32 %v12212_v63, %v15046_v25  ;;  %v13274_v25 = vld [vmem:[%s16986_s3 + $0x130] sm:$0xff]  }
 0x29b   : > { %v12214_v13 = vpop.f32.mrf.mxu0  ;;  %12591 = vmatpush3.bf16.msra.mxu1 %v13274_v25  ;;  %v12249_v25 = vadd.f32 %v15116_v21, %v15109_v56 }
 0x29c   : > { %17083 = vst [vmem:[#allocation40_spill] sm:$0xff] %v15375_v42  ;;  %v12215_v4 = vadd.f32 %v12214_v13, %v12213_v5 }
 0x29e   : > { %v15383_v58 = vadd.f32 %v12215_v4, %v15057_v2  ;;  %v15390_v28 = vpop.f32.mrf.mxu1 }
 0x2a0   : > { %17084 = vst [vmem:[#allocation41_spill] sm:$0xff] %v15383_v58  ;;  %v15395_v2 = vpop.f32.mrf.mxu1 }
 0x2a2   : > { %v15400_v4 = vpop.f32.mrf.mxu1 }
 0x2a3   : > { %v12216_v3 = vpop.f32.mrf.mxu0 }
 0x2a4   : > { %v15402_v58 = vpop.f32.mrf.mxu1 }
 0x2a5   : > { %v12217_v63 = vpop.f32.mrf.mxu0 }
 0x2a6   : > { %v12218_v34 = vadd.f32 %v12217_v63, %v12216_v3  ;;  %v12246_v3 = vadd.f32 %v15105_v33, %v15096_v48  ;;  %v12261_v63 = vadd.f32 %v15164_v50, %v15162_v26  ;;  %v12264_v48 = vadd.f32 %v15171_v12, %v15169_v55  ;;  %v13284_v26 = vld [vmem:[%s16986_s3 + $0x168] sm:$0xff]  }
 0x2a7   : > { %v12219_v42 = vpop.f32.mrf.mxu0  ;;  %v12267_v33 = vadd.f32 %v15178_v15, %v15176_v57  ;;  %v12282_v50 = vadd.f32 %v15231_v62, %v15229_v7  ;;  %v12288_v57 = vadd.f32 %v15269_v30, %v15261_v27  ;;  %12592 = vmatprep.subr.bf16.mxu1 %v13284_v26  ;;  %v17085_v7 = vld [vmem:[#allocation21_spill] sm:$0xff]  ;;  %v17089_v62 = vld [vmem:[#allocation12_spill] sm:$0xff]  ;;  %v17090_v30 = vld [vmem:[#allocation26_spill] sm:$0xff] }
 0x2a8   : > { %v15393_v38 = vadd.f32 %v12218_v34, %v15063_v36  ;;  %v12252_v36 = vadd.f32 %v15131_v18, %v15127_v45  ;;  %v5411_v21 = vadd.f32 %v12246_v3, %v15099_v53  ;;  %v15424_v45 = vadd.f32 %v12249_v25, %v15114_v37  ;;  %v17093_v3 = vld [vmem:[#allocation13_spill] sm:$0xff]  ;;  %v17094_v25 = vld [vmem:[#allocation14_spill] sm:$0xff] }
 0x2a9   : > { %v12220_v5 = vpop.f32.mrf.mxu0  ;;  %v12270_v18 = vadd.f32 %v15188_v32, %v15183_v39  ;;  %v12276_v53 = vadd.f32 %v15208_v52, %v15203_v51  ;;  %v12279_v37 = vadd.f32 %v15218_v60, %v15210_v14  ;;  %v15454_v32 = vadd.f32 %v12261_v63, %v15160_v1  ;;  %v17088_v14 = vld [vmem:[#allocation11_spill] sm:$0xff]  ;;  %v17097_v26 = vld [vmem:[#allocation17_spill] sm:$0xff] }
 0x2aa   : > { %v12221_v59 = vadd.f32 %v12220_v5, %v12219_v42  ;;  %v12255_v42 = vadd.f32 %v15143_v40, %v15141_v61  ;;  %v12273_v61 = vadd.f32 %v15198_v6, %v15193_v16  ;;  %v17086_v16 = vld [vmem:[#allocation24_spill] sm:$0xff]  ;;  %v17087_v6 = vld [vmem:[#allocation25_spill] sm:$0xff]  ;;  %v15461_v60 = vadd.f32 %v12264_v48, %v17088_v14  ;;  %v17092_v5 = vld [vmem:[#allocation10_spill] sm:$0xff] }
 0x2ab   : > { %v12294_v51 = vadd.f32 %v17087_v6, %v17086_v16  ;;  %v17095_v63 = vld [vmem:[#allocation15_spill] sm:$0xff]  ;;  %v17099_v16 = vld [vmem:[#allocation18_spill] sm:$0xff]  ;;  %v17101_v6 = vld [vmem:[#allocation33_spill] sm:$0xff] }
 0x2ac   : > { %v15398_v13 = vadd.f32 %v12221_v59, %v15070_v43  ;;  %v12258_v43 = vadd.f32 %v15157_v44, %v15152_v17  ;;  %v5419_v17 = vadd.f32 %v12252_v36, %v15125_v29  ;;  %v5422_v44 = vadd.f32 %v12255_v42, %v15137_v0  ;;  %v13288_v29 = vld [vmem:[%s16986_s3 + $0x128] sm:$0xff]  }
 0x2ad   : > { %v12285_v0 = vadd.f32 %v15247_v22, %v15242_v9  ;;  %v15464_v9 = vadd.f32 %v12267_v33, %v17089_v62  ;;  %12593 = vmatpush3.bf16.msra.mxu1 %v13288_v29  ;;  %v17091_v22 = vld [vmem:[#allocation27_spill] sm:$0xff]  ;;  %v15475_v36 = vadd.f32 %v12273_v61, %v17094_v25  ;;  %v12300_v42 = vadd.f32 %v15321_v11, %v15319_v8  ;;  %v17096_v33 = vld [vmem:[#allocation16_spill] sm:$0xff] }
 0x2ae   : > { %v15442_v12 = vadd.f32 %v12258_v43, %v15150_v24  ;;  %v12291_v24 = vadd.f32 %v17085_v7, %v15274_v54  ;;  %v12297_v27 = vadd.f32 %v17091_v22, %v17090_v30  ;;  %v15472_v54 = vadd.f32 %v12270_v18, %v17093_v3  ;;  %v17098_v61 = vld [vmem:[#allocation19_spill] sm:$0xff]  ;;  %v17107_v3 = vld [vmem:[#allocation5_spill] sm:$0xff] }
 0x2af   : > { %v15480_v48 = vadd.f32 %v12276_v53, %v17095_v63  ;;  %v12303_v18 = vadd.f32 %v15328_v47, %v15326_v10  ;;  %v15491_v7 = vadd.f32 %v12288_v57, %v17098_v61  ;;  %v15494_v11 = vadd.f32 %v12285_v0, %v17099_v16  ;;  %v17100_v8 = vld [vmem:[#allocation31_spill] sm:$0xff]  ;;  %v17105_v47 = vld [vmem:[#allocation37_spill] sm:$0xff] }
 0x2b0   : > { %v12306_v53 = vadd.f32 %v15344_v46, %v17100_v8  ;;  %v17104_v22 = vld [vmem:[#allocation23_spill] sm:$0xff]  ;;  %v12312_v57 = vadd.f32 %v17105_v47, %v15353_v19  ;;  %v15512_v25 = vadd.f32 %v12297_v27, %v17107_v3  ;;  %v17108_v46 = vld [vmem:[#allocation38_spill] sm:$0xff]  ;;  %v12324_v19 = vadd.f32 %v15395_v2, %v15390_v28  ;;  %v17110_v61 = vld [vmem:[#allocation29_spill] sm:$0xff] }
 0x2b1   : > { %v15504_v10 = vadd.f32 %v12294_v51, %v17104_v22  ;;  %v12321_v51 = vadd.f32 %v15385_v35, %v15380_v31  ;;  %v15526_v16 = vadd.f32 %v12303_v18, %v17110_v61  ;;  %v17111_v31 = vld [vmem:[#allocation30_spill] sm:$0xff]  ;;  %v13298_v28 = vld [vmem:[%s16986_s3 + $0x160] sm:$0xff]  }
 0x2b2   : > { %v15532_v35 = vadd.f32 %v12306_v53, %v17111_v31  ;;  %12594 = vmatprep.subr.bf16.mxu1 %v13298_v28  ;;  %v17117_v3 = vld [vmem:[#allocation41_spill] sm:$0xff] }
 0x2bb   : > { %v15416_v34 = vpop.f32.mrf.mxu1 }
 0x2bd   : > { %v12222_v56 = vpop.f32.mrf.mxu0  ;;  %v12329_v40 = vpop.f32.mrf.mxu1 }
 0x2bf   : > { %v12223_v55 = vpop.f32.mrf.mxu0  ;;  %v15451_v15 = vpop.f32.mrf.mxu1 }
 0x2c0   : > { %v12224_v39 = vadd.f32 %v12223_v55, %v12222_v56  ;;  %v15483_v56 = vadd.f32 %v12279_v37, %v17096_v33  ;;  %v15486_v55 = vadd.f32 %v12282_v50, %v17097_v26  ;;  %v17102_v37 = vld [vmem:[#allocation34_spill] sm:$0xff]  ;;  %v17103_v50 = vld [vmem:[#allocation20_spill] sm:$0xff] }
 0x2c1   : > { %v12225_v52 = vpop.f32.mrf.mxu0  ;;  %v12332_v1 = vpop.f32.mrf.mxu1  ;;  %v12309_v14 = vadd.f32 %v17102_v37, %v17101_v6  ;;  %v15501_v30 = vadd.f32 %v12291_v24, %v17103_v50  ;;  %v12318_v24 = vadd.f32 %v15372_v41, %v15370_v20  ;;  %v17109_v33 = vld [vmem:[#allocation28_spill] sm:$0xff]  ;;  %v12330_v41 = vadd.f32 %v12329_v40, %v15416_v34  ;;  %v17113_v6 = vld [vmem:[#allocation35_spill] sm:$0xff] }
 0x2c2   : > { %v15469_v59 = vadd.f32 %v12224_v39, %v17092_v5  ;;  %v15521_v26 = vadd.f32 %v12300_v42, %v17109_v33  ;;  %v17112_v42 = vld [vmem:[#allocation32_spill] sm:$0xff]  ;;  %v15541_v37 = vadd.f32 %v12312_v57, %v17113_v6  ;;  %v15556_v57 = vadd.f32 %v12332_v1, %v15451_v15 }
 0x2c3   : > { %v12226_v43 = vpop.f32.mrf.mxu0  ;;  %v12334_v29 = vpop.f32.mrf.mxu1  ;;  %v15535_v8 = vadd.f32 %v12309_v14, %v17112_v42  ;;  %v17114_v34 = vld [vmem:[#allocation36_spill] sm:$0xff]  ;;  %v15547_v53 = vadd.f32 %v12318_v24, %v15363_v49  ;;  %v17115_v14 = vld [vmem:[#allocation39_spill] sm:$0xff]  ;;  %v15563_v49 = vadd.f32 %v12330_v41, %v15393_v38  ;;  %v6146_v41 = vld [vmem:[#allocation2 + $0xc] sm:$0xf] }
 0x2c4   : > { %v12227_v39 = vadd.f32 %v12226_v43, %v12225_v52  ;;  %v17106_v52 = vld [vmem:[#allocation22_spill] sm:$0xff]  ;;  %v12315_v43 = vadd.f32 %v15365_v23, %v17108_v46  ;;  %v12327_v23 = vadd.f32 %v15402_v58, %v15400_v4  ;;  %v6153_v33 = vld [vmem:[#allocation2 + $0x18] sm:$0xf] }
 0x2c5   : > { %v12854_v62 = vpop.f32.mrf.mxu0 }
 0x2c6   : > { %v15509_v5 = vadd.f32 %v12227_v39, %v17106_v52  ;;  %v5580_v0 = vadd.f32 %v12854_v62, %v5419_v17  ;;  %v12335_v17 = vpop.f32.mrf.mxu1  ;;  %v15544_v40 = vadd.f32 %v12315_v43, %v17114_v34  ;;  %v15550_v62 = vadd.f32 %v12321_v51, %v17115_v14  ;;  %v17116_v52 = vld [vmem:[#allocation40_spill] sm:$0xff] }
 0x2c7   : > { %v5571_v63 = vpop.f32.mrf.mxu0  ;;  %v12336_v58 = vadd.f32 %v12335_v17, %v12334_v29  ;;  %v15560_v46 = vadd.f32 %v12327_v23, %v17117_v3 }
 0x2c8   : > { %v5700_v39 = vmax.f32 %v5580_v0, 0.0  ;;  %v5572_v27 = vadd.f32 %v5571_v63, %v5411_v21 }
 0x2c9   : > { %v12855_v20 = vpop.f32.mrf.mxu0  ;;  %v15567_v1 = vadd.f32 %v12336_v58, %v15469_v59  ;;  %v6157_v58 = vld [vmem:[#allocation2 + $0x20] sm:$0x1] }
 0x2ca   : > { %v11862_v2 = vpack.c.bf16 %v5700_v39, %v5700_v39  ;;  %v5698_v21 = vmax.f32 %v5572_v27, 0.0  ;;  %v5583_v18 = vadd.f32 %v12855_v20, %v5422_v44  ;;  %v15553_v44 = vadd.f32 %v12324_v19, %v17116_v52 }
 0x2cb   : > { %v5574_v4 = vpop.f32.mrf.mxu0 }
 0x2cc   : > { %v5844_v50 = vshrl.u32 %v11862_v2, 16  ;;  %v11860_v22 = vpack.c.bf16 %v5698_v21, %v5698_v21  ;;  %v5701_v47 = vmax.f32 %v5583_v18, 0.0  ;;  %v5575_v29 = vadd.f32 %v5574_v4, %v15424_v45  ;;  %v13302_v45 = vld [vmem:[%s16986_s3 + $0x120] sm:$0xff]  }
 0x2cd   : > { %v12858_v0 = vpop.f32.mrf.mxu0  ;;  %v5847_v24 = vshll.u32 %v11862_v2, 16  ;;  %12595 = vmatpush3.bf16.msra.mxu1 %v13302_v45 }
 0x2ce   : > { %v5846_v43 = vrot.slane %v5844_v50, 7  ;;  %v5827_v51 = vshrl.u32 %v11860_v22, 16  ;;  %v11863_v63 = vpack.c.bf16 %v5701_v47, %v5701_v47  ;;  %v5830_v17 = vshll.u32 %v11860_v22, 16 }
 0x2cf   : > { %v5699_v19 = vmax.f32 %v5575_v29, 0.0  ;;  %v5596_v39 = vadd.f32 %v12858_v0, %v15461_v60  ;;  %v5587_v15 = vpop.f32.mrf.mxu0 }
 0x2d0   : > { %v5849_v27 = vor.u32 %v5847_v24, %v5846_v43  ;;  %v5850_v38 = vrot.slane %v5846_v43, 4  ;;  %v5829_v61 = vrot.slane %v5827_v51, 7  ;;  %v5852_v23 = vshrl.u32 %v11863_v63, 16 }
 0x2d1   : > { %v5855_v20 = vshll.u32 %v11863_v63, 16  ;;  %v11861_v31 = vpack.c.bf16 %v5699_v19, %v5699_v19  ;;  %v5704_v42 = vmax.f32 %v5596_v39, 0.0  ;;  %v5588_v28 = vadd.f32 %v5587_v15, %v15442_v12  ;;  %v12859_v2 = vpop.f32.mrf.mxu0  ;;  %v6150_v39 = vld [vmem:[#allocation2 + $0x14] sm:$0x1]  ;;  %v13383_v63 = vld [vmem:[%s16986_s3 + $0x180] sm:$0xff]  }
 0x2d2   : > { %v6154_v59 = vsel %vm13705_vm13, %v5849_v27, %v6153_v33  ;;  %v5832_v21 = vor.u32 %v5830_v17, %v5829_v61  ;;  %v5833_v18 = vrot.slane %v5829_v61, 4  ;;  %v5854_v6 = vrot.slane %v5852_v23, 7 }
 0x2d3   : > { %6155 = vst [vmem:[#allocation2 + $0x18] sm:$0xf] %v6154_v59  ;;  %v5835_v4 = vshrl.u32 %v11861_v31, 16  ;;  %v5838_v34 = vshll.u32 %v11861_v31, 16  ;;  %v11866_v14 = vpack.c.bf16 %v5704_v42, %v5704_v42  ;;  %v5702_v50 = vmax.f32 %v5588_v28, 0.0  ;;  %v5590_v22 = vpop.f32.mrf.mxu0 }
 0x2d4   : > { %v6147_v47 = vsel %vm13705_vm13, %v5832_v21, %v6146_v41  ;;  %v5857_v52 = vor.u32 %v5855_v20, %v5854_v6  ;;  %v5859_v12 = vrot.slane %v5854_v6, 4  ;;  %v5599_v29 = vadd.f32 %v12859_v2, %v15464_v9  ;;  %v6167_v20 = vld [vmem:[#allocation2 + $0x30] sm:$0xf]  ;;  %v13312_v2 = vld [vmem:[%s16986_s3 + $0x1f8] sm:$0xff]  }
 0x2d5   : > { %6148 = vst [vmem:[#allocation2 + $0xc] sm:$0xf] %v6147_v47  ;;  %v5837_v0 = vrot.slane %v5835_v4, 7  ;;  %v5878_v3 = vshrl.u32 %v11866_v14, 16  ;;  %v5881_v43 = vshll.u32 %v11866_v14, 16  ;;  %v11864_v24 = vpack.c.bf16 %v5702_v50, %v5702_v50  ;;  %v12862_v51 = vpop.f32.mrf.mxu0  ;;  %12700 = vmatprep.subr.bf16.mxu0 %v13312_v2 }
 0x2d6   : > { %v5858_v33 = vsel %vm13724_vm14, %v5850_v38, %v5857_v52  ;;  %v6158_v19 = vsel %vm13648_vm3, %v5859_v12, %v6157_v58  ;;  %v5705_v15 = vmax.f32 %v5599_v29, 0.0  ;;  %v5591_v45 = vadd.f32 %v5590_v22, %v15454_v32  ;;  %v13314_v32 = vld [vmem:[%s16986_s3 + $0x158] sm:$0xff]   ;;  %v6160_v47 = vld [vmem:[#allocation2 + $0x24] sm:$0xf] }
 0x2d7   : > { %6156 = vst [vmem:[#allocation2 + $0x1c] sm:$0xf] %v5858_v33  ;;  %6159 = vst [vmem:[#allocation2 + $0x20] sm:$0x1] %v6158_v19  ;;  %v5840_v27 = vor.u32 %v5838_v34, %v5837_v0  ;;  %v5842_v9 = vrot.slane %v5837_v0, 4  ;;  %v15583_v61 = vrot.slane %v5878_v3, 7  ;;  %v5603_v41 = vpop.f32.mrf.mxu0  ;;  %v5612_v38 = vadd.f32 %v12862_v51, %v15480_v48  ;;  %12596 = vmatprep.subr.bf16.mxu1 %v13314_v32 }
 0x2d8   : > { %v5861_v23 = vshrl.u32 %v11864_v24, 16  ;;  %v5864_v31 = vshll.u32 %v11864_v24, 16  ;;  %v11867_v42 = vpack.c.bf16 %v5705_v15, %v5705_v15  ;;  %v5703_v28 = vmax.f32 %v5591_v45, 0.0 }
 0x2d9   : > { %v5841_v59 = vsel %vm13724_vm14, %v5833_v18, %v5840_v27  ;;  %v6151_v21 = vsel %vm13648_vm3, %v5842_v9, %v6150_v39  ;;  %v5883_v6 = vor.u32 %v5881_v43, %v15583_v61  ;;  %v5884_v58 = vrot.slane %v15583_v61, 4  ;;  %v12863_v4 = vpop.f32.mrf.mxu0  ;;  %v6171_v39 = vld [vmem:[#allocation2 + $0x38] sm:$0x1] }
 0x2da   : > { %6149 = vst [vmem:[#allocation2 + $0x10] sm:$0xf] %v5841_v59  ;;  %6152 = vst [vmem:[#allocation2 + $0x14] sm:$0x1] %v6151_v21  ;;  %v5863_v48 = vrot.slane %v5861_v23, 7  ;;  %v5886_v34 = vshrl.u32 %v11867_v42, 16  ;;  %v11865_v50 = vpack.c.bf16 %v5703_v28, %v5703_v28  ;;  %v5604_v12 = vadd.f32 %v5603_v41, %v15472_v54 }
 0x2db   : > { %v5889_v14 = vshll.u32 %v11867_v42, 16  ;;  %v7092_v22 = vld [vmem:[#allocation2 + $0x18] sm:$0xf]  ;;  %v6168_v18 = vsel %vm13705_vm13, %v5883_v6, %v6167_v20  ;;  %v5708_v52 = vmax.f32 %v5612_v38, 0.0  ;;  %v5615_v29 = vadd.f32 %v12863_v4, %v15483_v56  ;;  %v5606_v0 = vpop.f32.mrf.mxu0  ;;  %v6164_v42 = vld [vmem:[#allocation2 + $0x2c] sm:$0x1] }
 0x2dc   : > { %7124 = vst [vmem:[#allocation3 + $0x54] sm:$0xf] %v7092_v22  ;;  %v6262_v3 = vld [vmem:[#allocation2 + $0x18] sm:$0xf]  ;;  %6169 = vst [vmem:[#allocation2 + $0x30] sm:$0xf] %v6168_v18  ;;  %v5866_v43 = vor.u32 %v5864_v31, %v5863_v48 }
 0x2dd   : > { %v5867_v24 = vrot.slane %v5863_v48, 4  ;;  %v5888_v51 = vrot.slane %v5886_v34, 7  ;;  %v5869_v33 = vshrl.u32 %v11865_v50, 16  ;;  %v7090_v19 = vld [vmem:[#allocation2 + $0xc] sm:$0xf]  ;;  %v5872_v15 = vshll.u32 %v11865_v50, 16  ;;  %v12866_v61 = vpop.f32.mrf.mxu0 }
 0x2de   : > { %6294 = vst [vmem:[#allocation3 + $0x90] sm:$0xf] %v6262_v3  ;;  %v11870_v45 = vpack.c.bf16 %v5708_v52, %v5708_v52  ;;  %v5706_v27 = vmax.f32 %v5604_v12, 0.0  ;;  %v5709_v9 = vmax.f32 %v5615_v29, 0.0  ;;  %7122 = vst [vmem:[#allocation3 + $0xc] sm:$0xf] %v7090_v19  ;;  %v6161_v54 = vsel %vm13705_vm13, %v5866_v43, %v6160_v47 }
 0x2df   : > { %v5891_v56 = vor.u32 %v5889_v14, %v5888_v51  ;;  %v5893_v23 = vrot.slane %v5888_v51, 4  ;;  %v5871_v41 = vrot.slane %v5869_v33, 7  ;;  %v7093_v20 = vld [vmem:[#allocation2 + $0x1c] sm:$0xf]  ;;  %v6260_v31 = vld [vmem:[#allocation2 + $0xc] sm:$0xf]  ;;  %v5619_v59 = vpop.f32.mrf.mxu0  ;;  %v5607_v51 = vadd.f32 %v5606_v0, %v15475_v36 }
 0x2e0   : > { %6162 = vst [vmem:[#allocation2 + $0x24] sm:$0xf] %v6161_v54  ;;  %v5912_v28 = vshrl.u32 %v11870_v45, 16  ;;  %v5915_v38 = vshll.u32 %v11870_v45, 16  ;;  %v11868_v2 = vpack.c.bf16 %v5706_v27, %v5706_v27  ;;  %v11871_v32 = vpack.c.bf16 %v5709_v9, %v5709_v9  ;;  %7125 = vst [vmem:[#allocation3 + $0x78] sm:$0xf] %v7093_v20 }
 0x2e1   : > { %6292 = vst [vmem:[#allocation3 + $0x48] sm:$0xf] %v6260_v31  ;;  %v5892_v21 = vsel %vm13724_vm14, %v5884_v58, %v5891_v56  ;;  %v6172_v6 = vsel %vm13648_vm3, %v5893_v23, %v6171_v39  ;;  %v5874_v4 = vor.u32 %v5872_v15, %v5871_v41  ;;  %v5876_v48 = vrot.slane %v5871_v41, 4  ;;  %v6263_v34 = vld [vmem:[#allocation2 + $0x1c] sm:$0xf]  ;;  %v12867_v52 = vpop.f32.mrf.mxu0 }
 0x2e2   : > { %v13318_v14 = vld [vmem:[%s16986_s3 + $0x118] sm:$0xff]   ;;  %6170 = vst [vmem:[#allocation2 + $0x34] sm:$0xf] %v5892_v21  ;;  %6173 = vst [vmem:[#allocation2 + $0x38] sm:$0x1] %v6172_v6  ;;  %v5914_v50 = vrot.slane %v5912_v28, 7  ;;  %v5628_v54 = vadd.f32 %v12866_v61, %v15491_v7  ;;  %v5620_v56 = vadd.f32 %v5619_v59, %v15486_v55  ;;  %v5631_v23 = vadd.f32 %v12867_v52, %v15501_v30 }
 0x2e3   : > { %v5895_v22 = vshrl.u32 %v11868_v2, 16  ;;  %v5898_v18 = vshll.u32 %v11868_v2, 16  ;;  %v5920_v47 = vshrl.u32 %v11871_v32, 16  ;;  %v7091_v12 = vld [vmem:[#allocation2 + $0x10] sm:$0xf]  ;;  %v5875_v58 = vsel %vm13724_vm14, %v5867_v24, %v5874_v4  ;;  %12597 = vmatpush3.bf16.msra.mxu1 %v13318_v14  ;;  %v5622_v45 = vpop.f32.mrf.mxu0  ;;  %v13313_v6 = vld [vmem:[%s16986_s3 + $0x1b8] sm:$0xff]  }
 0x2e4   : > { %6295 = vst [vmem:[#allocation3 + $0xb4] sm:$0xf] %v6263_v34  ;;  %v6165_v29 = vsel %vm13648_vm3, %v5876_v48, %v6164_v42  ;;  %v6181_v3 = vld [vmem:[#allocation2 + $0x48] sm:$0xf]  ;;  %v5923_v43 = vshll.u32 %v11871_v32, 16  ;;  %v5917_v33 = vor.u32 %v5915_v38, %v5914_v50  ;;  %v5918_v19 = vrot.slane %v5914_v50, 4 }
 0x2e5   : > { %7123 = vst [vmem:[#allocation3 + $0x30] sm:$0xf] %v7091_v12  ;;  %6163 = vst [vmem:[#allocation2 + $0x28] sm:$0xf] %v5875_v58  ;;  %v15616_v39 = vrot.slane %v5895_v22, 7  ;;  %v5922_v15 = vrot.slane %v5920_v47, 7  ;;  %v12870_v42 = vpop.f32.mrf.mxu0  ;;  %v5623_v59 = vadd.f32 %v5622_v45, %v15494_v11 }
 0x2e6   : > { %6166 = vst [vmem:[#allocation2 + $0x2c] sm:$0x1] %v6165_v29  ;;  %v6261_v27 = vld [vmem:[#allocation2 + $0x10] sm:$0xf]  ;;  %v6174_v9 = vld [vmem:[#allocation2 + $0x3c] sm:$0xf]  ;;  %v6182_v36 = vsel %vm13705_vm13, %v5917_v33, %v6181_v3  ;;  %v5644_v52 = vadd.f32 %v12870_v42, %v15521_v26 }
 0x2e7   : > { %v5707_v24 = vmax.f32 %v5607_v51, 0.0  ;;  %6293 = vst [vmem:[#allocation3 + $0x6c] sm:$0xf] %v6261_v27  ;;  %v5900_v0 = vor.u32 %v5898_v18, %v15616_v39  ;;  %v5901_v41 = vrot.slane %v15616_v39, 4  ;;  %v5925_v20 = vor.u32 %v5923_v43, %v5922_v15  ;;  %v6185_v31 = vld [vmem:[#allocation2 + $0x50] sm:$0x1]  ;;  %v5635_v21 = vpop.f32.mrf.mxu0 }
 0x2e8   : > { %6183 = vst [vmem:[#allocation2 + $0x48] sm:$0xf] %v6182_v36  ;;  %v5927_v28 = vrot.slane %v5922_v15, 4  ;;  %v5712_v2 = vmax.f32 %v5628_v54, 0.0  ;;  %v5710_v7 = vmax.f32 %v5620_v56, 0.0  ;;  %v5713_v32 = vmax.f32 %v5631_v23, 0.0 }
 0x2e9   : > { %v11869_v38 = vpack.c.bf16 %v5707_v24, %v5707_v24  ;;  %v7094_v61 = vld [vmem:[#allocation2 + $0x24] sm:$0xf]  ;;  %v6175_v55 = vsel %vm13705_vm13, %v5900_v0, %v6174_v9  ;;  %v5926_v30 = vsel %vm13724_vm14, %v5918_v19, %v5925_v20  ;;  %v7096_v50 = vld [vmem:[#allocation2 + $0x30] sm:$0xf]  ;;  %v7097_v22 = vld [vmem:[#allocation2 + $0x34] sm:$0xf]  ;;  %v15636_v12 = vpop.f32.mrf.mxu0  ;;  %v5636_v33 = vadd.f32 %v5635_v21, %v15504_v10 }
 0x2ea   : > { %7126 = vst [vmem:[#allocation3 + $0x9c] sm:$0xf] %v7094_v61  ;;  %6176 = vst [vmem:[#allocation2 + $0x3c] sm:$0xf] %v6175_v55  ;;  %v6186_v4 = vsel %vm13648_vm3, %v5927_v28, %v6185_v31  ;;  %v11874_v14 = vpack.c.bf16 %v5712_v2, %v5712_v2  ;;  %v11872_v18 = vpack.c.bf16 %v5710_v7, %v5710_v7  ;;  %v5711_v11 = vmax.f32 %v5623_v59, 0.0  ;;  %v13328_v15 = vld [vmem:[%s16986_s3 + $0x1f0] sm:$0xff]  }
 0x2eb   : > { %6184 = vst [vmem:[#allocation2 + $0x4c] sm:$0xf] %v5926_v30  ;;  %v5903_v48 = vshrl.u32 %v11869_v38, 16  ;;  %v5906_v34 = vshll.u32 %v11869_v38, 16  ;;  %6187 = vst [vmem:[#allocation2 + $0x50] sm:$0x1] %v6186_v4  ;;  %v11875_v47 = vpack.c.bf16 %v5713_v32, %v5713_v32  ;;  %v15642_v54 = vpop.f32.mrf.mxu0 }
 0x2ec   : > { %v13253_v58 = vld [vmem:[#allocation3 + $0x8] ss:$36 sps:$4 sm:$0xff]   ;;  %7128 = vst [vmem:[#allocation3 + $0xe4] sm:$0xf] %v7096_v50  ;;  %7129 = vst [vmem:[#allocation3 + $0x108] sm:$0xf] %v7097_v22  ;;  %v11873_v20 = vpack.c.bf16 %v5711_v11, %v5711_v11 }
 0x2ed   : > { %v13255_v29 = vld [vmem:[#allocation3 + $0xc] ss:$36 sps:$4 sm:$0xff]   ;;  %v5905_v3 = vrot.slane %v5903_v48, 7  ;;  %v5946_v43 = vshrl.u32 %v11874_v14, 16  ;;  %v5949_v51 = vshll.u32 %v11874_v14, 16  ;;  %v5929_v27 = vshrl.u32 %v11872_v18, 16  ;;  %v12874_v2 = vpop.f32.mrf.mxu0 }
 0x2ee   : > { %v7095_v19 = vld [vmem:[#allocation2 + $0x28] sm:$0xf]  ;;  %v6178_v45 = vld [vmem:[#allocation2 + $0x44] sm:$0x1]  ;;  %v5932_v9 = vshll.u32 %v11872_v18, 16  ;;  %v5954_v26 = vshrl.u32 %v11875_v47, 16  ;;  %10426 = vmatprep.mubr.bf16.mxu0 %v13255_v29 }
 0x2ef   : > { %v5957_v24 = vshll.u32 %v11875_v47, 16  ;;  %7127 = vst [vmem:[#allocation3 + $0xc0] sm:$0xf] %v7095_v19  ;;  %v5908_v56 = vor.u32 %v5906_v34, %v5905_v3  ;;  %v5910_v23 = vrot.slane %v5905_v3, 4  ;;  %v5948_v36 = vrot.slane %v5946_v43, 7  ;;  %10427 = vmatmul.mubr.bf16.vlgmr.msra.gmra.mxu0 %v13253_v58  ;;  %v13329_v4 = vld [vmem:[%s16986_s3 + $0x1b0] sm:$0xff]   ;;  %v5651_v34 = vpop.f32.mrf.mxu0 }
 0x2f0   : > { %v6195_v0 = vld [vmem:[#allocation2 + $0x60] sm:$0xf]  ;;  %v6264_v10 = vld [vmem:[#allocation2 + $0x24] sm:$0xf]  ;;  %v15644_v31 = vrot.slane %v5929_v27, 7  ;;  %v5956_v42 = vrot.slane %v5954_v26, 7  ;;  %12701 = vmatpush3.bf16.msra.mxu0 %v13313_v6 }
 0x2f1   : > { %v5716_v28 = vmax.f32 %v5644_v52, 0.0  ;;  %v5714_v38 = vmax.f32 %v5636_v33, 0.0  ;;  %v6265_v7 = vld [vmem:[#allocation2 + $0x28] sm:$0xf]  ;;  %6296 = vst [vmem:[#allocation3 + $0xd8] sm:$0xf] %v6264_v10  ;;  %v5909_v61 = vsel %vm13724_vm14, %v5901_v41, %v5908_v56  ;;  %v6179_v55 = vsel %vm13648_vm3, %v5910_v23, %v6178_v45  ;;  %12702 = vmatprep.subr.bf16.mxu0 %v13328_v15  ;;  %v15665_v29 = vpop.f32.mrf.mxu0 }
 0x2f2   : > { %v5951_v30 = vor.u32 %v5949_v51, %v5948_v36  ;;  %v5952_v32 = vrot.slane %v5948_v36, 4  ;;  %v6188_v59 = vld [vmem:[#allocation2 + $0x54] sm:$0xf]  ;;  %v6199_v21 = vld [vmem:[#allocation2 + $0x68] sm:$0x1]  ;;  %v5934_v39 = vor.u32 %v5932_v9, %v15644_v31  ;;  %v5935_v6 = vrot.slane %v15644_v31, 4 }
 0x2f3   : > { %6297 = vst [vmem:[#allocation3 + $0xfc] sm:$0xf] %v6265_v7  ;;  %6177 = vst [vmem:[#allocation2 + $0x40] sm:$0xf] %v5909_v61  ;;  %v5959_v41 = vor.u32 %v5957_v24, %v5956_v42  ;;  %v5961_v48 = vrot.slane %v5956_v42, 4  ;;  %v5937_v50 = vshrl.u32 %v11873_v20, 16  ;;  %v11878_v18 = vpack.c.bf16 %v5716_v28, %v5716_v28  ;;  %v15679_v42 = vpop.f32.mrf.mxu0 }
 0x2f4   : > { %6180 = vst [vmem:[#allocation2 + $0x44] sm:$0x1] %v6179_v55  ;;  %v6196_v14 = vsel %vm13705_vm13, %v5951_v30, %v6195_v0  ;;  %v5940_v22 = vshll.u32 %v11873_v20, 16  ;;  %v6189_v47 = vsel %vm13705_vm13, %v5934_v39, %v6188_v59  ;;  %v11876_v58 = vpack.c.bf16 %v5714_v38, %v5714_v38  ;;  %v7098_v3 = vld [vmem:[#allocation2 + $0x3c] sm:$0xf]  ;;  %12703 = vmatpush3.bf16.msra.mxu0 %v13329_v4  ;;  %v13330_v27 = vld [vmem:[%s16986_s3 + $0x150] sm:$0xff]  }
 0x2f5   : > { %6197 = vst [vmem:[#allocation2 + $0x60] sm:$0xf] %v6196_v14  ;;  %v5960_v11 = vsel %vm13724_vm14, %v5952_v32, %v5959_v41  ;;  %v6200_v52 = vsel %vm13648_vm3, %v5961_v48, %v6199_v21  ;;  %v6266_v43 = vld [vmem:[#allocation2 + $0x30] sm:$0xf]  ;;  %v6267_v51 = vld [vmem:[#allocation2 + $0x34] sm:$0xf]  ;;  %v5647_v45 = vadd.f32 %v15636_v12, %v15526_v16  ;;  %v5639_v23 = vadd.f32 %v15642_v54, %v15512_v25 }
 0x2f6   : > { %6190 = vst [vmem:[#allocation2 + $0x54] sm:$0xf] %v6189_v47  ;;  %6198 = vst [vmem:[#allocation2 + $0x64] sm:$0xf] %v5960_v11  ;;  %v5939_v33 = vrot.slane %v5937_v50, 7  ;;  %v5980_v19 = vshrl.u32 %v11878_v18, 16  ;;  %v5660_v36 = vadd.f32 %v12874_v2, %v15541_v37  ;;  %12598 = vmatprep.subr.bf16.mxu1 %v13330_v27  ;;  %v5652_v37 = vadd.f32 %v5651_v34, %v15532_v35 }
 0x2f7   : > { %6201 = vst [vmem:[#allocation2 + $0x68] sm:$0x1] %v6200_v52  ;;  %v5983_v15 = vshll.u32 %v11878_v18, 16  ;;  %7130 = vst [vmem:[#allocation3 + $0x12c] sm:$0xf] %v7098_v3  ;;  %v5963_v24 = vshrl.u32 %v11876_v58, 16 }
 0x2f8   : > { %6298 = vst [vmem:[#allocation3 + $0x120] sm:$0xf] %v6266_v43  ;;  %6299 = vst [vmem:[#allocation3 + $0x144] sm:$0xf] %v6267_v51  ;;  %v6192_v9 = vld [vmem:[#allocation2 + $0x5c] sm:$0x1]  ;;  %v5942_v0 = vor.u32 %v5940_v22, %v5939_v33  ;;  %v15702_v22 = vpop.f32.mrf.mxu0 }
 0x2f9   : > { %v6209_v26 = vld [vmem:[#allocation2 + $0x78] sm:$0xf]  ;;  %v5966_v56 = vshll.u32 %v11876_v58, 16  ;;  %v5944_v20 = vrot.slane %v5939_v33, 4  ;;  %v15675_v10 = vrot.slane %v5980_v19, 7  ;;  %v5717_v12 = vmax.f32 %v5647_v45, 0.0 }
 0x2fa   : > { %v6202_v16 = vld [vmem:[#allocation2 + $0x6c] sm:$0xf]  ;;  %v13334_v28 = vld [vmem:[%s16986_s3 + $0x110] sm:$0xff]   ;;  %v15684_v38 = vrot.slane %v5963_v24, 7  ;;  %v5715_v25 = vmax.f32 %v5639_v23, 0.0  ;;  %v5720_v54 = vmax.f32 %v5660_v36, 0.0  ;;  %v5943_v7 = vsel %vm13724_vm14, %v5935_v6, %v5942_v0 }
 0x2fb   : > { %v15677_v31 = vld [vmem:[#allocation2 + $0xc] sm:$0xe]  ;;  %v7100_v2 = vld [vmem:[#allocation2 + $0x48] sm:$0xf]  ;;  %v6193_v61 = vsel %vm13648_vm3, %v5944_v20, %v6192_v9  ;;  %v5985_v55 = vor.u32 %v5983_v15, %v15675_v10  ;;  %v5986_v30 = vrot.slane %v15675_v10, 4  ;;  %12599 = vmatpush3.bf16.msra.mxu1 %v13334_v28  ;;  %v11879_v4 = vpack.c.bf16 %v5717_v12, %v5717_v12 }
 0x2fc   : > { %v15693_v32 = vld [vmem:[#allocation2 + $0x10] sm:$0xf]  ;;  %v7099_v59 = vld [vmem:[#allocation2 + $0x40] sm:$0xf]  ;;  %7132 = vst [vmem:[#allocation3 + $0x174] sm:$0xf] %v7100_v2  ;;  %v5968_v35 = vor.u32 %v5966_v56, %v15684_v38  ;;  %v11877_v39 = vpack.c.bf16 %v5715_v25, %v5715_v25  ;;  %v11882_v34 = vpack.c.bf16 %v5720_v54, %v5720_v54  ;;  %v5663_v12 = vadd.f32 %v15665_v29, %v15544_v40 }
 0x2fd   : > { %6191 = vst [vmem:[#allocation2 + $0x58] sm:$0xf] %v5943_v7  ;;  %6194 = vst [vmem:[#allocation2 + $0x5c] sm:$0x1] %v6193_v61  ;;  %v5969_v21 = vrot.slane %v15684_v38, 4  ;;  %v6210_v48 = vsel %vm13705_vm13, %v5985_v55, %v6209_v26  ;;  %v5718_v14 = vmax.f32 %v5652_v37, 0.0 }
 0x2fe   : > { %v15697_v6 = vld [vmem:[#allocation2 + $0x14] sm:$0x1]  ;;  %7131 = vst [vmem:[#allocation3 + $0x150] sm:$0xf] %v7099_v59  ;;  %v7101_v41 = vld [vmem:[#allocation2 + $0x4c] sm:$0xf]  ;;  %v6203_v11 = vsel %vm13705_vm13, %v5968_v35, %v6202_v16 }
 0x2ff   : > { %v11560_v50 = vrot.slane %v15677_v31, 9  ;;  %7133 = vst [vmem:[#allocation3 + $0x198] sm:$0xf] %v7101_v41  ;;  %v6268_v18 = vld [vmem:[#allocation2 + $0x3c] sm:$0xf]  ;;  %v5988_v52 = vshrl.u32 %v11879_v4, 16  ;;  %v11880_v45 = vpack.c.bf16 %v5718_v14, %v5718_v14  ;;  %v15718_v31 = vpop.f32.mrf.mxu0 }
 0x300   : > { %v6269_v47 = vld [vmem:[#allocation2 + $0x40] sm:$0xf]  ;;  %6211 = vst [vmem:[#allocation2 + $0x78] sm:$0xf] %v6210_v48  ;;  %v5991_v58 = vshll.u32 %v11879_v4, 16  ;;  %v5971_v3 = vshrl.u32 %v11877_v39, 16 }
 0x301   : > { %6300 = vst [vmem:[#allocation3 + $0x168] sm:$0xf] %v6268_v18  ;;  %6301 = vst [vmem:[#allocation3 + $0x18c] sm:$0xf] %v6269_v47  ;;  %v13344_v43 = vld [vmem:[%s16986_s3 + $0x1e8] sm:$0xff]   ;;  %v5974_v33 = vshll.u32 %v11877_v39, 16  ;;  %v15743_v18 = vpop.f32.mrf.mxu0 }
 0x302   : > { %6204 = vst [vmem:[#allocation2 + $0x6c] sm:$0xf] %v6203_v11  ;;  %v6213_v51 = vld [vmem:[#allocation2 + $0x80] sm:$0x1]  ;;  %v6014_v19 = vshrl.u32 %v11882_v34, 16  ;;  %v6017_v15 = vshll.u32 %v11882_v34, 16  ;;  %12704 = vmatprep.subr.bf16.mxu0 %v13344_v43  ;;  %v5655_v11 = vadd.f32 %v15679_v42, %v15535_v8 }
 0x303   : > { %v13345_v27 = vld [vmem:[%s16986_s3 + $0x1a8] sm:$0xff]   ;;  %v5990_v9 = vrot.slane %v5988_v52, 7  ;;  %v5973_v26 = vrot.slane %v5971_v3, 7  ;;  %v6206_v24 = vld [vmem:[#allocation2 + $0x74] sm:$0x1]  ;;  %v6923_v56 = vrot.slane %v15693_v32, 5 }
 0x304   : > { %v6926_v23 = vrot.slane %v15697_v6, 5  ;;  %v15714_v36 = vrot.slane %v6014_v19, 7  ;;  %v6223_v0 = vld [vmem:[#allocation2 + $0x90] sm:$0xf]  ;;  %v5997_v20 = vshrl.u32 %v11880_v45, 16  ;;  %v6000_v16 = vshll.u32 %v11880_v45, 16  ;;  %12705 = vmatpush3.bf16.msra.mxu0 %v13345_v27 }
 0x305   : > { %v13346_v28 = vld [vmem:[%s16986_s3 + $0x148] sm:$0xff]   ;;  %v5993_v38 = vor.u32 %v5991_v58, %v5990_v9  ;;  %v5995_v25 = vrot.slane %v5990_v9, 4  ;;  %v5976_v54 = vor.u32 %v5974_v33, %v5973_v26  ;;  %v5978_v37 = vrot.slane %v5973_v26, 4  ;;  %v6216_v2 = vld [vmem:[#allocation2 + $0x84] sm:$0xf] }
 0x306   : > { %v6325_v7 = vld [vmem:[#allocation2 + $0xc] sm:$0xf]  ;;  %v6019_v61 = vor.u32 %v6017_v15, %v15714_v36  ;;  %v6020_v55 = vrot.slane %v15714_v36, 4  ;;  %v15725_v32 = vrot.slane %v5997_v20, 7  ;;  %v6924_v29 = vsel %vm13697_vm12, %v11560_v50, %v6923_v56  ;;  %v7102_v59 = vld [vmem:[#allocation2 + $0x54] sm:$0xf]  ;;  %12600 = vmatprep.subr.bf16.mxu1 %v13346_v28 }
 0x307   : > { %v7103_v35 = vld [vmem:[#allocation2 + $0x58] sm:$0xf]  ;;  %v5994_v4 = vsel %vm13724_vm14, %v5986_v30, %v5993_v38  ;;  %v6214_v39 = vsel %vm13648_vm3, %v5995_v25, %v6213_v51  ;;  %v5977_v6 = vsel %vm13724_vm14, %v5969_v21, %v5976_v54  ;;  %v6207_v41 = vsel %vm13648_vm3, %v5978_v37, %v6206_v24  ;;  %7060 = vst [vmem:[#allocation3 + $0x50] sm:$0xf] %v6924_v29  ;;  %v6326_v48 = vld [vmem:[#allocation2 + $0x10] sm:$0xf] }
 0x308   : > { %7134 = vst [vmem:[#allocation3 + $0x1bc] sm:$0xf] %v7102_v59  ;;  %7135 = vst [vmem:[#allocation3 + $0x1e0] sm:$0xf] %v7103_v35  ;;  %v6270_v34 = vld [vmem:[#allocation2 + $0x48] sm:$0xf]  ;;  %v6224_v10 = vsel %vm13705_vm13, %v6019_v61, %v6223_v0  ;;  %v6002_v30 = vor.u32 %v6000_v16, %v15725_v32 }
 0x309   : > { %v6271_v14 = vld [vmem:[#allocation2 + $0x4c] sm:$0xf]  ;;  %6212 = vst [vmem:[#allocation2 + $0x7c] sm:$0xf] %v5994_v4  ;;  %6215 = vst [vmem:[#allocation2 + $0x80] sm:$0x1] %v6214_v39  ;;  %v12337_v4 = vpop.f32.mrf.mxu1 }
 0x30a   : > { %6205 = vst [vmem:[#allocation2 + $0x70] sm:$0xf] %v5977_v6  ;;  %6208 = vst [vmem:[#allocation2 + $0x74] sm:$0x1] %v6207_v41  ;;  %v6003_v21 = vrot.slane %v15725_v32, 4  ;;  %v6925_v50 = vrot.slane %v6923_v56, 4  ;;  %v6217_v51 = vsel %vm13705_vm13, %v6002_v30, %v6216_v2 }
 0x30b   : > { %6302 = vst [vmem:[#allocation3 + $0x1b0] sm:$0xf] %v6270_v34  ;;  %6303 = vst [vmem:[#allocation3 + $0x1d4] sm:$0xf] %v6271_v14  ;;  %v5721_v47 = vmax.f32 %v5663_v12, 0.0  ;;  %v6395_v58 = vshrl.u32 %v6325_v7, 16  ;;  %v15760_v12 = vpop.f32.mrf.mxu0 }
 0x30c   : > { %6225 = vst [vmem:[#allocation2 + $0x90] sm:$0xf] %v6224_v10  ;;  %v6327_v52 = vld [vmem:[#allocation2 + $0x14] sm:$0x1]  ;;  %v6398_v3 = vshll.u32 %v6325_v7, 16  ;;  %v13350_v43 = vld [vmem:[%s16986_s3 + $0x108] sm:$0xff]   ;;  %v6927_v33 = vsel %vm13697_vm12, %v6925_v50, %v6926_v23  ;;  %v5676_v23 = vadd.f32 %v15702_v22, %v15553_v44 }
 0x30d   : > { %v6404_v19 = vshll.u32 %v6326_v48, 16  ;;  %v6408_v15 = vshrl.u32 %v6326_v48, 16  ;;  %v6824_v45 = vld [vmem:[#allocation2 + $0x18] sm:$0xe]  ;;  %6218 = vst [vmem:[#allocation2 + $0x84] sm:$0xf] %v6217_v51  ;;  %v11883_v27 = vpack.c.bf16 %v5721_v47, %v5721_v47  ;;  %12601 = vmatpush3.bf16.msra.mxu1 %v13350_v43  ;;  %v15764_v50 = vpop.f32.mrf.mxu0 }
 0x30e   : > { %7061 = vst [vmem:[#allocation3 + $0x74] sm:$0xf] %v6927_v33  ;;  %v5719_v8 = vmax.f32 %v5655_v11, 0.0  ;;  %v6397_v42 = vrot.slane %v6395_v58, 4  ;;  %v6400_v9 = vrot.slane %v6398_v3, 5  ;;  %v6414_v16 = vshll.u32 %v6327_v52, 16 }
 0x30f   : > { %v15754_v26 = vld [vmem:[#allocation2 + $0x1c] sm:$0xf]  ;;  %v15756_v24 = vld [vmem:[#allocation2 + $0x20] sm:$0x1]  ;;  %v6406_v0 = vrot.slane %v6404_v19, 5  ;;  %v6410_v20 = vrot.slane %v6408_v15, 4 }
 0x310   : > { %v7104_v56 = vld [vmem:[#allocation2 + $0x60] sm:$0xf]  ;;  %v7105_v28 = vld [vmem:[#allocation2 + $0x64] sm:$0xf]  ;;  %v6022_v38 = vshrl.u32 %v11883_v27, 16  ;;  %v6025_v25 = vshll.u32 %v11883_v27, 16  ;;  %v11881_v54 = vpack.c.bf16 %v5719_v8, %v5719_v8  ;;  %v6401_v37 = vor.u32 %v6400_v9, %v6397_v42  ;;  %v12338_v9 = vpop.f32.mrf.mxu1 }
 0x311   : > { %7136 = vst [vmem:[#allocation3 + $0x204] sm:$0xf] %v7104_v56  ;;  %7137 = vst [vmem:[#allocation3 + $0x228] sm:$0xf] %v7105_v28  ;;  %v6272_v2 = vld [vmem:[#allocation2 + $0x54] sm:$0xf]  ;;  %v6411_v61 = vor.u32 %v6410_v20, %v6406_v0  ;;  %v5668_v42 = vadd.f32 %v15718_v31, %v15547_v53 }
 0x312   : > { %v6273_v7 = vld [vmem:[#allocation2 + $0x58] sm:$0xf]  ;;  %v6416_v29 = vrot.slane %v6414_v16, 5  ;;  %v5724_v59 = vmax.f32 %v5676_v23, 0.0  ;;  %v11561_v35 = vrot.slane %v6824_v45, 9  ;;  %v6024_v39 = vrot.slane %v6022_v38, 7  ;;  %v5683_v38 = vpop.f32.mrf.mxu0 }
 0x313   : > { %6304 = vst [vmem:[#allocation3 + $0x1f8] sm:$0xf] %v6272_v2  ;;  %6305 = vst [vmem:[#allocation3 + $0x21c] sm:$0xf] %v6273_v7  ;;  %v6227_v44 = vld [vmem:[#allocation2 + $0x98] sm:$0x1] }
 0x314   : > { %v6005_v22 = vshrl.u32 %v11881_v54, 16  ;;  %v6008_v6 = vshll.u32 %v11881_v54, 16  ;;  %v6402_v41 = vrot.slane %v6401_v37, 4  ;;  %v6220_v48 = vld [vmem:[#allocation2 + $0x8c] sm:$0x1]  ;;  %v6412_v34 = vrot.slane %v6411_v61, 4 }
 0x315   : > { %v11886_v14 = vpack.c.bf16 %v5724_v59, %v5724_v59  ;;  %v6930_v10 = vrot.slane %v15754_v26, 5  ;;  %v6933_v30 = vrot.slane %v15756_v24, 5  ;;  %v13360_v47 = vld [vmem:[%s16986_s3 + $0x1e0] sm:$0xff]   ;;  %v6027_v11 = vor.u32 %v6025_v25, %v6024_v39  ;;  %v6328_v51 = vld [vmem:[#allocation2 + $0x18] sm:$0xf] }
 0x316   : > { %v6029_v52 = vrot.slane %v6024_v39, 4  ;;  %v6007_v58 = vrot.slane %v6005_v22, 7  ;;  %v6407_v43 = vsel %vm13689_vm11, %v6402_v41, %v6406_v0  ;;  %v6329_v33 = vld [vmem:[#allocation2 + $0x1c] sm:$0xf]  ;;  %v13260_v19 = vld [vmem:[#allocation3 + $0x54] ss:$36 sps:$4 sm:$0xff]   ;;  %v6417_v15 = vsel %vm13689_vm11, %v6412_v34, %v6416_v29  ;;  %12706 = vmatprep.subr.bf16.mxu0 %v13360_v47 }
 0x317   : > { %6788 = vst [vmem:[#allocation3 + $0x4c] sm:$0xf] %v6407_v43  ;;  %v6048_v45 = vshrl.u32 %v11886_v14, 16  ;;  %v6931_v27 = vsel %vm13697_vm12, %v11561_v35, %v6930_v10  ;;  %v15775_v8 = vld [vmem:[#allocation2 + $0x20] sm:$0x1]  ;;  %v6028_v24 = vsel %vm13724_vm14, %v6020_v55, %v6027_v11  ;;  %10434 = vmatprep.mubr.bf16.mxu0 %v13260_v19  ;;  %v6051_v31 = vshll.u32 %v11886_v14, 16  ;;  %v12883_v14 = vpop.f32.mrf.mxu0 }
 0x318   : > { %v13258_v26 = vld [vmem:[#allocation3 + $0x50] ss:$36 sps:$4 sm:$0xff]   ;;  %v6228_v56 = vsel %vm13648_vm3, %v6029_v52, %v6227_v44  ;;  %v6010_v0 = vor.u32 %v6008_v6, %v6007_v58  ;;  %v6012_v20 = vrot.slane %v6007_v58, 4  ;;  %6789 = vst [vmem:[#allocation3 + $0x70] sm:$0xf] %v6417_v15  ;;  %v13361_v53 = vld [vmem:[%s16986_s3 + $0x1a0] sm:$0xff]   ;;  %v12339_v59 = vadd.f32 %v12338_v9, %v12337_v4 }
 0x319   : > { %v6237_v16 = vld [vmem:[#allocation2 + $0xa8] sm:$0xf]  ;;  %7062 = vst [vmem:[#allocation3 + $0x98] sm:$0xf] %v6931_v27  ;;  %v7106_v23 = vld [vmem:[#allocation2 + $0x6c] sm:$0xf]  ;;  %10435 = vmatmul.mubr.bf16.gmra.mxu0 %v13258_v26  ;;  %v5671_v34 = vadd.f32 %v15760_v12, %v15550_v62  ;;  %v5692_v52 = vadd.f32 %v15764_v50, %v15567_v1  ;;  %v15823_v26 = vadd.f32 %v5683_v38, %v15563_v49 }
 0x31a   : > { %6226 = vst [vmem:[#allocation2 + $0x94] sm:$0xf] %v6028_v24  ;;  %6229 = vst [vmem:[#allocation2 + $0x98] sm:$0x1] %v6228_v56  ;;  %v15788_v36 = vrot.slane %v6048_v45, 7  ;;  %v6932_v55 = vrot.slane %v6930_v10, 4  ;;  %v6011_v54 = vsel %vm13724_vm14, %v6003_v21, %v6010_v0  ;;  %v6221_v37 = vsel %vm13648_vm3, %v6012_v20, %v6220_v48  ;;  %12707 = vmatpush3.bf16.msra.mxu0 %v13361_v53 }
 0x31b   : > { %v6419_v28 = vshrl.u32 %v6328_v51, 16  ;;  %v7107_v25 = vld [vmem:[#allocation2 + $0x70] sm:$0xf]  ;;  %7138 = vst [vmem:[#allocation3 + $0x24c] sm:$0xf] %v7106_v23  ;;  %v6422_v2 = vshll.u32 %v6328_v51, 16  ;;  %v5679_v48 = vadd.f32 %v15743_v18, %v15560_v46  ;;  %v5534_v51 = vadd.f32 %v12339_v59, %v15509_v5  ;;  %v5686_v5 = vpop.f32.mrf.mxu0 }
 0x31c   : > { %v6428_v7 = vshll.u32 %v6329_v33, 16  ;;  %7139 = vst [vmem:[#allocation3 + $0x270] sm:$0xf] %v7107_v25  ;;  %v6274_v61 = vld [vmem:[#allocation2 + $0x60] sm:$0xf]  ;;  %v6053_v35 = vor.u32 %v6051_v31, %v15788_v36  ;;  %v6934_v32 = vsel %vm13697_vm12, %v6932_v55, %v6933_v30  ;;  %v6432_v22 = vshrl.u32 %v6329_v33, 16 }
 0x31d   : > { %v6275_v29 = vld [vmem:[#allocation2 + $0x64] sm:$0xf]  ;;  %6219 = vst [vmem:[#allocation2 + $0x88] sm:$0xf] %v6011_v54  ;;  %6222 = vst [vmem:[#allocation2 + $0x8c] sm:$0x1] %v6221_v37  ;;  %v5526_v33 = vadd.f32 %v15556_v57, %v15398_v13  ;;  %v15836_v54 = vadd.f32 %v12883_v14, %v5534_v51 }
 0x31e   : > { %v6421_v39 = vrot.slane %v6419_v28, 4  ;;  %6306 = vst [vmem:[#allocation3 + $0x240] sm:$0xf] %v6274_v61  ;;  %6307 = vst [vmem:[#allocation3 + $0x264] sm:$0xf] %v6275_v29  ;;  %v6424_v21 = vrot.slane %v6422_v2, 5  ;;  %v6238_v4 = vsel %vm13705_vm13, %v6053_v35, %v6237_v16 }
 0x31f   : > { %7063 = vst [vmem:[#allocation3 + $0xbc] sm:$0xf] %v6934_v32  ;;  %v6430_v44 = vrot.slane %v6428_v7, 5  ;;  %v6438_v6 = vshll.u32 %v15775_v8, 16  ;;  %v5722_v41 = vmax.f32 %v5668_v42, 0.0  ;;  %v13362_v10 = vld [vmem:[%s16986_s3 + $0x140] sm:$0xff]   ;;  %v15840_v29 = vadd.f32 %v5686_v5, %v5526_v33 }
 0x320   : > { %v6054_v30 = vrot.slane %v15788_v36, 4  ;;  %6239 = vst [vmem:[#allocation2 + $0xa8] sm:$0xf] %v6238_v4  ;;  %v6425_v47 = vor.u32 %v6424_v21, %v6421_v39  ;;  %v6434_v11 = vrot.slane %v6432_v22, 4  ;;  %v15812_v58 = vld [vmem:[#allocation2 + $0x24] sm:$0xe]  ;;  %12602 = vmatprep.subr.bf16.mxu1 %v13362_v10 }
 0x321   : > { %v13363_v46 = vld [vmem:[%s16986_s3 + $0x1d8] sm:$0xff]   ;;  %v13261_v62 = vld [vmem:[#allocation3 + $0x48] ss:$36 sps:$4 sm:$0xff]   ;;  %v11884_v12 = vpack.c.bf16 %v5722_v41, %v5722_v41  ;;  %v5725_v43 = vmax.f32 %v5679_v48, 0.0  ;;  %v5723_v45 = vmax.f32 %v5671_v34, 0.0  ;;  %v5728_v1 = vmax.f32 %v5692_v52, 0.0 }
 0x322   : > { %v13263_v18 = vld [vmem:[#allocation3 + $0x4c] ss:$36 sps:$4 sm:$0xff]   ;;  %v6426_v19 = vrot.slane %v6425_v47, 4  ;;  %v6435_v15 = vor.u32 %v6434_v11, %v6430_v44  ;;  %v7108_v50 = vld [vmem:[#allocation2 + $0x78] sm:$0xf]  ;;  %12708 = vmatprep.subr.bf16.mxu0 %v13363_v46  ;;  %v6440_v27 = vrot.slane %v6438_v6, 5 }
 0x323   : > { %10273 = vmatprep.mubr.bf16.mxu1 %v13263_v18  ;;  %v6031_v8 = vshrl.u32 %v11884_v12, 16  ;;  %v11887_v42 = vpack.c.bf16 %v5725_v43, %v5725_v43  ;;  %v15820_v9 = vld [vmem:[#allocation2 + $0x28] sm:$0xf]  ;;  %v7109_v24 = vld [vmem:[#allocation2 + $0x7c] sm:$0xf]  ;;  %v13367_v13 = vld [vmem:[%s16986_s3 + $0x100] sm:$0xff]   ;;  %v11885_v20 = vpack.c.bf16 %v5723_v45, %v5723_v45  ;;  %v11890_v16 = vpack.c.bf16 %v5728_v1, %v5728_v1 }
 0x324   : > { %7140 = vst [vmem:[#allocation3 + $0x294] sm:$0xf] %v7108_v50  ;;  %10274 = vmatmul.mubr.bf16.gmra.mxu1 %v13261_v62  ;;  %v6431_v57 = vsel %vm13689_vm11, %v6426_v19, %v6430_v44  ;;  %v6436_v56 = vrot.slane %v6435_v15, 4  ;;  %v6230_v0 = vld [vmem:[#allocation2 + $0x9c] sm:$0xf]  ;;  %v6034_v38 = vshll.u32 %v11884_v12, 16 }
 0x325   : > { %v15830_v23 = vld [vmem:[#allocation2 + $0x24] sm:$0xf]  ;;  %7141 = vst [vmem:[#allocation3 + $0x2b8] sm:$0xf] %v7109_v24  ;;  %v6276_v49 = vld [vmem:[#allocation2 + $0x6c] sm:$0xf]  ;;  %12603 = vmatpush3.bf16.msra.mxu1 %v13367_v13 }
 0x326   : > { %v6277_v53 = vld [vmem:[#allocation2 + $0x70] sm:$0xf]  ;;  %v13368_v31 = vld [vmem:[%s16986_s3 + $0x198] sm:$0xff]   ;;  %6790 = vst [vmem:[#allocation3 + $0x94] sm:$0xf] %v6431_v57  ;;  %v6033_v28 = vrot.slane %v6031_v8, 7  ;;  %v6441_v2 = vsel %vm13689_vm11, %v6436_v56, %v6440_v27 }
 0x327   : > { %v13266_v55 = vld [vmem:[#allocation3 + $0x9c] ss:$36 sps:$4 sm:$0xff]   ;;  %v11562_v25 = vrot.slane %v15812_v58, 9  ;;  %6308 = vst [vmem:[#allocation3 + $0x288] sm:$0xf] %v6276_v49  ;;  %v6056_v7 = vshrl.u32 %v11887_v42, 16  ;;  %12709 = vmatpush3.bf16.msra.mxu0 %v13368_v31 }
 0x328   : > { %6309 = vst [vmem:[#allocation3 + $0x2ac] sm:$0xf] %v6277_v53  ;;  %v13264_v37 = vld [vmem:[#allocation3 + $0x98] ss:$36 sps:$4 sm:$0xff]   ;;  %v6039_v61 = vshrl.u32 %v11885_v20, 16  ;;  %10442 = vmatprep.mubr.bf16.mxu0 %v13266_v55  ;;  %v6036_v35 = vor.u32 %v6034_v38, %v6033_v28  ;;  %v6037_v32 = vrot.slane %v6033_v28, 4 }
 0x329   : > { %v13372_v59 = vld [vmem:[%s16986_s3 + $0x1d0] sm:$0xff]   ;;  %6791 = vst [vmem:[#allocation3 + $0xb8] sm:$0xf] %v6441_v2  ;;  %v6059_v39 = vshll.u32 %v11887_v42, 16  ;;  %v6234_v44 = vld [vmem:[#allocation2 + $0xa4] sm:$0x1]  ;;  %10443 = vmatmul.mubr.bf16.gmra.mxu0 %v13264_v37 }
 0x32a   : > { %v6241_v21 = vld [vmem:[#allocation2 + $0xb0] sm:$0x1]  ;;  %v6082_v22 = vshrl.u32 %v11890_v16, 16  ;;  %v6058_v4 = vrot.slane %v6056_v7, 7  ;;  %v6041_v41 = vrot.slane %v6039_v61, 7  ;;  %v6042_v48 = vshll.u32 %v11885_v20, 16  ;;  %12710 = vmatprep.subr.bf16.mxu0 %v13372_v59 }
 0x32b   : > { %v13373_v6 = vld [vmem:[%s16986_s3 + $0x190] sm:$0xff]   ;;  %v6829_v34 = vld [vmem:[#allocation2 + $0x2c] sm:$0x1]  ;;  %v6937_v14 = vrot.slane %v15820_v9, 5  ;;  %v6231_v10 = vsel %vm13705_vm13, %v6036_v35, %v6230_v0  ;;  %v6085_v11 = vshll.u32 %v11890_v16, 16  ;;  %v6443_v58 = vshrl.u32 %v15830_v23, 16 }
 0x32c   : > { %v15851_v47 = vrot.slane %v6082_v22, 7  ;;  %v6251_v52 = vld [vmem:[#allocation2 + $0xc0] sm:$0xf]  ;;  %v13374_v46 = vld [vmem:[%s16986_s3 + $0x1c8] sm:$0xff]   ;;  %6232 = vst [vmem:[#allocation2 + $0x9c] sm:$0xf] %v6231_v10  ;;  %v6061_v62 = vor.u32 %v6059_v39, %v6058_v4  ;;  %v6044_v12 = vor.u32 %v6042_v48, %v6041_v41  ;;  %12711 = vmatpush3.bf16.msra.mxu0 %v13373_v6 }
 0x32d   : > { %v6063_v18 = vrot.slane %v6058_v4, 4  ;;  %v6046_v43 = vrot.slane %v6041_v41, 4  ;;  %v6332_v51 = vld [vmem:[#allocation2 + $0x28] sm:$0xf]  ;;  %v6333_v33 = vld [vmem:[#allocation2 + $0x2c] sm:$0x1]  ;;  %v6938_v15 = vsel %vm13697_vm12, %v11562_v25, %v6937_v14  ;;  %12712 = vmatprep.subr.bf16.mxu0 %v13374_v46 }
 0x32e   : > { %v6087_v19 = vor.u32 %v6085_v11, %v15851_v47  ;;  %v6939_v45 = vrot.slane %v6937_v14, 4  ;;  %v6940_v1 = vrot.slane %v6829_v34, 5  ;;  %v7110_v50 = vld [vmem:[#allocation2 + $0x84] sm:$0xf]  ;;  %v7111_v27 = vld [vmem:[#allocation2 + $0x88] sm:$0xf]  ;;  %v6062_v8 = vsel %vm13724_vm14, %v6054_v30, %v6061_v62 }
 0x32f   : > { %v6242_v42 = vsel %vm13648_vm3, %v6063_v18, %v6241_v21  ;;  %v6045_v9 = vsel %vm13724_vm14, %v6037_v32, %v6044_v12  ;;  %v6235_v5 = vsel %vm13648_vm3, %v6046_v43, %v6234_v44  ;;  %7064 = vst [vmem:[#allocation3 + $0xe0] sm:$0xf] %v6938_v15  ;;  %7142 = vst [vmem:[#allocation3 + $0x2dc] sm:$0xf] %v7110_v50  ;;  %v6278_v24 = vld [vmem:[#allocation2 + $0x78] sm:$0xf] }
 0x330   : > { %7143 = vst [vmem:[#allocation3 + $0x300] sm:$0xf] %v7111_v27  ;;  %v6279_v13 = vld [vmem:[#allocation2 + $0x7c] sm:$0xf]  ;;  %6240 = vst [vmem:[#allocation2 + $0xac] sm:$0xf] %v6062_v8  ;;  %v6252_v36 = vsel %vm13705_vm13, %v6087_v19, %v6251_v52  ;;  %v6941_v30 = vsel %vm13697_vm12, %v6939_v45, %v6940_v1 }
 0x331   : > { %6243 = vst [vmem:[#allocation2 + $0xb0] sm:$0x1] %v6242_v42  ;;  %6233 = vst [vmem:[#allocation2 + $0xa0] sm:$0xf] %v6045_v9  ;;  %v6445_v57 = vrot.slane %v6443_v58, 4  ;;  %v6446_v56 = vshll.u32 %v15830_v23, 16 }
 0x332   : > { %6236 = vst [vmem:[#allocation2 + $0xa4] sm:$0x1] %v6235_v5  ;;  %v6830_v0 = vld [vmem:[#allocation2 + $0x30] sm:$0xe]  ;;  %6310 = vst [vmem:[#allocation3 + $0x2d0] sm:$0xf] %v6278_v24 }
 0x333   : > { %6311 = vst [vmem:[#allocation3 + $0x2f4] sm:$0xf] %v6279_v13  ;;  %v13269_v20 = vld [vmem:[#allocation3 + $0x94] ss:$36 sps:$4 sm:$0xff]   ;;  %6253 = vst [vmem:[#allocation2 + $0xc0] sm:$0xf] %v6252_v36 }
 0x334   : > { %7065 = vst [vmem:[#allocation3 + $0x104] sm:$0xf] %v6941_v30  ;;  %v6452_v16 = vshll.u32 %v6332_v51, 16  ;;  %v6831_v49 = vld [vmem:[#allocation2 + $0x34] sm:$0xf]  ;;  %v6448_v31 = vrot.slane %v6446_v56, 5  ;;  %10281 = vmatprep.mubr.bf16.mxu1 %v13269_v20 }
 0x335   : > { %v13267_v53 = vld [vmem:[#allocation3 + $0x90] ss:$36 sps:$4 sm:$0xff]   ;;  %v6456_v55 = vshrl.u32 %v6332_v51, 16  ;;  %v6462_v28 = vshll.u32 %v6333_v33, 16  ;;  %v5726_v38 = vmax.f32 %v15823_v26, 0.0  ;;  %v6088_v25 = vrot.slane %v15851_v47, 4 }
 0x336   : > { %v6454_v37 = vrot.slane %v6452_v16, 5  ;;  %v5729_v23 = vmax.f32 %v15836_v54, 0.0  ;;  %v5727_v2 = vmax.f32 %v15840_v29, 0.0  ;;  %v6832_v7 = vld [vmem:[#allocation2 + $0x38] sm:$0x1]  ;;  %10282 = vmatmul.mubr.bf16.gmra.mxu1 %v13267_v53  ;;  %v6449_v61 = vor.u32 %v6448_v31, %v6445_v57  ;;  %v13375_v13 = vld [vmem:[%s16986_s3 + $0x188] sm:$0xff]  }
 0x337   : > { %v6458_v59 = vrot.slane %v6456_v55, 4  ;;  %v11888_v35 = vpack.c.bf16 %v5726_v38, %v5726_v38  ;;  %v11563_v32 = vrot.slane %v6830_v0, 9  ;;  %v6464_v39 = vrot.slane %v6462_v28, 5  ;;  %v6334_v6 = vld [vmem:[#allocation2 + $0x30] sm:$0xf]  ;;  %12713 = vmatpush3.bf16.msra.mxu0 %v13375_v13 }
 0x338   : > { %v11891_v21 = vpack.c.bf16 %v5729_v23, %v5729_v23  ;;  %v11889_v44 = vpack.c.bf16 %v5727_v2, %v5727_v2  ;;  %v6944_v22 = vrot.slane %v6831_v49, 5  ;;  %v15879_v26 = vld [vmem:[#allocation2 + $0x34] sm:$0xf]  ;;  %v7112_v4 = vld [vmem:[#allocation2 + $0x90] sm:$0xf]  ;;  %v6450_v48 = vrot.slane %v6449_v61, 4 }
 0x339   : > { %v7113_v41 = vld [vmem:[#allocation2 + $0x94] sm:$0xf]  ;;  %v6459_v34 = vor.u32 %v6458_v59, %v6454_v37  ;;  %v6065_v54 = vshrl.u32 %v11888_v35, 16  ;;  %v6947_v14 = vrot.slane %v6832_v7, 5  ;;  %7144 = vst [vmem:[#allocation3 + $0x324] sm:$0xf] %v7112_v4 }
 0x33a   : > { %7145 = vst [vmem:[#allocation3 + $0x348] sm:$0xf] %v7113_v41  ;;  %v6280_v29 = vld [vmem:[#allocation2 + $0x84] sm:$0xf]  ;;  %v6068_v10 = vshll.u32 %v11888_v35, 16  ;;  %v6090_v11 = vshrl.u32 %v11891_v21, 16  ;;  %v6455_v18 = vsel %vm13689_vm11, %v6450_v48, %v6454_v37  ;;  %v6945_v19 = vsel %vm13697_vm12, %v11563_v32, %v6944_v22 }
 0x33b   : > { %v6093_v52 = vshll.u32 %v11891_v21, 16  ;;  %v6073_v58 = vshrl.u32 %v11889_v44, 16  ;;  %v6281_v46 = vld [vmem:[#allocation2 + $0x88] sm:$0xf]  ;;  %6312 = vst [vmem:[#allocation3 + $0x318] sm:$0xf] %v6280_v29 }
 0x33c   : > { %v13273_v62 = vld [vmem:[#allocation3 + $0xe4] ss:$36 sps:$4 sm:$0xff]   ;;  %v6460_v12 = vrot.slane %v6459_v34, 4  ;;  %v6244_v43 = vld [vmem:[#allocation2 + $0xb4] sm:$0xf]  ;;  %v6076_v33 = vshll.u32 %v11889_v44, 16 }
 0x33d   : > { %v6255_v51 = vld [vmem:[#allocation2 + $0xc8] sm:$0x1]  ;;  %6313 = vst [vmem:[#allocation3 + $0x33c] sm:$0xf] %v6281_v46  ;;  %v13271_v15 = vld [vmem:[#allocation3 + $0xe0] ss:$36 sps:$4 sm:$0xff]   ;;  %10450 = vmatprep.mubr.bf16.mxu0 %v13273_v62 }
 0x33e   : > { %6792 = vst [vmem:[#allocation3 + $0xdc] sm:$0xf] %v6455_v18  ;;  %v6067_v45 = vrot.slane %v6065_v54, 7  ;;  %v6092_v1 = vrot.slane %v6090_v11, 7  ;;  %v6075_v50 = vrot.slane %v6073_v58, 7  ;;  %v6946_v27 = vrot.slane %v6944_v22, 4  ;;  %10451 = vmatmul.mubr.bf16.gmra.mxu0 %v13271_v15 }
 0x33f   : > { %7066 = vst [vmem:[#allocation3 + $0x128] sm:$0xf] %v6945_v19  ;;  %v6465_v8 = vsel %vm13689_vm11, %v6460_v12, %v6464_v39  ;;  %v6248_v42 = vld [vmem:[#allocation2 + $0xbc] sm:$0x1]  ;;  %v6467_v9 = vshrl.u32 %v6334_v6, 16  ;;  %v6470_v5 = vshll.u32 %v6334_v6, 16 }
 0x340   : > { %v6476_v24 = vshll.u32 %v15879_v26, 16  ;;  %6793 = vst [vmem:[#allocation3 + $0x100] sm:$0xf] %v6465_v8  ;;  %v6070_v36 = vor.u32 %v6068_v10, %v6067_v45  ;;  %v6071_v30 = vrot.slane %v6067_v45, 4  ;;  %v6095_v57 = vor.u32 %v6093_v52, %v6092_v1  ;;  %v15891_v0 = vld [vmem:[#allocation2 + $0x38] sm:$0x1] }
 0x341   : > { %v6097_v56 = vrot.slane %v6092_v1, 4  ;;  %v6833_v20 = vld [vmem:[#allocation2 + $0x3c] sm:$0xe]  ;;  %v6834_v16 = vld [vmem:[#allocation2 + $0x40] sm:$0xf]  ;;  %v6078_v49 = vor.u32 %v6076_v33, %v6075_v50  ;;  %v6080_v53 = vrot.slane %v6075_v50, 4  ;;  %v6948_v31 = vsel %vm13697_vm12, %v6946_v27, %v6947_v14 }
 0x342   : > { %v6469_v55 = vrot.slane %v6467_v9, 4  ;;  %v6835_v28 = vld [vmem:[#allocation2 + $0x44] sm:$0x1]  ;;  %v6337_v38 = vld [vmem:[#allocation2 + $0x3c] sm:$0xf]  ;;  %v6245_v37 = vsel %vm13705_vm13, %v6070_v36, %v6244_v43  ;;  %v6096_v23 = vsel %vm13724_vm14, %v6088_v25, %v6095_v57  ;;  %v6472_v7 = vrot.slane %v6470_v5, 5 }
 0x343   : > { %v6256_v2 = vsel %vm13648_vm3, %v6097_v56, %v6255_v51  ;;  %7067 = vst [vmem:[#allocation3 + $0x14c] sm:$0xf] %v6948_v31  ;;  %v7114_v61 = vld [vmem:[#allocation2 + $0x9c] sm:$0xf]  ;;  %v7115_v59 = vld [vmem:[#allocation2 + $0xa0] sm:$0xf]  ;;  %v6079_v60 = vsel %vm13724_vm14, %v6071_v30, %v6078_v49  ;;  %v6249_v47 = vsel %vm13648_vm3, %v6080_v53, %v6248_v42 }
 0x344   : > { %v13382_v35 = vld [vmem:[%s16986_s3 + $0x1c0] sm:$0xff]   ;;  %6246 = vst [vmem:[#allocation2 + $0xb4] sm:$0xf] %v6245_v37  ;;  %6254 = vst [vmem:[#allocation2 + $0xc4] sm:$0xf] %v6096_v23  ;;  %v6478_v25 = vrot.slane %v6476_v24, 5  ;;  %v6473_v44 = vor.u32 %v6472_v7, %v6469_v55 }
 0x345   : > { %6257 = vst [vmem:[#allocation2 + $0xc8] sm:$0x1] %v6256_v2  ;;  %v6480_v32 = vshrl.u32 %v15879_v26, 16  ;;  %7146 = vst [vmem:[#allocation3 + $0x36c] sm:$0xf] %v7114_v61  ;;  %v11564_v22 = vrot.slane %v6833_v20, 9  ;;  %12714 = vmatprep.subr.bf16.mxu0 %v13382_v35 }
 0x346   : > { %7147 = vst [vmem:[#allocation3 + $0x390] sm:$0xf] %v7115_v59  ;;  %v6282_v39 = vld [vmem:[#allocation2 + $0x90] sm:$0xf]  ;;  %v6283_v21 = vld [vmem:[#allocation2 + $0x94] sm:$0xf]  ;;  %12715 = vmatpush3.bf16.msra.mxu0 %v13383_v63 }
 0x347   : > { %6247 = vst [vmem:[#allocation2 + $0xb8] sm:$0xf] %v6079_v60  ;;  %6250 = vst [vmem:[#allocation2 + $0xbc] sm:$0x1] %v6249_v47  ;;  %v6951_v6 = vrot.slane %v6834_v16, 5  ;;  %v6482_v17 = vrot.slane %v6480_v32, 4 }
 0x348   : > { %v6338_v4 = vld [vmem:[#allocation2 + $0x40] sm:$0xf]  ;;  %6314 = vst [vmem:[#allocation3 + $0x360] sm:$0xf] %v6282_v39  ;;  %6315 = vst [vmem:[#allocation3 + $0x384] sm:$0xf] %v6283_v21 }
 0x349   : > { %v6486_v26 = vshll.u32 %v15891_v0, 16  ;;  %v6491_v41 = vshrl.u32 %v6337_v38, 16  ;;  %v6494_v48 = vshll.u32 %v6337_v38, 16  ;;  %v6474_v34 = vrot.slane %v6473_v44, 4  ;;  %v15917_v10 = vld [vmem:[#allocation2 + $0x44] sm:$0x1] }
 0x34a   : > { %v6952_v54 = vsel %vm13697_vm12, %v11564_v22, %v6951_v6  ;;  %v6953_v14 = vrot.slane %v6951_v6, 4  ;;  %v6954_v29 = vrot.slane %v6835_v28, 5  ;;  %v6836_v11 = vld [vmem:[#allocation2 + $0x48] sm:$0xe]  ;;  %v6837_v52 = vld [vmem:[#allocation2 + $0x4c] sm:$0xf]  ;;  %v6483_v62 = vor.u32 %v6482_v17, %v6478_v25 }
 0x34b   : > { %v13384_v58 = vld [vmem:[%s16986_s3 + $0x238] sm:$0xff]   ;;  %7068 = vst [vmem:[#allocation3 + $0x170] sm:$0xf] %v6952_v54  ;;  %v6493_v18 = vrot.slane %v6491_v41, 4  ;;  %v6838_v12 = vld [vmem:[#allocation2 + $0x50] sm:$0x1]  ;;  %v6479_v51 = vsel %vm13689_vm11, %v6474_v34, %v6478_v25 }
 0x34c   : > { %v13277_v46 = vld [vmem:[#allocation3 + $0xdc] ss:$36 sps:$4 sm:$0xff]   ;;  %v6955_v33 = vsel %vm13697_vm12, %v6953_v14, %v6954_v29  ;;  %v6496_v19 = vrot.slane %v6494_v48, 5  ;;  %v6500_v15 = vshll.u32 %v6338_v4, 16  ;;  %v6340_v45 = vld [vmem:[#allocation2 + $0x48] sm:$0xf]  ;;  %12884 = vmatprep.subr.bf16.mxu1 %v13384_v58 }
 0x34d   : > { %v13275_v43 = vld [vmem:[#allocation3 + $0xd8] ss:$36 sps:$4 sm:$0xff]   ;;  %10289 = vmatprep.mubr.bf16.mxu1 %v13277_v46  ;;  %v13280_v1 = vld [vmem:[#allocation3 + $0x12c] ss:$36 sps:$4 sm:$0xff]   ;;  %v6484_v50 = vrot.slane %v6483_v62, 4  ;;  %v6488_v27 = vrot.slane %v6486_v26, 5 }
 0x34e   : > { %6794 = vst [vmem:[#allocation3 + $0x124] sm:$0xf] %v6479_v51  ;;  %7069 = vst [vmem:[#allocation3 + $0x194] sm:$0xf] %v6955_v33  ;;  %10290 = vmatmul.mubr.bf16.gmra.mxu1 %v13275_v43  ;;  %v13278_v8 = vld [vmem:[#allocation3 + $0x128] ss:$36 sps:$4 sm:$0xff]   ;;  %v6497_v42 = vor.u32 %v6496_v19, %v6493_v18  ;;  %10458 = vmatprep.mubr.bf16.mxu0 %v13280_v1 }
 0x34f   : > { %v6502_v9 = vrot.slane %v6500_v15, 5  ;;  %v6504_v5 = vshrl.u32 %v6338_v4, 16  ;;  %v6341_v24 = vld [vmem:[#allocation2 + $0x4c] sm:$0xf]  ;;  %v6489_v13 = vsel %vm13689_vm11, %v6484_v50, %v6488_v27  ;;  %v6510_v36 = vshll.u32 %v15917_v10, 16  ;;  %10459 = vmatmul.mubr.bf16.gmra.mxu0 %v13278_v8 }
 0x350   : > { %v11565_v30 = vrot.slane %v6836_v11, 9  ;;  %v6958_v57 = vrot.slane %v6837_v52, 5  ;;  %v6342_v56 = vld [vmem:[#allocation2 + $0x50] sm:$0x1]  ;;  %6795 = vst [vmem:[#allocation3 + $0x148] sm:$0xf] %v6489_v13 }
 0x351   : > { %v6498_v0 = vrot.slane %v6497_v42, 4  ;;  %v6506_v20 = vrot.slane %v6504_v5, 4  ;;  %v6961_v16 = vrot.slane %v6838_v12, 5  ;;  %v6515_v49 = vshrl.u32 %v6340_v45, 16  ;;  %v6839_v53 = vld [vmem:[#allocation2 + $0x54] sm:$0xe] }
 0x352   : > { %v6840_v31 = vld [vmem:[#allocation2 + $0x58] sm:$0xf]  ;;  %v7116_v55 = vld [vmem:[#allocation2 + $0xa8] sm:$0xf]  ;;  %v6959_v28 = vsel %vm13697_vm12, %v11565_v30, %v6958_v57  ;;  %v6960_v38 = vrot.slane %v6958_v57, 4  ;;  %v6518_v37 = vshll.u32 %v6340_v45, 16 }
 0x353   : > { %v6524_v23 = vshll.u32 %v6341_v24, 16  ;;  %v6343_v2 = vld [vmem:[#allocation2 + $0x54] sm:$0xf]  ;;  %v7117_v7 = vld [vmem:[#allocation2 + $0xac] sm:$0xf]  ;;  %v6503_v61 = vsel %vm13689_vm11, %v6498_v0, %v6502_v9  ;;  %v6507_v59 = vor.u32 %v6506_v20, %v6502_v9  ;;  %v6517_v35 = vrot.slane %v6515_v49, 4 }
 0x354   : > { %7148 = vst [vmem:[#allocation3 + $0x3b4] sm:$0xf] %v7116_v55  ;;  %7070 = vst [vmem:[#allocation3 + $0x1b8] sm:$0xf] %v6959_v28  ;;  %v6528_v60 = vshrl.u32 %v6341_v24, 16  ;;  %v6962_v32 = vsel %vm13697_vm12, %v6960_v38, %v6961_v16  ;;  %v6520_v39 = vrot.slane %v6518_v37, 5 }
 0x355   : > { %v6841_v47 = vld [vmem:[#allocation2 + $0x5c] sm:$0x1]  ;;  %7149 = vst [vmem:[#allocation3 + $0x3d8] sm:$0xf] %v7117_v7  ;;  %6796 = vst [vmem:[#allocation3 + $0x16c] sm:$0xf] %v6503_v61 }
 0x356   : > { %v6284_v25 = vld [vmem:[#allocation2 + $0x9c] sm:$0xf]  ;;  %v6526_v21 = vrot.slane %v6524_v23, 5  ;;  %v6534_v44 = vshll.u32 %v6342_v56, 16  ;;  %v6285_v22 = vld [vmem:[#allocation2 + $0xa0] sm:$0xf]  ;;  %v6521_v41 = vor.u32 %v6520_v39, %v6517_v35 }
 0x357   : > { %6316 = vst [vmem:[#allocation3 + $0x3a8] sm:$0xf] %v6284_v25  ;;  %v6508_v6 = vrot.slane %v6507_v59, 4  ;;  %v6512_v4 = vrot.slane %v6510_v36, 5  ;;  %7071 = vst [vmem:[#allocation3 + $0x1dc] sm:$0xf] %v6962_v32 }
 0x358   : > { %v6530_v63 = vrot.slane %v6528_v60, 4  ;;  %v6344_v17 = vld [vmem:[#allocation2 + $0x58] sm:$0xf]  ;;  %6317 = vst [vmem:[#allocation3 + $0x3cc] sm:$0xf] %v6285_v22  ;;  %v11566_v48 = vrot.slane %v6839_v53, 9 }
 0x359   : > { %v13287_v26 = vld [vmem:[#allocation3 + $0x174] ss:$36 sps:$4 sm:$0xff]   ;;  %v6965_v34 = vrot.slane %v6840_v31, 5  ;;  %v6345_v54 = vld [vmem:[#allocation2 + $0x5c] sm:$0x1]  ;;  %v6513_v29 = vsel %vm13689_vm11, %v6508_v6, %v6512_v4  ;;  %v6539_v11 = vshrl.u32 %v6343_v2, 16 }
 0x35a   : > { %v13285_v14 = vld [vmem:[#allocation3 + $0x170] ss:$36 sps:$4 sm:$0xff]   ;;  %v6531_v10 = vor.u32 %v6530_v63, %v6526_v21  ;;  %v6842_v52 = vld [vmem:[#allocation2 + $0x60] sm:$0xe]  ;;  %10466 = vmatprep.mubr.bf16.mxu0 %v13287_v26  ;;  %6797 = vst [vmem:[#allocation3 + $0x190] sm:$0xf] %v6513_v29 }
 0x35b   : > { %v13283_v58 = vld [vmem:[#allocation3 + $0x124] ss:$36 sps:$4 sm:$0xff]   ;;  %v6522_v46 = vrot.slane %v6521_v41, 4  ;;  %v6536_v62 = vrot.slane %v6534_v44, 5  ;;  %v6966_v18 = vsel %vm13697_vm12, %v11566_v48, %v6965_v34  ;;  %v6968_v12 = vrot.slane %v6841_v47, 5  ;;  %10467 = vmatmul.mubr.bf16.gmra.mxu0 %v13285_v14 }
 0x35c   : > { %v6843_v43 = vld [vmem:[#allocation2 + $0x64] sm:$0xf]  ;;  %v13281_v51 = vld [vmem:[#allocation3 + $0x120] ss:$36 sps:$4 sm:$0xff]   ;;  %v6532_v33 = vrot.slane %v6531_v10, 4  ;;  %v6967_v19 = vrot.slane %v6965_v34, 4  ;;  %10297 = vmatprep.mubr.bf16.mxu1 %v13283_v58 }
 0x35d   : > { %7072 = vst [vmem:[#allocation3 + $0x200] sm:$0xf] %v6966_v18  ;;  %v6541_v15 = vrot.slane %v6539_v11, 4  ;;  %v6542_v45 = vshll.u32 %v6343_v2, 16  ;;  %v6527_v1 = vsel %vm13689_vm11, %v6522_v46, %v6526_v21  ;;  %v6548_v50 = vshll.u32 %v6344_v17, 16  ;;  %10298 = vmatmul.mubr.bf16.gmra.mxu1 %v13281_v51 }
 0x35e   : > { %v6552_v27 = vshrl.u32 %v6344_v17, 16  ;;  %v6558_v8 = vshll.u32 %v6345_v54, 16  ;;  %v6844_v42 = vld [vmem:[#allocation2 + $0x68] sm:$0x1]  ;;  %v6537_v9 = vsel %vm13689_vm11, %v6532_v33, %v6536_v62  ;;  %6798 = vst [vmem:[#allocation3 + $0x1b4] sm:$0xf] %v6527_v1  ;;  %v6969_v5 = vsel %vm13697_vm12, %v6967_v19, %v6968_v12 }
 0x35f   : > { %v6544_v24 = vrot.slane %v6542_v45, 5  ;;  %v6346_v13 = vld [vmem:[#allocation2 + $0x60] sm:$0xf]  ;;  %v6347_v36 = vld [vmem:[#allocation2 + $0x64] sm:$0xf]  ;;  %v6550_v57 = vrot.slane %v6548_v50, 5 }
 0x360   : > { %v13294_v30 = vld [vmem:[#allocation3 + $0x1bc] ss:$36 sps:$4 sm:$0xff]   ;;  %6799 = vst [vmem:[#allocation3 + $0x1d8] sm:$0xf] %v6537_v9  ;;  %7073 = vst [vmem:[#allocation3 + $0x224] sm:$0xf] %v6969_v5 }
 0x361   : > { %v11567_v56 = vrot.slane %v6842_v52, 9  ;;  %v6348_v0 = vld [vmem:[#allocation2 + $0x68] sm:$0x1]  ;;  %v13292_v20 = vld [vmem:[#allocation3 + $0x1b8] ss:$36 sps:$4 sm:$0xff]   ;;  %v6545_v16 = vor.u32 %v6544_v24, %v6541_v15  ;;  %v6554_v49 = vrot.slane %v6552_v27, 4  ;;  %10474 = vmatprep.mubr.bf16.mxu0 %v13294_v30 }
 0x362   : > { %v6560_v53 = vrot.slane %v6558_v8, 5  ;;  %v6972_v31 = vrot.slane %v6843_v43, 5  ;;  %v6845_v55 = vld [vmem:[#allocation2 + $0x6c] sm:$0xe]  ;;  %v6846_v28 = vld [vmem:[#allocation2 + $0x70] sm:$0xf] }
 0x363   : > { %v6975_v38 = vrot.slane %v6844_v42, 5  ;;  %v6563_v37 = vshrl.u32 %v6346_v13, 16  ;;  %v6566_v23 = vshll.u32 %v6346_v13, 16  ;;  %v6572_v2 = vshll.u32 %v6347_v36, 16  ;;  %v7118_v7 = vld [vmem:[#allocation2 + $0xb4] sm:$0xf]  ;;  %10475 = vmatmul.mubr.bf16.gmra.mxu0 %v13292_v20 }
 0x364   : > { %v13289_v61 = vld [vmem:[#allocation3 + $0x168] ss:$36 sps:$4 sm:$0xff]   ;;  %v6546_v35 = vrot.slane %v6545_v16, 4  ;;  %v6555_v60 = vor.u32 %v6554_v49, %v6550_v57  ;;  %v6973_v47 = vsel %vm13697_vm12, %v11567_v56, %v6972_v31  ;;  %7150 = vst [vmem:[#allocation3 + $0x3fc] sm:$0xf] %v7118_v7  ;;  %v6974_v25 = vrot.slane %v6972_v31, 4 }
 0x365   : > { %v13291_v59 = vld [vmem:[#allocation3 + $0x16c] ss:$36 sps:$4 sm:$0xff]   ;;  %7074 = vst [vmem:[#allocation3 + $0x248] sm:$0xf] %v6973_v47  ;;  %v6565_v32 = vrot.slane %v6563_v37, 4  ;;  %v6568_v39 = vrot.slane %v6566_v23, 5 }
 0x366   : > { %v6574_v21 = vrot.slane %v6572_v2, 5  ;;  %v6847_v44 = vld [vmem:[#allocation2 + $0x74] sm:$0x1]  ;;  %10305 = vmatprep.mubr.bf16.mxu1 %v13291_v59  ;;  %v6551_v22 = vsel %vm13689_vm11, %v6546_v35, %v6550_v57  ;;  %v6556_v6 = vrot.slane %v6555_v60, 4  ;;  %v6576_v4 = vshrl.u32 %v6347_v36, 16 }
 0x367   : > { %v6582_v63 = vshll.u32 %v6348_v0, 16  ;;  %v6349_v17 = vld [vmem:[#allocation2 + $0x6c] sm:$0xf]  ;;  %v6350_v26 = vld [vmem:[#allocation2 + $0x70] sm:$0xf]  ;;  %v6976_v48 = vsel %vm13697_vm12, %v6974_v25, %v6975_v38  ;;  %v6569_v34 = vor.u32 %v6568_v39, %v6565_v32  ;;  %v11568_v54 = vrot.slane %v6845_v55, 9  ;;  %10306 = vmatmul.mubr.bf16.gmra.mxu1 %v13289_v61 }
 0x368   : > { %v7119_v41 = vld [vmem:[#allocation2 + $0xb8] sm:$0xf]  ;;  %6800 = vst [vmem:[#allocation3 + $0x1fc] sm:$0xf] %v6551_v22  ;;  %v6979_v14 = vrot.slane %v6846_v28, 5  ;;  %v6561_v11 = vsel %vm13689_vm11, %v6556_v6, %v6560_v53  ;;  %v6578_v52 = vrot.slane %v6576_v4, 4 }
 0x369   : > { %7151 = vst [vmem:[#allocation3 + $0x420] sm:$0xf] %v7119_v41  ;;  %v6286_v29 = vld [vmem:[#allocation2 + $0xa8] sm:$0xf]  ;;  %v13297_v10 = vld [vmem:[#allocation3 + $0x1b4] ss:$36 sps:$4 sm:$0xff]  }
 0x36a   : > { %7075 = vst [vmem:[#allocation3 + $0x26c] sm:$0xf] %v6976_v48  ;;  %v6351_v58 = vld [vmem:[#allocation2 + $0x74] sm:$0x1]  ;;  %6318 = vst [vmem:[#allocation3 + $0x3f0] sm:$0xf] %v6286_v29  ;;  %v6980_v18 = vsel %vm13697_vm12, %v11568_v54, %v6979_v14  ;;  %10313 = vmatprep.mubr.bf16.mxu1 %v13297_v10  ;;  %v6579_v51 = vor.u32 %v6578_v52, %v6574_v21 }
 0x36b   : > { %v13301_v46 = vld [vmem:[#allocation3 + $0x204] ss:$36 sps:$4 sm:$0xff]   ;;  %6801 = vst [vmem:[#allocation3 + $0x220] sm:$0xf] %v6561_v11  ;;  %v6570_v62 = vrot.slane %v6569_v34, 4  ;;  %v6584_v33 = vrot.slane %v6582_v63, 5 }
 0x36c   : > { %v6848_v12 = vld [vmem:[#allocation2 + $0x78] sm:$0xe]  ;;  %v6849_v43 = vld [vmem:[#allocation2 + $0x7c] sm:$0xf]  ;;  %v6981_v19 = vrot.slane %v6979_v14, 4  ;;  %v6982_v15 = vrot.slane %v6847_v44, 5  ;;  %10482 = vmatprep.mubr.bf16.mxu0 %v13301_v46 }
 0x36d   : > { %7076 = vst [vmem:[#allocation3 + $0x290] sm:$0xf] %v6980_v18  ;;  %v6287_v45 = vld [vmem:[#allocation2 + $0xac] sm:$0xf]  ;;  %v6575_v1 = vsel %vm13689_vm11, %v6570_v62, %v6574_v21  ;;  %v6587_v50 = vshrl.u32 %v6349_v17, 16  ;;  %v6590_v27 = vshll.u32 %v6349_v17, 16 }
 0x36e   : > { %v6596_v8 = vshll.u32 %v6350_v26, 16  ;;  %v6850_v42 = vld [vmem:[#allocation2 + $0x80] sm:$0x1]  ;;  %6319 = vst [vmem:[#allocation3 + $0x414] sm:$0xf] %v6287_v45  ;;  %v6580_v5 = vrot.slane %v6579_v51, 4  ;;  %v6983_v24 = vsel %vm13697_vm12, %v6981_v19, %v6982_v15 }
 0x36f   : > { %v13299_v9 = vld [vmem:[#allocation3 + $0x200] ss:$36 sps:$4 sm:$0xff]   ;;  %6802 = vst [vmem:[#allocation3 + $0x244] sm:$0xf] %v6575_v1  ;;  %v6600_v13 = vshrl.u32 %v6350_v26, 16  ;;  %v6606_v36 = vshll.u32 %v6351_v58, 16 }
 0x370   : > { %v6352_v30 = vld [vmem:[#allocation2 + $0x78] sm:$0xf]  ;;  %7077 = vst [vmem:[#allocation3 + $0x2b4] sm:$0xf] %v6983_v24  ;;  %v6589_v57 = vrot.slane %v6587_v50, 4  ;;  %v6592_v56 = vrot.slane %v6590_v27, 5  ;;  %10483 = vmatmul.mubr.bf16.gmra.mxu0 %v13299_v9  ;;  %v6585_v49 = vsel %vm13689_vm11, %v6580_v5, %v6584_v33 }
 0x371   : > { %v6598_v0 = vrot.slane %v6596_v8, 5  ;;  %v6353_v20 = vld [vmem:[#allocation2 + $0x7c] sm:$0xf]  ;;  %v13295_v16 = vld [vmem:[#allocation3 + $0x1b0] ss:$36 sps:$4 sm:$0xff]   ;;  %v6602_v53 = vrot.slane %v6600_v13, 4 }
 0x372   : > { %v11569_v31 = vrot.slane %v6848_v12, 9  ;;  %v6986_v55 = vrot.slane %v6849_v43, 5  ;;  %v13308_v28 = vld [vmem:[#allocation3 + $0x24c] ss:$36 sps:$4 sm:$0xff]   ;;  %6803 = vst [vmem:[#allocation3 + $0x268] sm:$0xf] %v6585_v49  ;;  %v6593_v38 = vor.u32 %v6592_v56, %v6589_v57  ;;  %10314 = vmatmul.mubr.bf16.gmra.mxu1 %v13295_v16 }
 0x373   : > { %v6608_v37 = vrot.slane %v6606_v36, 5  ;;  %v6354_v23 = vld [vmem:[#allocation2 + $0x80] sm:$0x1]  ;;  %v13305_v2 = vld [vmem:[#allocation3 + $0x1fc] ss:$36 sps:$4 sm:$0xff]   ;;  %v6603_v7 = vor.u32 %v6602_v53, %v6598_v0  ;;  %v6989_v35 = vrot.slane %v6850_v42, 5  ;;  %10490 = vmatprep.mubr.bf16.mxu0 %v13308_v28 }
 0x374   : > { %v6987_v61 = vsel %vm13697_vm12, %v11569_v31, %v6986_v55  ;;  %v6988_v59 = vrot.slane %v6986_v55, 4  ;;  %v6851_v60 = vld [vmem:[#allocation2 + $0x84] sm:$0xe]  ;;  %v6852_v47 = vld [vmem:[#allocation2 + $0x88] sm:$0xf]  ;;  %v6594_v25 = vrot.slane %v6593_v38, 4  ;;  %10321 = vmatprep.mubr.bf16.mxu1 %v13305_v2 }
 0x375   : > { %7078 = vst [vmem:[#allocation3 + $0x2d8] sm:$0xf] %v6987_v61  ;;  %v6611_v32 = vshrl.u32 %v6352_v30, 16  ;;  %v6614_v39 = vshll.u32 %v6352_v30, 16  ;;  %v6620_v21 = vshll.u32 %v6353_v20, 16  ;;  %v6604_v22 = vrot.slane %v6603_v7, 4 }
 0x376   : > { %v6853_v44 = vld [vmem:[#allocation2 + $0x8c] sm:$0x1]  ;;  %v6990_v6 = vsel %vm13697_vm12, %v6988_v59, %v6989_v35  ;;  %v6624_v4 = vshrl.u32 %v6353_v20, 16  ;;  %v6630_v63 = vshll.u32 %v6354_v23, 16  ;;  %v6355_v17 = vld [vmem:[#allocation2 + $0x84] sm:$0xf]  ;;  %v6599_v26 = vsel %vm13689_vm11, %v6594_v25, %v6598_v0 }
 0x377   : > { %7079 = vst [vmem:[#allocation3 + $0x2fc] sm:$0xf] %v6990_v6  ;;  %v6613_v41 = vrot.slane %v6611_v32, 4  ;;  %v6616_v48 = vrot.slane %v6614_v39, 5  ;;  %v6622_v34 = vrot.slane %v6620_v21, 5  ;;  %v6609_v10 = vsel %vm13689_vm11, %v6604_v22, %v6608_v37 }
 0x378   : > { %v6356_v54 = vld [vmem:[#allocation2 + $0x88] sm:$0xf]  ;;  %v13303_v14 = vld [vmem:[#allocation3 + $0x1f8] ss:$36 sps:$4 sm:$0xff]   ;;  %v13306_v29 = vld [vmem:[#allocation3 + $0x248] ss:$36 sps:$4 sm:$0xff]  }
 0x379   : > { %6804 = vst [vmem:[#allocation3 + $0x28c] sm:$0xf] %v6599_v26  ;;  %v6626_v11 = vrot.slane %v6624_v4, 4  ;;  %v6357_v52 = vld [vmem:[#allocation2 + $0x8c] sm:$0x1]  ;;  %v6617_v46 = vor.u32 %v6616_v48, %v6613_v41  ;;  %v11570_v62 = vrot.slane %v6851_v60, 9  ;;  %10491 = vmatmul.mubr.bf16.gmra.mxu0 %v13306_v29 }
 0x37a   : > { %v13317_v58 = vld [vmem:[#allocation3 + $0x294] ss:$36 sps:$4 sm:$0xff]   ;;  %6805 = vst [vmem:[#allocation3 + $0x2b0] sm:$0xf] %v6609_v10  ;;  %v6993_v18 = vrot.slane %v6852_v47, 5  ;;  %v6632_v33 = vrot.slane %v6630_v63, 5  ;;  %10322 = vmatmul.mubr.bf16.gmra.mxu1 %v13303_v14 }
 0x37b   : > { %v7120_v12 = vld [vmem:[#allocation2 + $0xc0] sm:$0xf]  ;;  %v6627_v51 = vor.u32 %v6626_v11, %v6622_v34  ;;  %v6996_v19 = vrot.slane %v6853_v44, 5  ;;  %10498 = vmatprep.mubr.bf16.mxu0 %v13317_v58  ;;  %v6618_v15 = vrot.slane %v6617_v46, 4  ;;  %v6635_v50 = vshrl.u32 %v6355_v17, 16 }
 0x37c   : > { %v13311_v43 = vld [vmem:[#allocation3 + $0x244] ss:$36 sps:$4 sm:$0xff]   ;;  %7152 = vst [vmem:[#allocation3 + $0x444] sm:$0xf] %v7120_v12  ;;  %v6994_v45 = vsel %vm13697_vm12, %v11570_v62, %v6993_v18  ;;  %v6995_v1 = vrot.slane %v6993_v18, 4  ;;  %v6638_v5 = vshll.u32 %v6355_v17, 16 }
 0x37d   : > { %v6854_v27 = vld [vmem:[#allocation2 + $0x90] sm:$0xe]  ;;  %v6855_v8 = vld [vmem:[#allocation2 + $0x94] sm:$0xf]  ;;  %v7121_v42 = vld [vmem:[#allocation2 + $0xc4] sm:$0xf]  ;;  %10329 = vmatprep.mubr.bf16.mxu1 %v13311_v43  ;;  %v6623_v30 = vsel %vm13689_vm11, %v6618_v15, %v6622_v34 }
 0x37e   : > { %v6628_v9 = vrot.slane %v6627_v51, 4  ;;  %7080 = vst [vmem:[#allocation3 + $0x320] sm:$0xf] %v6994_v45  ;;  %v6644_v24 = vshll.u32 %v6356_v54, 16  ;;  %v6648_v13 = vshrl.u32 %v6356_v54, 16  ;;  %v6997_v57 = vsel %vm13697_vm12, %v6995_v1, %v6996_v19 }
 0x37f   : > { %v6856_v36 = vld [vmem:[#allocation2 + $0x98] sm:$0x1]  ;;  %7153 = vst [vmem:[#allocation3 + $0x468] sm:$0xf] %v7121_v42  ;;  %v6637_v56 = vrot.slane %v6635_v50, 4  ;;  %v6654_v0 = vshll.u32 %v6357_v52, 16 }
 0x380   : > { %v6288_v20 = vld [vmem:[#allocation2 + $0xb4] sm:$0xf]  ;;  %v6289_v16 = vld [vmem:[#allocation2 + $0xb8] sm:$0xf]  ;;  %v6633_v49 = vsel %vm13689_vm11, %v6628_v9, %v6632_v33  ;;  %6806 = vst [vmem:[#allocation3 + $0x2d4] sm:$0xf] %v6623_v30  ;;  %v12380_v30 = vpop.f32.mrf.mxu1 }
 0x381   : > { %7081 = vst [vmem:[#allocation3 + $0x344] sm:$0xf] %v6997_v57  ;;  %v6640_v53 = vrot.slane %v6638_v5, 5  ;;  %v6358_v31 = vld [vmem:[#allocation2 + $0x90] sm:$0xf]  ;;  %v6646_v38 = vrot.slane %v6644_v24, 5 }
 0x382   : > { %v6359_v55 = vld [vmem:[#allocation2 + $0x94] sm:$0xf]  ;;  %6320 = vst [vmem:[#allocation3 + $0x438] sm:$0xf] %v6288_v20  ;;  %6321 = vst [vmem:[#allocation3 + $0x45c] sm:$0xf] %v6289_v16 }
 0x383   : > { %v13315_v28 = vld [vmem:[#allocation3 + $0x290] ss:$36 sps:$4 sm:$0xff]   ;;  %6807 = vst [vmem:[#allocation3 + $0x2f8] sm:$0xf] %v6633_v49  ;;  %v6650_v37 = vrot.slane %v6648_v13, 4  ;;  %v6641_v7 = vor.u32 %v6640_v53, %v6637_v56  ;;  %v6656_v61 = vrot.slane %v6654_v0, 5 }
 0x384   : > { %v6360_v23 = vld [vmem:[#allocation2 + $0x98] sm:$0x1]  ;;  %v11571_v59 = vrot.slane %v6854_v27, 9  ;;  %v7000_v35 = vrot.slane %v6855_v8, 5  ;;  %v7003_v25 = vrot.slane %v6856_v36, 5  ;;  %v6659_v32 = vshrl.u32 %v6358_v31, 16  ;;  %10499 = vmatmul.mubr.bf16.gmra.mxu0 %v13315_v28 }
 0x385   : > { %v13309_v2 = vld [vmem:[#allocation3 + $0x240] ss:$36 sps:$4 sm:$0xff]   ;;  %v6651_v47 = vor.u32 %v6650_v37, %v6646_v38  ;;  %v6662_v39 = vshll.u32 %v6358_v31, 16  ;;  %v13321_v44 = vld [vmem:[#allocation3 + $0x28c] ss:$36 sps:$4 sm:$0xff]   ;;  %v6642_v22 = vrot.slane %v6641_v7, 4 }
 0x386   : > { %v13324_v60 = vld [vmem:[#allocation3 + $0x2dc] ss:$36 sps:$4 sm:$0xff]   ;;  %v6857_v21 = vld [vmem:[#allocation2 + $0x9c] sm:$0xe]  ;;  %v7001_v6 = vsel %vm13697_vm12, %v11571_v59, %v7000_v35  ;;  %v7002_v4 = vrot.slane %v7000_v35, 4  ;;  %v6668_v63 = vshll.u32 %v6359_v55, 16  ;;  %10330 = vmatmul.mubr.bf16.gmra.mxu1 %v13309_v2 }
 0x387   : > { %v6858_v17 = vld [vmem:[#allocation2 + $0xa0] sm:$0xf]  ;;  %v6859_v26 = vld [vmem:[#allocation2 + $0xa4] sm:$0x1]  ;;  %10506 = vmatprep.mubr.bf16.mxu0 %v13324_v60  ;;  %v6652_v41 = vrot.slane %v6651_v47, 4  ;;  %v6661_v48 = vrot.slane %v6659_v32, 4  ;;  %v6647_v14 = vsel %vm13689_vm11, %v6642_v22, %v6646_v38  ;;  %10337 = vmatprep.mubr.bf16.mxu1 %v13321_v44  ;;  %v12381_v32 = vpop.f32.mrf.mxu1 }
 0x388   : > { %7082 = vst [vmem:[#allocation3 + $0x368] sm:$0xf] %v7001_v6  ;;  %v6664_v34 = vrot.slane %v6662_v39, 5  ;;  %v6672_v54 = vshrl.u32 %v6359_v55, 16  ;;  %v7004_v29 = vsel %vm13697_vm12, %v7002_v4, %v7003_v25  ;;  %v6670_v10 = vrot.slane %v6668_v63, 5 }
 0x389   : > { %v6678_v11 = vshll.u32 %v6360_v23, 16  ;;  %v6361_v52 = vld [vmem:[#allocation2 + $0x9c] sm:$0xf]  ;;  %v7922_v58 = vld [vmem:[#allocation2 + $0x18] sm:$0xf]  ;;  %v6657_v46 = vsel %vm13689_vm11, %v6652_v41, %v6656_v61  ;;  %v11572_v51 = vrot.slane %v6857_v21, 9  ;;  %v15993_v22 = vadd.f32 %v12381_v32, %v12380_v30 }
 0x38a   : > { %6808 = vst [vmem:[#allocation3 + $0x31c] sm:$0xf] %v6647_v14  ;;  %7083 = vst [vmem:[#allocation3 + $0x38c] sm:$0xf] %v7004_v29  ;;  %v6665_v62 = vor.u32 %v6664_v34, %v6661_v48  ;;  %v6674_v18 = vrot.slane %v6672_v54, 4  ;;  %v7007_v1 = vrot.slane %v6858_v17, 5 }
 0x38b   : > { %v6362_v12 = vld [vmem:[#allocation2 + $0xa0] sm:$0xf]  ;;  %7954 = vst [vmem:[#allocation3 + $0x18] sm:$0xf] %v7922_v58  ;;  %6809 = vst [vmem:[#allocation3 + $0x340] sm:$0xf] %v6657_v46 }
 0x38c   : > { %v6680_v43 = vrot.slane %v6678_v11, 5  ;;  %v6363_v33 = vld [vmem:[#allocation2 + $0xa4] sm:$0x1]  ;;  %v13322_v19 = vld [vmem:[#allocation3 + $0x2d8] ss:$36 sps:$4 sm:$0xff]   ;;  %v6666_v15 = vrot.slane %v6665_v62, 4  ;;  %v6675_v45 = vor.u32 %v6674_v18, %v6670_v10  ;;  %v7008_v16 = vsel %vm13697_vm12, %v11572_v51, %v7007_v1 }
 0x38d   : > { %v7010_v50 = vrot.slane %v6859_v26, 5  ;;  %v6860_v27 = vld [vmem:[#allocation2 + $0xa8] sm:$0xe]  ;;  %v6861_v8 = vld [vmem:[#allocation2 + $0xac] sm:$0xf]  ;;  %v6683_v42 = vshrl.u32 %v6361_v52, 16  ;;  %10507 = vmatmul.mubr.bf16.gmra.mxu0 %v13322_v19 }
 0x38e   : > { %v6686_v9 = vshll.u32 %v6361_v52, 16  ;;  %v6692_v5 = vshll.u32 %v6362_v12, 16  ;;  %v6696_v24 = vshrl.u32 %v6362_v12, 16  ;;  %v6862_v13 = vld [vmem:[#allocation2 + $0xb0] sm:$0x1]  ;;  %v6671_v0 = vsel %vm13689_vm11, %v6666_v15, %v6670_v10 }
 0x38f   : > { %v7923_v36 = vld [vmem:[#allocation2 + $0x1c] sm:$0xf]  ;;  %v13319_v57 = vld [vmem:[#allocation3 + $0x288] ss:$36 sps:$4 sm:$0xff]   ;;  %v6676_v20 = vrot.slane %v6675_v45, 4  ;;  %v7009_v49 = vrot.slane %v7007_v1, 4 }
 0x390   : > { %v13333_v56 = vld [vmem:[#allocation3 + $0x324] ss:$36 sps:$4 sm:$0xff]   ;;  %7955 = vst [vmem:[#allocation3 + $0x3c] sm:$0xf] %v7923_v36  ;;  %6810 = vst [vmem:[#allocation3 + $0x364] sm:$0xf] %v6671_v0  ;;  %10338 = vmatmul.mubr.bf16.gmra.mxu1 %v13319_v57 }
 0x391   : > { %7084 = vst [vmem:[#allocation3 + $0x3b0] sm:$0xf] %v7008_v16  ;;  %v6685_v53 = vrot.slane %v6683_v42, 4  ;;  %v6688_v31 = vrot.slane %v6686_v9, 5  ;;  %v6694_v55 = vrot.slane %v6692_v5, 5  ;;  %v6698_v28 = vrot.slane %v6696_v24, 4  ;;  %10514 = vmatprep.mubr.bf16.mxu0 %v13333_v56 }
 0x392   : > { %v6364_v38 = vld [vmem:[#allocation2 + $0xa8] sm:$0xf]  ;;  %v13327_v37 = vld [vmem:[#allocation3 + $0x2d4] ss:$36 sps:$4 sm:$0xff]   ;;  %v6681_v23 = vsel %vm13689_vm11, %v6676_v20, %v6680_v43  ;;  %v7011_v2 = vsel %vm13697_vm12, %v7009_v49, %v7010_v50  ;;  %v6702_v7 = vshll.u32 %v6363_v33, 16  ;;  %v11573_v60 = vrot.slane %v6860_v27, 9 }
 0x393   : > { %v6365_v61 = vld [vmem:[#allocation2 + $0xac] sm:$0xf]  ;;  %6811 = vst [vmem:[#allocation3 + $0x388] sm:$0xf] %v6681_v23  ;;  %7085 = vst [vmem:[#allocation3 + $0x3d4] sm:$0xf] %v7011_v2  ;;  %v6689_v59 = vor.u32 %v6688_v31, %v6685_v53  ;;  %v6699_v35 = vor.u32 %v6698_v28, %v6694_v55  ;;  %10345 = vmatprep.mubr.bf16.mxu1 %v13327_v37 }
 0x394   : > { %v7014_v47 = vrot.slane %v6861_v8, 5  ;;  %v6366_v25 = vld [vmem:[#allocation2 + $0xb0] sm:$0x1]  ;;  %v6704_v39 = vrot.slane %v6702_v7, 5  ;;  %v7017_v21 = vrot.slane %v6862_v13, 5  ;;  %v6707_v41 = vshrl.u32 %v6364_v38, 16 }
 0x395   : > { %v6863_v44 = vld [vmem:[#allocation2 + $0xb4] sm:$0xe]  ;;  %v6690_v6 = vrot.slane %v6689_v59, 4  ;;  %v6700_v4 = vrot.slane %v6699_v35, 4  ;;  %v6864_v26 = vld [vmem:[#allocation2 + $0xb8] sm:$0xf] }
 0x396   : > { %v7015_v63 = vsel %vm13697_vm12, %v11573_v60, %v7014_v47  ;;  %v7016_v17 = vrot.slane %v7014_v47, 4  ;;  %v6710_v48 = vshll.u32 %v6364_v38, 16  ;;  %v6716_v34 = vshll.u32 %v6365_v61, 16  ;;  %v6865_v14 = vld [vmem:[#allocation2 + $0xbc] sm:$0x1] }
 0x397   : > { %7086 = vst [vmem:[#allocation3 + $0x3f8] sm:$0xf] %v7015_v63  ;;  %v6720_v54 = vshrl.u32 %v6365_v61, 16  ;;  %v6367_v29 = vld [vmem:[#allocation2 + $0xb4] sm:$0xf]  ;;  %v6695_v52 = vsel %vm13689_vm11, %v6690_v6, %v6694_v55  ;;  %v6705_v58 = vsel %vm13689_vm11, %v6700_v4, %v6704_v39  ;;  %v6726_v62 = vshll.u32 %v6366_v25, 16 }
 0x398   : > { %v13331_v10 = vld [vmem:[#allocation3 + $0x320] ss:$36 sps:$4 sm:$0xff]   ;;  %v13340_v11 = vld [vmem:[#allocation3 + $0x36c] ss:$36 sps:$4 sm:$0xff]   ;;  %v7018_v46 = vsel %vm13697_vm12, %v7016_v17, %v7017_v21  ;;  %6812 = vst [vmem:[#allocation3 + $0x3ac] sm:$0xf] %v6695_v52 }
 0x399   : > { %6813 = vst [vmem:[#allocation3 + $0x3d0] sm:$0xf] %v6705_v58  ;;  %7087 = vst [vmem:[#allocation3 + $0x41c] sm:$0xf] %v7018_v46  ;;  %v6709_v18 = vrot.slane %v6707_v41, 4  ;;  %v6712_v12 = vrot.slane %v6710_v48, 5  ;;  %10515 = vmatmul.mubr.bf16.gmra.mxu0 %v13331_v10 }
 0x39a   : > { %v6718_v43 = vrot.slane %v6716_v34, 5  ;;  %v6722_v51 = vrot.slane %v6720_v54, 4  ;;  %v13325_v33 = vld [vmem:[#allocation3 + $0x2d0] ss:$36 sps:$4 sm:$0xff]   ;;  %v11574_v19 = vrot.slane %v6863_v44, 9  ;;  %v7021_v15 = vrot.slane %v6864_v26, 5  ;;  %10522 = vmatprep.mubr.bf16.mxu0 %v13340_v11 }
 0x39b   : > { %v6368_v45 = vld [vmem:[#allocation2 + $0xb8] sm:$0xf]  ;;  %v6713_v50 = vor.u32 %v6712_v12, %v6709_v18  ;;  %v6369_v8 = vld [vmem:[#allocation2 + $0xbc] sm:$0x1]  ;;  %v6731_v42 = vshrl.u32 %v6367_v29, 16  ;;  %10346 = vmatmul.mubr.bf16.gmra.mxu1 %v13325_v33  ;;  %v6728_v9 = vrot.slane %v6726_v62, 5 }
 0x39c   : > { %v13337_v1 = vld [vmem:[#allocation3 + $0x31c] ss:$36 sps:$4 sm:$0xff]   ;;  %v6723_v27 = vor.u32 %v6722_v51, %v6718_v43  ;;  %v7022_v5 = vsel %vm13697_vm12, %v11574_v19, %v7021_v15  ;;  %v7023_v24 = vrot.slane %v7021_v15, 4  ;;  %v7024_v13 = vrot.slane %v6865_v14, 5  ;;  %v7987_v20 = vld [vmem:[#allocation2 + $0x1c] sm:$0xf] }
 0x39d   : > { %v7986_v36 = vld [vmem:[#allocation2 + $0x18] sm:$0xf]  ;;  %10353 = vmatprep.mubr.bf16.mxu1 %v13337_v1  ;;  %v6714_v30 = vrot.slane %v6713_v50, 4  ;;  %7088 = vst [vmem:[#allocation3 + $0x440] sm:$0xf] %v7022_v5  ;;  %v6733_v56 = vrot.slane %v6731_v42, 4 }
 0x39e   : > { %v6724_v57 = vrot.slane %v6723_v27, 4  ;;  %v6734_v0 = vshll.u32 %v6367_v29, 16  ;;  %v7025_v16 = vsel %vm13697_vm12, %v7023_v24, %v7024_v13  ;;  %v6740_v49 = vshll.u32 %v6368_v45, 16  ;;  %v7988_v55 = vld [vmem:[#allocation2 + $0x20] sm:$0x1] }
 0x39f   : > { %v6744_v53 = vshrl.u32 %v6368_v45, 16  ;;  %v6750_v31 = vshll.u32 %v6369_v8, 16  ;;  %v7924_v28 = vld [vmem:[#allocation2 + $0x24] sm:$0xf]  ;;  %v6719_v38 = vsel %vm13689_vm11, %v6714_v30, %v6718_v43  ;;  %7089 = vst [vmem:[#allocation3 + $0x464] sm:$0xf] %v7025_v16 }
 0x3a0   : > { %v6729_v37 = vsel %vm13689_vm11, %v6724_v57, %v6728_v9  ;;  %v6736_v23 = vrot.slane %v6734_v0, 5  ;;  %v8035_v2 = vshrl.u32 %v7986_v36, 16  ;;  %v7154_v7 = vld [vmem:[#allocation2 + $0xc] sm:$0xf]  ;;  %v7925_v61 = vld [vmem:[#allocation2 + $0x28] sm:$0xf] }
 0x3a1   : > { %7956 = vst [vmem:[#allocation3 + $0x60] sm:$0xf] %v7924_v28  ;;  %v13338_v59 = vld [vmem:[#allocation3 + $0x368] ss:$36 sps:$4 sm:$0xff]   ;;  %6814 = vst [vmem:[#allocation3 + $0x3f4] sm:$0xf] %v6719_v38 }
 0x3a2   : > { %6815 = vst [vmem:[#allocation3 + $0x418] sm:$0xf] %v6729_v37  ;;  %v6742_v35 = vrot.slane %v6740_v49, 5  ;;  %v6746_v60 = vrot.slane %v6744_v53, 4  ;;  %7957 = vst [vmem:[#allocation3 + $0x84] sm:$0xf] %v7925_v61  ;;  %v6737_v32 = vor.u32 %v6736_v23, %v6733_v56  ;;  %10523 = vmatmul.mubr.bf16.gmra.mxu0 %v13338_v59 }
 0x3a3   : > { %v13335_v47 = vld [vmem:[#allocation3 + $0x318] ss:$36 sps:$4 sm:$0xff]   ;;  %v6752_v39 = vrot.slane %v6750_v31, 5  ;;  %v8037_v44 = vrot.slane %v8035_v2, 4  ;;  %v8038_v6 = vshll.u32 %v7986_v36, 16  ;;  %v8044_v4 = vshll.u32 %v7987_v20, 16 }
 0x3a4   : > { %v13349_v25 = vld [vmem:[#allocation3 + $0x3b4] ss:$36 sps:$4 sm:$0xff]   ;;  %v6747_v21 = vor.u32 %v6746_v60, %v6742_v35  ;;  %v13343_v17 = vld [vmem:[#allocation3 + $0x364] ss:$36 sps:$4 sm:$0xff]   ;;  %v6738_v26 = vrot.slane %v6737_v32, 4  ;;  %v8048_v41 = vshrl.u32 %v7987_v20, 16  ;;  %10354 = vmatmul.mubr.bf16.gmra.mxu1 %v13335_v47 }
 0x3a5   : > { %v7155_v63 = vld [vmem:[#allocation2 + $0x10] sm:$0xf]  ;;  %10530 = vmatprep.mubr.bf16.mxu0 %v13349_v25  ;;  %v8054_v48 = vshll.u32 %v7988_v55, 16  ;;  %v7156_v34 = vld [vmem:[#allocation2 + $0x14] sm:$0x1]  ;;  %v7203_v54 = vshrl.u32 %v7154_v7, 16  ;;  %10361 = vmatprep.mubr.bf16.mxu1 %v13343_v17 }
 0x3a6   : > { %v6748_v14 = vrot.slane %v6747_v21, 4  ;;  %v8040_v29 = vrot.slane %v8038_v6, 5  ;;  %v8046_v10 = vrot.slane %v8044_v4, 5  ;;  %v7206_v11 = vshll.u32 %v7154_v7, 16  ;;  %v7650_v62 = vld [vmem:[#allocation2 + $0xc] sm:$0xe] }
 0x3a7   : > { %v6743_v52 = vsel %vm13689_vm11, %v6738_v26, %v6742_v35  ;;  %v8050_v58 = vrot.slane %v8048_v41, 4  ;;  %v7205_v46 = vrot.slane %v7203_v54, 4  ;;  %v7651_v18 = vld [vmem:[#allocation2 + $0x10] sm:$0xf]  ;;  %v13347_v12 = vld [vmem:[#allocation3 + $0x3b0] ss:$36 sps:$4 sm:$0xff]  }
 0x3a8   : > { %v6753_v43 = vsel %vm13689_vm11, %v6748_v14, %v6752_v39  ;;  %6816 = vst [vmem:[#allocation3 + $0x43c] sm:$0xf] %v6743_v52  ;;  %v8041_v51 = vor.u32 %v8040_v29, %v8037_v44  ;;  %v7208_v33 = vrot.slane %v7206_v11, 5  ;;  %v7652_v19 = vld [vmem:[#allocation2 + $0x14] sm:$0x1]  ;;  %v8056_v45 = vrot.slane %v8054_v48, 5 }
 0x3a9   : > { %6817 = vst [vmem:[#allocation3 + $0x460] sm:$0xf] %v6753_v43  ;;  %v8051_v15 = vor.u32 %v8050_v58, %v8046_v10  ;;  %v7212_v1 = vshll.u32 %v7155_v63, 16  ;;  %v7216_v50 = vshrl.u32 %v7155_v63, 16  ;;  %v7989_v27 = vld [vmem:[#allocation2 + $0x24] sm:$0xf] }
 0x3aa   : > { %v13356_v8 = vld [vmem:[#allocation3 + $0x3fc] ss:$36 sps:$4 sm:$0xff]   ;;  %v8042_v42 = vrot.slane %v8041_v51, 4  ;;  %v7209_v9 = vor.u32 %v7208_v33, %v7205_v46  ;;  %v7222_v5 = vshll.u32 %v7156_v34, 16  ;;  %v11575_v24 = vrot.slane %v7650_v62, 9  ;;  %10531 = vmatmul.mubr.bf16.gmra.mxu0 %v13347_v12 }
 0x3ab   : > { %v8052_v13 = vrot.slane %v8051_v15, 4  ;;  %v7214_v36 = vrot.slane %v7212_v1, 5  ;;  %v7218_v30 = vrot.slane %v7216_v50, 4  ;;  %v7748_v57 = vrot.slane %v7651_v18, 5  ;;  %v7990_v56 = vld [vmem:[#allocation2 + $0x28] sm:$0xf]  ;;  %10538 = vmatprep.mubr.bf16.mxu0 %v13356_v8 }
 0x3ac   : > { %v13341_v0 = vld [vmem:[#allocation3 + $0x360] ss:$36 sps:$4 sm:$0xff]   ;;  %v8047_v20 = vsel %vm13689_vm11, %v8042_v42, %v8046_v10  ;;  %v7210_v16 = vrot.slane %v7209_v9, 4  ;;  %v7751_v49 = vrot.slane %v7652_v19, 5  ;;  %v13353_v53 = vld [vmem:[#allocation3 + $0x3ac] ss:$36 sps:$4 sm:$0xff]  }
 0x3ad   : > { %v8057_v31 = vsel %vm13689_vm11, %v8052_v13, %v8056_v45  ;;  %8450 = vst [vmem:[#allocation3 + $0x1c] sm:$0xf] %v8047_v20  ;;  %v7219_v55 = vor.u32 %v7218_v30, %v7214_v36  ;;  %v7749_v28 = vsel %vm13697_vm12, %v11575_v24, %v7748_v57  ;;  %v7750_v38 = vrot.slane %v7748_v57, 4  ;;  %v7991_v37 = vld [vmem:[#allocation2 + $0x2c] sm:$0x1]  ;;  %10362 = vmatmul.mubr.bf16.gmra.mxu1 %v13341_v0 }
 0x3ae   : > { %8451 = vst [vmem:[#allocation3 + $0x40] sm:$0xf] %v8057_v31  ;;  %v7215_v23 = vsel %vm13689_vm11, %v7210_v16, %v7214_v36  ;;  %7890 = vst [vmem:[#allocation3 + $0x14] sm:$0xf] %v7749_v28  ;;  %v8059_v2 = vshrl.u32 %v7989_v27, 16  ;;  %v8062_v7 = vshll.u32 %v7989_v27, 16  ;;  %10369 = vmatprep.mubr.bf16.mxu1 %v13353_v53 }
 0x3af   : > { %v8068_v61 = vshll.u32 %v7990_v56, 16  ;;  %v7157_v59 = vld [vmem:[#allocation2 + $0x18] sm:$0xf]  ;;  %v7220_v35 = vrot.slane %v7219_v55, 4  ;;  %v7224_v60 = vrot.slane %v7222_v5, 5  ;;  %v7752_v47 = vsel %vm13697_vm12, %v7750_v38, %v7751_v49 }
 0x3b0   : > { %7618 = vst [vmem:[#allocation3 + $0x10] sm:$0xf] %v7215_v23  ;;  %v8072_v25 = vshrl.u32 %v7990_v56, 16  ;;  %v7158_v32 = vld [vmem:[#allocation2 + $0x1c] sm:$0xf]  ;;  %v8061_v21 = vrot.slane %v8059_v2, 4 }
 0x3b1   : > { %v13354_v39 = vld [vmem:[#allocation3 + $0x3f8] ss:$36 sps:$4 sm:$0xff]   ;;  %7891 = vst [vmem:[#allocation3 + $0x38] sm:$0xf] %v7752_v47  ;;  %v7159_v44 = vld [vmem:[#allocation2 + $0x20] sm:$0x1]  ;;  %v7225_v4 = vsel %vm13689_vm11, %v7220_v35, %v7224_v60 }
 0x3b2   : > { %v13366_v6 = vld [vmem:[#allocation3 + $0x444] ss:$36 sps:$4 sm:$0xff]   ;;  %v8064_v63 = vrot.slane %v8062_v7, 5  ;;  %v8070_v17 = vrot.slane %v8068_v61, 5  ;;  %v8074_v26 = vrot.slane %v8072_v25, 4  ;;  %v8078_v34 = vshll.u32 %v7991_v37, 16  ;;  %10539 = vmatmul.mubr.bf16.gmra.mxu0 %v13354_v39 }
 0x3b3   : > { %v7926_v41 = vld [vmem:[#allocation2 + $0x30] sm:$0xf]  ;;  %v13351_v48 = vld [vmem:[#allocation3 + $0x3a8] ss:$36 sps:$4 sm:$0xff]   ;;  %7619 = vst [vmem:[#allocation3 + $0x34] sm:$0xf] %v7225_v4  ;;  %10546 = vmatprep.mubr.bf16.mxu0 %v13366_v6 }
 0x3b4   : > { %v7227_v54 = vshrl.u32 %v7157_v59, 16  ;;  %v7230_v14 = vshll.u32 %v7157_v59, 16  ;;  %v7236_v29 = vshll.u32 %v7158_v32, 16  ;;  %v7927_v10 = vld [vmem:[#allocation2 + $0x34] sm:$0xf]  ;;  %v8065_v11 = vor.u32 %v8064_v63, %v8061_v21 }
 0x3b5   : > { %7958 = vst [vmem:[#allocation3 + $0xa8] sm:$0xf] %v7926_v41  ;;  %v8075_v52 = vor.u32 %v8074_v26, %v8070_v17  ;;  %v7240_v58 = vshrl.u32 %v7158_v32, 16  ;;  %v7653_v46 = vld [vmem:[#allocation2 + $0x18] sm:$0xe]  ;;  %v7246_v15 = vshll.u32 %v7159_v44, 16  ;;  %10370 = vmatmul.mubr.bf16.gmra.mxu1 %v13351_v48 }
 0x3b6   : > { %v7654_v62 = vld [vmem:[#allocation2 + $0x1c] sm:$0xf]  ;;  %7959 = vst [vmem:[#allocation3 + $0xcc] sm:$0xf] %v7927_v10  ;;  %v7229_v18 = vrot.slane %v7227_v54, 4  ;;  %v7232_v12 = vrot.slane %v7230_v14, 5 }
 0x3b7   : > { %v7238_v43 = vrot.slane %v7236_v29, 5  ;;  %v7992_v51 = vld [vmem:[#allocation2 + $0x30] sm:$0xf]  ;;  %v8066_v19 = vrot.slane %v8065_v11, 4  ;;  %v8076_v45 = vrot.slane %v8075_v52, 4  ;;  %v8080_v1 = vrot.slane %v8078_v34, 5 }
 0x3b8   : > { %v13359_v33 = vld [vmem:[#allocation3 + $0x3f4] ss:$36 sps:$4 sm:$0xff]   ;;  %v7233_v50 = vor.u32 %v7232_v12, %v7229_v18  ;;  %v7242_v27 = vrot.slane %v7240_v58, 4  ;;  %v7655_v8 = vld [vmem:[#allocation2 + $0x20] sm:$0x1]  ;;  %v11576_v9 = vrot.slane %v7653_v46, 9 }
 0x3b9   : > { %10377 = vmatprep.mubr.bf16.mxu1 %v13359_v33  ;;  %v8071_v42 = vsel %vm13689_vm11, %v8066_v19, %v8070_v17  ;;  %v7755_v5 = vrot.slane %v7654_v62, 5  ;;  %v8083_v24 = vshrl.u32 %v7992_v51, 16  ;;  %v13364_v13 = vld [vmem:[#allocation3 + $0x440] ss:$36 sps:$4 sm:$0xff]   ;;  %v8081_v36 = vsel %vm13689_vm11, %v8076_v45, %v8080_v1  ;;  %v7993_v56 = vld [vmem:[#allocation2 + $0x34] sm:$0xf] }
 0x3ba   : > { %8452 = vst [vmem:[#allocation3 + $0x64] sm:$0xf] %v8071_v42  ;;  %v7234_v30 = vrot.slane %v7233_v50, 4  ;;  %v7243_v57 = vor.u32 %v7242_v27, %v7238_v43  ;;  %v7994_v0 = vld [vmem:[#allocation2 + $0x38] sm:$0x1]  ;;  %v8086_v20 = vshll.u32 %v7992_v51, 16  ;;  %10547 = vmatmul.mubr.bf16.gmra.mxu0 %v13364_v13 }
 0x3bb   : > { %v13378_v16 = vld [vmem:[#allocation3 + $0x1c] ss:$36 sps:$4 sm:$0xff]   ;;  %8453 = vst [vmem:[#allocation3 + $0x88] sm:$0xf] %v8081_v36  ;;  %v7248_v49 = vrot.slane %v7246_v15, 5  ;;  %v7756_v53 = vsel %vm13697_vm12, %v11576_v9, %v7755_v5  ;;  %v7757_v31 = vrot.slane %v7755_v5, 4 }
 0x3bc   : > { %v7758_v55 = vrot.slane %v7655_v8, 5  ;;  %v7160_v28 = vld [vmem:[#allocation2 + $0x24] sm:$0xf]  ;;  %v13357_v38 = vld [vmem:[#allocation3 + $0x3f0] ss:$36 sps:$4 sm:$0xff]   ;;  %v7239_v37 = vsel %vm13689_vm11, %v7234_v30, %v7238_v43  ;;  %v7244_v23 = vrot.slane %v7243_v57, 4  ;;  %10748 = vmatprep.mubr.bf16.mxu0 %v13378_v16 }
 0x3bd   : > { %7892 = vst [vmem:[#allocation3 + $0x5c] sm:$0xf] %v7756_v53  ;;  %v8085_v2 = vrot.slane %v8083_v24, 4  ;;  %v8088_v7 = vrot.slane %v8086_v20, 5  ;;  %v7161_v61 = vld [vmem:[#allocation2 + $0x28] sm:$0xf]  ;;  %10378 = vmatmul.mubr.bf16.gmra.mxu1 %v13357_v38 }
 0x3be   : > { %v13371_v59 = vld [vmem:[#allocation3 + $0x43c] ss:$36 sps:$4 sm:$0xff]   ;;  %7620 = vst [vmem:[#allocation3 + $0x58] sm:$0xf] %v7239_v37  ;;  %v7759_v35 = vsel %vm13697_vm12, %v7757_v31, %v7758_v55  ;;  %v8092_v60 = vshll.u32 %v7993_v56, 16  ;;  %v8096_v47 = vshrl.u32 %v7993_v56, 16  ;;  %v7249_v39 = vsel %vm13689_vm11, %v7244_v23, %v7248_v49 }
 0x3bf   : > { %v8102_v25 = vshll.u32 %v7994_v0, 16  ;;  %v7162_v32 = vld [vmem:[#allocation2 + $0x2c] sm:$0x1]  ;;  %7893 = vst [vmem:[#allocation3 + $0x80] sm:$0xf] %v7759_v35  ;;  %v8089_v21 = vor.u32 %v8088_v7, %v8085_v2  ;;  %v7251_v44 = vshrl.u32 %v7160_v28, 16  ;;  %10385 = vmatprep.mubr.bf16.mxu1 %v13371_v59 }
 0x3c0   : > { %v7254_v6 = vshll.u32 %v7160_v28, 16  ;;  %v7656_v4 = vld [vmem:[#allocation2 + $0x24] sm:$0xe]  ;;  %v7657_v63 = vld [vmem:[#allocation2 + $0x28] sm:$0xf]  ;;  %v8094_v26 = vrot.slane %v8092_v60, 5 }
 0x3c1   : > { %v7928_v17 = vld [vmem:[#allocation2 + $0x3c] sm:$0xf]  ;;  %7621 = vst [vmem:[#allocation3 + $0x7c] sm:$0xf] %v7249_v39  ;;  %v8098_v41 = vrot.slane %v8096_v47, 4  ;;  %v7260_v48 = vshll.u32 %v7161_v61, 16 }
 0x3c2   : > { %v7929_v34 = vld [vmem:[#allocation2 + $0x40] sm:$0xf]  ;;  %7960 = vst [vmem:[#allocation3 + $0xf0] sm:$0xf] %v7928_v17  ;;  %v8090_v54 = vrot.slane %v8089_v21, 4  ;;  %v7253_v14 = vrot.slane %v7251_v44, 4 }
 0x3c3   : > { %v7256_v29 = vrot.slane %v7254_v6, 5  ;;  %v7264_v10 = vshrl.u32 %v7161_v61, 16  ;;  %v7658_v11 = vld [vmem:[#allocation2 + $0x2c] sm:$0x1]  ;;  %7961 = vst [vmem:[#allocation3 + $0x114] sm:$0xf] %v7929_v34  ;;  %v8099_v52 = vor.u32 %v8098_v41, %v8094_v26 }
 0x3c4   : > { %v8104_v58 = vrot.slane %v8102_v25, 5  ;;  %v7262_v46 = vrot.slane %v7260_v48, 5  ;;  %v7995_v62 = vld [vmem:[#allocation2 + $0x3c] sm:$0xf]  ;;  %v8095_v18 = vsel %vm13689_vm11, %v8090_v54, %v8094_v26  ;;  %v7270_v51 = vshll.u32 %v7162_v32, 16 }
 0x3c5   : > { %v7257_v12 = vor.u32 %v7256_v29, %v7253_v14  ;;  %v7266_v43 = vrot.slane %v7264_v10, 4  ;;  %v7996_v33 = vld [vmem:[#allocation2 + $0x40] sm:$0xf]  ;;  %v13376_v19 = vld [vmem:[#allocation3 + $0x18] ss:$36 sps:$4 sm:$0xff]   ;;  %v8100_v15 = vrot.slane %v8099_v52, 4 }
 0x3c6   : > { %8454 = vst [vmem:[#allocation3 + $0xac] sm:$0xf] %v8095_v18  ;;  %v11577_v45 = vrot.slane %v7656_v4, 9  ;;  %v7762_v1 = vrot.slane %v7657_v63, 5  ;;  %v7765_v50 = vrot.slane %v7658_v11, 5  ;;  %v8107_v5 = vshrl.u32 %v7995_v62, 16  ;;  %10749 = vmatmul.mubr.bf16.vlgmr.msra.gmra.mxu0 %v13376_v19 }
 0x3c7   : > { %v13369_v27 = vld [vmem:[#allocation3 + $0x438] ss:$36 sps:$4 sm:$0xff]   ;;  %v13387_v8 = vld [vmem:[#allocation3 + $0x64] ss:$36 sps:$4 sm:$0xff]   ;;  %v7258_v42 = vrot.slane %v7257_v12, 4  ;;  %v7267_v9 = vor.u32 %v7266_v43, %v7262_v46  ;;  %v8110_v24 = vshll.u32 %v7995_v62, 16  ;;  %v8105_v36 = vsel %vm13689_vm11, %v8100_v15, %v8104_v58 }
 0x3c8   : > { %v13381_v13 = vld [vmem:[#allocation3 + $0x14] ss:$36 sps:$4 sm:$0xff]   ;;  %v7763_v30 = vsel %vm13697_vm12, %v11577_v45, %v7762_v1  ;;  %v7764_v57 = vrot.slane %v7762_v1, 4  ;;  %v7997_v56 = vld [vmem:[#allocation2 + $0x44] sm:$0x1]  ;;  %v8116_v0 = vshll.u32 %v7996_v33, 16  ;;  %10756 = vmatprep.mubr.bf16.mxu0 %v13387_v8  ;;  %10386 = vmatmul.mubr.bf16.gmra.mxu1 %v13369_v27 }
 0x3c9   : > { %v7163_v20 = vld [vmem:[#allocation2 + $0x30] sm:$0xf]  ;;  %8455 = vst [vmem:[#allocation3 + $0xd0] sm:$0xf] %v8105_v36  ;;  %v7263_v16 = vsel %vm13689_vm11, %v7258_v42, %v7262_v46  ;;  %v7268_v49 = vrot.slane %v7267_v9, 4  ;;  %v7272_v53 = vrot.slane %v7270_v51, 5  ;;  %10587 = vmatprep.mubr.bf16.mxu1 %v13381_v13 }
 0x3ca   : > { %7894 = vst [vmem:[#allocation3 + $0xa4] sm:$0xf] %v7763_v30  ;;  %v7164_v31 = vld [vmem:[#allocation2 + $0x34] sm:$0xf]  ;;  %7622 = vst [vmem:[#allocation3 + $0xa0] sm:$0xf] %v7263_v16  ;;  %v7766_v55 = vsel %vm13697_vm12, %v7764_v57, %v7765_v50 }
 0x3cb   : > { %v8109_v28 = vrot.slane %v8107_v5, 4  ;;  %v8112_v38 = vrot.slane %v8110_v24, 5  ;;  %v8118_v37 = vrot.slane %v8116_v0, 5  ;;  %v7165_v23 = vld [vmem:[#allocation2 + $0x38] sm:$0x1]  ;;  %v7273_v2 = vsel %vm13689_vm11, %v7268_v49, %v7272_v53  ;;  %v13397_v14 = vld [vmem:[%s16986_s3 + $0x230] sm:$0xff]  }
 0x3cc   : > { %7895 = vst [vmem:[#allocation3 + $0xc8] sm:$0xf] %v7766_v55  ;;  %v8120_v7 = vshrl.u32 %v7996_v33, 16  ;;  %v8126_v61 = vshll.u32 %v7997_v56, 16  ;;  %v7275_v59 = vshrl.u32 %v7163_v20, 16  ;;  %v7278_v47 = vshll.u32 %v7163_v20, 16 }
 0x3cd   : > { %v7659_v35 = vld [vmem:[#allocation2 + $0x30] sm:$0xe]  ;;  %7623 = vst [vmem:[#allocation3 + $0xc4] sm:$0xf] %v7273_v2  ;;  %v8113_v60 = vor.u32 %v8112_v38, %v8109_v28  ;;  %v7284_v25 = vshll.u32 %v7164_v31, 16  ;;  %v7288_v32 = vshrl.u32 %v7164_v31, 16 }
 0x3ce   : > { %v7660_v39 = vld [vmem:[#allocation2 + $0x34] sm:$0xf]  ;;  %v8122_v21 = vrot.slane %v8120_v7, 4  ;;  %v7277_v44 = vrot.slane %v7275_v59, 4  ;;  %v7294_v6 = vshll.u32 %v7165_v23, 16  ;;  %v7280_v17 = vrot.slane %v7278_v47, 5 }
 0x3cf   : > { %v7661_v4 = vld [vmem:[#allocation2 + $0x38] sm:$0x1]  ;;  %v8114_v63 = vrot.slane %v8113_v60, 4  ;;  %v7286_v26 = vrot.slane %v7284_v25, 5  ;;  %v7290_v41 = vrot.slane %v7288_v32, 4  ;;  %v11578_v10 = vrot.slane %v7659_v35, 9 }
 0x3d0   : > { %v7930_v48 = vld [vmem:[#allocation2 + $0x48] sm:$0xf]  ;;  %v13385_v54 = vld [vmem:[#allocation3 + $0x60] ss:$36 sps:$4 sm:$0xff]   ;;  %v8123_v29 = vor.u32 %v8122_v21, %v8118_v37  ;;  %v7769_v11 = vrot.slane %v7660_v39, 5  ;;  %v8128_v18 = vrot.slane %v8126_v61, 5  ;;  %v7281_v12 = vor.u32 %v7280_v17, %v7277_v44 }
 0x3d1   : > { %v13379_v34 = vld [vmem:[#allocation3 + $0x10] ss:$36 sps:$4 sm:$0xff]   ;;  %7962 = vst [vmem:[#allocation3 + $0x138] sm:$0xf] %v7930_v48  ;;  %v13390_v58 = vld [vmem:[#allocation3 + $0x5c] ss:$36 sps:$4 sm:$0xff]   ;;  %v8119_v62 = vsel %vm13689_vm11, %v8114_v63, %v8118_v37  ;;  %v7291_v43 = vor.u32 %v7290_v41, %v7286_v26  ;;  %10757 = vmatmul.mubr.bf16.gmra.mxu0 %v13385_v54 }
 0x3d2   : > { %v7931_v52 = vld [vmem:[#allocation2 + $0x4c] sm:$0xf]  ;;  %v13393_v46 = vld [vmem:[#allocation3 + $0xac] ss:$36 sps:$4 sm:$0xff]   ;;  %v8124_v51 = vrot.slane %v8123_v29, 4  ;;  %v7770_v33 = vsel %vm13697_vm12, %v11578_v10, %v7769_v11  ;;  %v7771_v19 = vrot.slane %v7769_v11, 4  ;;  %10588 = vmatmul.mubr.bf16.vlgmr.msra.gmra.mxu1 %v13379_v34 }
 0x3d3   : > { %7963 = vst [vmem:[#allocation3 + $0x15c] sm:$0xf] %v7931_v52  ;;  %8456 = vst [vmem:[#allocation3 + $0xf4] sm:$0xf] %v8119_v62  ;;  %v7772_v15 = vrot.slane %v7661_v4, 5  ;;  %10764 = vmatprep.mubr.bf16.mxu0 %v13393_v46  ;;  %v7282_v1 = vrot.slane %v7281_v12, 4  ;;  %10595 = vmatprep.mubr.bf16.mxu1 %v13390_v58 }
 0x3d4   : > { %v7998_v45 = vld [vmem:[#allocation2 + $0x48] sm:$0xf]  ;;  %v7292_v50 = vrot.slane %v7291_v43, 4  ;;  %v7296_v27 = vrot.slane %v7294_v6, 5  ;;  %7896 = vst [vmem:[#allocation3 + $0xec] sm:$0xf] %v7770_v33  ;;  %v8129_v42 = vsel %vm13689_vm11, %v8124_v51, %v8128_v18 }
 0x3d5   : > { %v7999_v8 = vld [vmem:[#allocation2 + $0x4c] sm:$0xf]  ;;  %v7773_v9 = vsel %vm13697_vm12, %v7771_v19, %v7772_v15  ;;  %v8000_v5 = vld [vmem:[#allocation2 + $0x50] sm:$0x1]  ;;  %v8131_v24 = vshrl.u32 %v7998_v45, 16  ;;  %v13499_v13 = vld [vmem:[%s16986_s3 + $0x238] sm:$0xff]   ;;  %v7287_v36 = vsel %vm13689_vm11, %v7282_v1, %v7286_v26 }
 0x3d6   : > { %12885 = vmatpush3.bf16.msra.mxu1 %v13499_v13  ;;  %8457 = vst [vmem:[#allocation3 + $0x118] sm:$0xf] %v8129_v42  ;;  %v7297_v30 = vsel %vm13689_vm11, %v7292_v50, %v7296_v27  ;;  %7897 = vst [vmem:[#allocation3 + $0x110] sm:$0xf] %v7773_v9  ;;  %v8134_v57 = vshll.u32 %v7998_v45, 16  ;;  %v8140_v56 = vshll.u32 %v7999_v8, 16 }
 0x3d7   : > { %v7166_v0 = vld [vmem:[#allocation2 + $0x3c] sm:$0xf]  ;;  %v7167_v20 = vld [vmem:[#allocation2 + $0x40] sm:$0xf]  ;;  %12886 = vmatprep.subr.bf16.mxu1 %v13397_v14  ;;  %7624 = vst [vmem:[#allocation3 + $0xe8] sm:$0xf] %v7287_v36 }
 0x3d8   : > { %v13391_v16 = vld [vmem:[#allocation3 + $0xa8] ss:$36 sps:$4 sm:$0xff]   ;;  %7625 = vst [vmem:[#allocation3 + $0x10c] sm:$0xf] %v7297_v30  ;;  %v8133_v49 = vrot.slane %v8131_v24, 4  ;;  %v8144_v53 = vshrl.u32 %v7999_v8, 16 }
 0x3d9   : > { %v7168_v31 = vld [vmem:[#allocation2 + $0x44] sm:$0x1]  ;;  %v7299_v55 = vshrl.u32 %v7166_v0, 16  ;;  %v13410_v28 = vld [vmem:[%s16986_s3 + $0x228] sm:$0xff]   ;;  %v8136_v38 = vrot.slane %v8134_v57, 5  ;;  %v8142_v37 = vrot.slane %v8140_v56, 5  ;;  %10765 = vmatmul.mubr.bf16.gmra.mxu0 %v13391_v16 }
 0x3da   : > { %v7302_v23 = vshll.u32 %v7166_v0, 16  ;;  %v7308_v2 = vshll.u32 %v7167_v20, 16  ;;  %v7662_v7 = vld [vmem:[#allocation2 + $0x3c] sm:$0xe]  ;;  %v13388_v61 = vld [vmem:[#allocation3 + $0x58] ss:$36 sps:$4 sm:$0xff]   ;;  %12887 = vmatpush3.bf16.msra.mxu1 %v13397_v14 }
 0x3db   : > { %v8146_v59 = vrot.slane %v8144_v53, 4  ;;  %v8150_v35 = vshll.u32 %v8000_v5, 16  ;;  %v7301_v60 = vrot.slane %v7299_v55, 4  ;;  %v7312_v47 = vshrl.u32 %v7167_v20, 16  ;;  %v7663_v25 = vld [vmem:[#allocation2 + $0x40] sm:$0xf]  ;;  %12888 = vmatprep.subr.bf16.mxu1 %v13410_v28  ;;  %10596 = vmatmul.mubr.bf16.gmra.mxu1 %v13388_v61  ;;  %v12492_v53 = vpop.f32.mrf.mxu0 }
 0x3dc   : > { %v8137_v32 = vor.u32 %v8136_v38, %v8133_v49  ;;  %v7304_v39 = vrot.slane %v7302_v23, 5  ;;  %v7310_v21 = vrot.slane %v7308_v2, 5  ;;  %v7318_v44 = vshll.u32 %v7168_v31, 16  ;;  %v7664_v6 = vld [vmem:[#allocation2 + $0x44] sm:$0x1]  ;;  %v13436_v51 = vld [vmem:[%s16986_s3 + $0x218] sm:$0xff]  }
 0x3dd   : > { %v8147_v4 = vor.u32 %v8146_v59, %v8142_v37  ;;  %v7314_v63 = vrot.slane %v7312_v47, 4  ;;  %v11579_v17 = vrot.slane %v7662_v7, 9  ;;  %v7776_v26 = vrot.slane %v7663_v25, 5  ;;  %v7932_v41 = vld [vmem:[#allocation2 + $0x54] sm:$0xf]  ;;  %v13423_v48 = vld [vmem:[%s16986_s3 + $0x220] sm:$0xff]  }
 0x3de   : > { %v13396_v34 = vld [vmem:[#allocation3 + $0xa4] ss:$36 sps:$4 sm:$0xff]   ;;  %v8138_v54 = vrot.slane %v8137_v32, 4  ;;  %v7305_v29 = vor.u32 %v7304_v39, %v7301_v60  ;;  %v7933_v14 = vld [vmem:[#allocation2 + $0x58] sm:$0xf]  ;;  %v8152_v52 = vrot.slane %v8150_v35, 5  ;;  %12889 = vmatpush3.bf16.msra.mxu1 %v13410_v28  ;;  %v12493_v35 = vpop.f32.mrf.mxu0 }
 0x3df   : > { %7964 = vst [vmem:[#allocation3 + $0x180] sm:$0xf] %v7932_v41  ;;  %v13400_v10 = vld [vmem:[#allocation3 + $0xf4] ss:$36 sps:$4 sm:$0xff]   ;;  %v8148_v11 = vrot.slane %v8147_v4, 4  ;;  %v7315_v58 = vor.u32 %v7314_v63, %v7310_v21  ;;  %v7777_v46 = vsel %vm13697_vm12, %v11579_v17, %v7776_v26  ;;  %10603 = vmatprep.mubr.bf16.mxu1 %v13396_v34  ;;  %v7778_v12 = vrot.slane %v7776_v26, 4  ;;  %12890 = vmatprep.subr.bf16.mxu1 %v13423_v48 }
 0x3e0   : > { %7965 = vst [vmem:[#allocation3 + $0x1a4] sm:$0xf] %v7933_v14  ;;  %v8143_v62 = vsel %vm13689_vm11, %v8138_v54, %v8142_v37  ;;  %v7306_v18 = vrot.slane %v7305_v29, 4  ;;  %v7779_v43 = vrot.slane %v7664_v6, 5  ;;  %7898 = vst [vmem:[#allocation3 + $0x134] sm:$0xf] %v7777_v46  ;;  %10772 = vmatprep.mubr.bf16.mxu0 %v13400_v10 }
 0x3e1   : > { %v13398_v33 = vld [vmem:[#allocation3 + $0xf0] ss:$36 sps:$4 sm:$0xff]   ;;  %v8153_v19 = vsel %vm13689_vm11, %v8148_v11, %v8152_v52  ;;  %8458 = vst [vmem:[#allocation3 + $0x13c] sm:$0xf] %v8143_v62  ;;  %v7316_v15 = vrot.slane %v7315_v58, 4  ;;  %v7320_v45 = vrot.slane %v7318_v44, 5 }
 0x3e2   : > { %v8001_v1 = vld [vmem:[#allocation2 + $0x54] sm:$0xf]  ;;  %8459 = vst [vmem:[#allocation3 + $0x160] sm:$0xf] %v8153_v19  ;;  %v7311_v50 = vsel %vm13689_vm11, %v7306_v18, %v7310_v21  ;;  %v7780_v27 = vsel %vm13697_vm12, %v7778_v12, %v7779_v43  ;;  %v8002_v8 = vld [vmem:[#allocation2 + $0x58] sm:$0xf]  ;;  %12891 = vmatpush3.bf16.msra.mxu1 %v13423_v48  ;;  %10773 = vmatmul.mubr.bf16.gmra.mxu0 %v13398_v33 }
 0x3e3   : > { %v8003_v42 = vld [vmem:[#allocation2 + $0x5c] sm:$0x1]  ;;  %v8155_v9 = vshrl.u32 %v8001_v1, 16  ;;  %v8158_v5 = vshll.u32 %v8001_v1, 16  ;;  %v7321_v24 = vsel %vm13689_vm11, %v7316_v15, %v7320_v45  ;;  %7626 = vst [vmem:[#allocation3 + $0x130] sm:$0xf] %v7311_v50  ;;  %12892 = vmatprep.subr.bf16.mxu1 %v13436_v51  ;;  %v16096_v48 = vadd.f32 %v12493_v35, %v12492_v53 }
 0x3e4   : > { %7899 = vst [vmem:[#allocation3 + $0x158] sm:$0xf] %v7780_v27  ;;  %v8164_v13 = vshll.u32 %v8002_v8, 16  ;;  %v8168_v36 = vshrl.u32 %v8002_v8, 16  ;;  %v8174_v30 = vshll.u32 %v8003_v42, 16  ;;  %v13449_v56 = vld [vmem:[%s16986_s3 + $0x210] sm:$0xff]  }
 0x3e5   : > { %v7169_v57 = vld [vmem:[#allocation2 + $0x48] sm:$0xf]  ;;  %7627 = vst [vmem:[#allocation3 + $0x154] sm:$0xf] %v7321_v24  ;;  %v8157_v0 = vrot.slane %v8155_v9, 4  ;;  %v8160_v20 = vrot.slane %v8158_v5, 5 }
 0x3e6   : > { %v7170_v16 = vld [vmem:[#allocation2 + $0x4c] sm:$0xf]  ;;  %v7171_v49 = vld [vmem:[#allocation2 + $0x50] sm:$0x1]  ;;  %v13394_v31 = vld [vmem:[#allocation3 + $0xa0] ss:$36 sps:$4 sm:$0xff]   ;;  %12893 = vmatpush3.bf16.msra.mxu1 %v13436_v51 }
 0x3e7   : > { %v8166_v55 = vrot.slane %v8164_v13, 5  ;;  %v8170_v28 = vrot.slane %v8168_v36, 4  ;;  %v8176_v38 = vrot.slane %v8174_v30, 5  ;;  %v7323_v37 = vshrl.u32 %v7169_v57, 16  ;;  %v13403_v23 = vld [vmem:[#allocation3 + $0xec] ss:$36 sps:$4 sm:$0xff]   ;;  %10604 = vmatmul.mubr.bf16.gmra.mxu1 %v13394_v31  ;;  %12894 = vmatprep.subr.bf16.mxu1 %v13449_v56 }
 0x3e8   : > { %v8161_v2 = vor.u32 %v8160_v20, %v8157_v0  ;;  %v7326_v7 = vshll.u32 %v7169_v57, 16  ;;  %v7332_v61 = vshll.u32 %v7170_v16, 16  ;;  %v7336_v59 = vshrl.u32 %v7170_v16, 16  ;;  %v7665_v32 = vld [vmem:[#allocation2 + $0x48] sm:$0xe]  ;;  %10611 = vmatprep.mubr.bf16.mxu1 %v13403_v23  ;;  %v13475_v18 = vld [vmem:[%s16986_s3 + $0x200] sm:$0xff]  }
 0x3e9   : > { %v8171_v60 = vor.u32 %v8170_v28, %v8166_v55  ;;  %v7325_v47 = vrot.slane %v7323_v37, 4  ;;  %v7342_v25 = vshll.u32 %v7171_v49, 16  ;;  %v7666_v39 = vld [vmem:[#allocation2 + $0x4c] sm:$0xf]  ;;  %v13406_v17 = vld [vmem:[#allocation3 + $0x13c] ss:$36 sps:$4 sm:$0xff]  }
 0x3ea   : > { %v8162_v21 = vrot.slane %v8161_v2, 4  ;;  %v7328_v44 = vrot.slane %v7326_v7, 5  ;;  %v7334_v6 = vrot.slane %v7332_v61, 5  ;;  %v7338_v4 = vrot.slane %v7336_v59, 4  ;;  %v13462_v63 = vld [vmem:[%s16986_s3 + $0x208] sm:$0xff]   ;;  %10780 = vmatprep.mubr.bf16.mxu0 %v13406_v17  ;;  %12895 = vmatpush3.bf16.msra.mxu1 %v13449_v56 }
 0x3eb   : > { %v8172_v26 = vrot.slane %v8171_v60, 4  ;;  %v7667_v41 = vld [vmem:[#allocation2 + $0x50] sm:$0x1]  ;;  %v7934_v14 = vld [vmem:[#allocation2 + $0x60] sm:$0xf]  ;;  %v11580_v46 = vrot.slane %v7665_v32, 9  ;;  %12896 = vmatprep.subr.bf16.mxu1 %v13462_v63 }
 0x3ec   : > { %v8167_v34 = vsel %vm13689_vm11, %v8162_v21, %v8166_v55  ;;  %v7329_v54 = vor.u32 %v7328_v44, %v7325_v47  ;;  %v7339_v29 = vor.u32 %v7338_v4, %v7334_v6  ;;  %v7935_v10 = vld [vmem:[#allocation2 + $0x64] sm:$0xf]  ;;  %v13404_v52 = vld [vmem:[#allocation3 + $0x138] ss:$36 sps:$4 sm:$0xff]   ;;  %v7783_v62 = vrot.slane %v7666_v39, 5 }
 0x3ed   : > { %v13401_v11 = vld [vmem:[#allocation3 + $0xe8] ss:$36 sps:$4 sm:$0xff]   ;;  %v8177_v58 = vsel %vm13689_vm11, %v8172_v26, %v8176_v38  ;;  %8460 = vst [vmem:[#allocation3 + $0x184] sm:$0xf] %v8167_v34  ;;  %7966 = vst [vmem:[#allocation3 + $0x1c8] sm:$0xf] %v7934_v14  ;;  %10781 = vmatmul.mubr.bf16.gmra.mxu0 %v13404_v52 }
 0x3ee   : > { %7967 = vst [vmem:[#allocation3 + $0x1ec] sm:$0xf] %v7935_v10  ;;  %v13409_v12 = vld [vmem:[#allocation3 + $0x134] ss:$36 sps:$4 sm:$0xff]   ;;  %8461 = vst [vmem:[#allocation3 + $0x1a8] sm:$0xf] %v8177_v58  ;;  %v7784_v45 = vsel %vm13697_vm12, %v11580_v46, %v7783_v62  ;;  %12897 = vmatpush3.bf16.msra.mxu1 %v13462_v63 }
 0x3ef   : > { %v7330_v43 = vrot.slane %v7329_v54, 4  ;;  %v7340_v51 = vrot.slane %v7339_v29, 4  ;;  %v7344_v33 = vrot.slane %v7342_v25, 5  ;;  %v7786_v19 = vrot.slane %v7667_v41, 5  ;;  %v8004_v15 = vld [vmem:[#allocation2 + $0x60] sm:$0xf]  ;;  %10612 = vmatmul.mubr.bf16.gmra.mxu1 %v13401_v11  ;;  %12898 = vmatprep.subr.bf16.mxu1 %v13475_v18 }
 0x3f0   : > { %v7785_v1 = vrot.slane %v7783_v62, 4  ;;  %v8005_v50 = vld [vmem:[#allocation2 + $0x64] sm:$0xf]  ;;  %v8006_v27 = vld [vmem:[#allocation2 + $0x68] sm:$0x1]  ;;  %v8179_v8 = vshrl.u32 %v8004_v15, 16  ;;  %10619 = vmatprep.mubr.bf16.mxu1 %v13409_v12 }
 0x3f1   : > { %v7335_v42 = vsel %vm13689_vm11, %v7330_v43, %v7334_v6  ;;  %v7345_v9 = vsel %vm13689_vm11, %v7340_v51, %v7344_v33  ;;  %7900 = vst [vmem:[#allocation3 + $0x17c] sm:$0xf] %v7784_v45  ;;  %v8182_v5 = vshll.u32 %v8004_v15, 16  ;;  %v8188_v24 = vshll.u32 %v8005_v50, 16  ;;  %v7172_v13 = vld [vmem:[#allocation2 + $0x54] sm:$0xf] }
 0x3f2   : > { %v7173_v36 = vld [vmem:[#allocation2 + $0x58] sm:$0xf]  ;;  %7628 = vst [vmem:[#allocation3 + $0x178] sm:$0xf] %v7335_v42  ;;  %7629 = vst [vmem:[#allocation3 + $0x19c] sm:$0xf] %v7345_v9  ;;  %v7787_v30 = vsel %vm13697_vm12, %v7785_v1, %v7786_v19  ;;  %12899 = vmatpush3.bf16.msra.mxu1 %v13475_v18 }
 0x3f3   : > { %v8181_v57 = vrot.slane %v8179_v8, 4  ;;  %v8192_v56 = vshrl.u32 %v8005_v50, 16  ;;  %v8198_v0 = vshll.u32 %v8006_v27, 16  ;;  %v7174_v20 = vld [vmem:[#allocation2 + $0x5c] sm:$0x1]  ;;  %v8184_v16 = vrot.slane %v8182_v5, 5 }
 0x3f4   : > { %7901 = vst [vmem:[#allocation3 + $0x1a0] sm:$0xf] %v7787_v30  ;;  %v8190_v49 = vrot.slane %v8188_v24, 5  ;;  %v7347_v53 = vshrl.u32 %v7172_v13, 16  ;;  %v7350_v31 = vshll.u32 %v7172_v13, 16  ;;  %v7356_v38 = vshll.u32 %v7173_v36, 16 }
 0x3f5   : > { %v8194_v55 = vrot.slane %v8192_v56, 4  ;;  %v8200_v28 = vrot.slane %v8198_v0, 5  ;;  %v7360_v37 = vshrl.u32 %v7173_v36, 16  ;;  %v7668_v23 = vld [vmem:[#allocation2 + $0x54] sm:$0xe]  ;;  %v8185_v2 = vor.u32 %v8184_v16, %v8181_v57 }
 0x3f6   : > { %v7349_v7 = vrot.slane %v7347_v53, 4  ;;  %v7352_v61 = vrot.slane %v7350_v31, 5  ;;  %v7366_v59 = vshll.u32 %v7174_v20, 16  ;;  %v7669_v35 = vld [vmem:[#allocation2 + $0x58] sm:$0xf]  ;;  %v7358_v32 = vrot.slane %v7356_v38, 5 }
 0x3f7   : > { %v13407_v60 = vld [vmem:[#allocation3 + $0x130] ss:$36 sps:$4 sm:$0xff]   ;;  %v13413_v47 = vld [vmem:[#allocation3 + $0x184] ss:$36 sps:$4 sm:$0xff]   ;;  %v8195_v25 = vor.u32 %v8194_v55, %v8190_v49  ;;  %v8186_v44 = vrot.slane %v8185_v2, 4  ;;  %v7362_v4 = vrot.slane %v7360_v37, 4  ;;  %v16125_v2 = vpop.f32.mrf.mxu0 }
 0x3f8   : > { %v7670_v39 = vld [vmem:[#allocation2 + $0x5c] sm:$0x1]  ;;  %v7353_v6 = vor.u32 %v7352_v61, %v7349_v7  ;;  %v7936_v63 = vld [vmem:[#allocation2 + $0x6c] sm:$0xf]  ;;  %10788 = vmatprep.mubr.bf16.mxu0 %v13413_v47  ;;  %v7368_v26 = vrot.slane %v7366_v59, 5  ;;  %v11581_v41 = vrot.slane %v7668_v23, 9  ;;  %10620 = vmatmul.mubr.bf16.gmra.mxu1 %v13407_v60 }
 0x3f9   : > { %v13411_v21 = vld [vmem:[#allocation3 + $0x180] ss:$36 sps:$4 sm:$0xff]   ;;  %v8196_v17 = vrot.slane %v8195_v25, 4  ;;  %v7790_v34 = vrot.slane %v7669_v35, 5  ;;  %v7937_v54 = vld [vmem:[#allocation2 + $0x70] sm:$0xf]  ;;  %v8191_v29 = vsel %vm13689_vm11, %v8186_v44, %v8190_v49  ;;  %v7363_v10 = vor.u32 %v7362_v4, %v7358_v32 }
 0x3fa   : > { %7968 = vst [vmem:[#allocation3 + $0x210] sm:$0xf] %v7936_v63  ;;  %10789 = vmatmul.mubr.bf16.gmra.mxu0 %v13411_v21  ;;  %v7354_v14 = vrot.slane %v7353_v6, 4  ;;  %7969 = vst [vmem:[#allocation3 + $0x234] sm:$0xf] %v7937_v54  ;;  %v7793_v12 = vrot.slane %v7670_v39, 5 }
 0x3fb   : > { %v8007_v11 = vld [vmem:[#allocation2 + $0x6c] sm:$0xf]  ;;  %v8008_v52 = vld [vmem:[#allocation2 + $0x70] sm:$0xf]  ;;  %v13416_v58 = vld [vmem:[#allocation3 + $0x17c] ss:$36 sps:$4 sm:$0xff]   ;;  %v8201_v46 = vsel %vm13689_vm11, %v8196_v17, %v8200_v28  ;;  %v7791_v62 = vsel %vm13697_vm12, %v11581_v41, %v7790_v34 }
 0x3fc   : > { %8462 = vst [vmem:[#allocation3 + $0x1cc] sm:$0xf] %v8191_v29  ;;  %v7792_v18 = vrot.slane %v7790_v34, 4  ;;  %8463 = vst [vmem:[#allocation3 + $0x1f0] sm:$0xf] %v8201_v46  ;;  %v7359_v43 = vsel %vm13689_vm11, %v7354_v14, %v7358_v32  ;;  %v7364_v51 = vrot.slane %v7363_v10, 4  ;;  %10627 = vmatprep.mubr.bf16.mxu1 %v13416_v58  ;;  %v16131_v34 = vpop.f32.mrf.mxu0 }
 0x3fd   : > { %7902 = vst [vmem:[#allocation3 + $0x1c4] sm:$0xf] %v7791_v62  ;;  %v8009_v33 = vld [vmem:[#allocation2 + $0x74] sm:$0x1]  ;;  %v8203_v19 = vshrl.u32 %v8007_v11, 16  ;;  %v8206_v15 = vshll.u32 %v8007_v11, 16  ;;  %v12383_v11 = vpop.f32.mrf.mxu1 }
 0x3fe   : > { %7630 = vst [vmem:[#allocation3 + $0x1c0] sm:$0xf] %v7359_v43  ;;  %v7794_v45 = vsel %vm13697_vm12, %v7792_v18, %v7793_v12  ;;  %v8212_v1 = vshll.u32 %v8008_v52, 16  ;;  %v8216_v50 = vshrl.u32 %v8008_v52, 16  ;;  %v8222_v27 = vshll.u32 %v8009_v33, 16 }
 0x3ff   : > { %v7175_v8 = vld [vmem:[#allocation2 + $0x60] sm:$0xf]  ;;  %v7369_v42 = vsel %vm13689_vm11, %v7364_v51, %v7368_v26  ;;  %7903 = vst [vmem:[#allocation3 + $0x1e8] sm:$0xf] %v7794_v45  ;;  %v8205_v9 = vrot.slane %v8203_v19, 4  ;;  %v8208_v5 = vrot.slane %v8206_v15, 5 }
 0x400   : > { %v7176_v24 = vld [vmem:[#allocation2 + $0x64] sm:$0xf]  ;;  %v7177_v13 = vld [vmem:[#allocation2 + $0x68] sm:$0x1]  ;;  %v13414_v36 = vld [vmem:[#allocation3 + $0x178] ss:$36 sps:$4 sm:$0xff]  }
 0x401   : > { %7631 = vst [vmem:[#allocation3 + $0x1e4] sm:$0xf] %v7369_v42  ;;  %v8214_v30 = vrot.slane %v8212_v1, 5  ;;  %v8218_v57 = vrot.slane %v8216_v50, 4  ;;  %v8224_v56 = vrot.slane %v8222_v27, 5  ;;  %v7371_v0 = vshrl.u32 %v7175_v8, 16  ;;  %10628 = vmatmul.mubr.bf16.gmra.mxu1 %v13414_v36 }
 0x402   : > { %v8209_v20 = vor.u32 %v8208_v5, %v8205_v9  ;;  %v7374_v16 = vshll.u32 %v7175_v8, 16  ;;  %v7380_v49 = vshll.u32 %v7176_v24, 16  ;;  %v7384_v53 = vshrl.u32 %v7176_v24, 16  ;;  %v7671_v31 = vld [vmem:[#allocation2 + $0x60] sm:$0xe]  ;;  %v12498_v9 = vpop.f32.mrf.mxu0 }
 0x403   : > { %v8219_v55 = vor.u32 %v8218_v57, %v8214_v30  ;;  %v7373_v28 = vrot.slane %v7371_v0, 4  ;;  %v7390_v38 = vshll.u32 %v7177_v13, 16  ;;  %v7672_v37 = vld [vmem:[#allocation2 + $0x64] sm:$0xf]  ;;  %v7673_v23 = vld [vmem:[#allocation2 + $0x68] sm:$0x1]  ;;  %v12384_v57 = vpop.f32.mrf.mxu1 }
 0x404   : > { %v8210_v7 = vrot.slane %v8209_v20, 4  ;;  %v7376_v61 = vrot.slane %v7374_v16, 5  ;;  %v7382_v59 = vrot.slane %v7380_v49, 5  ;;  %v7386_v35 = vrot.slane %v7384_v53, 4  ;;  %v13417_v60 = vld [vmem:[#allocation3 + $0x1c8] ss:$36 sps:$4 sm:$0xff]   ;;  %v12499_v53 = vpop.f32.mrf.mxu0 }
 0x405   : > { %v13419_v47 = vld [vmem:[#allocation3 + $0x1cc] ss:$36 sps:$4 sm:$0xff]   ;;  %v8220_v25 = vrot.slane %v8219_v55, 4  ;;  %v7938_v44 = vld [vmem:[#allocation2 + $0x78] sm:$0xf]  ;;  %v11582_v63 = vrot.slane %v7671_v31, 9 }
 0x406   : > { %v8215_v32 = vsel %vm13689_vm11, %v8210_v7, %v8214_v30  ;;  %v7377_v39 = vor.u32 %v7376_v61, %v7373_v28  ;;  %v7387_v21 = vor.u32 %v7386_v35, %v7382_v59  ;;  %v7939_v6 = vld [vmem:[#allocation2 + $0x7c] sm:$0xf]  ;;  %10796 = vmatprep.mubr.bf16.mxu0 %v13419_v47  ;;  %v7797_v17 = vrot.slane %v7672_v37, 5  ;;  %7970 = vst [vmem:[#allocation3 + $0x258] sm:$0xf] %v7938_v44 }
 0x407   : > { %v8225_v4 = vsel %vm13689_vm11, %v8220_v25, %v8224_v56  ;;  %8464 = vst [vmem:[#allocation3 + $0x214] sm:$0xf] %v8215_v32  ;;  %7971 = vst [vmem:[#allocation3 + $0x27c] sm:$0xf] %v7939_v6  ;;  %v8010_v26 = vld [vmem:[#allocation2 + $0x78] sm:$0xf]  ;;  %10797 = vmatmul.mubr.bf16.gmra.mxu0 %v13417_v60  ;;  %v16141_v35 = vadd.f32 %v12499_v53, %v12498_v9  ;;  %v12501_v60 = vpop.f32.mrf.mxu0 }
 0x408   : > { %v8011_v41 = vld [vmem:[#allocation2 + $0x7c] sm:$0xf]  ;;  %8465 = vst [vmem:[#allocation3 + $0x238] sm:$0xf] %v8225_v4  ;;  %v7378_v29 = vrot.slane %v7377_v39, 4  ;;  %v7392_v14 = vrot.slane %v7390_v38, 5  ;;  %v7798_v46 = vsel %vm13697_vm12, %v11582_v63, %v7797_v17 }
 0x409   : > { %v13422_v54 = vld [vmem:[#allocation3 + $0x1c4] ss:$36 sps:$4 sm:$0xff]   ;;  %v7800_v10 = vrot.slane %v7673_v23, 5  ;;  %v7388_v58 = vrot.slane %v7387_v21, 4  ;;  %v7799_v62 = vrot.slane %v7797_v17, 4  ;;  %v8227_v12 = vshrl.u32 %v8010_v26, 16 }
 0x40a   : > { %v13420_v52 = vld [vmem:[#allocation3 + $0x1c0] ss:$36 sps:$4 sm:$0xff]   ;;  %v8012_v18 = vld [vmem:[#allocation2 + $0x80] sm:$0x1]  ;;  %10635 = vmatprep.mubr.bf16.mxu1 %v13422_v54  ;;  %v7383_v43 = vsel %vm13689_vm11, %v7378_v29, %v7382_v59  ;;  %7904 = vst [vmem:[#allocation3 + $0x20c] sm:$0xf] %v7798_v46  ;;  %v12385_v59 = vadd.f32 %v12384_v57, %v12383_v11 }
 0x40b   : > { %v8230_v51 = vshll.u32 %v8010_v26, 16  ;;  %v8236_v33 = vshll.u32 %v8011_v41, 16  ;;  %v8240_v19 = vshrl.u32 %v8011_v41, 16  ;;  %v7178_v15 = vld [vmem:[#allocation2 + $0x6c] sm:$0xf]  ;;  %v7393_v45 = vsel %vm13689_vm11, %v7388_v58, %v7392_v14  ;;  %10636 = vmatmul.mubr.bf16.gmra.mxu1 %v13420_v52  ;;  %v12502_v26 = vpop.f32.mrf.mxu0 }
 0x40c   : > { %7632 = vst [vmem:[#allocation3 + $0x208] sm:$0xf] %v7383_v43  ;;  %v7801_v1 = vsel %vm13697_vm12, %v7799_v62, %v7800_v10  ;;  %v8229_v50 = vrot.slane %v8227_v12, 4  ;;  %v8246_v27 = vshll.u32 %v8012_v18, 16  ;;  %v7179_v8 = vld [vmem:[#allocation2 + $0x70] sm:$0xf]  ;;  %v12497_v12 = vadd.f32 %v16131_v34, %v16125_v2  ;;  %v16158_v43 = vpop.f32.mrf.mxu1 }
 0x40d   : > { %v7180_v42 = vld [vmem:[#allocation2 + $0x74] sm:$0x1]  ;;  %7633 = vst [vmem:[#allocation3 + $0x22c] sm:$0xf] %v7393_v45  ;;  %7905 = vst [vmem:[#allocation3 + $0x230] sm:$0xf] %v7801_v1  ;;  %v16161_v1 = vadd.f32 %v12502_v26, %v12501_v60 }
 0x40e   : > { %v8232_v5 = vrot.slane %v8230_v51, 5  ;;  %v8238_v24 = vrot.slane %v8236_v33, 5  ;;  %v8242_v13 = vrot.slane %v8240_v19, 4  ;;  %v7395_v36 = vshrl.u32 %v7178_v15, 16  ;;  %v7674_v30 = vld [vmem:[#allocation2 + $0x6c] sm:$0xe]  ;;  %v12387_v2 = vpop.f32.mrf.mxu1 }
 0x40f   : > { %v8248_v56 = vrot.slane %v8246_v27, 5  ;;  %v7398_v0 = vshll.u32 %v7178_v15, 16  ;;  %v7404_v20 = vshll.u32 %v7179_v8, 16  ;;  %v7408_v16 = vshrl.u32 %v7179_v8, 16  ;;  %v7675_v49 = vld [vmem:[#allocation2 + $0x70] sm:$0xf] }
 0x410   : > { %v8233_v31 = vor.u32 %v8232_v5, %v8229_v50  ;;  %v8243_v55 = vor.u32 %v8242_v13, %v8238_v24  ;;  %v7397_v28 = vrot.slane %v7395_v36, 4  ;;  %v7414_v38 = vshll.u32 %v7180_v42, 16  ;;  %v7676_v37 = vld [vmem:[#allocation2 + $0x74] sm:$0x1]  ;;  %v13424_v23 = vld [vmem:[#allocation3 + $0x210] ss:$36 sps:$4 sm:$0xff]  }
 0x411   : > { %v13426_v7 = vld [vmem:[#allocation3 + $0x214] ss:$36 sps:$4 sm:$0xff]   ;;  %v7400_v61 = vrot.slane %v7398_v0, 5  ;;  %v7406_v32 = vrot.slane %v7404_v20, 5  ;;  %v7410_v39 = vrot.slane %v7408_v16, 4  ;;  %v11583_v4 = vrot.slane %v7674_v30, 9  ;;  %v12389_v16 = vpop.f32.mrf.mxu1 }
 0x412   : > { %v8234_v47 = vrot.slane %v8233_v31, 4  ;;  %v8244_v25 = vrot.slane %v8243_v55, 4  ;;  %v16146_v21 = vld [vmem:[%s16987_s4] ss:$0 sm:$0xff]  ;;  %10804 = vmatprep.mubr.bf16.mxu0 %v13426_v7  ;;  %v7416_v6 = vrot.slane %v7414_v38, 5  ;;  %v7804_v63 = vrot.slane %v7675_v49, 5  ;;  %v12504_v49 = vpop.f32.mrf.mxu0 }
 0x413   : > { %v7401_v44 = vor.u32 %v7400_v61, %v7397_v28  ;;  %v7940_v17 = vld [vmem:[#allocation2 + $0x84] sm:$0xf]  ;;  %10805 = vmatmul.mubr.bf16.gmra.mxu0 %v13424_v23  ;;  %v7411_v29 = vor.u32 %v7410_v39, %v7406_v32  ;;  %v7807_v14 = vrot.slane %v7676_v37, 5  ;;  %v7941_v10 = vld [vmem:[#allocation2 + $0x88] sm:$0xf]  ;;  %v10268_v18 = vadd.f32 %v15993_v22, %v16146_v21 }
 0x414   : > { %v8239_v41 = vsel %vm13689_vm11, %v8234_v47, %v8238_v24  ;;  %v8249_v54 = vsel %vm13689_vm11, %v8244_v25, %v8248_v56  ;;  %7972 = vst [vmem:[#allocation3 + $0x2a0] sm:$0xf] %v7940_v17  ;;  %v8013_v11 = vld [vmem:[#allocation2 + $0x84] sm:$0xf]  ;;  %v7805_v62 = vsel %vm13697_vm12, %v11583_v4, %v7804_v63  ;;  %7973 = vst [vmem:[#allocation3 + $0x2c4] sm:$0xf] %v7941_v10  ;;  %v12390_v17 = vpop.f32.mrf.mxu1  ;;  %v12505_v26 = vpop.f32.mrf.mxu0 }
 0x415   : > { %v13427_v52 = vld [vmem:[#allocation3 + $0x208] ss:$36 sps:$4 sm:$0xff]   ;;  %8466 = vst [vmem:[#allocation3 + $0x25c] sm:$0xf] %v8239_v41  ;;  %8467 = vst [vmem:[#allocation3 + $0x280] sm:$0xf] %v8249_v54  ;;  %v10271_v19 = vadd.f32 %v12385_v59, %v16146_v21  ;;  %v16170_v0 = vadd.f32 %v16096_v48, %v10268_v18  ;;  %v12388_v18 = vadd.f32 %v12387_v2, %v16158_v43 }
 0x416   : > { %v13429_v58 = vld [vmem:[#allocation3 + $0x20c] ss:$36 sps:$4 sm:$0xff]   ;;  %v7402_v46 = vrot.slane %v7401_v44, 4  ;;  %v7412_v51 = vrot.slane %v7411_v29, 4  ;;  %v7806_v33 = vrot.slane %v7804_v63, 4  ;;  %v8251_v22 = vshrl.u32 %v8013_v11, 16  ;;  %v12507_v2 = vpop.f32.mrf.mxu0 }
 0x417   : > { %7906 = vst [vmem:[#allocation3 + $0x254] sm:$0xf] %v7805_v62  ;;  %v8014_v15 = vld [vmem:[#allocation2 + $0x88] sm:$0xf]  ;;  %v8015_v45 = vld [vmem:[#allocation2 + $0x8c] sm:$0x1]  ;;  %10643 = vmatprep.mubr.bf16.mxu1 %v13429_v58  ;;  %v16172_v39 = vadd.f32 %v12497_v12, %v10271_v19  ;;  %v16182_v43 = vadd.f32 %v12388_v18, %v16146_v21 }
 0x418   : > { %v7407_v50 = vsel %vm13689_vm11, %v7402_v46, %v7406_v32  ;;  %v8254_v27 = vshll.u32 %v8013_v11, 16  ;;  %v8260_v8 = vshll.u32 %v8014_v15, 16  ;;  %v7181_v42 = vld [vmem:[#allocation2 + $0x78] sm:$0xf]  ;;  %10644 = vmatmul.mubr.bf16.gmra.mxu1 %v13427_v52  ;;  %v7417_v34 = vsel %vm13689_vm11, %v7412_v51, %v7416_v6  ;;  %v7182_v13 = vld [vmem:[#allocation2 + $0x7c] sm:$0xf] }
 0x419   : > { %7634 = vst [vmem:[#allocation3 + $0x250] sm:$0xf] %v7407_v50  ;;  %v7808_v9 = vsel %vm13697_vm12, %v7806_v33, %v7807_v14  ;;  %v8264_v5 = vshrl.u32 %v8014_v15, 16  ;;  %v8270_v24 = vshll.u32 %v8015_v45, 16  ;;  %v7183_v36 = vld [vmem:[#allocation2 + $0x80] sm:$0x1]  ;;  %v12391_v45 = vadd.f32 %v12390_v17, %v12389_v16 }
 0x41a   : > { %7635 = vst [vmem:[#allocation3 + $0x274] sm:$0xf] %v7417_v34  ;;  %7907 = vst [vmem:[#allocation3 + $0x278] sm:$0xf] %v7808_v9  ;;  %v8253_v30 = vrot.slane %v8251_v22, 4  ;;  %v8256_v57 = vrot.slane %v8254_v27, 5 }
 0x41b   : > { %v8262_v56 = vrot.slane %v8260_v8, 5  ;;  %v7677_v20 = vld [vmem:[#allocation2 + $0x78] sm:$0xe]  ;;  %v8266_v53 = vrot.slane %v8264_v5, 4  ;;  %v8272_v31 = vrot.slane %v8270_v24, 5  ;;  %v7419_v55 = vshrl.u32 %v7181_v42, 16 }
 0x41c   : > { %v7422_v28 = vshll.u32 %v7181_v42, 16  ;;  %v7678_v38 = vld [vmem:[#allocation2 + $0x7c] sm:$0xf]  ;;  %v8257_v37 = vor.u32 %v8256_v57, %v8253_v30  ;;  %v7428_v23 = vshll.u32 %v7182_v13, 16  ;;  %v7432_v7 = vshrl.u32 %v7182_v13, 16 }
 0x41d   : > { %v7438_v61 = vshll.u32 %v7183_v36, 16  ;;  %v7679_v59 = vld [vmem:[#allocation2 + $0x80] sm:$0x1]  ;;  %v13430_v60 = vld [vmem:[#allocation3 + $0x258] ss:$36 sps:$4 sm:$0xff]   ;;  %v8267_v47 = vor.u32 %v8266_v53, %v8262_v56  ;;  %v7421_v25 = vrot.slane %v7419_v55, 4  ;;  %v16184_v42 = vadd.f32 %v12505_v26, %v12504_v49  ;;  %v12392_v36 = vpop.f32.mrf.mxu1 }
 0x41e   : > { %v7424_v32 = vrot.slane %v7422_v28, 5  ;;  %v13432_v48 = vld [vmem:[#allocation3 + $0x25c] ss:$36 sps:$4 sm:$0xff]   ;;  %v8258_v44 = vrot.slane %v8257_v37, 4  ;;  %v7430_v6 = vrot.slane %v7428_v23, 5  ;;  %v7434_v4 = vrot.slane %v7432_v7, 4 }
 0x41f   : > { %v7440_v63 = vrot.slane %v7438_v61, 5  ;;  %v8268_v41 = vrot.slane %v8267_v47, 4  ;;  %v11584_v29 = vrot.slane %v7677_v20, 9  ;;  %v7811_v14 = vrot.slane %v7678_v38, 5  ;;  %v7942_v10 = vld [vmem:[#allocation2 + $0x90] sm:$0xf]  ;;  %10812 = vmatprep.mubr.bf16.mxu0 %v13432_v48  ;;  %v12393_v37 = vpop.f32.mrf.mxu1  ;;  %v12508_v47 = vpop.f32.mrf.mxu0 }
 0x420   : > { %v7425_v54 = vor.u32 %v7424_v32, %v7421_v25  ;;  %v8263_v11 = vsel %vm13689_vm11, %v8258_v44, %v8262_v56  ;;  %v7435_v52 = vor.u32 %v7434_v4, %v7430_v6  ;;  %v7814_v58 = vrot.slane %v7679_v59, 5  ;;  %v7943_v46 = vld [vmem:[#allocation2 + $0x94] sm:$0xf]  ;;  %7974 = vst [vmem:[#allocation3 + $0x2e8] sm:$0xf] %v7942_v10  ;;  %10813 = vmatmul.mubr.bf16.gmra.mxu0 %v13430_v60 }
 0x421   : > { %v8016_v62 = vld [vmem:[#allocation2 + $0x90] sm:$0xf]  ;;  %v13433_v12 = vld [vmem:[#allocation3 + $0x250] ss:$36 sps:$4 sm:$0xff]   ;;  %v8273_v33 = vsel %vm13689_vm11, %v8268_v41, %v8272_v31  ;;  %8468 = vst [vmem:[#allocation3 + $0x2a4] sm:$0xf] %v8263_v11  ;;  %v7812_v15 = vsel %vm13697_vm12, %v11584_v29, %v7811_v14  ;;  %v12395_v4 = vpop.f32.mrf.mxu1  ;;  %v16193_v11 = vadd.f32 %v12391_v45, %v16146_v21 }
 0x422   : > { %v13435_v51 = vld [vmem:[#allocation3 + $0x254] ss:$36 sps:$4 sm:$0xff]   ;;  %v7426_v19 = vrot.slane %v7425_v54, 4  ;;  %7975 = vst [vmem:[#allocation3 + $0x30c] sm:$0xf] %v7943_v46  ;;  %v7436_v50 = vrot.slane %v7435_v52, 4  ;;  %v12394_v52 = vadd.f32 %v12393_v37, %v12392_v36 }
 0x423   : > { %8469 = vst [vmem:[#allocation3 + $0x2c8] sm:$0xf] %v8273_v33  ;;  %v7813_v22 = vrot.slane %v7811_v14, 4  ;;  %7908 = vst [vmem:[#allocation3 + $0x29c] sm:$0xf] %v7812_v15  ;;  %10651 = vmatprep.mubr.bf16.mxu1 %v13435_v51  ;;  %v8275_v9 = vshrl.u32 %v8016_v62, 16  ;;  %v12396_v46 = vpop.f32.mrf.mxu1 }
 0x424   : > { %v8017_v27 = vld [vmem:[#allocation2 + $0x94] sm:$0xf]  ;;  %v8018_v8 = vld [vmem:[#allocation2 + $0x98] sm:$0x1]  ;;  %v7431_v34 = vsel %vm13689_vm11, %v7426_v19, %v7430_v6  ;;  %v8278_v5 = vshll.u32 %v8016_v62, 16  ;;  %10652 = vmatmul.mubr.bf16.gmra.mxu1 %v13433_v12  ;;  %v7441_v30 = vsel %vm13689_vm11, %v7436_v50, %v7440_v63  ;;  %v12510_v19 = vpop.f32.mrf.mxu0 }
 0x425   : > { %v8284_v24 = vshll.u32 %v8017_v27, 16  ;;  %v7184_v13 = vld [vmem:[#allocation2 + $0x84] sm:$0xf]  ;;  %7636 = vst [vmem:[#allocation3 + $0x298] sm:$0xf] %v7431_v34  ;;  %v7815_v57 = vsel %vm13697_vm12, %v7813_v22, %v7814_v58  ;;  %v8288_v56 = vshrl.u32 %v8017_v27, 16  ;;  %v16195_v58 = vadd.f32 %v12508_v47, %v12507_v2 }
 0x426   : > { %v8294_v20 = vshll.u32 %v8018_v8, 16  ;;  %v7185_v16 = vld [vmem:[#allocation2 + $0x88] sm:$0xf]  ;;  %v7186_v49 = vld [vmem:[#allocation2 + $0x8c] sm:$0x1]  ;;  %v8277_v53 = vrot.slane %v8275_v9, 4  ;;  %v16200_v27 = vadd.f32 %v12394_v52, %v16146_v21 }
 0x427   : > { %7637 = vst [vmem:[#allocation3 + $0x2bc] sm:$0xf] %v7441_v30  ;;  %7909 = vst [vmem:[#allocation3 + $0x2c0] sm:$0xf] %v7815_v57  ;;  %v8280_v31 = vrot.slane %v8278_v5, 5  ;;  %v8286_v55 = vrot.slane %v8284_v24, 5  ;;  %v12397_v24 = vadd.f32 %v12396_v46, %v12395_v4 }
 0x428   : > { %v7443_v28 = vshrl.u32 %v7184_v13, 16  ;;  %v7680_v38 = vld [vmem:[#allocation2 + $0x84] sm:$0xe]  ;;  %v8290_v23 = vrot.slane %v8288_v56, 4  ;;  %v8296_v7 = vrot.slane %v8294_v20, 5  ;;  %v7446_v61 = vshll.u32 %v7184_v13, 16  ;;  %v12511_v13 = vpop.f32.mrf.mxu0 }
 0x429   : > { %v7452_v59 = vshll.u32 %v7185_v16, 16  ;;  %v7681_v60 = vld [vmem:[#allocation2 + $0x88] sm:$0xf]  ;;  %v8281_v25 = vor.u32 %v8280_v31, %v8277_v53  ;;  %v7456_v48 = vshrl.u32 %v7185_v16, 16  ;;  %v7462_v44 = vshll.u32 %v7186_v49, 16 }
 0x42a   : > { %v7445_v32 = vrot.slane %v7443_v28, 4  ;;  %v7682_v6 = vld [vmem:[#allocation2 + $0x8c] sm:$0x1]  ;;  %v8291_v63 = vor.u32 %v8290_v23, %v8286_v55  ;;  %v7448_v17 = vrot.slane %v7446_v61, 5  ;;  %v11585_v41 = vrot.slane %v7680_v38, 9  ;;  %v12513_v38 = vpop.f32.mrf.mxu0 }
 0x42b   : > { %v7454_v26 = vrot.slane %v7452_v59, 5  ;;  %v7944_v54 = vld [vmem:[#allocation2 + $0x9c] sm:$0xf]  ;;  %v8282_v10 = vrot.slane %v8281_v25, 4  ;;  %v7458_v12 = vrot.slane %v7456_v48, 4  ;;  %v7464_v51 = vrot.slane %v7462_v44, 5 }
 0x42c   : > { %v13437_v29 = vld [vmem:[#allocation3 + $0x2a0] ss:$36 sps:$4 sm:$0xff]   ;;  %7976 = vst [vmem:[#allocation3 + $0x330] sm:$0xf] %v7944_v54  ;;  %v8292_v62 = vrot.slane %v8291_v63, 4  ;;  %v7449_v18 = vor.u32 %v7448_v17, %v7445_v32  ;;  %v7818_v50 = vrot.slane %v7681_v60, 5  ;;  %v16206_v16 = vadd.f32 %v12511_v13, %v12510_v19 }
 0x42d   : > { %v13439_v14 = vld [vmem:[#allocation3 + $0x2a4] ss:$36 sps:$4 sm:$0xff]   ;;  %v8287_v15 = vsel %vm13689_vm11, %v8282_v10, %v8286_v55  ;;  %v7821_v22 = vrot.slane %v7682_v6, 5  ;;  %v7459_v5 = vor.u32 %v7458_v12, %v7454_v26  ;;  %v8021_v56 = vld [vmem:[#allocation2 + $0xa4] sm:$0x1] }
 0x42e   : > { %v7945_v33 = vld [vmem:[#allocation2 + $0xa0] sm:$0xf]  ;;  %10820 = vmatprep.mubr.bf16.mxu0 %v13439_v14  ;;  %v8019_v45 = vld [vmem:[#allocation2 + $0x9c] sm:$0xf]  ;;  %v13440_v8 = vld [vmem:[#allocation3 + $0x298] ss:$36 sps:$4 sm:$0xff]   ;;  %v8297_v34 = vsel %vm13689_vm11, %v8292_v62, %v8296_v7  ;;  %v7819_v36 = vsel %vm13697_vm12, %v11585_v41, %v7818_v50 }
 0x42f   : > { %7977 = vst [vmem:[#allocation3 + $0x354] sm:$0xf] %v7945_v33  ;;  %v13442_v2 = vld [vmem:[#allocation3 + $0x29c] ss:$36 sps:$4 sm:$0xff]   ;;  %10821 = vmatmul.mubr.bf16.gmra.mxu0 %v13437_v29  ;;  %8470 = vst [vmem:[#allocation3 + $0x2ec] sm:$0xf] %v8287_v15  ;;  %v10287_v15 = vadd.f32 %v12397_v24, %v16146_v21 }
 0x430   : > { %v7450_v9 = vrot.slane %v7449_v18, 4  ;;  %8471 = vst [vmem:[#allocation3 + $0x310] sm:$0xf] %v8297_v34  ;;  %v7820_v30 = vrot.slane %v7818_v50, 4  ;;  %v8020_v57 = vld [vmem:[#allocation2 + $0xa0] sm:$0xf]  ;;  %10659 = vmatprep.mubr.bf16.mxu1 %v13442_v2  ;;  %v12398_v50 = vpop.f32.mrf.mxu1 }
 0x431   : > { %v8299_v20 = vshrl.u32 %v8019_v45, 16  ;;  %v7460_v53 = vrot.slane %v7459_v5, 4  ;;  %7910 = vst [vmem:[#allocation3 + $0x2e4] sm:$0xf] %v7819_v36  ;;  %v8302_v31 = vshll.u32 %v8019_v45, 16  ;;  %v8308_v55 = vshll.u32 %v8020_v57, 16  ;;  %10660 = vmatmul.mubr.bf16.gmra.mxu1 %v13440_v8 }
 0x432   : > { %v7455_v49 = vsel %vm13689_vm11, %v7450_v9, %v7454_v26  ;;  %v7187_v28 = vld [vmem:[#allocation2 + $0x90] sm:$0xf]  ;;  %v7822_v37 = vsel %vm13697_vm12, %v7820_v30, %v7821_v22  ;;  %v8312_v7 = vshrl.u32 %v8020_v57, 16  ;;  %v8318_v61 = vshll.u32 %v8021_v56, 16  ;;  %v7188_v59 = vld [vmem:[#allocation2 + $0x94] sm:$0xf]  ;;  %v12514_v26 = vpop.f32.mrf.mxu0  ;;  %v12399_v24 = vpop.f32.mrf.mxu1 }
 0x433   : > { %7638 = vst [vmem:[#allocation3 + $0x2e0] sm:$0xf] %v7455_v49  ;;  %v8301_v23 = vrot.slane %v8299_v20, 4  ;;  %v7465_v60 = vsel %vm13689_vm11, %v7460_v53, %v7464_v51  ;;  %7911 = vst [vmem:[#allocation3 + $0x308] sm:$0xf] %v7822_v37  ;;  %v8304_v47 = vrot.slane %v8302_v31, 5  ;;  %v16215_v22 = vadd.f32 %v12514_v26, %v12513_v38 }
 0x434   : > { %v8310_v25 = vrot.slane %v8308_v55, 5  ;;  %v7189_v32 = vld [vmem:[#allocation2 + $0x98] sm:$0x1]  ;;  %v7467_v48 = vshrl.u32 %v7187_v28, 16  ;;  %7639 = vst [vmem:[#allocation3 + $0x304] sm:$0xf] %v7465_v60  ;;  %v16219_v45 = vadd.f32 %v16141_v35, %v16182_v43  ;;  %v16223_v56 = vpop.f32.mrf.mxu0  ;;  %v16227_v35 = vadd.f32 %v16161_v1, %v16193_v11  ;;  %v12401_v1 = vpop.f32.mrf.mxu1 }
 0x435   : > { %v8314_v44 = vrot.slane %v8312_v7, 4  ;;  %v8320_v6 = vrot.slane %v8318_v61, 5  ;;  %v7470_v4 = vshll.u32 %v7187_v28, 16  ;;  %v7476_v63 = vshll.u32 %v7188_v59, 16  ;;  %v7683_v17 = vld [vmem:[#allocation2 + $0x90] sm:$0xe] }
 0x436   : > { %v8305_v41 = vor.u32 %v8304_v47, %v8301_v23  ;;  %v7469_v54 = vrot.slane %v7467_v48, 4  ;;  %v7480_v29 = vshrl.u32 %v7188_v59, 16  ;;  %v7486_v14 = vshll.u32 %v7189_v32, 16  ;;  %v7684_v10 = vld [vmem:[#allocation2 + $0x94] sm:$0xf]  ;;  %v12517_v11 = vpop.f32.mrf.mxu0 }
 0x437   : > { %v8315_v52 = vor.u32 %v8314_v44, %v8310_v25  ;;  %v7472_v46 = vrot.slane %v7470_v4, 5  ;;  %v7478_v62 = vrot.slane %v7476_v63, 5  ;;  %v7685_v18 = vld [vmem:[#allocation2 + $0x98] sm:$0x1]  ;;  %v11586_v12 = vrot.slane %v7683_v17, 9 }
 0x438   : > { %v13443_v51 = vld [vmem:[#allocation3 + $0x2e8] ss:$36 sps:$4 sm:$0xff]   ;;  %v8306_v19 = vrot.slane %v8305_v41, 4  ;;  %v7482_v34 = vrot.slane %v7480_v29, 4  ;;  %v7488_v9 = vrot.slane %v7486_v14, 5  ;;  %v7825_v36 = vrot.slane %v7684_v10, 5  ;;  %v12519_v4 = vpop.f32.mrf.mxu0 }
 0x439   : > { %v13445_v33 = vld [vmem:[#allocation3 + $0x2ec] ss:$36 sps:$4 sm:$0xff]   ;;  %v8316_v8 = vrot.slane %v8315_v52, 4  ;;  %v7473_v2 = vor.u32 %v7472_v46, %v7469_v54  ;;  %v7828_v30 = vrot.slane %v7685_v18, 5  ;;  %v7947_v57 = vld [vmem:[#allocation2 + $0xac] sm:$0xf]  ;;  %v12400_v55 = vadd.f32 %v12399_v24, %v12398_v50 }
 0x43a   : > { %v7946_v5 = vld [vmem:[#allocation2 + $0xa8] sm:$0xf]  ;;  %10828 = vmatprep.mubr.bf16.mxu0 %v13445_v33  ;;  %v8311_v13 = vsel %vm13689_vm11, %v8306_v19, %v8310_v25  ;;  %v7483_v49 = vor.u32 %v7482_v34, %v7478_v62  ;;  %7979 = vst [vmem:[#allocation3 + $0x39c] sm:$0xf] %v7947_v57  ;;  %v8023_v31 = vld [vmem:[#allocation2 + $0xac] sm:$0xf]  ;;  %v7826_v37 = vsel %vm13697_vm12, %v11586_v12, %v7825_v36  ;;  %v12520_v18 = vpop.f32.mrf.mxu0 }
 0x43b   : > { %7978 = vst [vmem:[#allocation3 + $0x378] sm:$0xf] %v7946_v5  ;;  %10829 = vmatmul.mubr.bf16.gmra.mxu0 %v13443_v51  ;;  %v8321_v43 = vsel %vm13689_vm11, %v8316_v8, %v8320_v6  ;;  %8472 = vst [vmem:[#allocation3 + $0x334] sm:$0xf] %v8311_v13  ;;  %v7474_v20 = vrot.slane %v7473_v2, 4  ;;  %v7827_v23 = vrot.slane %v7825_v36, 4  ;;  %v16235_v7 = vadd.f32 %v16184_v42, %v16200_v27 }
 0x43c   : > { %v8022_v53 = vld [vmem:[#allocation2 + $0xa8] sm:$0xf]  ;;  %v13446_v28 = vld [vmem:[#allocation3 + $0x2e0] ss:$36 sps:$4 sm:$0xff]   ;;  %8473 = vst [vmem:[#allocation3 + $0x358] sm:$0xf] %v8321_v43  ;;  %v16238_v61 = vadd.f32 %v16195_v58, %v10287_v15  ;;  %v16247_v54 = vadd.f32 %v12400_v55, %v16146_v21  ;;  %v12522_v5 = vpop.f32.mrf.mxu0  ;;  %v16250_v24 = vadd.f32 %v12517_v11, %v16223_v56  ;;  %v16252_v43 = vadd.f32 %v12520_v18, %v12519_v4 }
 0x43d   : > { %v13448_v38 = vld [vmem:[#allocation3 + $0x2e4] ss:$36 sps:$4 sm:$0xff]   ;;  %v7479_v59 = vsel %vm13689_vm11, %v7474_v20, %v7478_v62  ;;  %v7484_v60 = vrot.slane %v7483_v49, 4  ;;  %7912 = vst [vmem:[#allocation3 + $0x32c] sm:$0xf] %v7826_v37  ;;  %v8323_v25 = vshrl.u32 %v8022_v53, 16  ;;  %v7829_v48 = vsel %vm13697_vm12, %v7827_v23, %v7828_v30  ;;  %v12402_v62 = vpop.f32.mrf.mxu1 }
 0x43e   : > { %v8024_v47 = vld [vmem:[#allocation2 + $0xb0] sm:$0x1]  ;;  %v8326_v32 = vshll.u32 %v8022_v53, 16  ;;  %10667 = vmatprep.mubr.bf16.mxu1 %v13448_v38  ;;  %7640 = vst [vmem:[#allocation3 + $0x328] sm:$0xf] %v7479_v59  ;;  %v8332_v44 = vshll.u32 %v8023_v31, 16  ;;  %v12403_v57 = vadd.f32 %v12402_v62, %v12401_v1  ;;  %v12523_v38 = vpop.f32.mrf.mxu0 }
 0x43f   : > { %v8336_v6 = vshrl.u32 %v8023_v31, 16  ;;  %v8342_v42 = vshll.u32 %v8024_v47, 16  ;;  %v7190_v27 = vld [vmem:[#allocation2 + $0x9c] sm:$0xf]  ;;  %10668 = vmatmul.mubr.bf16.gmra.mxu1 %v13446_v28  ;;  %v7489_v58 = vsel %vm13689_vm11, %v7484_v60, %v7488_v9  ;;  %7913 = vst [vmem:[#allocation3 + $0x350] sm:$0xf] %v7829_v48  ;;  %v12404_v55 = vpop.f32.mrf.mxu1 }
 0x440   : > { %v8325_v63 = vrot.slane %v8323_v25, 4  ;;  %v8328_v17 = vrot.slane %v8326_v32, 5  ;;  %v7191_v26 = vld [vmem:[#allocation2 + $0xa0] sm:$0xf]  ;;  %v7192_v41 = vld [vmem:[#allocation2 + $0xa4] sm:$0x1]  ;;  %v16259_v25 = vadd.f32 %v12403_v57, %v16146_v21 }
 0x441   : > { %7641 = vst [vmem:[#allocation3 + $0x34c] sm:$0xf] %v7489_v58  ;;  %v8334_v29 = vrot.slane %v8332_v44, 5  ;;  %v8338_v14 = vrot.slane %v8336_v6, 4  ;;  %v8344_v10 = vrot.slane %v8342_v42, 5  ;;  %v7491_v52 = vshrl.u32 %v7190_v27, 16  ;;  %v12405_v6 = vpop.f32.mrf.mxu1  ;;  %v12525_v42 = vpop.f32.mrf.mxu0 }
 0x442   : > { %v7686_v46 = vld [vmem:[#allocation2 + $0x9c] sm:$0xe]  ;;  %v8329_v12 = vor.u32 %v8328_v17, %v8325_v63  ;;  %v7494_v51 = vshll.u32 %v7190_v27, 16  ;;  %v7500_v33 = vshll.u32 %v7191_v26, 16  ;;  %v7504_v19 = vshrl.u32 %v7191_v26, 16 }
 0x443   : > { %v7687_v15 = vld [vmem:[#allocation2 + $0xa0] sm:$0xf]  ;;  %v8339_v50 = vor.u32 %v8338_v14, %v8334_v29  ;;  %v7493_v8 = vrot.slane %v7491_v52, 4  ;;  %v7510_v2 = vshll.u32 %v7192_v41, 16  ;;  %v7688_v34 = vld [vmem:[#allocation2 + $0xa4] sm:$0x1]  ;;  %v12406_v17 = vadd.f32 %v12405_v6, %v12404_v55  ;;  %v12526_v62 = vpop.f32.mrf.mxu0 }
 0x444   : > { %v11587_v9 = vrot.slane %v7686_v46, 9  ;;  %v13450_v13 = vld [vmem:[#allocation3 + $0x330] ss:$36 sps:$4 sm:$0xff]   ;;  %v8330_v30 = vrot.slane %v8329_v12, 4  ;;  %v7496_v49 = vrot.slane %v7494_v51, 5  ;;  %v7502_v53 = vrot.slane %v7500_v33, 5  ;;  %v12407_v46 = vpop.f32.mrf.mxu1 }
 0x445   : > { %v13452_v36 = vld [vmem:[#allocation3 + $0x334] ss:$36 sps:$4 sm:$0xff]   ;;  %v8340_v20 = vrot.slane %v8339_v50, 4  ;;  %v7506_v31 = vrot.slane %v7504_v19, 4  ;;  %v7948_v28 = vld [vmem:[#allocation2 + $0xb4] sm:$0xf]  ;;  %v16263_v26 = vadd.f32 %v12523_v38, %v12522_v5 }
 0x446   : > { %10836 = vmatprep.mubr.bf16.mxu0 %v13452_v36  ;;  %v8335_v37 = vsel %vm13689_vm11, %v8330_v30, %v8334_v29  ;;  %v7512_v23 = vrot.slane %v7510_v2, 5  ;;  %v7832_v59 = vrot.slane %v7687_v15, 5  ;;  %v7835_v60 = vrot.slane %v7688_v34, 5  ;;  %v7949_v1 = vld [vmem:[#allocation2 + $0xb8] sm:$0xf]  ;;  %v12408_v5 = vpop.f32.mrf.mxu1 }
 0x447   : > { %7980 = vst [vmem:[#allocation3 + $0x3c0] sm:$0xf] %v7948_v28  ;;  %10837 = vmatmul.mubr.bf16.gmra.mxu0 %v13450_v13  ;;  %v8345_v56 = vsel %vm13689_vm11, %v8340_v20, %v8344_v10  ;;  %8474 = vst [vmem:[#allocation3 + $0x37c] sm:$0xf] %v8335_v37  ;;  %v7497_v11 = vor.u32 %v7496_v49, %v7493_v8  ;;  %v7507_v47 = vor.u32 %v7506_v31, %v7502_v53  ;;  %v8025_v32 = vld [vmem:[#allocation2 + $0xb4] sm:$0xf]  ;;  %v16271_v13 = vpop.f32.mrf.mxu0 }
 0x448   : > { %7981 = vst [vmem:[#allocation3 + $0x3e4] sm:$0xf] %v7949_v1  ;;  %v8026_v48 = vld [vmem:[#allocation2 + $0xb8] sm:$0xf]  ;;  %v8027_v44 = vld [vmem:[#allocation2 + $0xbc] sm:$0x1]  ;;  %v7833_v58 = vsel %vm13697_vm12, %v11587_v9, %v7832_v59  ;;  %v12410_v37 = vpop.f32.mrf.mxu1  ;;  %v12409_v6 = vadd.f32 %v12408_v5, %v12407_v46 }
 0x449   : > { %v13453_v27 = vld [vmem:[#allocation3 + $0x328] ss:$36 sps:$4 sm:$0xff]   ;;  %8475 = vst [vmem:[#allocation3 + $0x3a0] sm:$0xf] %v8345_v56  ;;  %v7834_v63 = vrot.slane %v7832_v59, 4  ;;  %v7498_v41 = vrot.slane %v7497_v11, 4 }
 0x44a   : > { %v13455_v4 = vld [vmem:[#allocation3 + $0x32c] ss:$36 sps:$4 sm:$0xff]   ;;  %v7508_v29 = vrot.slane %v7507_v47, 4  ;;  %7914 = vst [vmem:[#allocation3 + $0x374] sm:$0xf] %v7833_v58  ;;  %v8347_v14 = vshrl.u32 %v8025_v32, 16 }
 0x44b   : > { %v8350_v10 = vshll.u32 %v8025_v32, 16  ;;  %v7193_v52 = vld [vmem:[#allocation2 + $0xa8] sm:$0xf]  ;;  %10675 = vmatprep.mubr.bf16.mxu1 %v13455_v4  ;;  %v7836_v18 = vsel %vm13697_vm12, %v7834_v63, %v7835_v60  ;;  %v8356_v12 = vshll.u32 %v8026_v48, 16  ;;  %v8360_v51 = vshrl.u32 %v8026_v48, 16 }
 0x44c   : > { %v8366_v33 = vshll.u32 %v8027_v44, 16  ;;  %v7194_v19 = vld [vmem:[#allocation2 + $0xac] sm:$0xf]  ;;  %10676 = vmatmul.mubr.bf16.gmra.mxu1 %v13453_v27  ;;  %v7503_v15 = vsel %vm13689_vm11, %v7498_v41, %v7502_v53  ;;  %v7513_v50 = vsel %vm13689_vm11, %v7508_v29, %v7512_v23  ;;  %7915 = vst [vmem:[#allocation3 + $0x398] sm:$0xf] %v7836_v18  ;;  %v8349_v8 = vrot.slane %v8347_v14, 4  ;;  %v16273_v23 = vpop.f32.mrf.mxu0  ;;  %v12411_v27 = vpop.f32.mrf.mxu1 }
 0x44d   : > { %v8352_v2 = vrot.slane %v8350_v10, 5  ;;  %v7195_v34 = vld [vmem:[#allocation2 + $0xb0] sm:$0x1]  ;;  %v7689_v9 = vld [vmem:[#allocation2 + $0xa8] sm:$0xe]  ;;  %v8358_v36 = vrot.slane %v8356_v12, 5  ;;  %v16276_v44 = vadd.f32 %v12406_v17, %v16146_v21  ;;  %v16278_v4 = vadd.f32 %v12526_v62, %v12525_v42 }
 0x44e   : > { %7642 = vst [vmem:[#allocation3 + $0x370] sm:$0xf] %v7503_v15  ;;  %7643 = vst [vmem:[#allocation3 + $0x394] sm:$0xf] %v7513_v50  ;;  %v8362_v30 = vrot.slane %v8360_v51, 4  ;;  %v8368_v57 = vrot.slane %v8366_v33, 5  ;;  %v16280_v58 = vpop.f32.mrf.mxu0  ;;  %v16284_v51 = vpop.f32.mrf.mxu1  ;;  %v16291_v15 = vadd.f32 %v12409_v6, %v16146_v21 }
 0x44f   : > { %v7515_v20 = vshrl.u32 %v7193_v52, 16  ;;  %v7690_v49 = vld [vmem:[#allocation2 + $0xac] sm:$0xf]  ;;  %v8353_v31 = vor.u32 %v8352_v2, %v8349_v8  ;;  %v7518_v53 = vshll.u32 %v7193_v52, 16  ;;  %v7524_v55 = vshll.u32 %v7194_v19, 16 }
 0x450   : > { %v7528_v28 = vshrl.u32 %v7194_v19, 16  ;;  %v7691_v38 = vld [vmem:[#allocation2 + $0xb0] sm:$0x1]  ;;  %v8363_v59 = vor.u32 %v8362_v30, %v8358_v36  ;;  %v7534_v1 = vshll.u32 %v7195_v34, 16  ;;  %v11588_v56 = vrot.slane %v7689_v9, 9  ;;  %v16286_v42 = vpop.f32.mrf.mxu0 }
 0x451   : > { %v7517_v60 = vrot.slane %v7515_v20, 4  ;;  %v7950_v11 = vld [vmem:[#allocation2 + $0xc0] sm:$0xf]  ;;  %v13456_v47 = vld [vmem:[#allocation3 + $0x378] ss:$36 sps:$4 sm:$0xff]   ;;  %v8354_v48 = vrot.slane %v8353_v31, 4  ;;  %v12412_v30 = vadd.f32 %v12411_v27, %v12410_v37  ;;  %v12414_v20 = vpop.f32.mrf.mxu1 }
 0x452   : > { %v13458_v32 = vld [vmem:[#allocation3 + $0x37c] ss:$36 sps:$4 sm:$0xff]   ;;  %7982 = vst [vmem:[#allocation3 + $0x408] sm:$0xf] %v7950_v11  ;;  %v8364_v63 = vrot.slane %v8363_v59, 4  ;;  %v7520_v41 = vrot.slane %v7518_v53, 5 }
 0x453   : > { %v7526_v29 = vrot.slane %v7524_v55, 5  ;;  %v7530_v14 = vrot.slane %v7528_v28, 4  ;;  %v7951_v10 = vld [vmem:[#allocation2 + $0xc4] sm:$0xf]  ;;  %10844 = vmatprep.mubr.bf16.mxu0 %v13458_v32  ;;  %v8359_v52 = vsel %vm13689_vm11, %v8354_v48, %v8358_v36  ;;  %v7536_v18 = vrot.slane %v7534_v1, 5 }
 0x454   : > { %v7839_v12 = vrot.slane %v7690_v49, 5  ;;  %v7842_v17 = vrot.slane %v7691_v38, 5  ;;  %7983 = vst [vmem:[#allocation3 + $0x42c] sm:$0xf] %v7951_v10  ;;  %v8028_v46 = vld [vmem:[#allocation2 + $0xc0] sm:$0xf]  ;;  %10845 = vmatmul.mubr.bf16.gmra.mxu0 %v13456_v47  ;;  %v8369_v62 = vsel %vm13689_vm11, %v8364_v63, %v8368_v57  ;;  %v7521_v33 = vor.u32 %v7520_v41, %v7517_v60  ;;  %v16295_v49 = vpop.f32.mrf.mxu0 }
 0x455   : > { %8476 = vst [vmem:[#allocation3 + $0x3c4] sm:$0xf] %v8359_v52  ;;  %v7531_v19 = vor.u32 %v7530_v14, %v7526_v29  ;;  %v8029_v50 = vld [vmem:[#allocation2 + $0xc4] sm:$0xf]  ;;  %v8030_v8 = vld [vmem:[#allocation2 + $0xc8] sm:$0x1] }
 0x456   : > { %v7196_v2 = vld [vmem:[#allocation2 + $0xb4] sm:$0xf]  ;;  %v13459_v34 = vld [vmem:[#allocation3 + $0x370] ss:$36 sps:$4 sm:$0xff]   ;;  %8477 = vst [vmem:[#allocation3 + $0x3e8] sm:$0xf] %v8369_v62  ;;  %v7840_v9 = vsel %vm13697_vm12, %v11588_v56, %v7839_v12  ;;  %v16299_v56 = vpop.f32.mrf.mxu1  ;;  %v16301_v47 = vpop.f32.mrf.mxu0 }
 0x457   : > { %v7841_v5 = vrot.slane %v7839_v12, 4  ;;  %v8371_v36 = vshrl.u32 %v8028_v46, 16  ;;  %v13461_v57 = vld [vmem:[#allocation3 + $0x374] ss:$36 sps:$4 sm:$0xff]   ;;  %v7522_v31 = vrot.slane %v7521_v33, 4  ;;  %v7532_v53 = vrot.slane %v7531_v19, 4 }
 0x458   : > { %7916 = vst [vmem:[#allocation3 + $0x3bc] sm:$0xf] %v7840_v9  ;;  %v8374_v55 = vshll.u32 %v8028_v46, 16  ;;  %v8380_v28 = vshll.u32 %v8029_v50, 16  ;;  %v8384_v60 = vshrl.u32 %v8029_v50, 16  ;;  %v8390_v1 = vshll.u32 %v8030_v8, 16  ;;  %10683 = vmatprep.mubr.bf16.mxu1 %v13461_v57  ;;  %v16307_v46 = vpop.f32.mrf.mxu0 }
 0x459   : > { %v7843_v38 = vsel %vm13697_vm12, %v7841_v5, %v7842_v17  ;;  %v8373_v59 = vrot.slane %v8371_v36, 4  ;;  %v7197_v11 = vld [vmem:[#allocation2 + $0xb8] sm:$0xf]  ;;  %v7527_v37 = vsel %vm13689_vm11, %v7522_v31, %v7526_v29  ;;  %v7537_v32 = vsel %vm13689_vm11, %v7532_v53, %v7536_v18  ;;  %v7198_v27 = vld [vmem:[#allocation2 + $0xbc] sm:$0x1]  ;;  %10684 = vmatmul.mubr.bf16.gmra.mxu1 %v13459_v34  ;;  %v12417_v17 = vpop.f32.mrf.mxu1 }
 0x45a   : > { %7917 = vst [vmem:[#allocation3 + $0x3e0] sm:$0xf] %v7843_v38  ;;  %v8376_v48 = vrot.slane %v8374_v55, 5  ;;  %v8382_v6 = vrot.slane %v8380_v28, 5  ;;  %v7692_v63 = vld [vmem:[#allocation2 + $0xb4] sm:$0xe]  ;;  %v16311_v57 = vpop.f32.mrf.mxu0  ;;  %v16314_v55 = vadd.f32 %v12412_v30, %v16146_v21  ;;  %v12415_v28 = vadd.f32 %v12414_v20, %v16284_v51 }
 0x45b   : > { %7644 = vst [vmem:[#allocation3 + $0x3b8] sm:$0xf] %v7527_v37  ;;  %7645 = vst [vmem:[#allocation3 + $0x3dc] sm:$0xf] %v7537_v32  ;;  %v8386_v41 = vrot.slane %v8384_v60, 4  ;;  %v8392_v14 = vrot.slane %v8390_v1, 5  ;;  %v16309_v36 = vpop.f32.mrf.mxu1  ;;  %v16319_v38 = vadd.f32 %v16273_v23, %v16271_v13 }
 0x45c   : > { %v7539_v10 = vshrl.u32 %v7196_v2, 16  ;;  %v7542_v52 = vshll.u32 %v7196_v2, 16  ;;  %v7693_v12 = vld [vmem:[#allocation2 + $0xb8] sm:$0xf]  ;;  %v8377_v29 = vor.u32 %v8376_v48, %v8373_v59  ;;  %v7548_v62 = vshll.u32 %v7197_v11, 16  ;;  %v16321_v48 = vpop.f32.mrf.mxu0 }
 0x45d   : > { %v7552_v33 = vshrl.u32 %v7197_v11, 16  ;;  %v7558_v18 = vshll.u32 %v7198_v27, 16  ;;  %v7694_v19 = vld [vmem:[#allocation2 + $0xbc] sm:$0x1]  ;;  %v8387_v50 = vor.u32 %v8386_v41, %v8382_v6  ;;  %v11589_v5 = vrot.slane %v7692_v63, 9  ;;  %v12420_v32 = vpop.f32.mrf.mxu1 }
 0x45e   : > { %v7541_v8 = vrot.slane %v7539_v10, 4  ;;  %v7544_v9 = vrot.slane %v7542_v52, 5  ;;  %v7199_v34 = vld [vmem:[#allocation2 + $0xc0] sm:$0xf]  ;;  %v13463_v31 = vld [vmem:[#allocation3 + $0x3c0] ss:$36 sps:$4 sm:$0xff]  }
 0x45f   : > { %v13465_v2 = vld [vmem:[#allocation3 + $0x3c4] ss:$36 sps:$4 sm:$0xff]   ;;  %v8378_v53 = vrot.slane %v8377_v29, 4  ;;  %v8388_v59 = vrot.slane %v8387_v50, 4  ;;  %v7550_v1 = vrot.slane %v7548_v62, 5  ;;  %v7554_v11 = vrot.slane %v7552_v33, 4  ;;  %v16335_v29 = vpop.f32.mrf.mxu0 }
 0x460   : > { %v7545_v60 = vor.u32 %v7544_v9, %v7541_v8  ;;  %v7200_v37 = vld [vmem:[#allocation2 + $0xc4] sm:$0xf]  ;;  %10852 = vmatprep.mubr.bf16.mxu0 %v13465_v2  ;;  %v7560_v21 = vrot.slane %v7558_v18, 5  ;;  %v7846_v30 = vrot.slane %v7693_v12, 5  ;;  %v7849_v63 = vrot.slane %v7694_v19, 5  ;;  %v12422_v12 = vpop.f32.mrf.mxu1 }
 0x461   : > { %v8383_v27 = vsel %vm13689_vm11, %v8378_v53, %v8382_v6  ;;  %v7201_v51 = vld [vmem:[#allocation2 + $0xc8] sm:$0x1]  ;;  %10853 = vmatmul.mubr.bf16.gmra.mxu0 %v13463_v31  ;;  %v8393_v13 = vsel %vm13689_vm11, %v8388_v59, %v8392_v14  ;;  %v7555_v20 = vor.u32 %v7554_v11, %v7550_v1  ;;  %v16330_v41 = vld [vmem:[%s16987_s4] ss:$0 sm:$0xff]  ;;  %v7695_v6 = vld [vmem:[#allocation2 + $0xc0] sm:$0xe]  ;;  %v12418_v19 = vadd.f32 %v12417_v17, %v16299_v56 }
 0x462   : > { %8478 = vst [vmem:[#allocation3 + $0x40c] sm:$0xf] %v8383_v27  ;;  %v7546_v23 = vrot.slane %v7545_v60, 4  ;;  %v16333_v10 = vadd.f32 %v16330_v41, %v12415_v28  ;;  %v7696_v52 = vld [vmem:[#allocation2 + $0xc4] sm:$0xf]  ;;  %v7847_v14 = vsel %vm13697_vm12, %v11589_v5, %v7846_v30  ;;  %v7848_v33 = vrot.slane %v7846_v30, 4  ;;  %v12423_v53 = vpop.f32.mrf.mxu1  ;;  %v16342_v28 = vpop.f32.mrf.mxu0 }
 0x463   : > { %v13466_v62 = vld [vmem:[#allocation3 + $0x3b8] ss:$36 sps:$4 sm:$0xff]   ;;  %8479 = vst [vmem:[#allocation3 + $0x430] sm:$0xf] %v8393_v13  ;;  %v7563_v18 = vshrl.u32 %v7199_v34, 16  ;;  %v7556_v9 = vrot.slane %v7555_v20, 4  ;;  %v16393_v3 = vadd.f32 %v16335_v29, %v16321_v48 }
 0x464   : > { %v13468_v50 = vld [vmem:[#allocation3 + $0x3bc] ss:$36 sps:$4 sm:$0xff]   ;;  %v7551_v8 = vsel %vm13689_vm11, %v7546_v23, %v7550_v1  ;;  %7918 = vst [vmem:[#allocation3 + $0x404] sm:$0xf] %v7847_v14  ;;  %v7566_v31 = vshll.u32 %v7199_v34, 16  ;;  %v7572_v2 = vshll.u32 %v7200_v37, 16  ;;  %v7850_v59 = vsel %vm13697_vm12, %v7848_v33, %v7849_v63  ;;  %v12425_v30 = vpop.f32.mrf.mxu1  ;;  %v16348_v13 = vpop.f32.mrf.mxu0 }
 0x465   : > { %7646 = vst [vmem:[#allocation3 + $0x400] sm:$0xf] %v7551_v8  ;;  %v7565_v5 = vrot.slane %v7563_v18, 4  ;;  %v7576_v60 = vshrl.u32 %v7200_v37, 16  ;;  %v7582_v11 = vshll.u32 %v7201_v51, 16  ;;  %10691 = vmatprep.mubr.bf16.mxu1 %v13468_v50  ;;  %v7561_v56 = vsel %vm13689_vm11, %v7556_v9, %v7560_v21 }
 0x466   : > { %v7697_v27 = vld [vmem:[#allocation2 + $0xc8] sm:$0x1]  ;;  %7919 = vst [vmem:[#allocation3 + $0x428] sm:$0xf] %v7850_v59  ;;  %v7568_v17 = vrot.slane %v7566_v31, 5  ;;  %v7574_v1 = vrot.slane %v7572_v2, 5  ;;  %10692 = vmatmul.mubr.bf16.gmra.mxu1 %v13466_v62  ;;  %v16351_v51 = vadd.f32 %v16330_v41, %v12418_v19  ;;  %v16355_v21 = vadd.f32 %v16286_v42, %v16280_v58  ;;  %v12426_v62 = vpop.f32.mrf.mxu1  ;;  %v16358_v9 = vpop.f32.mrf.mxu0 }
 0x467   : > { %v11590_v34 = vrot.slane %v7695_v6, 9  ;;  %7647 = vst [vmem:[#allocation3 + $0x424] sm:$0xf] %v7561_v56  ;;  %v7578_v23 = vrot.slane %v7576_v60, 4  ;;  %v7584_v20 = vrot.slane %v7582_v11, 5  ;;  %v7853_v63 = vrot.slane %v7696_v52, 5 }
 0x468   : > { %v7856_v14 = vrot.slane %v7697_v27, 5  ;;  %v7569_v37 = vor.u32 %v7568_v17, %v7565_v5  ;;  %v12421_v33 = vadd.f32 %v12420_v32, %v16309_v36  ;;  %v13481_v6 = vld [vmem:[#allocation3 + $0x454] ss:$36 sps:$4 sm:$0xff]   ;;  %v8482_v18 = vld [vmem:[#allocation2 + $0x18] sm:$0xe]  ;;  %v16364_v19 = vadd.f32 %v16301_v47, %v16295_v49  ;;  %v12428_v27 = vpop.f32.mrf.mxu1  ;;  %v16373_v56 = vpop.f32.mrf.mxu0 }
 0x469   : > { %v8483_v50 = vld [vmem:[#allocation2 + $0x1c] sm:$0xf]  ;;  %v8484_v8 = vld [vmem:[#allocation2 + $0x20] sm:$0x1]  ;;  %v7579_v31 = vor.u32 %v7578_v23, %v7574_v1  ;;  %v7854_v52 = vsel %vm13697_vm12, %v11590_v34, %v7853_v63  ;;  %v7855_v2 = vrot.slane %v7853_v63, 4  ;;  %v12424_v60 = vadd.f32 %v12423_v53, %v12422_v12 }
 0x46a   : > { %v8485_v58 = vld [vmem:[#allocation2 + $0x24] sm:$0xe]  ;;  %v8486_v42 = vld [vmem:[#allocation2 + $0x28] sm:$0xf]  ;;  %v7570_v32 = vrot.slane %v7569_v37, 4  ;;  %v16367_v5 = vadd.f32 %v16330_v41, %v12421_v33  ;;  %v16371_v11 = vadd.f32 %v16311_v57, %v16307_v46  ;;  %v11591_v47 = vrot.slane %v8482_v18, 9  ;;  %v12429_v33 = vpop.f32.mrf.mxu1 }
 0x46b   : > { %v13469_v59 = vld [vmem:[#allocation3 + $0x408] ss:$36 sps:$4 sm:$0xff]   ;;  %7920 = vst [vmem:[#allocation3 + $0x44c] sm:$0xf] %v7854_v52  ;;  %v7580_v17 = vrot.slane %v7579_v31, 4  ;;  %v7857_v49 = vsel %vm13697_vm12, %v7855_v2, %v7856_v14  ;;  %v8580_v34 = vrot.slane %v8483_v50, 5  ;;  %v16380_v53 = vadd.f32 %v16330_v41, %v12424_v60  ;;  %v16382_v31 = vpop.f32.mrf.mxu0 }
 0x46c   : > { %v13471_v36 = vld [vmem:[#allocation3 + $0x40c] ss:$36 sps:$4 sm:$0xff]   ;;  %v8487_v23 = vld [vmem:[#allocation2 + $0x2c] sm:$0x1]  ;;  %v7575_v63 = vsel %vm13689_vm11, %v7570_v32, %v7574_v1  ;;  %7921 = vst [vmem:[#allocation3 + $0x470] sm:$0xf] %v7857_v49  ;;  %v12427_v46 = vadd.f32 %v12426_v62, %v12425_v30 }
 0x46d   : > { %10860 = vmatprep.mubr.bf16.mxu0 %v13471_v36  ;;  %v8583_v12 = vrot.slane %v8484_v8, 5  ;;  %v8488_v57 = vld [vmem:[#allocation2 + $0x30] sm:$0xe]  ;;  %v8489_v37 = vld [vmem:[#allocation2 + $0x34] sm:$0xf]  ;;  %v7585_v14 = vsel %vm13689_vm11, %v7580_v17, %v7584_v20  ;;  %v8581_v18 = vsel %vm13697_vm12, %v11591_v47, %v8580_v34  ;;  %v8582_v1 = vrot.slane %v8580_v34, 4  ;;  %v12550_v32 = vpop.f32.mrf.mxu0 }
 0x46e   : > { %10861 = vmatmul.mubr.bf16.gmra.mxu0 %v13469_v59  ;;  %7648 = vst [vmem:[#allocation3 + $0x448] sm:$0xf] %v7575_v63  ;;  %v11592_v50 = vrot.slane %v8485_v58, 9  ;;  %v8490_v8 = vld [vmem:[#allocation2 + $0x38] sm:$0x1]  ;;  %v16389_v30 = vadd.f32 %v16330_v41, %v12427_v46  ;;  %v8587_v62 = vrot.slane %v8486_v42, 5  ;;  %v12430_v20 = vadd.f32 %v12429_v33, %v12428_v27  ;;  %v12431_v59 = vpop.f32.mrf.mxu1 }
 0x46f   : > { %v8491_v52 = vld [vmem:[#allocation2 + $0x3c] sm:$0xe]  ;;  %7649 = vst [vmem:[#allocation3 + $0x46c] sm:$0xf] %v7585_v14  ;;  %10868 = vmatprep.mubr.bf16.mxu0 %v13481_v6  ;;  %8722 = vst [vmem:[#allocation3 + $0x20] sm:$0xf] %v8581_v18  ;;  %v8584_v58 = vsel %vm13697_vm12, %v8582_v1, %v8583_v12  ;;  %v12552_v33 = vpop.f32.mrf.mxu0 }
 0x470   : > { %v13472_v2 = vld [vmem:[#allocation3 + $0x400] ss:$36 sps:$4 sm:$0xff]   ;;  %v13479_v60 = vld [vmem:[#allocation3 + $0x450] ss:$36 sps:$4 sm:$0xff]   ;;  %v8590_v17 = vrot.slane %v8487_v23, 5  ;;  %v11593_v49 = vrot.slane %v8488_v57, 9  ;;  %v8588_v42 = vsel %vm13697_vm12, %v11592_v50, %v8587_v62  ;;  %v16400_v48 = vadd.f32 %v16330_v41, %v12430_v20  ;;  %v12432_v29 = vpop.f32.mrf.mxu1 }
 0x471   : > { %v13474_v36 = vld [vmem:[#allocation3 + $0x404] ss:$36 sps:$4 sm:$0xff]   ;;  %v8594_v47 = vrot.slane %v8489_v37, 5  ;;  %8723 = vst [vmem:[#allocation3 + $0x44] sm:$0xf] %v8584_v58  ;;  %v8589_v34 = vrot.slane %v8587_v62, 4  ;;  %v16406_v57 = vadd.f32 %v16348_v13, %v16342_v28  ;;  %v12433_v37 = vadd.f32 %v12432_v29, %v12431_v59  ;;  %v12553_v20 = vpop.f32.mrf.mxu0 }
 0x472   : > { %v8492_v6 = vld [vmem:[#allocation2 + $0x40] sm:$0xf]  ;;  %10699 = vmatprep.mubr.bf16.mxu1 %v13474_v36  ;;  %v8597_v63 = vrot.slane %v8490_v8, 5  ;;  %v8493_v27 = vld [vmem:[#allocation2 + $0x44] sm:$0x1]  ;;  %v12434_v50 = vpop.f32.mrf.mxu1  ;;  %v11594_v8 = vrot.slane %v8491_v52, 9  ;;  %v16417_v13 = vadd.f32 %v16373_v56, %v16358_v9  ;;  %v16422_v9 = vadd.f32 %v12550_v32, %v16382_v31 }
 0x473   : > { %v8494_v46 = vld [vmem:[#allocation2 + $0x48] sm:$0xe]  ;;  %10700 = vmatmul.mubr.bf16.gmra.mxu1 %v13472_v2  ;;  %8724 = vst [vmem:[#allocation3 + $0x68] sm:$0xf] %v8588_v42  ;;  %v8595_v23 = vsel %vm13697_vm12, %v11593_v49, %v8594_v47  ;;  %v8596_v12 = vrot.slane %v8594_v47, 4  ;;  %v8591_v1 = vsel %vm13697_vm12, %v8589_v34, %v8590_v17  ;;  %v8601_v36 = vrot.slane %v8492_v6, 5 }
 0x474   : > { %v8495_v14 = vld [vmem:[#allocation2 + $0x4c] sm:$0xf]  ;;  %v8496_v18 = vld [vmem:[#allocation2 + $0x50] sm:$0x1]  ;;  %8726 = vst [vmem:[#allocation3 + $0xb0] sm:$0xf] %v8595_v23  ;;  %v16413_v28 = vadd.f32 %v16330_v41, %v12433_v37  ;;  %v12435_v34 = vpop.f32.mrf.mxu1 }
 0x475   : > { %v8604_v2 = vrot.slane %v8493_v27, 5  ;;  %v8497_v62 = vld [vmem:[#allocation2 + $0x54] sm:$0xe]  ;;  %8725 = vst [vmem:[#allocation3 + $0x8c] sm:$0xf] %v8591_v1  ;;  %v8598_v58 = vsel %vm13697_vm12, %v8596_v12, %v8597_v63  ;;  %v11595_v59 = vrot.slane %v8494_v46, 9  ;;  %v8602_v52 = vsel %vm13697_vm12, %v11594_v8, %v8601_v36  ;;  %v12555_v63 = vpop.f32.mrf.mxu0 }
 0x476   : > { %v8498_v17 = vld [vmem:[#allocation2 + $0x58] sm:$0xf]  ;;  %v8499_v49 = vld [vmem:[#allocation2 + $0x5c] sm:$0x1]  ;;  %8727 = vst [vmem:[#allocation3 + $0xd4] sm:$0xf] %v8598_v58  ;;  %10869 = vmatmul.mubr.bf16.gmra.mxu0 %v13479_v60  ;;  %v12436_v12 = vadd.f32 %v12435_v34, %v12434_v50  ;;  %v16424_v46 = vadd.f32 %v12553_v20, %v12552_v33  ;;  %v12437_v1 = vpop.f32.mrf.mxu1 }
 0x477   : > { %v8603_v47 = vrot.slane %v8601_v36, 4  ;;  %v8608_v6 = vrot.slane %v8495_v14, 5  ;;  %v8611_v42 = vrot.slane %v8496_v18, 5  ;;  %v8500_v29 = vld [vmem:[#allocation2 + $0x60] sm:$0xe]  ;;  %v11596_v56 = vrot.slane %v8497_v62, 9  ;;  %v12556_v58 = vpop.f32.mrf.mxu0 }
 0x478   : > { %v13476_v27 = vld [vmem:[#allocation3 + $0x448] ss:$36 sps:$4 sm:$0xff]   ;;  %8728 = vst [vmem:[#allocation3 + $0xf8] sm:$0xf] %v8602_v52  ;;  %v8615_v8 = vrot.slane %v8498_v17, 5  ;;  %v16431_v31 = vadd.f32 %v16330_v41, %v12436_v12  ;;  %v8618_v32 = vrot.slane %v8499_v49, 5  ;;  %v16433_v50 = vadd.f32 %v12556_v58, %v12555_v63  ;;  %v12438_v62 = vpop.f32.mrf.mxu1 }
 0x479   : > { %v13478_v23 = vld [vmem:[#allocation3 + $0x44c] ss:$36 sps:$4 sm:$0xff]   ;;  %v8605_v37 = vsel %vm13697_vm12, %v8603_v47, %v8604_v2  ;;  %v8609_v14 = vsel %vm13697_vm12, %v11595_v59, %v8608_v6  ;;  %v8610_v18 = vrot.slane %v8608_v6, 4  ;;  %v13482_v60 = vld [vmem:[#allocation3 + $0x20] ss:$36 sps:$4 sm:$0xff]   ;;  %v11597_v33 = vrot.slane %v8500_v29, 9  ;;  %v12558_v47 = vpop.f32.mrf.mxu0 }
 0x47a   : > { %v8501_v36 = vld [vmem:[#allocation2 + $0x64] sm:$0xf]  ;;  %10707 = vmatprep.mubr.bf16.mxu1 %v13478_v23  ;;  %8729 = vst [vmem:[#allocation3 + $0x11c] sm:$0xf] %v8605_v37  ;;  %8730 = vst [vmem:[#allocation3 + $0x140] sm:$0xf] %v8609_v14  ;;  %v8616_v20 = vsel %vm13697_vm12, %v11596_v56, %v8615_v8  ;;  %v12439_v6 = vadd.f32 %v12438_v62, %v12437_v1  ;;  %v16441_v29 = vadd.f32 %v16206_v16, %v16247_v54  ;;  %v12440_v63 = vpop.f32.mrf.mxu1 }
 0x47b   : > { %v8612_v2 = vsel %vm13697_vm12, %v8610_v18, %v8611_v42  ;;  %v8617_v59 = vrot.slane %v8615_v8, 4  ;;  %v8502_v17 = vld [vmem:[#allocation2 + $0x68] sm:$0x1]  ;;  %v8622_v52 = vrot.slane %v8501_v36, 5  ;;  %10708 = vmatmul.mubr.bf16.gmra.mxu1 %v13476_v27  ;;  %8732 = vst [vmem:[#allocation3 + $0x188] sm:$0xf] %v8616_v20  ;;  %v16445_v42 = vadd.f32 %v16215_v22, %v16259_v25  ;;  %v12559_v37 = vpop.f32.mrf.mxu0 }
 0x47c   : > { %8731 = vst [vmem:[#allocation3 + $0x164] sm:$0xf] %v8612_v2  ;;  %v8625_v34 = vrot.slane %v8502_v17, 5  ;;  %v8503_v49 = vld [vmem:[#allocation2 + $0x6c] sm:$0xe]  ;;  %12900 = vmatprep.mubr.bf16.mxu1 %v13482_v60  ;;  %v10343_v14 = vadd.f32 %v16330_v41, %v12439_v6  ;;  %v16452_v54 = vadd.f32 %v12559_v37, %v12558_v47  ;;  %v16456_v22 = vadd.f32 %v16250_v24, %v16276_v44  ;;  %v12441_v1 = vpop.f32.mrf.mxu1 }
 0x47d   : > { %v8619_v23 = vsel %vm13697_vm12, %v8617_v59, %v8618_v32  ;;  %v8623_v27 = vsel %vm13697_vm12, %v11597_v33, %v8622_v52  ;;  %v8624_v12 = vrot.slane %v8622_v52, 4  ;;  %v11598_v56 = vrot.slane %v8503_v49, 9  ;;  %v8504_v16 = vld [vmem:[#allocation2 + $0x70] sm:$0xf]  ;;  %v8505_v8 = vld [vmem:[#allocation2 + $0x74] sm:$0x1]  ;;  %v12561_v58 = vpop.f32.mrf.mxu0 }
 0x47e   : > { %8733 = vst [vmem:[#allocation3 + $0x1ac] sm:$0xf] %v8619_v23  ;;  %8734 = vst [vmem:[#allocation3 + $0x1d0] sm:$0xf] %v8623_v27  ;;  %v16460_v25 = vadd.f32 %v16252_v43, %v16291_v15  ;;  %v8629_v36 = vrot.slane %v8504_v16, 5  ;;  %v16466_v60 = vadd.f32 %v16263_v26, %v16314_v55  ;;  %v16470_v32 = vadd.f32 %v16278_v4, %v16333_v10  ;;  %v12443_v62 = vpop.f32.mrf.mxu1 }
 0x47f   : > { %v8626_v18 = vsel %vm13697_vm12, %v8624_v12, %v8625_v34  ;;  %v12442_v24 = vadd.f32 %v12441_v1, %v12440_v63  ;;  %v8506_v44 = vld [vmem:[#allocation2 + $0x78] sm:$0xe]  ;;  %v8507_v43 = vld [vmem:[#allocation2 + $0x7c] sm:$0xf]  ;;  %v16474_v15 = vadd.f32 %v16319_v38, %v16351_v51  ;;  %v16478_v33 = vadd.f32 %v16355_v21, %v16367_v5  ;;  %v13483_v2 = vld [vmem:[#allocation3 + $0x68] ss:$36 sps:$4 sm:$0xff]   ;;  %v12562_v55 = vpop.f32.mrf.mxu0 }
 0x480   : > { %8735 = vst [vmem:[#allocation3 + $0x1f4] sm:$0xf] %v8626_v18  ;;  %v8630_v26 = vsel %vm13697_vm12, %v11598_v56, %v8629_v36  ;;  %v16484_v4 = vadd.f32 %v16364_v19, %v16380_v53  ;;  %v16488_v10 = vadd.f32 %v16371_v11, %v16389_v30  ;;  %v16492_v38 = vadd.f32 %v16393_v3, %v16400_v48  ;;  %v13484_v51 = vld [vmem:[#allocation3 + $0xb0] ss:$36 sps:$4 sm:$0xff]   ;;  %v12444_v17 = vpop.f32.mrf.mxu1  ;;  %v8508_v52 = vld [vmem:[#allocation2 + $0x80] sm:$0x1] }
 0x481   : > { %v8631_v21 = vrot.slane %v8629_v36, 4  ;;  %v8632_v5 = vrot.slane %v8505_v8, 5  ;;  %8736 = vst [vmem:[#allocation3 + $0x218] sm:$0xf] %v8630_v26  ;;  %v11599_v20 = vrot.slane %v8506_v44, 9  ;;  %v8636_v59 = vrot.slane %v8507_v43, 5  ;;  %v12564_v19 = vpop.f32.mrf.mxu0 }
 0x482   : > { %v16494_v47 = vadd.f32 %v12562_v55, %v12561_v58  ;;  %v16498_v53 = vadd.f32 %v16406_v57, %v16413_v28  ;;  %v16502_v11 = vadd.f32 %v16417_v13, %v16431_v31  ;;  %v16505_v30 = vadd.f32 %v16422_v9, %v10343_v14  ;;  %v8509_v49 = vld [vmem:[#allocation2 + $0x84] sm:$0xe]  ;;  %v8510_v63 = vld [vmem:[#allocation2 + $0x88] sm:$0xf]  ;;  %v12446_v28 = vpop.f32.mrf.mxu1  ;;  %v8511_v31 = vld [vmem:[#allocation2 + $0x8c] sm:$0x1] }
 0x483   : > { %12901 = vmatmul.mubr.bf16.vlgmr.msra.gmra.mxu1 %v13483_v2  ;;  %v12445_v3 = vadd.f32 %v12444_v17, %v12443_v62  ;;  %v8633_v48 = vsel %vm13697_vm12, %v8631_v21, %v8632_v5  ;;  %v8637_v6 = vsel %vm13697_vm12, %v11599_v20, %v8636_v59  ;;  %v8638_v34 = vrot.slane %v8636_v59, 4  ;;  %v12565_v13 = vpop.f32.mrf.mxu0  ;;  %v13485_v16 = vld [vmem:[#allocation3 + $0xf8] ss:$36 sps:$4 sm:$0xff]   ;;  %v13486_v44 = vld [vmem:[#allocation3 + $0x140] ss:$36 sps:$4 sm:$0xff]  }
 0x484   : > { %12904 = vmatprep.mubr.bf16.mxu1 %v13484_v51  ;;  %v10348_v57 = vadd.f32 %v16330_v41, %v12442_v24  ;;  %8737 = vst [vmem:[#allocation3 + $0x23c] sm:$0xf] %v8633_v48  ;;  %8738 = vst [vmem:[#allocation3 + $0x260] sm:$0xf] %v8637_v6  ;;  %v8639_v9 = vrot.slane %v8508_v52, 5  ;;  %v11600_v23 = vrot.slane %v8509_v49, 9  ;;  %v12447_v12 = vpop.f32.mrf.mxu1  ;;  %v16512_v37 = vadd.f32 %v12565_v13, %v12564_v19 }
 0x485   : > { %v8643_v27 = vrot.slane %v8510_v63, 5  ;;  %v8646_v56 = vrot.slane %v8511_v31, 5  ;;  %v12567_v14 = vpop.f32.mrf.mxu0  ;;  %v12448_v1 = vadd.f32 %v12447_v12, %v12446_v28  ;;  %v8512_v58 = vld [vmem:[#allocation2 + $0x90] sm:$0xe]  ;;  %v8513_v24 = vld [vmem:[#allocation2 + $0x94] sm:$0xf]  ;;  %v10351_v21 = vadd.f32 %v16330_v41, %v12445_v3 }
 0x486   : > { %v8640_v18 = vsel %vm13697_vm12, %v8638_v34, %v8639_v9  ;;  %v12449_v43 = vpop.f32.mrf.mxu1  ;;  %v8514_v2 = vld [vmem:[#allocation2 + $0x98] sm:$0x1]  ;;  %v11601_v62 = vrot.slane %v8512_v58, 9  ;;  %v8650_v26 = vrot.slane %v8513_v24, 5  ;;  %v16519_v51 = vadd.f32 %v16424_v46, %v10348_v57  ;;  %v8515_v17 = vld [vmem:[#allocation2 + $0x9c] sm:$0xe] }
 0x487   : > { %v8644_v8 = vsel %vm13697_vm12, %v11600_v23, %v8643_v27  ;;  %v8645_v36 = vrot.slane %v8643_v27, 4  ;;  %8739 = vst [vmem:[#allocation3 + $0x284] sm:$0xf] %v8640_v18  ;;  %v12568_v55 = vpop.f32.mrf.mxu0  ;;  %v8653_v20 = vrot.slane %v8514_v2, 5  ;;  %v8516_v52 = vld [vmem:[#allocation2 + $0xa0] sm:$0xf] }
 0x488   : > { %8740 = vst [vmem:[#allocation3 + $0x2a8] sm:$0xf] %v8644_v8  ;;  %v16524_v59 = vadd.f32 %v12568_v55, %v12567_v14  ;;  %v12450_v19 = vpop.f32.mrf.mxu1  ;;  %v8651_v48 = vsel %vm13697_vm12, %v11601_v62, %v8650_v26  ;;  %v8652_v6 = vrot.slane %v8650_v26, 4  ;;  %v8517_v49 = vld [vmem:[#allocation2 + $0xa4] sm:$0x1]  ;;  %v11602_v46 = vrot.slane %v8515_v17, 9 }
 0x489   : > { %v8647_v5 = vsel %vm13697_vm12, %v8645_v36, %v8646_v56  ;;  %v12570_v34 = vpop.f32.mrf.mxu0  ;;  %v8657_v63 = vrot.slane %v8516_v52, 5  ;;  %v12451_v3 = vadd.f32 %v12450_v19, %v12449_v43  ;;  %8742 = vst [vmem:[#allocation3 + $0x2f0] sm:$0xf] %v8651_v48  ;;  %v8660_v31 = vrot.slane %v8517_v49, 5  ;;  %v8518_v27 = vld [vmem:[#allocation2 + $0xa8] sm:$0xe] }
 0x48a   : > { %8741 = vst [vmem:[#allocation3 + $0x2cc] sm:$0xf] %v8647_v5  ;;  %v12452_v57 = vpop.f32.mrf.mxu1  ;;  %v8654_v28 = vsel %vm13697_vm12, %v8652_v6, %v8653_v20  ;;  %v8519_v12 = vld [vmem:[#allocation2 + $0xac] sm:$0xf]  ;;  %v8520_v14 = vld [vmem:[#allocation2 + $0xb0] sm:$0x1]  ;;  %v16537_v43 = vadd.f32 %v16433_v50, %v10351_v21  ;;  %v10356_v62 = vadd.f32 %v16330_v41, %v12448_v1 }
 0x48b   : > { %12905 = vmatmul.mubr.bf16.gmra.mxu1 %v13485_v16  ;;  %v8658_v13 = vsel %vm13697_vm12, %v11602_v46, %v8657_v63  ;;  %v8659_v9 = vrot.slane %v8657_v63, 4  ;;  %v12571_v23 = vpop.f32.mrf.mxu0  ;;  %8743 = vst [vmem:[#allocation3 + $0x314] sm:$0xf] %v8654_v28  ;;  %v11603_v16 = vrot.slane %v8518_v27, 9  ;;  %v8664_v18 = vrot.slane %v8519_v12, 5 }
 0x48c   : > { %12908 = vmatprep.mubr.bf16.mxu1 %v13486_v44  ;;  %8744 = vst [vmem:[#allocation3 + $0x338] sm:$0xf] %v8658_v13  ;;  %v16532_v56 = vadd.f32 %v12571_v23, %v12570_v34  ;;  %v8521_v8 = vld [vmem:[#allocation2 + $0xb4] sm:$0xe]  ;;  %v12453_v36 = vpop.f32.mrf.mxu1  ;;  %v8522_v44 = vld [vmem:[#allocation2 + $0xb8] sm:$0xf]  ;;  %v10359_v50 = vadd.f32 %v16330_v41, %v12451_v3  ;;  %v16550_v12 = vadd.f32 %v16452_v54, %v10356_v62 }
 0x48d   : > { %v8661_v58 = vsel %vm13697_vm12, %v8659_v9, %v8660_v31  ;;  %v12573_v24 = vpop.f32.mrf.mxu0  ;;  %v13487_v2 = vld [vmem:[#allocation3 + $0x188] ss:$36 sps:$4 sm:$0xff]   ;;  %v12454_v26 = vadd.f32 %v12453_v36, %v12452_v57  ;;  %v8665_v55 = vsel %vm13697_vm12, %v11603_v16, %v8664_v18  ;;  %v8523_v5 = vld [vmem:[#allocation2 + $0xbc] sm:$0x1]  ;;  %v8666_v17 = vrot.slane %v8664_v18, 4 }
 0x48e   : > { %8745 = vst [vmem:[#allocation3 + $0x35c] sm:$0xf] %v8661_v58  ;;  %v12455_v20 = vpop.f32.mrf.mxu1  ;;  %v8667_v52 = vrot.slane %v8520_v14, 5  ;;  %8746 = vst [vmem:[#allocation3 + $0x380] sm:$0xf] %v8665_v55  ;;  %v11604_v48 = vrot.slane %v8521_v8, 9  ;;  %v16561_v62 = vadd.f32 %v16494_v47, %v10359_v50 }
 0x48f   : > { %v12574_v19 = vpop.f32.mrf.mxu0  ;;  %v8671_v6 = vrot.slane %v8522_v44, 5  ;;  %v8524_v34 = vld [vmem:[#allocation2 + $0xc0] sm:$0xe]  ;;  %v13488_v49 = vld [vmem:[#allocation3 + $0x1d0] ss:$36 sps:$4 sm:$0xff]   ;;  %v8674_v9 = vrot.slane %v8523_v5, 5 }
 0x490   : > { %v16543_v21 = vadd.f32 %v12574_v19, %v12573_v24  ;;  %v8525_v1 = vld [vmem:[#allocation2 + $0xc4] sm:$0xf]  ;;  %v12456_v46 = vpop.f32.mrf.mxu1  ;;  %v8668_v63 = vsel %vm13697_vm12, %v8666_v17, %v8667_v52  ;;  %v8526_v31 = vld [vmem:[#allocation2 + $0xc8] sm:$0x1]  ;;  %v11605_v27 = vrot.slane %v8524_v34, 9 }
 0x491   : > { %v12576_v57 = vpop.f32.mrf.mxu0  ;;  %v8672_v28 = vsel %vm13697_vm12, %v11604_v48, %v8671_v6  ;;  %v8673_v13 = vrot.slane %v8671_v6, 4  ;;  %v12457_v23 = vadd.f32 %v12456_v46, %v12455_v20  ;;  %8747 = vst [vmem:[#allocation3 + $0x3a4] sm:$0xf] %v8668_v63  ;;  %v8678_v3 = vrot.slane %v8525_v1, 5  ;;  %v13489_v17 = vld [vmem:[#allocation3 + $0x218] ss:$36 sps:$4 sm:$0xff]  }
 0x492   : > { %8748 = vst [vmem:[#allocation3 + $0x3c8] sm:$0xf] %v8672_v28  ;;  %v12458_v14 = vpop.f32.mrf.mxu1  ;;  %v8681_v24 = vrot.slane %v8526_v31, 5  ;;  %v13490_v19 = vld [vmem:[#allocation3 + $0x260] ss:$36 sps:$4 sm:$0xff]   ;;  %v10364_v48 = vadd.f32 %v16330_v41, %v12454_v26 }
 0x493   : > { %12909 = vmatmul.mubr.bf16.gmra.mxu1 %v13487_v2  ;;  %v8675_v16 = vsel %vm13697_vm12, %v8673_v13, %v8674_v9  ;;  %v12577_v18 = vpop.f32.mrf.mxu0  ;;  %v8679_v36 = vsel %vm13697_vm12, %v11605_v27, %v8678_v3  ;;  %v8680_v58 = vrot.slane %v8678_v3, 4  ;;  %v13491_v26 = vld [vmem:[#allocation3 + $0x2a8] ss:$36 sps:$4 sm:$0xff]   ;;  %v13492_v27 = vld [vmem:[#allocation3 + $0x2f0] ss:$36 sps:$4 sm:$0xff]  }
 0x494   : > { %12912 = vmatprep.mubr.bf16.mxu1 %v13488_v49  ;;  %8749 = vst [vmem:[#allocation3 + $0x3ec] sm:$0xf] %v8675_v16  ;;  %v16554_v8 = vadd.f32 %v12577_v18, %v12576_v57  ;;  %v12459_v44 = vpop.f32.mrf.mxu1  ;;  %8750 = vst [vmem:[#allocation3 + $0x410] sm:$0xf] %v8679_v36  ;;  %v16569_v63 = vadd.f32 %v16512_v37, %v10364_v48  ;;  %v10367_v57 = vadd.f32 %v16330_v41, %v12457_v23 }
 0x495   : > { %v12579_v2 = vpop.f32.mrf.mxu0  ;;  %v12460_v55 = vadd.f32 %v12459_v44, %v12458_v14  ;;  %v8682_v54 = vsel %vm13697_vm12, %v8680_v58, %v8681_v24 }
 0x496   : > { %v12461_v5 = vpop.f32.mrf.mxu1  ;;  %8751 = vst [vmem:[#allocation3 + $0x434] sm:$0xf] %v8682_v54  ;;  %v16575_v18 = vadd.f32 %v16524_v59, %v10367_v57 }
 0x497   : > { %v12580_v20 = vpop.f32.mrf.mxu0  ;;  %v10372_v58 = vadd.f32 %v16330_v41, %v12460_v55 }
 0x498   : > { %v16563_v52 = vadd.f32 %v12580_v20, %v12579_v2  ;;  %v12462_v6 = vpop.f32.mrf.mxu1  ;;  %v13493_v20 = vld [vmem:[#allocation3 + $0x338] ss:$36 sps:$4 sm:$0xff]   ;;  %v13494_v59 = vld [vmem:[#allocation3 + $0x380] ss:$36 sps:$4 sm:$0xff]  }
 0x499   : > { %v12582_v34 = vpop.f32.mrf.mxu0  ;;  %v12463_v49 = vadd.f32 %v12462_v6, %v12461_v5 }
 0x49a   : > { %v12464_v1 = vpop.f32.mrf.mxu1 }
 0x49b   : > { %12913 = vmatmul.mubr.bf16.gmra.mxu1 %v13489_v17  ;;  %v12583_v40 = vpop.f32.mrf.mxu0  ;;  %v10375_v48 = vadd.f32 %v16330_v41, %v12463_v49 }
 0x49c   : > { %12916 = vmatprep.mubr.bf16.mxu1 %v13490_v19  ;;  %v16566_v46 = vadd.f32 %v12583_v40, %v12582_v34  ;;  %v12465_v47 = vpop.f32.mrf.mxu1  ;;  %v16583_v19 = vadd.f32 %v16532_v56, %v10372_v58 }
 0x49d   : > { %v12585_v50 = vpop.f32.mrf.mxu0  ;;  %v12466_v28 = vadd.f32 %v12465_v47, %v12464_v1  ;;  %v16593_v57 = vadd.f32 %v16543_v21, %v10375_v48 }
 0x49e   : > { %v12467_v13 = vpop.f32.mrf.mxu1 }
 0x49f   : > { %v12586_v9 = vpop.f32.mrf.mxu0  ;;  %v10380_v56 = vadd.f32 %v16330_v41, %v12466_v28 }
 0x4a0   : > { %v16572_v31 = vadd.f32 %v12586_v9, %v12585_v50  ;;  %v12468_v3 = vpop.f32.mrf.mxu1 }
 0x4a1   : > { %v12716_v14 = vpop.f32.mrf.mxu0  ;;  %v12469_v16 = vadd.f32 %v12468_v3, %v12467_v13  ;;  %v13496_v3 = vld [vmem:[#allocation3 + $0x410] ss:$36 sps:$4 sm:$0xff]   ;;  %v16602_v58 = vadd.f32 %v16554_v8, %v10380_v56 }
 0x4a2   : > { %v12470_v36 = vpop.f32.mrf.mxu1 }
 0x4a3   : > { %12917 = vmatmul.mubr.bf16.gmra.mxu1 %v13491_v26  ;;  %v12717_v37 = vpop.f32.mrf.mxu0  ;;  %v13495_v26 = vld [vmem:[#allocation3 + $0x3c8] ss:$36 sps:$4 sm:$0xff]   ;;  %v10383_v21 = vadd.f32 %v16330_v41, %v12469_v16 }
 0x4a4   : > { %12920 = vmatprep.mubr.bf16.mxu1 %v13492_v27  ;;  %v16578_v23 = vadd.f32 %v12717_v37, %v12716_v14  ;;  %v12471_v24 = vpop.f32.mrf.mxu1 }
 0x4a5   : > { %v12719_v44 = vpop.f32.mrf.mxu0  ;;  %v12472_v2 = vadd.f32 %v12471_v24, %v12470_v36  ;;  %v16614_v8 = vadd.f32 %v16563_v52, %v10383_v21 }
 0x4a6   : > { %v12473_v54 = vpop.f32.mrf.mxu1 }
 0x4a7   : > { %v12720_v5 = vpop.f32.mrf.mxu0 }
 0x4a8   : > { %v16580_v17 = vadd.f32 %v12720_v5, %v12719_v44  ;;  %v12474_v6 = vpop.f32.mrf.mxu1 }
 0x4a9   : > { %v16586_v34 = vpop.f32.mrf.mxu0  ;;  %v12475_v55 = vadd.f32 %v12474_v6, %v12473_v54 }
 0x4aa   : > { %v12604_v1 = vpop.f32.mrf.mxu1 }
 0x4ab   : > { %12921 = vmatmul.mubr.bf16.gmra.mxu1 %v13493_v20  ;;  %v16588_v40 = vpop.f32.mrf.mxu0  ;;  %v10391_v56 = vadd.f32 %v16330_v41, %v12475_v55 }
 0x4ac   : > { %12924 = vmatprep.mubr.bf16.mxu1 %v13494_v59  ;;  %v12605_v47 = vpop.f32.mrf.mxu1  ;;  %v10388_v59 = vadd.f32 %v16330_v41, %v12472_v2 }
 0x4ad   : > { %v16590_v50 = vpop.f32.mrf.mxu0  ;;  %v12606_v13 = vadd.f32 %v12605_v47, %v12604_v1  ;;  %v16635_v21 = vadd.f32 %v16572_v31, %v10391_v56 }
 0x4ae   : > { %v12607_v9 = vpop.f32.mrf.mxu1  ;;  %v16625_v2 = vadd.f32 %v16566_v46, %v10388_v59 }
 0x4af   : > { %v16596_v49 = vpop.f32.mrf.mxu0  ;;  %v10590_v27 = vadd.f32 %v12606_v13, %v16170_v0  ;;  %v13497_v0 = vld [vmem:[#allocation3 + $0x458] ss:$36 sps:$4 sm:$0xff]   ;;  %17124 = vst [vmem:[#allocation24_spill] sm:$0xff] %v16635_v21 }
 0x4b0   : > { %v12608_v14 = vpop.f32.mrf.mxu1  ;;  %17123 = vst [vmem:[#allocation21_spill] sm:$0xff] %v16625_v2 }
 0x4b1   : > { %v16599_v36 = vpop.f32.mrf.mxu0  ;;  %v12609_v37 = vadd.f32 %v12608_v14, %v12607_v9  ;;  %v16655_v56 = vadd.f32 %v16578_v23, %v10590_v27 }
 0x4b2   : > { %v12610_v28 = vpop.f32.mrf.mxu1 }
 0x4b3   : > { %12925 = vmatmul.mubr.bf16.gmra.mxu1 %v13495_v26  ;;  %v16605_v24 = vpop.f32.mrf.mxu0  ;;  %v10593_v44 = vadd.f32 %v12609_v37, %v16172_v39 }
 0x4b4   : > { %12928 = vmatprep.mubr.bf16.mxu1 %v13496_v3  ;;  %v12611_v54 = vpop.f32.mrf.mxu1 }
 0x4b5   : > { %v16608_v5 = vpop.f32.mrf.mxu0  ;;  %v12612_v20 = vadd.f32 %v12611_v54, %v12610_v28 }
 0x4b6   : > { %v12613_v48 = vpop.f32.mrf.mxu1 }
 0x4b7   : > { %v16611_v6 = vpop.f32.mrf.mxu0  ;;  %v16617_v16 = vadd.f32 %v12612_v20, %v16219_v45 }
 0x4b8   : > { %v12614_v1 = vpop.f32.mrf.mxu1 }
 0x4b9   : > { %v16619_v47 = vpop.f32.mrf.mxu0  ;;  %v12615_v39 = vadd.f32 %v12614_v1, %v12613_v48 }
 0x4ba   : > { %v12616_v13 = vpop.f32.mrf.mxu1 }
 0x4bb   : > { %12929 = vmatmul.mubr.bf16.gmra.mxu1 %v13497_v0  ;;  %v16622_v9 = vpop.f32.mrf.mxu0  ;;  %v16628_v26 = vadd.f32 %v12615_v39, %v16227_v35 }
 0x4bc   : > { %v12617_v52 = vpop.f32.mrf.mxu1 }
 0x4bd   : > { %v16630_v3 = vpop.f32.mrf.mxu0  ;;  %v12618_v45 = vadd.f32 %v12617_v52, %v12616_v13 }
 0x4be   : > { %v12619_v14 = vpop.f32.mrf.mxu1 }
 0x4bf   : > { %v16632_v37 = vpop.f32.mrf.mxu0  ;;  %v16638_v41 = vadd.f32 %v12618_v45, %v16235_v7 }
 0x4c0   : > { %v12620_v55 = vpop.f32.mrf.mxu1 }
 0x4c1   : > { %v16640_v28 = vpop.f32.mrf.mxu0  ;;  %v12621_v46 = vadd.f32 %v12620_v55, %v12619_v14  ;;  %v16663_v55 = vadd.f32 %v16580_v17, %v10593_v44 }
 0x4c2   : > { %v12622_v54 = vpop.f32.mrf.mxu1 }
 0x4c3   : > { %v16642_v35 = vpop.f32.mrf.mxu0  ;;  %v16645_v0 = vadd.f32 %v12621_v46, %v16238_v61 }
 0x4c4   : > { %v12623_v20 = vpop.f32.mrf.mxu1 }
 0x4c5   : > { %v16647_v59 = vpop.f32.mrf.mxu0  ;;  %v12624_v48 = vadd.f32 %v12623_v20, %v12622_v54 }
 0x4c6   : > { %v12625_v1 = vpop.f32.mrf.mxu1 }
 0x4c7   : > { %v16649_v31 = vpop.f32.mrf.mxu0  ;;  %v16652_v7 = vadd.f32 %v12624_v48, %v16441_v29 }
 0x4c8   : > { %v12626_v39 = vpop.f32.mrf.mxu1 }
 0x4c9   : > { %v12627_v13 = vadd.f32 %v12626_v39, %v12625_v1  ;;  %v16657_v45 = vpop.f32.mrf.mxu0 }
 0x4ca   : > { %v12628_v52 = vpop.f32.mrf.mxu1 }
 0x4cb   : > { %v16660_v61 = vadd.f32 %v12627_v13, %v16445_v42  ;;  %v16665_v20 = vpop.f32.mrf.mxu0 }
 0x4cc   : > { %v12629_v14 = vpop.f32.mrf.mxu1 }
 0x4cd   : > { %v12630_v46 = vadd.f32 %v12629_v14, %v12628_v52  ;;  %v16670_v1 = vpop.f32.mrf.mxu0 }
 0x4ce   : > { %v12631_v54 = vpop.f32.mrf.mxu1 }
 0x4cf   : > { %v16668_v29 = vadd.f32 %v12630_v46, %v16456_v22  ;;  %v16675_v17 = vpop.f32.mrf.mxu0 }
 0x4d0   : > { %v12632_v23 = vpop.f32.mrf.mxu1 }
 0x4d1   : > { %v12633_v27 = vadd.f32 %v12632_v23, %v12631_v54  ;;  %v16680_v22 = vpop.f32.mrf.mxu0 }
 0x4d2   : > { %v12634_v48 = vpop.f32.mrf.mxu1  ;;  %17126 = vst [vmem:[#allocation11_spill] sm:$0xff] %v16680_v22 }
 0x4d3   : > { %v16673_v39 = vadd.f32 %v12633_v27, %v16460_v25  ;;  %v16685_v25 = vpop.f32.mrf.mxu0 }
 0x4d4   : > { %v12635_v42 = vpop.f32.mrf.mxu1  ;;  %17127 = vst [vmem:[#allocation12_spill] sm:$0xff] %v16685_v25 }
 0x4d5   : > { %17125 = vst [vmem:[#allocation25_spill] sm:$0xff] %v16673_v39  ;;  %v12636_v13 = vadd.f32 %v12635_v42, %v12634_v48 }
 0x4d6   : > { %v12637_v21 = vpop.f32.mrf.mxu1 }
 0x4d7   : > { %v16678_v44 = vadd.f32 %v12636_v13, %v16466_v60  ;;  %v16690_v60 = vpop.f32.mrf.mxu0 }
 0x4d8   : > { %v12638_v52 = vpop.f32.mrf.mxu1  ;;  %17128 = vst [vmem:[#allocation26_spill] sm:$0xff] %v16690_v60 }
 0x4d9   : > { %v12639_v14 = vadd.f32 %v12638_v52, %v12637_v21  ;;  %v16695_v22 = vpop.f32.mrf.mxu0 }
 0x4da   : > { %v12640_v46 = vpop.f32.mrf.mxu1  ;;  %17130 = vst [vmem:[#allocation10_spill] sm:$0xff] %v16695_v22 }
 0x4db   : > { %v16683_v54 = vadd.f32 %v12639_v14, %v16470_v32  ;;  %v16700_v25 = vpop.f32.mrf.mxu0 }
 0x4dc   : > { %v12641_v23 = vpop.f32.mrf.mxu1 }
 0x4dd   : > { %v12642_v2 = vadd.f32 %v12641_v23, %v12640_v46 }
 0x4de   : > { %v12643_v27 = vpop.f32.mrf.mxu1 }
 0x4df   : > { %v16688_v48 = vadd.f32 %v12642_v2, %v16474_v15 }
 0x4e0   : > { %v12644_v42 = vpop.f32.mrf.mxu1 }
 0x4e1   : > { %v12645_v39 = vadd.f32 %v12644_v42, %v12643_v27  ;;  %v16705_v27 = vpop.f32.mrf.mxu0 }
 0x4e2   : > { %v12646_v13 = vpop.f32.mrf.mxu1 }
 0x4e3   : > { %v16693_v21 = vadd.f32 %v12645_v39, %v16478_v33 }
 0x4e4   : > { %v12647_v52 = vpop.f32.mrf.mxu1 }
 0x4e5   : > { %17129 = vst [vmem:[#allocation27_spill] sm:$0xff] %v16693_v21  ;;  %v12648_v32 = vadd.f32 %v12647_v52, %v12646_v13  ;;  %v16707_v21 = vpop.f32.mrf.mxu0 }
 0x4e6   : > { %v12649_v14 = vpop.f32.mrf.mxu1 }
 0x4e7   : > { %v16698_v46 = vadd.f32 %v12648_v32, %v16484_v4  ;;  %v16712_v32 = vpop.f32.mrf.mxu0 }
 0x4e8   : > { %v12650_v23 = vpop.f32.mrf.mxu1 }
 0x4e9   : > { %v12651_v15 = vadd.f32 %v12650_v23, %v12649_v14  ;;  %v16717_v23 = vpop.f32.mrf.mxu0 }
 0x4ea   : > { %v12652_v33 = vpop.f32.mrf.mxu1  ;;  %17134 = vst [vmem:[#allocation16_spill] sm:$0xff] %v16717_v23 }
 0x4eb   : > { %v16703_v2 = vadd.f32 %v12651_v15, %v16488_v10 }
 0x4ec   : > { %v12653_v39 = vpop.f32.mrf.mxu1 }
 0x4ed   : > { %17131 = vst [vmem:[#allocation13_spill] sm:$0xff] %v16703_v2  ;;  %v12654_v42 = vadd.f32 %v12653_v39, %v12652_v33  ;;  %v16719_v33 = vpop.f32.mrf.mxu0 }
 0x4ee   : > { %v12655_v22 = vpop.f32.mrf.mxu1 }
 0x4ef   : > { %v16710_v13 = vadd.f32 %v12654_v42, %v16492_v38 }
 0x4f0   : > { %v12656_v4 = vpop.f32.mrf.mxu1 }
 0x4f1   : > { %17132 = vst [vmem:[#allocation14_spill] sm:$0xff] %v16710_v13  ;;  %v12657_v52 = vadd.f32 %v12656_v4, %v12655_v22  ;;  %v16724_v13 = vpop.f32.mrf.mxu0 }
 0x4f2   : > { %v12658_v10 = vpop.f32.mrf.mxu1  ;;  %17136 = vst [vmem:[#allocation19_spill] sm:$0xff] %v16724_v13 }
 0x4f3   : > { %v16715_v14 = vadd.f32 %v12657_v52, %v16498_v53  ;;  %v16729_v4 = vpop.f32.mrf.mxu0 }
 0x4f4   : > { %v12659_v15 = vpop.f32.mrf.mxu1  ;;  %17138 = vst [vmem:[#allocation31_spill] sm:$0xff] %v16729_v4 }
 0x4f5   : > { %17133 = vst [vmem:[#allocation15_spill] sm:$0xff] %v16715_v14  ;;  %v12660_v2 = vadd.f32 %v12659_v15, %v12658_v10  ;;  %v16731_v10 = vpop.f32.mrf.mxu0 }
 0x4f6   : > { %v12661_v60 = vpop.f32.mrf.mxu1 }
 0x4f7   : > { %v16722_v39 = vadd.f32 %v12660_v2, %v16502_v11 }
 0x4f8   : > { %v12662_v38 = vpop.f32.mrf.mxu1 }
 0x4f9   : > { %17135 = vst [vmem:[#allocation17_spill] sm:$0xff] %v16722_v39  ;;  %v12663_v42 = vadd.f32 %v12662_v38, %v12661_v60  ;;  %v16736_v39 = vpop.f32.mrf.mxu0 }
 0x4fb   : > { %v16727_v22 = vadd.f32 %v12663_v42, %v16505_v30  ;;  %v16741_v38 = vpop.f32.mrf.mxu0 }
 0x4fd   : > { %17137 = vst [vmem:[#allocation18_spill] sm:$0xff] %v16727_v22 }
 0x4ff   : > { %v12664_v53 = vpop.f32.mrf.mxu1 }
 0x501   : > { %v12665_v52 = vpop.f32.mrf.mxu1 }
 0x502   : > { %v12666_v14 = vadd.f32 %v12665_v52, %v12664_v53  ;;  %v16746_v52 = vpop.f32.mrf.mxu0 }
 0x503   : > { %v12667_v23 = vpop.f32.mrf.mxu1 }
 0x504   : > { %v16734_v15 = vadd.f32 %v12666_v14, %v16519_v51 }
 0x505   : > { %v12668_v11 = vpop.f32.mrf.mxu1 }
 0x506   : > { %17139 = vst [vmem:[#allocation33_spill] sm:$0xff] %v16734_v15  ;;  %v12669_v2 = vadd.f32 %v12668_v11, %v12667_v23  ;;  %v16751_v11 = vpop.f32.mrf.mxu0 }
 0x508   : > { %v16739_v60 = vadd.f32 %v12669_v2, %v16537_v43  ;;  %v16753_v2 = vpop.f32.mrf.mxu0 }
 0x509   : > { %17143 = vst [vmem:[#allocation37_spill] sm:$0xff] %v16753_v2 }
 0x50a   : > { %17140 = vst [vmem:[#allocation34_spill] sm:$0xff] %v16739_v60 }
 0x50c   : > { %v12670_v30 = vpop.f32.mrf.mxu1 }
 0x50e   : > { %v12671_v42 = vpop.f32.mrf.mxu1 }
 0x50f   : > { %v12672_v22 = vadd.f32 %v12671_v42, %v12670_v30 }
 0x510   : > { %v12673_v4 = vpop.f32.mrf.mxu1 }
 0x511   : > { %v16744_v53 = vadd.f32 %v12672_v22, %v16550_v12  ;;  %v16758_v12 = vpop.f32.mrf.mxu0 }
 0x512   : > { %v12674_v51 = vpop.f32.mrf.mxu1 }
 0x513   : > { %17141 = vst [vmem:[#allocation20_spill] sm:$0xff] %v16744_v53  ;;  %v12675_v14 = vadd.f32 %v12674_v51, %v12673_v4 }
 0x515   : > { %v16749_v23 = vadd.f32 %v12675_v14, %v16561_v62  ;;  %v16763_v62 = vpop.f32.mrf.mxu0 }
 0x516   : > { %17146 = vst [vmem:[#allocation38_spill] sm:$0xff] %v16763_v62 }
 0x517   : > { %17142 = vst [vmem:[#allocation23_spill] sm:$0xff] %v16749_v23  ;;  %v16765_v23 = vpop.f32.mrf.mxu0 }
 0x519   : > { %v12676_v43 = vpop.f32.mrf.mxu1 }
 0x51b   : > { %v12677_v60 = vpop.f32.mrf.mxu1 }
 0x51c   : > { %v12678_v15 = vadd.f32 %v12677_v60, %v12676_v43 }
 0x51d   : > { %v12679_v13 = vpop.f32.mrf.mxu1 }
 0x51e   : > { %v16756_v30 = vadd.f32 %v12678_v15, %v16569_v63  ;;  %v16770_v15 = vpop.f32.mrf.mxu0 }
 0x51f   : > { %v12680_v22 = vpop.f32.mrf.mxu1 }
 0x520   : > { %17144 = vst [vmem:[#allocation22_spill] sm:$0xff] %v16756_v30  ;;  %v12681_v42 = vadd.f32 %v12680_v22, %v12679_v13  ;;  %v16775_v22 = vpop.f32.mrf.mxu0 }
 0x522   : > { %v16761_v4 = vadd.f32 %v12681_v42, %v16575_v18  ;;  %v16777_v62 = vpop.f32.mrf.mxu0 }
 0x524   : > { %17145 = vst [vmem:[#allocation5_spill] sm:$0xff] %v16761_v4 }
 0x526   : > { %v12682_v51 = vpop.f32.mrf.mxu1 }
 0x528   : > { %v12683_v14 = vpop.f32.mrf.mxu1 }
 0x529   : > { %v12684_v53 = vadd.f32 %v12683_v14, %v12682_v51 }
 0x52a   : > { %v12685_v2 = vpop.f32.mrf.mxu1 }
 0x52b   : > { %v16768_v60 = vadd.f32 %v12684_v53, %v16583_v19 }
 0x52c   : > { %v12686_v63 = vpop.f32.mrf.mxu1 }
 0x52d   : > { %v12687_v43 = vadd.f32 %v12686_v63, %v12685_v2  ;;  %v16784_v2 = vpop.f32.mrf.mxu0 }
 0x52f   : > { %v16773_v13 = vadd.f32 %v12687_v43, %v16593_v57 }
 0x531   : > { %17147 = vst [vmem:[#allocation28_spill] sm:$0xff] %v16773_v13 }
 0x533   : > { %v12688_v18 = vpop.f32.mrf.mxu1 }
 0x535   : > { %v12689_v42 = vpop.f32.mrf.mxu1 }
 0x536   : > { %v12690_v4 = vadd.f32 %v12689_v42, %v12688_v18  ;;  %v12724_v18 = vadd.f32 %v16588_v40, %v16586_v34 }
 0x537   : > { %v12691_v30 = vpop.f32.mrf.mxu1 }
 0x538   : > { %v16780_v51 = vadd.f32 %v12690_v4, %v16602_v58  ;;  %v16795_v58 = vpop.f32.mrf.mxu0  ;;  %v10759_v4 = vadd.f32 %v12724_v18, %v16617_v16 }
 0x539   : > { %v12692_v19 = vpop.f32.mrf.mxu1 }
 0x53a   : > { %17148 = vst [vmem:[#allocation29_spill] sm:$0xff] %v16780_v51  ;;  %v12693_v53 = vadd.f32 %v12692_v19, %v12691_v30  ;;  %v11040_v19 = vld [vmem:[%s13673_s20 + $0x10] sm:$0xff] }
 0x53b   : > { %v16782_v14 = vpop.f32.mrf.mxu1 }
 0x53c   : > { %v16787_v57 = vadd.f32 %v12693_v53, %v16614_v8  ;;  %v12727_v8 = vadd.f32 %v16596_v49, %v16590_v50  ;;  %v16803_v53 = vpop.f32.mrf.mxu0  ;;  %v11041_v50 = vld [vmem:[%s13673_s20 + $0x18] sm:$0xff]  ;;  %v12736_v49 = vadd.f32 %v16622_v9, %v16619_v47  ;;  %v12739_v9 = vadd.f32 %v16632_v37, %v16630_v3 }
 0x53d   : > { %v16789_v63 = vpop.f32.mrf.mxu1 }
 0x53e   : > { %17149 = vst [vmem:[#allocation30_spill] sm:$0xff] %v16787_v57  ;;  %v10762_v40 = vadd.f32 %v12727_v8, %v16628_v26  ;;  %v16818_v18 = vpop.f32.mrf.mxu0  ;;  %v12730_v26 = vadd.f32 %v16605_v24, %v16599_v36  ;;  %v10775_v47 = vadd.f32 %v12736_v49, %v16652_v7  ;;  %v11042_v7 = vld [vmem:[%s13673_s20 + $0x20] sm:$0xff] }
 0x53f   : > { %v16791_v43 = vpop.f32.mrf.mxu1 }
 0x540   : > { %17150 = vst [vmem:[#allocation32_spill] sm:$0xff] %v16791_v43  ;;  %v11038_v43 = vld [vmem:[%s13673_s20] sm:$0xff] }
 0x541   : > { %v16797_v30 = vpop.f32.mrf.mxu1 }
 0x542   : > { %17151 = vst [vmem:[#allocation35_spill] sm:$0xff] %v16797_v30 }
 0x543   : > { %v12902_v42 = vpop.f32.mrf.mxu1 }
 0x544   : > { %v10920_v57 = vadd.f32 %v12902_v42, %v10759_v4  ;;  %v11039_v42 = vld [vmem:[%s13673_s20 + $0x8] sm:$0xff] }
 0x545   : > { %v10911_v51 = vpop.f32.mrf.mxu1 }
 0x546   : > { %v11072_v13 = vadd.f32 %v11040_v19, %v10920_v57  ;;  %v10912_v34 = vadd.f32 %v10911_v51, %v16655_v56 }
 0x547   : > { %v12903_v16 = vpop.f32.mrf.mxu1 }
 0x548   : > { %v11104_v57 = vmax.f32 %v11072_v13, 0.0  ;;  %v11070_v56 = vadd.f32 %v11038_v43, %v10912_v34  ;;  %v10923_v51 = vadd.f32 %v12903_v16, %v10762_v40  ;;  %v11044_v43 = vld [vmem:[%s13673_s20 + $0x30] sm:$0xff]  ;;  %v16829_v34 = vpop.f32.mrf.mxu0  ;;  %v10767_v16 = vadd.f32 %v12730_v26, %v16638_v41 }
 0x549   : > { %v10914_v4 = vpop.f32.mrf.mxu1 }
 0x54a   : > { %11136 = vst [vmem:[%s16813_s24 + $0x10] sm:$0xff] %v11104_v57  ;;  %v11102_v19 = vmax.f32 %v11070_v56, 0.0  ;;  %v11073_v8 = vadd.f32 %v11041_v50, %v10923_v51  ;;  %v10915_v30 = vadd.f32 %v10914_v4, %v16663_v55  ;;  %v12733_v55 = vadd.f32 %v16611_v6, %v16608_v5  ;;  %v11045_v51 = vld [vmem:[%s13673_s20 + $0x38] sm:$0xff]  ;;  %v16841_v4 = vpop.f32.mrf.mxu0 }
 0x54b   : > { %v12906_v13 = vpop.f32.mrf.mxu1  ;;  %v10778_v57 = vadd.f32 %v12739_v9, %v16660_v61  ;;  %v12748_v56 = vadd.f32 %v16665_v20, %v16657_v45  ;;  %v11043_v61 = vld [vmem:[%s13673_s20 + $0x28] sm:$0xff]  ;;  %v12751_v9 = vadd.f32 %v16675_v17, %v16670_v1 }
 0x54c   : > { %11134 = vst [vmem:[%s16813_s24] sm:$0xff] %v11102_v19  ;;  %v11105_v36 = vmax.f32 %v11073_v8, 0.0  ;;  %v11071_v24 = vadd.f32 %v11039_v42, %v10915_v30  ;;  %v10936_v40 = vadd.f32 %v12906_v13, %v10775_v47  ;;  %v10770_v26 = vadd.f32 %v12733_v55, %v16645_v0  ;;  %v16853_v0 = vpop.f32.mrf.mxu0 }
 0x54d   : > { %v10927_v50 = vpop.f32.mrf.mxu1  ;;  %v12742_v42 = vadd.f32 %v16642_v35, %v16640_v28  ;;  %v10791_v47 = vadd.f32 %v12748_v56, %v16678_v44  ;;  %v11046_v44 = vld [vmem:[%s13673_s20 + $0x40] sm:$0xff] }
 0x54e   : > { %11137 = vst [vmem:[%s16813_s24 + $0x18] sm:$0xff] %v11105_v36  ;;  %v11103_v3 = vmax.f32 %v11071_v24, 0.0  ;;  %v11076_v37 = vadd.f32 %v11044_v43, %v10936_v40  ;;  %v10928_v49 = vadd.f32 %v10927_v50, %v10767_v16  ;;  %v11048_v43 = vld [vmem:[%s13673_s20 + $0x50] sm:$0xff]  ;;  %v12745_v40 = vadd.f32 %v16649_v31, %v16647_v59 }
 0x54f   : > { %v12907_v30 = vpop.f32.mrf.mxu1  ;;  %v10783_v24 = vadd.f32 %v12742_v42, %v16668_v29  ;;  %v10794_v50 = vadd.f32 %v12751_v9, %v16683_v54  ;;  %v12760_v29 = vadd.f32 %v16705_v27, %v16700_v25  ;;  %v11047_v54 = vld [vmem:[%s13673_s20 + $0x48] sm:$0xff] }
 0x550   : > { %11135 = vst [vmem:[%s16813_s24 + $0x8] sm:$0xff] %v11103_v3  ;;  %v11108_v5 = vmax.f32 %v11076_v37, 0.0  ;;  %v11074_v6 = vadd.f32 %v11042_v7, %v10928_v49  ;;  %v10939_v41 = vadd.f32 %v12907_v30, %v10778_v57  ;;  %v11049_v3 = vld [vmem:[%s13673_s20 + $0x58] sm:$0xff]  ;;  %v17152_v37 = vld [vmem:[#allocation25_spill] sm:$0xff]  ;;  %v16866_v57 = vpop.f32.mrf.mxu0  ;;  %v17153_v30 = vld [vmem:[#allocation11_spill] sm:$0xff] }
 0x551   : > { %v10930_v19 = vpop.f32.mrf.mxu1  ;;  %v10786_v49 = vadd.f32 %v12745_v40, %v17152_v37  ;;  %v10807_v25 = vadd.f32 %v12760_v29, %v16698_v46  ;;  %v11050_v46 = vld [vmem:[%s13673_s20 + $0x60] sm:$0xff]  ;;  %v17159_v37 = vld [vmem:[#allocation16_spill] sm:$0xff] }
 0x552   : > { %11140 = vst [vmem:[%s16813_s24 + $0x30] sm:$0xff] %v11108_v5  ;;  %v11106_v45 = vmax.f32 %v11074_v6, 0.0  ;;  %v11077_v20 = vadd.f32 %v11045_v51, %v10939_v41  ;;  %v10931_v8 = vadd.f32 %v10930_v19, %v10770_v26  ;;  %v17154_v51 = vld [vmem:[#allocation12_spill] sm:$0xff]  ;;  %v11052_v19 = vld [vmem:[%s13673_s20 + $0x70] sm:$0xff]  ;;  %v17157_v40 = vld [vmem:[#allocation13_spill] sm:$0xff] }
 0x553   : > { %v12910_v13 = vpop.f32.mrf.mxu1  ;;  %v12754_v5 = vadd.f32 %v17154_v51, %v17153_v30  ;;  %v17160_v51 = vld [vmem:[#allocation17_spill] sm:$0xff] }
 0x554   : > { %11138 = vst [vmem:[%s16813_s24 + $0x20] sm:$0xff] %v11106_v45  ;;  %v11109_v28 = vmax.f32 %v11077_v20, 0.0  ;;  %v11075_v35 = vadd.f32 %v11043_v61, %v10931_v8  ;;  %v10952_v36 = vadd.f32 %v12910_v13, %v10791_v47  ;;  %v12763_v45 = vadd.f32 %v16712_v32, %v16707_v21  ;;  %v16878_v20 = vpop.f32.mrf.mxu0  ;;  %v17155_v13 = vld [vmem:[#allocation26_spill] sm:$0xff] }
 0x555   : > { %v10943_v16 = vpop.f32.mrf.mxu1  ;;  %v10799_v61 = vadd.f32 %v12754_v5, %v16688_v48  ;;  %v11056_v5 = vld [vmem:[%s13673_s20 + $0x90] sm:$0xff] }
 0x556   : > { %11141 = vst [vmem:[%s16813_s24 + $0x38] sm:$0xff] %v11109_v28  ;;  %v11107_v1 = vmax.f32 %v11075_v35, 0.0  ;;  %v11080_v17 = vadd.f32 %v11048_v43, %v10952_v36  ;;  %v10944_v55 = vadd.f32 %v10943_v16, %v10783_v24  ;;  %v17156_v43 = vld [vmem:[#allocation10_spill] sm:$0xff]  ;;  %v10810_v21 = vadd.f32 %v12763_v45, %v17157_v40  ;;  %v11053_v16 = vld [vmem:[%s13673_s20 + $0x78] sm:$0xff] }
 0x557   : > { %v12911_v7 = vpop.f32.mrf.mxu1  ;;  %v12757_v28 = vadd.f32 %v17156_v43, %v17155_v13  ;;  %v17164_v43 = vld [vmem:[#allocation18_spill] sm:$0xff] }
 0x558   : > { %11139 = vst [vmem:[%s16813_s24 + $0x28] sm:$0xff] %v11107_v1  ;;  %v11112_v59 = vmax.f32 %v11080_v17, 0.0  ;;  %v11078_v31 = vadd.f32 %v11046_v44, %v10944_v55  ;;  %v10955_v56 = vadd.f32 %v12911_v7, %v10794_v50  ;;  %v17158_v44 = vld [vmem:[#allocation27_spill] sm:$0xff]  ;;  %v12772_v17 = vadd.f32 %v16736_v39, %v16731_v10  ;;  %v16890_v55 = vpop.f32.mrf.mxu0 }
 0x559   : > { %v10946_v6 = vpop.f32.mrf.mxu1  ;;  %v10802_v1 = vadd.f32 %v12757_v28, %v17158_v44  ;;  %v11057_v28 = vld [vmem:[%s13673_s20 + $0x98] sm:$0xff] }
 0x55a   : > { %11144 = vst [vmem:[%s16813_s24 + $0x50] sm:$0xff] %v11112_v59  ;;  %v11110_v41 = vmax.f32 %v11078_v31, 0.0  ;;  %v11081_v26 = vadd.f32 %v11049_v3, %v10955_v56  ;;  %v10947_v42 = vadd.f32 %v10946_v6, %v10786_v49  ;;  %v12766_v49 = vadd.f32 %v16719_v33, %v17159_v37  ;;  %v11051_v59 = vld [vmem:[%s13673_s20 + $0x68] sm:$0xff] }
 0x55b   : > { %v12914_v27 = vpop.f32.mrf.mxu1  ;;  %v10823_v39 = vadd.f32 %v12772_v17, %v17160_v51  ;;  %v17161_v6 = vld [vmem:[#allocation14_spill] sm:$0xff] }
 0x55c   : > { %11142 = vst [vmem:[%s16813_s24 + $0x40] sm:$0xff] %v11110_v41  ;;  %v11113_v8 = vmax.f32 %v11081_v26, 0.0  ;;  %v11079_v47 = vadd.f32 %v11047_v54, %v10947_v42  ;;  %v10968_v9 = vadd.f32 %v12914_v27, %v10807_v25  ;;  %v10815_v54 = vadd.f32 %v12766_v49, %v17161_v6  ;;  %v16902_v26 = vpop.f32.mrf.mxu0  ;;  %v17162_v27 = vld [vmem:[#allocation19_spill] sm:$0xff]  ;;  %v17169_v51 = vld [vmem:[#allocation38_spill] sm:$0xff] }
 0x55d   : > { %v10959_v35 = vpop.f32.mrf.mxu1  ;;  %v12775_v41 = vadd.f32 %v16746_v52, %v16741_v38  ;;  %v11060_v49 = vld [vmem:[%s13673_s20 + $0xb0] sm:$0xff] }
 0x55e   : > { %11145 = vst [vmem:[%s16813_s24 + $0x58] sm:$0xff] %v11113_v8  ;;  %v11111_v36 = vmax.f32 %v11079_v47, 0.0  ;;  %v11084_v48 = vadd.f32 %v11052_v19, %v10968_v9  ;;  %v10960_v24 = vadd.f32 %v10959_v35, %v10799_v61  ;;  %v17163_v19 = vld [vmem:[#allocation31_spill] sm:$0xff]  ;;  %v11054_v8 = vld [vmem:[%s13673_s20 + $0x80] sm:$0xff] }
 0x55f   : > { %v12915_v32 = vpop.f32.mrf.mxu1  ;;  %v12769_v61 = vadd.f32 %v17163_v19, %v17162_v27  ;;  %v10826_v38 = vadd.f32 %v12775_v41, %v17164_v43  ;;  %v17165_v35 = vld [vmem:[#allocation15_spill] sm:$0xff]  ;;  %v17171_v27 = vld [vmem:[#allocation34_spill] sm:$0xff] }
 0x560   : > { %11143 = vst [vmem:[%s16813_s24 + $0x48] sm:$0xff] %v11111_v36  ;;  %v11116_v50 = vmax.f32 %v11084_v48, 0.0  ;;  %v11082_v7 = vadd.f32 %v11050_v46, %v10960_v24  ;;  %v10971_v3 = vadd.f32 %v12915_v32, %v10810_v21  ;;  %v12784_v36 = vadd.f32 %v16770_v15, %v16765_v23  ;;  %v16914_v48 = vpop.f32.mrf.mxu0  ;;  %v17166_v32 = vld [vmem:[#allocation37_spill] sm:$0xff]  ;;  %v17167_v15 = vld [vmem:[#allocation20_spill] sm:$0xff]  ;;  %v11059_v43 = vld [vmem:[%s13673_s20 + $0xa8] sm:$0xff] }
 0x561   : > { %v10962_v29 = vpop.f32.mrf.mxu1  ;;  %v10818_v46 = vadd.f32 %v12769_v61, %v17165_v35  ;;  %v12796_v61 = vadd.f32 %v16841_v4, %v16829_v34  ;;  %v12799_v35 = vadd.f32 %v16866_v57, %v16853_v0  ;;  %v17174_v0 = vld [vmem:[#allocation28_spill] sm:$0xff] }
 0x562   : > { %11148 = vst [vmem:[%s16813_s24 + $0x70] sm:$0xff] %v11116_v50  ;;  %v11114_v31 = vmax.f32 %v11082_v7, 0.0  ;;  %v11085_v56 = vadd.f32 %v11053_v16, %v10971_v3  ;;  %v10963_v30 = vadd.f32 %v10962_v29, %v10802_v1  ;;  %v12778_v16 = vadd.f32 %v17166_v32, %v16751_v11  ;;  %v11055_v1 = vld [vmem:[%s13673_s20 + $0x88] sm:$0xff]  ;;  %v12806_v17 = vpop.f32.mrf.mxu0  ;;  %v17168_v29 = vld [vmem:[#allocation33_spill] sm:$0xff] }
 0x563   : > { %v12918_v10 = vpop.f32.mrf.mxu1  ;;  %v10839_v3 = vadd.f32 %v12784_v36, %v17167_v15  ;;  %v10855_v4 = vadd.f32 %v12796_v61, %v16768_v60  ;;  %v11064_v36 = vld [vmem:[%s13673_s20 + $0xd0] sm:$0xff]  ;;  %v10858_v57 = vadd.f32 %v12799_v35, %v17174_v0  ;;  %v11066_v61 = vld [vmem:[%s13673_s20 + $0xe0] sm:$0xff] }
 0x564   : > { %11146 = vst [vmem:[%s16813_s24 + $0x60] sm:$0xff] %v11114_v31  ;;  %v11117_v33 = vmax.f32 %v11085_v56, 0.0  ;;  %v11083_v42 = vadd.f32 %v11051_v59, %v10963_v30  ;;  %v10984_v25 = vadd.f32 %v12918_v10, %v10823_v39  ;;  %v10831_v59 = vadd.f32 %v12778_v16, %v17168_v29  ;;  %v12807_v6 = vpop.f32.mrf.mxu0  ;;  %v11065_v29 = vld [vmem:[%s13673_s20 + $0xd8] sm:$0xff] }
 0x565   : > { %v10975_v45 = vpop.f32.mrf.mxu1  ;;  %v12787_v31 = vadd.f32 %v16777_v62, %v16775_v22  ;;  %v12781_v39 = vadd.f32 %v17169_v51, %v16758_v12  ;;  %v11061_v22 = vld [vmem:[%s13673_s20 + $0xb8] sm:$0xff]  ;;  %v12808_v60 = vadd.f32 %v12807_v6, %v12806_v17  ;;  %v11063_v51 = vld [vmem:[%s13673_s20 + $0xc8] sm:$0xff] }
 0x566   : > { %11149 = vst [vmem:[%s16813_s24 + $0x78] sm:$0xff] %v11117_v33  ;;  %v11115_v47 = vmax.f32 %v11083_v42, 0.0  ;;  %v11088_v9 = vadd.f32 %v11056_v5, %v10984_v25  ;;  %v10976_v13 = vadd.f32 %v10975_v45, %v10815_v54  ;;  %v11058_v5 = vld [vmem:[%s13673_s20 + $0xa0] sm:$0xff]  ;;  %v17170_v42 = vld [vmem:[#allocation23_spill] sm:$0xff] }
 0x567   : > { %v12919_v52 = vpop.f32.mrf.mxu1  ;;  %v10842_v25 = vadd.f32 %v12787_v31, %v17170_v42  ;;  %v10834_v19 = vadd.f32 %v12781_v39, %v17171_v27  ;;  %v11068_v42 = vld [vmem:[%s13673_s20 + $0xf0] sm:$0xff]  ;;  %v12805_v27 = vadd.f32 %v16914_v48, %v16902_v26 }
 0x568   : > { %11147 = vst [vmem:[%s16813_s24 + $0x68] sm:$0xff] %v11115_v47  ;;  %v11120_v24 = vmax.f32 %v11088_v9, 0.0  ;;  %v11086_v40 = vadd.f32 %v11054_v8, %v10976_v13  ;;  %v10987_v21 = vadd.f32 %v12919_v52, %v10826_v38  ;;  %v12790_v47 = vadd.f32 %v16795_v58, %v16784_v2  ;;  %v12809_v38 = vpop.f32.mrf.mxu0 }
 0x569   : > { %v10978_v44 = vpop.f32.mrf.mxu1  ;;  %v12696_v9 = vadd.f32 %v16789_v63, %v16782_v14  ;;  %v17172_v63 = vld [vmem:[#allocation22_spill] sm:$0xff] }
 0x56a   : > { %11152 = vst [vmem:[%s16813_s24 + $0x90] sm:$0xff] %v11120_v24  ;;  %v11118_v50 = vmax.f32 %v11086_v40, 0.0  ;;  %v11089_v7 = vadd.f32 %v11057_v28, %v10987_v21  ;;  %v10979_v23 = vadd.f32 %v10978_v44, %v10818_v46  ;;  %v10847_v24 = vadd.f32 %v12790_v47, %v17172_v63  ;;  %v17173_v21 = vld [vmem:[#allocation21_spill] sm:$0xff] }
 0x56b   : > { %v12922_v37 = vpop.f32.mrf.mxu1  ;;  %v12793_v40 = vadd.f32 %v16818_v18, %v16803_v53  ;;  %v10710_v32 = vadd.f32 %v12696_v9, %v17173_v21  ;;  %v11062_v44 = vld [vmem:[%s13673_s20 + $0xc0] sm:$0xff] }
 0x56c   : > { %11150 = vst [vmem:[%s16813_s24 + $0x80] sm:$0xff] %v11118_v50  ;;  %v11121_v11 = vmax.f32 %v11089_v7, 0.0  ;;  %v11087_v56 = vadd.f32 %v11055_v1, %v10979_v23  ;;  %v11000_v30 = vadd.f32 %v12922_v37, %v10839_v3  ;;  %v17175_v1 = vld [vmem:[#allocation32_spill] sm:$0xff]  ;;  %v17176_v50 = vld [vmem:[#allocation35_spill] sm:$0xff]  ;;  %v12810_v23 = vpop.f32.mrf.mxu0 }
 0x56d   : > { %v10991_v10 = vpop.f32.mrf.mxu1  ;;  %v12699_v7 = vadd.f32 %v17176_v50, %v17175_v1  ;;  %v10871_v39 = vadd.f32 %v12808_v60, %v10710_v32 }
 0x56e   : > { %11153 = vst [vmem:[%s16813_s24 + $0x98] sm:$0xff] %v11121_v11  ;;  %v11119_v54 = vmax.f32 %v11087_v56, 0.0  ;;  %v11092_v41 = vadd.f32 %v11060_v49, %v11000_v30  ;;  %v10992_v33 = vadd.f32 %v10991_v10, %v10831_v59  ;;  %v17177_v59 = vld [vmem:[#allocation5_spill] sm:$0xff]  ;;  %v12802_v11 = vadd.f32 %v16890_v55, %v16878_v20  ;;  %v17178_v10 = vld [vmem:[#allocation24_spill] sm:$0xff] }
 0x56f   : > { %v12923_v62 = vpop.f32.mrf.mxu1  ;;  %v10850_v31 = vadd.f32 %v12793_v40, %v17177_v59  ;;  %v12811_v56 = vadd.f32 %v12810_v23, %v12809_v38  ;;  %v17179_v55 = vld [vmem:[#allocation29_spill] sm:$0xff] }
 0x570   : > { %11151 = vst [vmem:[%s16813_s24 + $0x88] sm:$0xff] %v11119_v54  ;;  %v11124_v12 = vmax.f32 %v11092_v41, 0.0  ;;  %v11090_v45 = vadd.f32 %v11058_v5, %v10992_v33  ;;  %v11003_v8 = vadd.f32 %v12923_v62, %v10842_v25  ;;  %v10713_v5 = vadd.f32 %v12699_v7, %v17178_v10 }
 0x571   : > { %v10994_v13 = vpop.f32.mrf.mxu1 }
 0x572   : > { %11156 = vst [vmem:[%s16813_s24 + $0xb0] sm:$0xff] %v11124_v12  ;;  %v11122_v52 = vmax.f32 %v11090_v45, 0.0  ;;  %v11093_v28 = vadd.f32 %v11061_v22, %v11003_v8  ;;  %v10995_v34 = vadd.f32 %v10994_v13, %v10834_v19  ;;  %v10863_v22 = vadd.f32 %v12802_v11, %v17179_v55  ;;  %v11069_v13 = vld [vmem:[%s13673_s20 + $0xf8] sm:$0xff] }
 0x573   : > { %v12926_v46 = vpop.f32.mrf.mxu1  ;;  %v10874_v47 = vadd.f32 %v12811_v56, %v10713_v5 }
 0x574   : > { %11154 = vst [vmem:[%s16813_s24 + $0xa0] sm:$0xff] %v11122_v52  ;;  %v11125_v2 = vmax.f32 %v11093_v28, 0.0  ;;  %v11091_v58 = vadd.f32 %v11059_v43, %v10995_v34  ;;  %v11016_v14 = vadd.f32 %v12926_v46, %v10855_v4  ;;  %v17180_v28 = vld [vmem:[#allocation30_spill] sm:$0xff] }
 0x575   : > { %v11007_v16 = vpop.f32.mrf.mxu1  ;;  %v10866_v26 = vadd.f32 %v12805_v27, %v17180_v28  ;;  %v11067_v34 = vld [vmem:[%s13673_s20 + $0xe8] sm:$0xff] }
 0x576   : > { %11157 = vst [vmem:[%s16813_s24 + $0xb8] sm:$0xff] %v11125_v2  ;;  %v11123_v15 = vmax.f32 %v11091_v58, 0.0  ;;  %v11096_v3 = vadd.f32 %v11064_v36, %v11016_v14  ;;  %v11008_v37 = vadd.f32 %v11007_v16, %v10847_v24 }
 0x577   : > { %v12927_v49 = vpop.f32.mrf.mxu1 }
 0x578   : > { %11155 = vst [vmem:[%s16813_s24 + $0xa8] sm:$0xff] %v11123_v15  ;;  %v11128_v53 = vmax.f32 %v11096_v3, 0.0  ;;  %v11094_v18 = vadd.f32 %v11062_v44, %v11008_v37  ;;  %v11019_v17 = vadd.f32 %v12927_v49, %v10858_v57 }
 0x579   : > { %v11010_v30 = vpop.f32.mrf.mxu1 }
 0x57a   : > { %11160 = vst [vmem:[%s16813_s24 + $0xd0] sm:$0xff] %v11128_v53  ;;  %v11126_v6 = vmax.f32 %v11094_v18, 0.0  ;;  %v11097_v54 = vadd.f32 %v11065_v29, %v11019_v17  ;;  %v11011_v41 = vadd.f32 %v11010_v30, %v10850_v31 }
 0x57b   : > { %v12930_v33 = vpop.f32.mrf.mxu1 }
 0x57c   : > { %11158 = vst [vmem:[%s16813_s24 + $0xc0] sm:$0xff] %v11126_v6  ;;  %v11129_v25 = vmax.f32 %v11097_v54, 0.0  ;;  %v11095_v62 = vadd.f32 %v11063_v51, %v11011_v41  ;;  %v11032_v20 = vadd.f32 %v12930_v33, %v10871_v39 }
 0x57d   : > { %v11023_v19 = vpop.f32.mrf.mxu1 }
 0x57e   : > { %11161 = vst [vmem:[%s16813_s24 + $0xd8] sm:$0xff] %v11129_v25  ;;  %v11127_v12 = vmax.f32 %v11095_v62, 0.0  ;;  %v11100_v45 = vadd.f32 %v11068_v42, %v11032_v20  ;;  %v11024_v8 = vadd.f32 %v11023_v19, %v10863_v22 }
 0x57f   : > { %v12931_v9 = vpop.f32.mrf.mxu1 }
 0x580   : > { %11159 = vst [vmem:[%s16813_s24 + $0xc8] sm:$0xff] %v11127_v12  ;;  %v11132_v43 = vmax.f32 %v11100_v45, 0.0  ;;  %v11098_v38 = vadd.f32 %v11066_v61, %v11024_v8  ;;  %v11035_v52 = vadd.f32 %v12931_v9, %v10874_v47 }
 0x581   : > { %v11026_v48 = vpop.f32.mrf.mxu1 }
 0x582   : > { %11164 = vst [vmem:[%s16813_s24 + $0xf0] sm:$0xff] %v11132_v43  ;;  %v11130_v4 = vmax.f32 %v11098_v38, 0.0  ;;  %v11101_v35 = vadd.f32 %v11069_v13, %v11035_v52  ;;  %v11027_v46 = vadd.f32 %v11026_v48, %v10866_v26 }
 0x584   : > { %11162 = vst [vmem:[%s16813_s24 + $0xe0] sm:$0xff] %v11130_v4  ;;  %v11133_v36 = vmax.f32 %v11101_v35, 0.0  ;;  %v11099_v2 = vadd.f32 %v11067_v34, %v11027_v46 }
 0x586   : > { %11165 = vst [vmem:[%s16813_s24 + $0xf8] sm:$0xff] %v11133_v36  ;;  %v11131_v58 = vmax.f32 %v11099_v2, 0.0 }
 0x588   : > { %11163 = vst [vmem:[%s16813_s24 + $0xe8] sm:$0xff] %v11131_v58 }
 0x589 PF: > { %s15_s18 = sadd.s32 1, %s13507_s18  }
 0x58a   : > { %p12_p4 = scmp.ge.s32.totalorder %s15_s18, 4  }
 0x58c   :  { %14 = sbr.rel (!%p12_p4) target bundleno = 1 (0x1), region = 73 }

</bundles_post_ra>
